<compile_context>
chip_gen: v7x
topology: tpu7x:2x2x1
jax: 0.10.0
libtpu: 0.0.40
codegen_flags: <defaults>
</compile_context>

<pallas_src>
import jax
import jax.numpy as jnp
from jax import lax
from jax.experimental import pallas as pl
from jax.experimental.pallas import tpu as pltpu

BN_EPS = 1e-5
NUM_CLASSES = 11

# (cin, cout, stride) of each conv_dw block (channels are hardcoded in the PyTorch module).
LAYER_CFG = [
    (32, 64, 1), (64, 128, 2), (128, 128, 1), (128, 256, 2),
    (256, 256, 1), (256, 256, 1), (256, 256, 1),
]


def _pad128(c):
    return ((c + 127) // 128) * 128


# ----------------------------- fused kernel body -----------------------------

def _dw_sep_block(x_ref, o_ref, wdw_ref, s1_ref, b1_ref, wpw_ref, s2_ref, b2_ref,
                  *, stride, Ho, Wo):
    """Fused conv_dw block: depthwise 3x3 (stride) + BN + ReLU6 + 1x1 pointwise + BN + ReLU6.

    x_ref: (Hi+2, Wi+2, C) f32 VMEM, spatially ring-padded input.
    o_ref: (Ho+2, Wo+2, N) f32 VMEM, ring-padded output (input of the next depthwise conv),
           or None for the last block, in which case the (1, N) channel-sum over all Ho*Wo
           output pixels is returned (feeds the adaptive average pool).
    """
    C = wdw_ref.shape[1]
    N = wpw_ref.shape[1]
    wpw = wpw_ref[...]
    s1, b1 = s1_ref[...], b1_ref[...]
    s2, b2 = s2_ref[...], b2_ref[...]

    if o_ref is not None:
        # zero the whole buffer once (padding ring); interior is overwritten below.
        o_ref[...] = jnp.zeros_like(o_ref)

    rg = 8 if Ho % 8 == 0 else Ho          # row group: bounds live vregs on the 16x16x128 block
    pooled = None
    for g in range(Ho // rg):
        r0 = g * rg
        # --- depthwise 3x3 + folded BN + ReLU6 (f32 elementwise; stride via strided loads) ---
        acc = jnp.zeros((rg, Wo, C), jnp.float32)
        for kh in range(3):
            for kw in range(3):
                if stride == 1:
                    tap = x_ref[r0 + kh:r0 + kh + rg, kw:kw + Wo, :]
                else:
                    tap = x_ref[pl.ds(stride * r0 + kh, rg, stride=stride),
                                pl.ds(kw, Wo, stride=stride), :]
                acc = acc + tap * wdw_ref[kh * 3 + kw:kh * 3 + kw + 1, :]
        h = jnp.clip(acc * s1 + b1, 0.0, 6.0).astype(jnp.bfloat16)

        # --- 1x1 pointwise conv (bf16 MXU, f32 accumulation) + folded BN + ReLU6 ---
        if Wo % 8 == 0:
            # one (rg*Wo, C) @ (C, N) matmul + one block store per row group
            y = jnp.dot(h.reshape(rg * Wo, C), wpw, preferred_element_type=jnp.float32)
            y = jnp.clip(y * s2 + b2, 0.0, 6.0)
            if o_ref is None:
                ps = jnp.sum(y, axis=0, keepdims=True)
                pooled = ps if pooled is None else pooled + ps
            else:
                o_ref[1 + r0:1 + r0 + rg, 1:1 + Wo, :] = y.reshape(rg, Wo, N)
        else:
            # Wo < 8 (4x4 spatial): per-spatial-row matmuls (tiny absolute work)
            for r in range(rg):
                yr = jnp.dot(h[r], wpw, preferred_element_type=jnp.float32)
                yr = jnp.clip(yr * s2 + b2, 0.0, 6.0)
                if o_ref is None:
                    ps = jnp.sum(yr, axis=0, keepdims=True)
                    pooled = ps if pooled is None else pooled + ps
                else:
                    o_ref[1 + r0 + r, 1:1 + Wo, :] = yr
    return pooled


def _make_fused_kernel(blocks, n_weights, H0, W0, C0):
    n_blocks = len(blocks)

    def kernel(*refs):
        p_ref = refs[0]
        wrefs = refs[1:1 + n_weights]
        o_ref = refs[1 + n_weights]
        acts = refs[2 + n_weights:]

        w0_ref, s0_ref, b0_ref = wrefs[0], wrefs[1], wrefs[2]
        fcw_ref, fcb_ref = wrefs[-2], wrefs[-1]

        # --- conv_bn(3, 32, stride=2): im2col patches @ W (bf16 MXU) + folded BN + ReLU6 ---
        a0 = acts[0]
        a0[...] = jnp.zeros_like(a0)                               # zero padding ring
        w0, s0, b0 = w0_ref[...], s0_ref[...], b0_ref[...]
        rg0 = 8 if H0 % 8 == 0 else H0
        for g in range(H0 // rg0):
            rows = p_ref[0, g * rg0 * W0:(g + 1) * rg0 * W0, :]    # (rg0*W0, Kp) bf16
            y = jnp.dot(rows, w0, preferred_element_type=jnp.float32)
            y = jnp.clip(y * s0 + b0, 0.0, 6.0)
            a0[1 + g * rg0:1 + (g + 1) * rg0, 1:1 + W0, :] = y.reshape(rg0, W0, C0)

        # --- 7 fused depthwise-separable blocks; activations stay in VMEM scratch ---
        x_ref = a0
        pooled = None
        for bi, blk in enumerate(blocks):
            base = 3 + 6 * bi
            wdw_ref, s1_ref, b1_ref, wpw_ref, s2_ref, b2_ref = wrefs[base:base + 6]
            last = bi == n_blocks - 1
            out_ref = None if last else acts[bi + 1]
            pooled = _dw_sep_block(x_ref, out_ref, wdw_ref, s1_ref, b1_ref,
                                   wpw_ref, s2_ref, b2_ref,
                                   stride=blk["stride"], Ho=blk["Ho"], Wo=blk["Wo"])
            x_ref = out_ref

        # --- AdaptiveAvgPool2d((1,1)) + Linear head (classes padded to 128 lanes) ---
        last_blk = blocks[-1]
        mean = pooled * (1.0 / (last_blk["Ho"] * last_blk["Wo"]))          # (1, 256) f32
        logits = jnp.dot(mean.astype(jnp.bfloat16), fcw_ref[...],
                         preferred_element_type=jnp.float32) + fcb_ref[...]
        o_ref[...] = logits.reshape(1, 1, logits.shape[-1])

    return kernel


# ----------------------------- pallas_call wrapper -----------------------------

def _replicated_spec(a):
    zeros = (0,) * a.ndim
    return pl.BlockSpec(a.shape, lambda i: zeros)


def fused_forward_call(patches, kp, B, H0, W0):
    # static per-block plan (spatial sizes and padded channel counts)
    blocks = []
    s = H0
    for (cin, cout, stride) in LAYER_CFG:
        ho = s // stride
        blocks.append(dict(stride=stride, Ho=ho, Wo=ho, C=_pad128(cin), N=_pad128(cout)))
        s = ho

    C0 = _pad128(32)
    # per-image ring-padded VMEM activation scratch: conv0 output + all but the last block
    act_shapes = [(H0 + 2, W0 + 2, C0)]
    for blk in blocks[:-1]:
        act_shapes.append((blk["Ho"] + 2, blk["Wo"] + 2, blk["N"]))

    weights = [kp["conv0"]["w"], kp["conv0"]["scale"], kp["conv0"]["bias"]]
    for lp in kp["dw"]:
        weights += [lp["w_dw"], lp["s1"], lp["b1"], lp["w_pw"], lp["s2"], lp["b2"]]
    weights += [kp["fc_w"], kp["fc_b"]]

    ncp = kp["fc_w"].shape[1]
    kernel = _make_fused_kernel(blocks, len(weights), H0, W0, C0)

    in_specs = [pl.BlockSpec((1, H0 * W0, patches.shape[2]), lambda i: (i, 0, 0))]
    in_specs += [_replicated_spec(a) for a in weights]

    return pl.pallas_call(
        kernel,
        out_shape=jax.ShapeDtypeStruct((B, 1, ncp), jnp.float32),
        grid=(B,),
        in_specs=in_specs,
        out_specs=pl.BlockSpec((1, 1, ncp), lambda i: (i, 0, 0)),
        scratch_shapes=[pltpu.VMEM(shp, jnp.float32) for shp in act_shapes],
        compiler_params=pltpu.CompilerParams(dimension_semantics=("parallel",)),
    )(patches, *weights)


def student_net_forward(x_nchw, kp):
    x = jnp.transpose(x_nchw, (0, 2, 3, 1)).astype(jnp.float32)     # NCHW -> NHWC
    B, H, W, _ = x.shape
    H0, W0 = H // 2, W // 2

    # conv0 im2col in the wrapper (tiny XLA glue); K padded to 128 -> lane-dense patch loads.
    xp = jnp.pad(x, ((0, 0), (1, 1), (1, 1), (0, 0)))
    taps = [xp[:, kh:kh + 2 * H0:2, kw:kw + 2 * W0:2, :]
            for kh in range(3) for kw in range(3)]
    patches = jnp.concatenate(taps, axis=-1).reshape(B, H0 * W0, 27)
    kdim = kp["conv0"]["w"].shape[0]
    patches = jnp.pad(patches, ((0, 0), (0, 0), (0, kdim - 27))).astype(jnp.bfloat16)

    logits_p = fused_forward_call(patches, kp, B, H0, W0)
    return logits_p[:, 0, :NUM_CLASSES]


# ----------------------------- parameters -----------------------------

def init_params(key):
    ks = iter(jax.random.split(key, 64))

    def bn_fold(k, c):
        k1, k2, k3, k4 = jax.random.split(k, 4)
        gamma = 1.0 + 0.1 * jax.random.normal(k1, (c,), jnp.float32)
        beta = 0.1 * jax.random.normal(k2, (c,), jnp.float32)
        mean = 0.1 * jax.random.normal(k3, (c,), jnp.float32)
        var = 0.5 + jnp.abs(jax.random.normal(k4, (c,), jnp.float32))
        scale = gamma * lax.rsqrt(var + BN_EPS)
        bias = beta - mean * scale
        return scale.reshape(1, c), bias.reshape(1, c)

    params = {}
    # conv_bn(3, 32, 2): weight in HWIO layout (3, 3, 3, 32)
    w0 = jax.random.normal(next(ks), (3, 3, 3, 32), jnp.float32) * (27 ** -0.5)
    s0, b0 = bn_fold(next(ks), 32)
    params["conv0"] = {"w": w0, "scale": s0, "bias": b0}

    dw = []
    for cin, cout, _stride in LAYER_CFG:
        wd = jax.random.normal(next(ks), (3, 3, cin), jnp.float32) * (1.0 / 3.0)
        s1, b1 = bn_fold(next(ks), cin)
        wp = jax.random.normal(next(ks), (cin, cout), jnp.float32) * (cin ** -0.5)
        s2, b2 = bn_fold(next(ks), cout)
        dw.append({"w_dw": wd, "scale1": s1, "bias1": b1,
                   "w_pw": wp, "scale2": s2, "bias2": b2})
    params["dw"] = dw

    params["fc_w"] = jax.random.normal(next(ks), (256, NUM_CLASSES), jnp.float32) * (256 ** -0.5)
    params["fc_b"] = 0.1 * jax.random.normal(next(ks), (1, NUM_CLASSES), jnp.float32)
    return params


def prepare_params(params):
    """Zero-pad channel (and conv0-K / class) dims to multiples of 128 and cast MXU weights to bf16.

    Padded channels stay exactly zero through the net because the padded scale/bias/weight
    rows and columns are all zero (ReLU6(0*0+0)=0) -- this invariant must be preserved.
    """
    def pad_last(a, n):
        return jnp.pad(a, [(0, 0)] * (a.ndim - 1) + [(0, n - a.shape[-1])])

    kp = {}
    c0p = _pad128(32)
    p = params["conv0"]
    w0 = p["w"].reshape(27, 32)
    w0 = jnp.pad(w0, ((0, 128 - 27), (0, c0p - 32))).astype(jnp.bfloat16)   # K: 27->128, N: 32->128
    kp["conv0"] = {"w": w0,
                   "scale": pad_last(p["scale"], c0p),
                   "bias": pad_last(p["bias"], c0p)}

    blocks = []
    for (cin, cout, _stride), lp in zip(LAYER_CFG, params["dw"]):
        cinp, coutp = _pad128(cin), _pad128(cout)
        blocks.append({
            "w_dw": pad_last(lp["w_dw"].reshape(9, cin), cinp),
            "s1": pad_last(lp["scale1"], cinp),
            "b1": pad_last(lp["bias1"], cinp),
            "w_pw": jnp.pad(lp["w_pw"],
                            ((0, cinp - cin), (0, coutp - cout))).astype(jnp.bfloat16),
            "s2": pad_last(lp["scale2"], coutp),
            "b2": pad_last(lp["bias2"], coutp),
        })
    kp["dw"] = blocks
    kp["fc_w"] = jnp.pad(params["fc_w"],
                         ((0, 0), (0, 128 - NUM_CLASSES))).astype(jnp.bfloat16)
    kp["fc_b"] = pad_last(params["fc_b"], 128)
    return kp


# ----------------------------- pure-JAX reference -----------------------------

def reference_forward(x_nchw, params):
    """Pure-JAX (XLA) reference; matmul/conv0 inputs cast to bf16 to mirror the kernel's MXU dtype."""
    def bn_relu6(y, s, b):
        return jnp.clip(y * s.reshape(1, 1, 1, -1) + b.reshape(1, 1, 1, -1), 0.0, 6.0)

    x = jnp.transpose(x_nchw, (0, 2, 3, 1)).astype(jnp.float32)
    p = params["conv0"]
    y = lax.conv_general_dilated(x.astype(jnp.bfloat16), p["w"].astype(jnp.bfloat16),
                                 (2, 2), ((1, 1), (1, 1)),
                                 dimension_numbers=("NHWC", "HWIO", "NHWC"),
                                 preferred_element_type=jnp.float32)
    x = bn_relu6(y, p["scale"], p["bias"])
    for (cin, _cout, stride), lp in zip(LAYER_CFG, params["dw"]):
        wdw = lp["w_dw"].reshape(3, 3, 1, cin)
        y = lax.conv_general_dilated(x, wdw, (stride, stride), ((1, 1), (1, 1)),
                                     dimension_numbers=("NHWC", "HWIO", "NHWC"),
                                     feature_group_count=cin,
                                     precision=lax.Precision.HIGHEST)
        x = bn_relu6(y, lp["scale1"], lp["bias1"])
        y = jnp.einsum("bhwc,cd->bhwd", x.astype(jnp.bfloat16),
                       lp["w_pw"].astype(jnp.bfloat16),
                       preferred_element_type=jnp.float32)
        x = bn_relu6(y, lp["scale2"], lp["bias2"])
    pooled = jnp.mean(x, axis=(1, 2))
    return jnp.dot(pooled.astype(jnp.bfloat16), params["fc_w"].astype(jnp.bfloat16),
                   preferred_element_type=jnp.float32) + params["fc_b"]


# ----------------------------- main -----------------------------

if __name__ == "__main__":
    key = jax.random.PRNGKey(0)
    pkey, xkey = jax.random.split(key)
    params = init_params(pkey)
    kparams = prepare_params(params)

    # Input matches the PyTorch NCHW convention: (batch=2, channels=3, 32, 32).
    x = jax.random.normal(xkey, (2, 3, 32, 32), jnp.float32)

    fwd = jax.jit(student_net_forward)
    logits = jax.block_until_ready(fwd(x, kparams))

    ref = reference_forward(x, params)
    assert logits.shape == (2, NUM_CLASSES), logits.shape
    assert bool(jnp.all(jnp.isfinite(logits)))
    assert bool(jnp.allclose(logits, ref, rtol=5e-3, atol=5e-3)), (logits, ref)

    print("KERNEL_OK")
</pallas_src>

<mosaic_0001>
module attributes {stable_mosaic.version = 11 : i64} {
  func.func @kernel(%arg0: i32, %arg1: memref<1x256x128xbf16, #tpu.memory_space<vmem>>, %arg2: memref<128x128xbf16, #tpu.memory_space<vmem>>, %arg3: memref<1x128xf32, #tpu.memory_space<vmem>>, %arg4: memref<1x128xf32, #tpu.memory_space<vmem>>, %arg5: memref<9x128xf32, #tpu.memory_space<vmem>>, %arg6: memref<1x128xf32, #tpu.memory_space<vmem>>, %arg7: memref<1x128xf32, #tpu.memory_space<vmem>>, %arg8: memref<128x128xbf16, #tpu.memory_space<vmem>>, %arg9: memref<1x128xf32, #tpu.memory_space<vmem>>, %arg10: memref<1x128xf32, #tpu.memory_space<vmem>>, %arg11: memref<9x128xf32, #tpu.memory_space<vmem>>, %arg12: memref<1x128xf32, #tpu.memory_space<vmem>>, %arg13: memref<1x128xf32, #tpu.memory_space<vmem>>, %arg14: memref<128x128xbf16, #tpu.memory_space<vmem>>, %arg15: memref<1x128xf32, #tpu.memory_space<vmem>>, %arg16: memref<1x128xf32, #tpu.memory_space<vmem>>, %arg17: memref<9x128xf32, #tpu.memory_space<vmem>>, %arg18: memref<1x128xf32, #tpu.memory_space<vmem>>, %arg19: memref<1x128xf32, #tpu.memory_space<vmem>>, %arg20: memref<128x128xbf16, #tpu.memory_space<vmem>>, %arg21: memref<1x128xf32, #tpu.memory_space<vmem>>, %arg22: memref<1x128xf32, #tpu.memory_space<vmem>>, %arg23: memref<9x128xf32, #tpu.memory_space<vmem>>, %arg24: memref<1x128xf32, #tpu.memory_space<vmem>>, %arg25: memref<1x128xf32, #tpu.memory_space<vmem>>, %arg26: memref<128x256xbf16, #tpu.memory_space<vmem>>, %arg27: memref<1x256xf32, #tpu.memory_space<vmem>>, %arg28: memref<1x256xf32, #tpu.memory_space<vmem>>, %arg29: memref<9x256xf32, #tpu.memory_space<vmem>>, %arg30: memref<1x256xf32, #tpu.memory_space<vmem>>, %arg31: memref<1x256xf32, #tpu.memory_space<vmem>>, %arg32: memref<256x256xbf16, #tpu.memory_space<vmem>>, %arg33: memref<1x256xf32, #tpu.memory_space<vmem>>, %arg34: memref<1x256xf32, #tpu.memory_space<vmem>>, %arg35: memref<9x256xf32, #tpu.memory_space<vmem>>, %arg36: memref<1x256xf32, #tpu.memory_space<vmem>>, %arg37: memref<1x256xf32, #tpu.memory_space<vmem>>, %arg38: memref<256x256xbf16, #tpu.memory_space<vmem>>, %arg39: memref<1x256xf32, #tpu.memory_space<vmem>>, %arg40: memref<1x256xf32, #tpu.memory_space<vmem>>, %arg41: memref<9x256xf32, #tpu.memory_space<vmem>>, %arg42: memref<1x256xf32, #tpu.memory_space<vmem>>, %arg43: memref<1x256xf32, #tpu.memory_space<vmem>>, %arg44: memref<256x256xbf16, #tpu.memory_space<vmem>>, %arg45: memref<1x256xf32, #tpu.memory_space<vmem>>, %arg46: memref<1x256xf32, #tpu.memory_space<vmem>>, %arg47: memref<256x128xbf16, #tpu.memory_space<vmem>>, %arg48: memref<1x128xf32, #tpu.memory_space<vmem>>, %arg49: memref<1x1x128xf32, #tpu.memory_space<vmem>>, %arg50: memref<18x18x128xf32, #tpu.memory_space<vmem>>, %arg51: memref<18x18x128xf32, #tpu.memory_space<vmem>>, %arg52: memref<10x10x128xf32, #tpu.memory_space<vmem>>, %arg53: memref<10x10x128xf32, #tpu.memory_space<vmem>>, %arg54: memref<6x6x256xf32, #tpu.memory_space<vmem>>, %arg55: memref<6x6x256xf32, #tpu.memory_space<vmem>>, %arg56: memref<6x6x256xf32, #tpu.memory_space<vmem>>) attributes {dimension_semantics = [#tpu.dimension_semantics<parallel>], iteration_bounds = array<i64: 2>, scalar_prefetch = 0 : i64, scratch_operands = 7 : i64, tpu.core_type = #tpu.core_type<tc>, window_params = [{transform_indices = @transform_0, window_bounds = array<i64: 1, 256, 128>}, {pipeline_mode = #tpu.pipeline_mode<synchronous>, transform_indices = @transform_1, window_bounds = array<i64: 128, 128>}, {pipeline_mode = #tpu.pipeline_mode<synchronous>, transform_indices = @transform_2, window_bounds = array<i64: 1, 128>}, {pipeline_mode = #tpu.pipeline_mode<synchronous>, transform_indices = @transform_3, window_bounds = array<i64: 1, 128>}, {pipeline_mode = #tpu.pipeline_mode<synchronous>, transform_indices = @transform_4, window_bounds = array<i64: 9, 128>}, {pipeline_mode = #tpu.pipeline_mode<synchronous>, transform_indices = @transform_5, window_bounds = array<i64: 1, 128>}, {pipeline_mode = #tpu.pipeline_mode<synchronous>, transform_indices = @transform_6, window_bounds = array<i64: 1, 128>}, {pipeline_mode = #tpu.pipeline_mode<synchronous>, transform_indices = @transform_7, window_bounds = array<i64: 128, 128>}, {pipeline_mode = #tpu.pipeline_mode<synchronous>, transform_indices = @transform_8, window_bounds = array<i64: 1, 128>}, {pipeline_mode = #tpu.pipeline_mode<synchronous>, transform_indices = @transform_9, window_bounds = array<i64: 1, 128>}, {pipeline_mode = #tpu.pipeline_mode<synchronous>, transform_indices = @transform_10, window_bounds = array<i64: 9, 128>}, {pipeline_mode = #tpu.pipeline_mode<synchronous>, transform_indices = @transform_11, window_bounds = array<i64: 1, 128>}, {pipeline_mode = #tpu.pipeline_mode<synchronous>, transform_indices = @transform_12, window_bounds = array<i64: 1, 128>}, {pipeline_mode = #tpu.pipeline_mode<synchronous>, transform_indices = @transform_13, window_bounds = array<i64: 128, 128>}, {pipeline_mode = #tpu.pipeline_mode<synchronous>, transform_indices = @transform_14, window_bounds = array<i64: 1, 128>}, {pipeline_mode = #tpu.pipeline_mode<synchronous>, transform_indices = @transform_15, window_bounds = array<i64: 1, 128>}, {pipeline_mode = #tpu.pipeline_mode<synchronous>, transform_indices = @transform_16, window_bounds = array<i64: 9, 128>}, {pipeline_mode = #tpu.pipeline_mode<synchronous>, transform_indices = @transform_17, window_bounds = array<i64: 1, 128>}, {pipeline_mode = #tpu.pipeline_mode<synchronous>, transform_indices = @transform_18, window_bounds = array<i64: 1, 128>}, {pipeline_mode = #tpu.pipeline_mode<synchronous>, transform_indices = @transform_19, window_bounds = array<i64: 128, 128>}, {pipeline_mode = #tpu.pipeline_mode<synchronous>, transform_indices = @transform_20, window_bounds = array<i64: 1, 128>}, {pipeline_mode = #tpu.pipeline_mode<synchronous>, transform_indices = @transform_21, window_bounds = array<i64: 1, 128>}, {pipeline_mode = #tpu.pipeline_mode<synchronous>, transform_indices = @transform_22, window_bounds = array<i64: 9, 128>}, {pipeline_mode = #tpu.pipeline_mode<synchronous>, transform_indices = @transform_23, window_bounds = array<i64: 1, 128>}, {pipeline_mode = #tpu.pipeline_mode<synchronous>, transform_indices = @transform_24, window_bounds = array<i64: 1, 128>}, {pipeline_mode = #tpu.pipeline_mode<synchronous>, transform_indices = @transform_25, window_bounds = array<i64: 128, 256>}, {pipeline_mode = #tpu.pipeline_mode<synchronous>, transform_indices = @transform_26, window_bounds = array<i64: 1, 256>}, {pipeline_mode = #tpu.pipeline_mode<synchronous>, transform_indices = @transform_27, window_bounds = array<i64: 1, 256>}, {pipeline_mode = #tpu.pipeline_mode<synchronous>, transform_indices = @transform_28, window_bounds = array<i64: 9, 256>}, {pipeline_mode = #tpu.pipeline_mode<synchronous>, transform_indices = @transform_29, window_bounds = array<i64: 1, 256>}, {pipeline_mode = #tpu.pipeline_mode<synchronous>, transform_indices = @transform_30, window_bounds = array<i64: 1, 256>}, {pipeline_mode = #tpu.pipeline_mode<synchronous>, transform_indices = @transform_31, window_bounds = array<i64: 256, 256>}, {pipeline_mode = #tpu.pipeline_mode<synchronous>, transform_indices = @transform_32, window_bounds = array<i64: 1, 256>}, {pipeline_mode = #tpu.pipeline_mode<synchronous>, transform_indices = @transform_33, window_bounds = array<i64: 1, 256>}, {pipeline_mode = #tpu.pipeline_mode<synchronous>, transform_indices = @transform_34, window_bounds = array<i64: 9, 256>}, {pipeline_mode = #tpu.pipeline_mode<synchronous>, transform_indices = @transform_35, window_bounds = array<i64: 1, 256>}, {pipeline_mode = #tpu.pipeline_mode<synchronous>, transform_indices = @transform_36, window_bounds = array<i64: 1, 256>}, {pipeline_mode = #tpu.pipeline_mode<synchronous>, transform_indices = @transform_37, window_bounds = array<i64: 256, 256>}, {pipeline_mode = #tpu.pipeline_mode<synchronous>, transform_indices = @transform_38, window_bounds = array<i64: 1, 256>}, {pipeline_mode = #tpu.pipeline_mode<synchronous>, transform_indices = @transform_39, window_bounds = array<i64: 1, 256>}, {pipeline_mode = #tpu.pipeline_mode<synchronous>, transform_indices = @transform_40, window_bounds = array<i64: 9, 256>}, {pipeline_mode = #tpu.pipeline_mode<synchronous>, transform_indices = @transform_41, window_bounds = array<i64: 1, 256>}, {pipeline_mode = #tpu.pipeline_mode<synchronous>, transform_indices = @transform_42, window_bounds = array<i64: 1, 256>}, {pipeline_mode = #tpu.pipeline_mode<synchronous>, transform_indices = @transform_43, window_bounds = array<i64: 256, 256>}, {pipeline_mode = #tpu.pipeline_mode<synchronous>, transform_indices = @transform_44, window_bounds = array<i64: 1, 256>}, {pipeline_mode = #tpu.pipeline_mode<synchronous>, transform_indices = @transform_45, window_bounds = array<i64: 1, 256>}, {pipeline_mode = #tpu.pipeline_mode<synchronous>, transform_indices = @transform_46, window_bounds = array<i64: 256, 128>}, {pipeline_mode = #tpu.pipeline_mode<synchronous>, transform_indices = @transform_47, window_bounds = array<i64: 1, 128>}, {transform_indices = @transform_48, window_bounds = array<i64: 1, 1, 128>}]} {
    %cst = arith.constant 0.000000e+00 : f32
    %0 = vector.broadcast %cst : f32 to vector<18x18x128xf32>
    %c0 = arith.constant 0 : index
    %c0_0 = arith.constant 0 : index
    %c0_1 = arith.constant 0 : index
    %1 = vector.load %arg50[%c0, %c0_0, %c0_1] : memref<18x18x128xf32, #tpu.memory_space<vmem>>, vector<18x18x128xf32>
    tpu.vector_store %arg50[%c0, %c0_0, %c0_1], %0 {strides = array<i32>} : memref<18x18x128xf32, #tpu.memory_space<vmem>>, vector<18x18x128xf32>,
    %c0_2 = arith.constant 0 : index
    %c0_3 = arith.constant 0 : index
    %2 = vector.load %arg2[%c0_2, %c0_3] : memref<128x128xbf16, #tpu.memory_space<vmem>>, vector<128x128xbf16>
    %c0_4 = arith.constant 0 : index
    %c0_5 = arith.constant 0 : index
    %3 = vector.load %arg3[%c0_4, %c0_5] : memref<1x128xf32, #tpu.memory_space<vmem>>, vector<1x128xf32>
    %c0_6 = arith.constant 0 : index
    %c0_7 = arith.constant 0 : index
    %4 = vector.load %arg4[%c0_6, %c0_7] : memref<1x128xf32, #tpu.memory_space<vmem>>, vector<1x128xf32>
    %c0_8 = arith.constant 0 : index
    %c0_9 = arith.constant 0 : index
    %c0_10 = arith.constant 0 : index
    %5 = vector.load %arg1[%c0_8, %c0_9, %c0_10] : memref<1x256x128xbf16, #tpu.memory_space<vmem>>, vector<1x128x128xbf16>
    %6 = vector.shape_cast %5 : vector<1x128x128xbf16> to vector<128x128xbf16>
    %cst_11 = arith.constant dense<0.000000e+00> : vector<128x128xf32>
    %7 = tpu.matmul %6, %2, %cst_11 {dimension_numbers = #tpu.dot_dimension_numbers<[1], [0], [0], [1], [0, 0, 1, 1], [], []>} : vector<128x128xbf16>, vector<128x128xbf16>, vector<128x128xf32> -> vector<128x128xf32>
    %8 = vector.broadcast %3 : vector<1x128xf32> to vector<128x128xf32>
    %9 = arith.mulf %7, %8 : vector<128x128xf32>
    %10 = vector.broadcast %4 : vector<1x128xf32> to vector<128x128xf32>
    %11 = arith.addf %9, %10 : vector<128x128xf32>
    %cst_12 = arith.constant 0.000000e+00 : f32
    %cst_13 = arith.constant 6.000000e+00 : f32
    %12 = vector.broadcast %cst_12 : f32 to vector<128x128xf32>
    %13 = arith.maximumf %12, %11 : vector<128x128xf32>
    %14 = vector.broadcast %cst_13 : f32 to vector<128x128xf32>
    %15 = arith.minimumf %14, %13 : vector<128x128xf32>
    %16 = vector.shape_cast %15 : vector<128x128xf32> to vector<8x16x128xf32>
    %c1 = arith.constant 1 : index
    %c1_14 = arith.constant 1 : index
    %c0_15 = arith.constant 0 : index
    %17 = vector.load %arg50[%c1, %c1_14, %c0_15] : memref<18x18x128xf32, #tpu.memory_space<vmem>>, vector<8x16x128xf32>
    tpu.vector_store %arg50[%c1, %c1_14, %c0_15], %16 {strides = array<i32>} : memref<18x18x128xf32, #tpu.memory_space<vmem>>, vector<8x16x128xf32>,
    %c0_16 = arith.constant 0 : index
    %c128 = arith.constant 128 : index
    %c0_17 = arith.constant 0 : index
    %18 = vector.load %arg1[%c0_16, %c128, %c0_17] : memref<1x256x128xbf16, #tpu.memory_space<vmem>>, vector<1x128x128xbf16>
    %19 = vector.shape_cast %18 : vector<1x128x128xbf16> to vector<128x128xbf16>
    %cst_18 = arith.constant dense<0.000000e+00> : vector<128x128xf32>
    %20 = tpu.matmul %19, %2, %cst_18 {dimension_numbers = #tpu.dot_dimension_numbers<[1], [0], [0], [1], [0, 0, 1, 1], [], []>} : vector<128x128xbf16>, vector<128x128xbf16>, vector<128x128xf32> -> vector<128x128xf32>
    %21 = vector.broadcast %3 : vector<1x128xf32> to vector<128x128xf32>
    %22 = arith.mulf %20, %21 : vector<128x128xf32>
    %23 = vector.broadcast %4 : vector<1x128xf32> to vector<128x128xf32>
    %24 = arith.addf %22, %23 : vector<128x128xf32>
    %cst_19 = arith.constant 0.000000e+00 : f32
    %cst_20 = arith.constant 6.000000e+00 : f32
    %25 = vector.broadcast %cst_19 : f32 to vector<128x128xf32>
    %26 = arith.maximumf %25, %24 : vector<128x128xf32>
    %27 = vector.broadcast %cst_20 : f32 to vector<128x128xf32>
    %28 = arith.minimumf %27, %26 : vector<128x128xf32>
    %29 = vector.shape_cast %28 : vector<128x128xf32> to vector<8x16x128xf32>
    %c9 = arith.constant 9 : index
    %c1_21 = arith.constant 1 : index
    %c0_22 = arith.constant 0 : index
    %30 = vector.load %arg50[%c9, %c1_21, %c0_22] : memref<18x18x128xf32, #tpu.memory_space<vmem>>, vector<8x16x128xf32>
    tpu.vector_store %arg50[%c9, %c1_21, %c0_22], %29 {strides = array<i32>} : memref<18x18x128xf32, #tpu.memory_space<vmem>>, vector<8x16x128xf32>,
    %c0_23 = arith.constant 0 : index
    %c0_24 = arith.constant 0 : index
    %31 = vector.load %arg8[%c0_23, %c0_24] : memref<128x128xbf16, #tpu.memory_space<vmem>>, vector<128x128xbf16>
    %c0_25 = arith.constant 0 : index
    %c0_26 = arith.constant 0 : index
    %32 = vector.load %arg6[%c0_25, %c0_26] : memref<1x128xf32, #tpu.memory_space<vmem>>, vector<1x128xf32>
    %c0_27 = arith.constant 0 : index
    %c0_28 = arith.constant 0 : index
    %33 = vector.load %arg7[%c0_27, %c0_28] : memref<1x128xf32, #tpu.memory_space<vmem>>, vector<1x128xf32>
    %c0_29 = arith.constant 0 : index
    %c0_30 = arith.constant 0 : index
    %34 = vector.load %arg9[%c0_29, %c0_30] : memref<1x128xf32, #tpu.memory_space<vmem>>, vector<1x128xf32>
    %c0_31 = arith.constant 0 : index
    %c0_32 = arith.constant 0 : index
    %35 = vector.load %arg10[%c0_31, %c0_32] : memref<1x128xf32, #tpu.memory_space<vmem>>, vector<1x128xf32>
    %cst_33 = arith.constant 0.000000e+00 : f32
    %36 = vector.broadcast %cst_33 : f32 to vector<18x18x128xf32>
    %c0_34 = arith.constant 0 : index
    %c0_35 = arith.constant 0 : index
    %c0_36 = arith.constant 0 : index
    %37 = vector.load %arg51[%c0_34, %c0_35, %c0_36] : memref<18x18x128xf32, #tpu.memory_space<vmem>>, vector<18x18x128xf32>
    tpu.vector_store %arg51[%c0_34, %c0_35, %c0_36], %36 {strides = array<i32>} : memref<18x18x128xf32, #tpu.memory_space<vmem>>, vector<18x18x128xf32>,
    %cst_37 = arith.constant 0.000000e+00 : f32
    %38 = vector.broadcast %cst_37 : f32 to vector<8x16x128xf32>
    %c0_38 = arith.constant 0 : index
    %c0_39 = arith.constant 0 : index
    %c0_40 = arith.constant 0 : index
    %39 = vector.load %arg50[%c0_38, %c0_39, %c0_40] : memref<18x18x128xf32, #tpu.memory_space<vmem>>, vector<8x16x128xf32>
    %c0_41 = arith.constant 0 : index
    %c0_42 = arith.constant 0 : index
    %40 = vector.load %arg5[%c0_41, %c0_42] : memref<9x128xf32, #tpu.memory_space<vmem>>, vector<1x128xf32>
    %41 = vector.shape_cast %40 : vector<1x128xf32> to vector<1x1x128xf32>
    %42 = vector.broadcast %41 : vector<1x1x128xf32> to vector<8x16x128xf32>
    %43 = arith.mulf %39, %42 : vector<8x16x128xf32>
    %44 = arith.addf %38, %43 : vector<8x16x128xf32>
    %c0_43 = arith.constant 0 : index
    %c1_44 = arith.constant 1 : index
    %c0_45 = arith.constant 0 : index
    %45 = vector.load %arg50[%c0_43, %c1_44, %c0_45] : memref<18x18x128xf32, #tpu.memory_space<vmem>>, vector<8x16x128xf32>
    %c1_46 = arith.constant 1 : index
    %c0_47 = arith.constant 0 : index
    %46 = vector.load %arg5[%c1_46, %c0_47] : memref<9x128xf32, #tpu.memory_space<vmem>>, vector<1x128xf32>
    %47 = vector.shape_cast %46 : vector<1x128xf32> to vector<1x1x128xf32>
    %48 = vector.broadcast %47 : vector<1x1x128xf32> to vector<8x16x128xf32>
    %49 = arith.mulf %45, %48 : vector<8x16x128xf32>
    %50 = arith.addf %44, %49 : vector<8x16x128xf32>
    %c0_48 = arith.constant 0 : index
    %c2 = arith.constant 2 : index
    %c0_49 = arith.constant 0 : index
    %51 = vector.load %arg50[%c0_48, %c2, %c0_49] : memref<18x18x128xf32, #tpu.memory_space<vmem>>, vector<8x16x128xf32>
    %c2_50 = arith.constant 2 : index
    %c0_51 = arith.constant 0 : index
    %52 = vector.load %arg5[%c2_50, %c0_51] : memref<9x128xf32, #tpu.memory_space<vmem>>, vector<1x128xf32>
    %53 = vector.shape_cast %52 : vector<1x128xf32> to vector<1x1x128xf32>
    %54 = vector.broadcast %53 : vector<1x1x128xf32> to vector<8x16x128xf32>
    %55 = arith.mulf %51, %54 : vector<8x16x128xf32>
    %56 = arith.addf %50, %55 : vector<8x16x128xf32>
    %c1_52 = arith.constant 1 : index
    %c0_53 = arith.constant 0 : index
    %c0_54 = arith.constant 0 : index
    %57 = vector.load %arg50[%c1_52, %c0_53, %c0_54] : memref<18x18x128xf32, #tpu.memory_space<vmem>>, vector<8x16x128xf32>
    %c3 = arith.constant 3 : index
    %c0_55 = arith.constant 0 : index
    %58 = vector.load %arg5[%c3, %c0_55] : memref<9x128xf32, #tpu.memory_space<vmem>>, vector<1x128xf32>
    %59 = vector.shape_cast %58 : vector<1x128xf32> to vector<1x1x128xf32>
    %60 = vector.broadcast %59 : vector<1x1x128xf32> to vector<8x16x128xf32>
    %61 = arith.mulf %57, %60 : vector<8x16x128xf32>
    %62 = arith.addf %56, %61 : vector<8x16x128xf32>
    %c1_56 = arith.constant 1 : index
    %c1_57 = arith.constant 1 : index
    %c0_58 = arith.constant 0 : index
    %63 = vector.load %arg50[%c1_56, %c1_57, %c0_58] : memref<18x18x128xf32, #tpu.memory_space<vmem>>, vector<8x16x128xf32>
    %c4 = arith.constant 4 : index
    %c0_59 = arith.constant 0 : index
    %64 = vector.load %arg5[%c4, %c0_59] : memref<9x128xf32, #tpu.memory_space<vmem>>, vector<1x128xf32>
    %65 = vector.shape_cast %64 : vector<1x128xf32> to vector<1x1x128xf32>
    %66 = vector.broadcast %65 : vector<1x1x128xf32> to vector<8x16x128xf32>
    %67 = arith.mulf %63, %66 : vector<8x16x128xf32>
    %68 = arith.addf %62, %67 : vector<8x16x128xf32>
    %c1_60 = arith.constant 1 : index
    %c2_61 = arith.constant 2 : index
    %c0_62 = arith.constant 0 : index
    %69 = vector.load %arg50[%c1_60, %c2_61, %c0_62] : memref<18x18x128xf32, #tpu.memory_space<vmem>>, vector<8x16x128xf32>
    %c5 = arith.constant 5 : index
    %c0_63 = arith.constant 0 : index
    %70 = vector.load %arg5[%c5, %c0_63] : memref<9x128xf32, #tpu.memory_space<vmem>>, vector<1x128xf32>
    %71 = vector.shape_cast %70 : vector<1x128xf32> to vector<1x1x128xf32>
    %72 = vector.broadcast %71 : vector<1x1x128xf32> to vector<8x16x128xf32>
    %73 = arith.mulf %69, %72 : vector<8x16x128xf32>
    %74 = arith.addf %68, %73 : vector<8x16x128xf32>
    %c2_64 = arith.constant 2 : index
    %c0_65 = arith.constant 0 : index
    %c0_66 = arith.constant 0 : index
    %75 = vector.load %arg50[%c2_64, %c0_65, %c0_66] : memref<18x18x128xf32, #tpu.memory_space<vmem>>, vector<8x16x128xf32>
    %c6 = arith.constant 6 : index
    %c0_67 = arith.constant 0 : index
    %76 = vector.load %arg5[%c6, %c0_67] : memref<9x128xf32, #tpu.memory_space<vmem>>, vector<1x128xf32>
    %77 = vector.shape_cast %76 : vector<1x128xf32> to vector<1x1x128xf32>
    %78 = vector.broadcast %77 : vector<1x1x128xf32> to vector<8x16x128xf32>
    %79 = arith.mulf %75, %78 : vector<8x16x128xf32>
    %80 = arith.addf %74, %79 : vector<8x16x128xf32>
    %c2_68 = arith.constant 2 : index
    %c1_69 = arith.constant 1 : index
    %c0_70 = arith.constant 0 : index
    %81 = vector.load %arg50[%c2_68, %c1_69, %c0_70] : memref<18x18x128xf32, #tpu.memory_space<vmem>>, vector<8x16x128xf32>
    %c7 = arith.constant 7 : index
    %c0_71 = arith.constant 0 : index
    %82 = vector.load %arg5[%c7, %c0_71] : memref<9x128xf32, #tpu.memory_space<vmem>>, vector<1x128xf32>
    %83 = vector.shape_cast %82 : vector<1x128xf32> to vector<1x1x128xf32>
    %84 = vector.broadcast %83 : vector<1x1x128xf32> to vector<8x16x128xf32>
    %85 = arith.mulf %81, %84 : vector<8x16x128xf32>
    %86 = arith.addf %80, %85 : vector<8x16x128xf32>
    %c2_72 = arith.constant 2 : index
    %c2_73 = arith.constant 2 : index
    %c0_74 = arith.constant 0 : index
    %87 = vector.load %arg50[%c2_72, %c2_73, %c0_74] : memref<18x18x128xf32, #tpu.memory_space<vmem>>, vector<8x16x128xf32>
    %c8 = arith.constant 8 : index
    %c0_75 = arith.constant 0 : index
    %88 = vector.load %arg5[%c8, %c0_75] : memref<9x128xf32, #tpu.memory_space<vmem>>, vector<1x128xf32>
    %89 = vector.shape_cast %88 : vector<1x128xf32> to vector<1x1x128xf32>
    %90 = vector.broadcast %89 : vector<1x1x128xf32> to vector<8x16x128xf32>
    %91 = arith.mulf %87, %90 : vector<8x16x128xf32>
    %92 = arith.addf %86, %91 : vector<8x16x128xf32>
    %93 = vector.shape_cast %32 : vector<1x128xf32> to vector<1x1x128xf32>
    %94 = vector.broadcast %93 : vector<1x1x128xf32> to vector<8x16x128xf32>
    %95 = arith.mulf %92, %94 : vector<8x16x128xf32>
    %96 = vector.shape_cast %33 : vector<1x128xf32> to vector<1x1x128xf32>
    %97 = vector.broadcast %96 : vector<1x1x128xf32> to vector<8x16x128xf32>
    %98 = arith.addf %95, %97 : vector<8x16x128xf32>
    %cst_76 = arith.constant 0.000000e+00 : f32
    %cst_77 = arith.constant 6.000000e+00 : f32
    %99 = vector.broadcast %cst_76 : f32 to vector<8x16x128xf32>
    %100 = arith.maximumf %99, %98 : vector<8x16x128xf32>
    %101 = vector.broadcast %cst_77 : f32 to vector<8x16x128xf32>
    %102 = arith.minimumf %101, %100 : vector<8x16x128xf32>
    %103 = arith.truncf %102 : vector<8x16x128xf32> to vector<8x16x128xbf16>
    %104 = vector.shape_cast %103 : vector<8x16x128xbf16> to vector<128x128xbf16>
    %cst_78 = arith.constant dense<0.000000e+00> : vector<128x128xf32>
    %105 = tpu.matmul %104, %31, %cst_78 {dimension_numbers = #tpu.dot_dimension_numbers<[1], [0], [0], [1], [0, 0, 1, 1], [], []>} : vector<128x128xbf16>, vector<128x128xbf16>, vector<128x128xf32> -> vector<128x128xf32>
    %106 = vector.broadcast %34 : vector<1x128xf32> to vector<128x128xf32>
    %107 = arith.mulf %105, %106 : vector<128x128xf32>
    %108 = vector.broadcast %35 : vector<1x128xf32> to vector<128x128xf32>
    %109 = arith.addf %107, %108 : vector<128x128xf32>
    %cst_79 = arith.constant 0.000000e+00 : f32
    %cst_80 = arith.constant 6.000000e+00 : f32
    %110 = vector.broadcast %cst_79 : f32 to vector<128x128xf32>
    %111 = arith.maximumf %110, %109 : vector<128x128xf32>
    %112 = vector.broadcast %cst_80 : f32 to vector<128x128xf32>
    %113 = arith.minimumf %112, %111 : vector<128x128xf32>
    %114 = vector.shape_cast %113 : vector<128x128xf32> to vector<8x16x128xf32>
    %c1_81 = arith.constant 1 : index
    %c1_82 = arith.constant 1 : index
    %c0_83 = arith.constant 0 : index
    %115 = vector.load %arg51[%c1_81, %c1_82, %c0_83] : memref<18x18x128xf32, #tpu.memory_space<vmem>>, vector<8x16x128xf32>
    tpu.vector_store %arg51[%c1_81, %c1_82, %c0_83], %114 {strides = array<i32>} : memref<18x18x128xf32, #tpu.memory_space<vmem>>, vector<8x16x128xf32>,
    %cst_84 = arith.constant 0.000000e+00 : f32
    %116 = vector.broadcast %cst_84 : f32 to vector<8x16x128xf32>
    %c8_85 = arith.constant 8 : index
    %c0_86 = arith.constant 0 : index
    %c0_87 = arith.constant 0 : index
    %117 = vector.load %arg50[%c8_85, %c0_86, %c0_87] : memref<18x18x128xf32, #tpu.memory_space<vmem>>, vector<8x16x128xf32>
    %c0_88 = arith.constant 0 : index
    %c0_89 = arith.constant 0 : index
    %118 = vector.load %arg5[%c0_88, %c0_89] : memref<9x128xf32, #tpu.memory_space<vmem>>, vector<1x128xf32>
    %119 = vector.shape_cast %118 : vector<1x128xf32> to vector<1x1x128xf32>
    %120 = vector.broadcast %119 : vector<1x1x128xf32> to vector<8x16x128xf32>
    %121 = arith.mulf %117, %120 : vector<8x16x128xf32>
    %122 = arith.addf %116, %121 : vector<8x16x128xf32>
    %c8_90 = arith.constant 8 : index
    %c1_91 = arith.constant 1 : index
    %c0_92 = arith.constant 0 : index
    %123 = vector.load %arg50[%c8_90, %c1_91, %c0_92] : memref<18x18x128xf32, #tpu.memory_space<vmem>>, vector<8x16x128xf32>
    %c1_93 = arith.constant 1 : index
    %c0_94 = arith.constant 0 : index
    %124 = vector.load %arg5[%c1_93, %c0_94] : memref<9x128xf32, #tpu.memory_space<vmem>>, vector<1x128xf32>
    %125 = vector.shape_cast %124 : vector<1x128xf32> to vector<1x1x128xf32>
    %126 = vector.broadcast %125 : vector<1x1x128xf32> to vector<8x16x128xf32>
    %127 = arith.mulf %123, %126 : vector<8x16x128xf32>
    %128 = arith.addf %122, %127 : vector<8x16x128xf32>
    %c8_95 = arith.constant 8 : index
    %c2_96 = arith.constant 2 : index
    %c0_97 = arith.constant 0 : index
    %129 = vector.load %arg50[%c8_95, %c2_96, %c0_97] : memref<18x18x128xf32, #tpu.memory_space<vmem>>, vector<8x16x128xf32>
    %c2_98 = arith.constant 2 : index
    %c0_99 = arith.constant 0 : index
    %130 = vector.load %arg5[%c2_98, %c0_99] : memref<9x128xf32, #tpu.memory_space<vmem>>, vector<1x128xf32>
    %131 = vector.shape_cast %130 : vector<1x128xf32> to vector<1x1x128xf32>
    %132 = vector.broadcast %131 : vector<1x1x128xf32> to vector<8x16x128xf32>
    %133 = arith.mulf %129, %132 : vector<8x16x128xf32>
    %134 = arith.addf %128, %133 : vector<8x16x128xf32>
    %c9_100 = arith.constant 9 : index
    %c0_101 = arith.constant 0 : index
    %c0_102 = arith.constant 0 : index
    %135 = vector.load %arg50[%c9_100, %c0_101, %c0_102] : memref<18x18x128xf32, #tpu.memory_space<vmem>>, vector<8x16x128xf32>
    %c3_103 = arith.constant 3 : index
    %c0_104 = arith.constant 0 : index
    %136 = vector.load %arg5[%c3_103, %c0_104] : memref<9x128xf32, #tpu.memory_space<vmem>>, vector<1x128xf32>
    %137 = vector.shape_cast %136 : vector<1x128xf32> to vector<1x1x128xf32>
    %138 = vector.broadcast %137 : vector<1x1x128xf32> to vector<8x16x128xf32>
    %139 = arith.mulf %135, %138 : vector<8x16x128xf32>
    %140 = arith.addf %134, %139 : vector<8x16x128xf32>
    %c9_105 = arith.constant 9 : index
    %c1_106 = arith.constant 1 : index
    %c0_107 = arith.constant 0 : index
    %141 = vector.load %arg50[%c9_105, %c1_106, %c0_107] : memref<18x18x128xf32, #tpu.memory_space<vmem>>, vector<8x16x128xf32>
    %c4_108 = arith.constant 4 : index
    %c0_109 = arith.constant 0 : index
    %142 = vector.load %arg5[%c4_108, %c0_109] : memref<9x128xf32, #tpu.memory_space<vmem>>, vector<1x128xf32>
    %143 = vector.shape_cast %142 : vector<1x128xf32> to vector<1x1x128xf32>
    %144 = vector.broadcast %143 : vector<1x1x128xf32> to vector<8x16x128xf32>
    %145 = arith.mulf %141, %144 : vector<8x16x128xf32>
    %146 = arith.addf %140, %145 : vector<8x16x128xf32>
    %c9_110 = arith.constant 9 : index
    %c2_111 = arith.constant 2 : index
    %c0_112 = arith.constant 0 : index
    %147 = vector.load %arg50[%c9_110, %c2_111, %c0_112] : memref<18x18x128xf32, #tpu.memory_space<vmem>>, vector<8x16x128xf32>
    %c5_113 = arith.constant 5 : index
    %c0_114 = arith.constant 0 : index
    %148 = vector.load %arg5[%c5_113, %c0_114] : memref<9x128xf32, #tpu.memory_space<vmem>>, vector<1x128xf32>
    %149 = vector.shape_cast %148 : vector<1x128xf32> to vector<1x1x128xf32>
    %150 = vector.broadcast %149 : vector<1x1x128xf32> to vector<8x16x128xf32>
    %151 = arith.mulf %147, %150 : vector<8x16x128xf32>
    %152 = arith.addf %146, %151 : vector<8x16x128xf32>
    %c10 = arith.constant 10 : index
    %c0_115 = arith.constant 0 : index
    %c0_116 = arith.constant 0 : index
    %153 = vector.load %arg50[%c10, %c0_115, %c0_116] : memref<18x18x128xf32, #tpu.memory_space<vmem>>, vector<8x16x128xf32>
    %c6_117 = arith.constant 6 : index
    %c0_118 = arith.constant 0 : index
    %154 = vector.load %arg5[%c6_117, %c0_118] : memref<9x128xf32, #tpu.memory_space<vmem>>, vector<1x128xf32>
    %155 = vector.shape_cast %154 : vector<1x128xf32> to vector<1x1x128xf32>
    %156 = vector.broadcast %155 : vector<1x1x128xf32> to vector<8x16x128xf32>
    %157 = arith.mulf %153, %156 : vector<8x16x128xf32>
    %158 = arith.addf %152, %157 : vector<8x16x128xf32>
    %c10_119 = arith.constant 10 : index
    %c1_120 = arith.constant 1 : index
    %c0_121 = arith.constant 0 : index
    %159 = vector.load %arg50[%c10_119, %c1_120, %c0_121] : memref<18x18x128xf32, #tpu.memory_space<vmem>>, vector<8x16x128xf32>
    %c7_122 = arith.constant 7 : index
    %c0_123 = arith.constant 0 : index
    %160 = vector.load %arg5[%c7_122, %c0_123] : memref<9x128xf32, #tpu.memory_space<vmem>>, vector<1x128xf32>
    %161 = vector.shape_cast %160 : vector<1x128xf32> to vector<1x1x128xf32>
    %162 = vector.broadcast %161 : vector<1x1x128xf32> to vector<8x16x128xf32>
    %163 = arith.mulf %159, %162 : vector<8x16x128xf32>
    %164 = arith.addf %158, %163 : vector<8x16x128xf32>
    %c10_124 = arith.constant 10 : index
    %c2_125 = arith.constant 2 : index
    %c0_126 = arith.constant 0 : index
    %165 = vector.load %arg50[%c10_124, %c2_125, %c0_126] : memref<18x18x128xf32, #tpu.memory_space<vmem>>, vector<8x16x128xf32>
    %c8_127 = arith.constant 8 : index
    %c0_128 = arith.constant 0 : index
    %166 = vector.load %arg5[%c8_127, %c0_128] : memref<9x128xf32, #tpu.memory_space<vmem>>, vector<1x128xf32>
    %167 = vector.shape_cast %166 : vector<1x128xf32> to vector<1x1x128xf32>
    %168 = vector.broadcast %167 : vector<1x1x128xf32> to vector<8x16x128xf32>
    %169 = arith.mulf %165, %168 : vector<8x16x128xf32>
    %170 = arith.addf %164, %169 : vector<8x16x128xf32>
    %171 = vector.shape_cast %32 : vector<1x128xf32> to vector<1x1x128xf32>
    %172 = vector.broadcast %171 : vector<1x1x128xf32> to vector<8x16x128xf32>
    %173 = arith.mulf %170, %172 : vector<8x16x128xf32>
    %174 = vector.shape_cast %33 : vector<1x128xf32> to vector<1x1x128xf32>
    %175 = vector.broadcast %174 : vector<1x1x128xf32> to vector<8x16x128xf32>
    %176 = arith.addf %173, %175 : vector<8x16x128xf32>
    %cst_129 = arith.constant 0.000000e+00 : f32
    %cst_130 = arith.constant 6.000000e+00 : f32
    %177 = vector.broadcast %cst_129 : f32 to vector<8x16x128xf32>
    %178 = arith.maximumf %177, %176 : vector<8x16x128xf32>
    %179 = vector.broadcast %cst_130 : f32 to vector<8x16x128xf32>
    %180 = arith.minimumf %179, %178 : vector<8x16x128xf32>
    %181 = arith.truncf %180 : vector<8x16x128xf32> to vector<8x16x128xbf16>
    %182 = vector.shape_cast %181 : vector<8x16x128xbf16> to vector<128x128xbf16>
    %cst_131 = arith.constant dense<0.000000e+00> : vector<128x128xf32>
    %183 = tpu.matmul %182, %31, %cst_131 {dimension_numbers = #tpu.dot_dimension_numbers<[1], [0], [0], [1], [0, 0, 1, 1], [], []>} : vector<128x128xbf16>, vector<128x128xbf16>, vector<128x128xf32> -> vector<128x128xf32>
    %184 = vector.broadcast %34 : vector<1x128xf32> to vector<128x128xf32>
    %185 = arith.mulf %183, %184 : vector<128x128xf32>
    %186 = vector.broadcast %35 : vector<1x128xf32> to vector<128x128xf32>
    %187 = arith.addf %185, %186 : vector<128x128xf32>
    %cst_132 = arith.constant 0.000000e+00 : f32
    %cst_133 = arith.constant 6.000000e+00 : f32
    %188 = vector.broadcast %cst_132 : f32 to vector<128x128xf32>
    %189 = arith.maximumf %188, %187 : vector<128x128xf32>
    %190 = vector.broadcast %cst_133 : f32 to vector<128x128xf32>
    %191 = arith.minimumf %190, %189 : vector<128x128xf32>
    %192 = vector.shape_cast %191 : vector<128x128xf32> to vector<8x16x128xf32>
    %c9_134 = arith.constant 9 : index
    %c1_135 = arith.constant 1 : index
    %c0_136 = arith.constant 0 : index
    %193 = vector.load %arg51[%c9_134, %c1_135, %c0_136] : memref<18x18x128xf32, #tpu.memory_space<vmem>>, vector<8x16x128xf32>
    tpu.vector_store %arg51[%c9_134, %c1_135, %c0_136], %192 {strides = array<i32>} : memref<18x18x128xf32, #tpu.memory_space<vmem>>, vector<8x16x128xf32>,
    %c0_137 = arith.constant 0 : index
    %c0_138 = arith.constant 0 : index
    %194 = vector.load %arg14[%c0_137, %c0_138] : memref<128x128xbf16, #tpu.memory_space<vmem>>, vector<128x128xbf16>
    %c0_139 = arith.constant 0 : index
    %c0_140 = arith.constant 0 : index
    %195 = vector.load %arg12[%c0_139, %c0_140] : memref<1x128xf32, #tpu.memory_space<vmem>>, vector<1x128xf32>
    %c0_141 = arith.constant 0 : index
    %c0_142 = arith.constant 0 : index
    %196 = vector.load %arg13[%c0_141, %c0_142] : memref<1x128xf32, #tpu.memory_space<vmem>>, vector<1x128xf32>
    %c0_143 = arith.constant 0 : index
    %c0_144 = arith.constant 0 : index
    %197 = vector.load %arg15[%c0_143, %c0_144] : memref<1x128xf32, #tpu.memory_space<vmem>>, vector<1x128xf32>
    %c0_145 = arith.constant 0 : index
    %c0_146 = arith.constant 0 : index
    %198 = vector.load %arg16[%c0_145, %c0_146] : memref<1x128xf32, #tpu.memory_space<vmem>>, vector<1x128xf32>
    %cst_147 = arith.constant 0.000000e+00 : f32
    %199 = vector.broadcast %cst_147 : f32 to vector<10x10x128xf32>
    %c0_148 = arith.constant 0 : index
    %c0_149 = arith.constant 0 : index
    %c0_150 = arith.constant 0 : index
    %200 = vector.load %arg52[%c0_148, %c0_149, %c0_150] : memref<10x10x128xf32, #tpu.memory_space<vmem>>, vector<10x10x128xf32>
    tpu.vector_store %arg52[%c0_148, %c0_149, %c0_150], %199 {strides = array<i32>} : memref<10x10x128xf32, #tpu.memory_space<vmem>>, vector<10x10x128xf32>,
    %cst_151 = arith.constant 0.000000e+00 : f32
    %201 = vector.broadcast %cst_151 : f32 to vector<8x8x128xf32>
    %c0_152 = arith.constant 0 : index
    %c0_153 = arith.constant 0 : index
    %c0_154 = arith.constant 0 : index
    %202 = tpu.strided_load %arg51[%c0_152, %c0_153, %c0_154] {strides = array<i32: 2, 2, 1>} : memref<18x18x128xf32, #tpu.memory_space<vmem>>, vector<8x8x128xf32>
    %c0_155 = arith.constant 0 : index
    %c0_156 = arith.constant 0 : index
    %203 = vector.load %arg11[%c0_155, %c0_156] : memref<9x128xf32, #tpu.memory_space<vmem>>, vector<1x128xf32>
    %204 = vector.shape_cast %203 : vector<1x128xf32> to vector<1x1x128xf32>
    %205 = vector.broadcast %204 : vector<1x1x128xf32> to vector<8x8x128xf32>
    %206 = arith.mulf %202, %205 : vector<8x8x128xf32>
    %207 = arith.addf %201, %206 : vector<8x8x128xf32>
    %c0_157 = arith.constant 0 : index
    %c1_158 = arith.constant 1 : index
    %c0_159 = arith.constant 0 : index
    %208 = tpu.strided_load %arg51[%c0_157, %c1_158, %c0_159] {strides = array<i32: 2, 2, 1>} : memref<18x18x128xf32, #tpu.memory_space<vmem>>, vector<8x8x128xf32>
    %c1_160 = arith.constant 1 : index
    %c0_161 = arith.constant 0 : index
    %209 = vector.load %arg11[%c1_160, %c0_161] : memref<9x128xf32, #tpu.memory_space<vmem>>, vector<1x128xf32>
    %210 = vector.shape_cast %209 : vector<1x128xf32> to vector<1x1x128xf32>
    %211 = vector.broadcast %210 : vector<1x1x128xf32> to vector<8x8x128xf32>
    %212 = arith.mulf %208, %211 : vector<8x8x128xf32>
    %213 = arith.addf %207, %212 : vector<8x8x128xf32>
    %c0_162 = arith.constant 0 : index
    %c2_163 = arith.constant 2 : index
    %c0_164 = arith.constant 0 : index
    %214 = tpu.strided_load %arg51[%c0_162, %c2_163, %c0_164] {strides = array<i32: 2, 2, 1>} : memref<18x18x128xf32, #tpu.memory_space<vmem>>, vector<8x8x128xf32>
    %c2_165 = arith.constant 2 : index
    %c0_166 = arith.constant 0 : index
    %215 = vector.load %arg11[%c2_165, %c0_166] : memref<9x128xf32, #tpu.memory_space<vmem>>, vector<1x128xf32>
    %216 = vector.shape_cast %215 : vector<1x128xf32> to vector<1x1x128xf32>
    %217 = vector.broadcast %216 : vector<1x1x128xf32> to vector<8x8x128xf32>
    %218 = arith.mulf %214, %217 : vector<8x8x128xf32>
    %219 = arith.addf %213, %218 : vector<8x8x128xf32>
    %c1_167 = arith.constant 1 : index
    %c0_168 = arith.constant 0 : index
    %c0_169 = arith.constant 0 : index
    %220 = tpu.strided_load %arg51[%c1_167, %c0_168, %c0_169] {strides = array<i32: 2, 2, 1>} : memref<18x18x128xf32, #tpu.memory_space<vmem>>, vector<8x8x128xf32>
    %c3_170 = arith.constant 3 : index
    %c0_171 = arith.constant 0 : index
    %221 = vector.load %arg11[%c3_170, %c0_171] : memref<9x128xf32, #tpu.memory_space<vmem>>, vector<1x128xf32>
    %222 = vector.shape_cast %221 : vector<1x128xf32> to vector<1x1x128xf32>
    %223 = vector.broadcast %222 : vector<1x1x128xf32> to vector<8x8x128xf32>
    %224 = arith.mulf %220, %223 : vector<8x8x128xf32>
    %225 = arith.addf %219, %224 : vector<8x8x128xf32>
    %c1_172 = arith.constant 1 : index
    %c1_173 = arith.constant 1 : index
    %c0_174 = arith.constant 0 : index
    %226 = tpu.strided_load %arg51[%c1_172, %c1_173, %c0_174] {strides = array<i32: 2, 2, 1>} : memref<18x18x128xf32, #tpu.memory_space<vmem>>, vector<8x8x128xf32>
    %c4_175 = arith.constant 4 : index
    %c0_176 = arith.constant 0 : index
    %227 = vector.load %arg11[%c4_175, %c0_176] : memref<9x128xf32, #tpu.memory_space<vmem>>, vector<1x128xf32>
    %228 = vector.shape_cast %227 : vector<1x128xf32> to vector<1x1x128xf32>
    %229 = vector.broadcast %228 : vector<1x1x128xf32> to vector<8x8x128xf32>
    %230 = arith.mulf %226, %229 : vector<8x8x128xf32>
    %231 = arith.addf %225, %230 : vector<8x8x128xf32>
    %c1_177 = arith.constant 1 : index
    %c2_178 = arith.constant 2 : index
    %c0_179 = arith.constant 0 : index
    %232 = tpu.strided_load %arg51[%c1_177, %c2_178, %c0_179] {strides = array<i32: 2, 2, 1>} : memref<18x18x128xf32, #tpu.memory_space<vmem>>, vector<8x8x128xf32>
    %c5_180 = arith.constant 5 : index
    %c0_181 = arith.constant 0 : index
    %233 = vector.load %arg11[%c5_180, %c0_181] : memref<9x128xf32, #tpu.memory_space<vmem>>, vector<1x128xf32>
    %234 = vector.shape_cast %233 : vector<1x128xf32> to vector<1x1x128xf32>
    %235 = vector.broadcast %234 : vector<1x1x128xf32> to vector<8x8x128xf32>
    %236 = arith.mulf %232, %235 : vector<8x8x128xf32>
    %237 = arith.addf %231, %236 : vector<8x8x128xf32>
    %c2_182 = arith.constant 2 : index
    %c0_183 = arith.constant 0 : index
    %c0_184 = arith.constant 0 : index
    %238 = tpu.strided_load %arg51[%c2_182, %c0_183, %c0_184] {strides = array<i32: 2, 2, 1>} : memref<18x18x128xf32, #tpu.memory_space<vmem>>, vector<8x8x128xf32>
    %c6_185 = arith.constant 6 : index
    %c0_186 = arith.constant 0 : index
    %239 = vector.load %arg11[%c6_185, %c0_186] : memref<9x128xf32, #tpu.memory_space<vmem>>, vector<1x128xf32>
    %240 = vector.shape_cast %239 : vector<1x128xf32> to vector<1x1x128xf32>
    %241 = vector.broadcast %240 : vector<1x1x128xf32> to vector<8x8x128xf32>
    %242 = arith.mulf %238, %241 : vector<8x8x128xf32>
    %243 = arith.addf %237, %242 : vector<8x8x128xf32>
    %c2_187 = arith.constant 2 : index
    %c1_188 = arith.constant 1 : index
    %c0_189 = arith.constant 0 : index
    %244 = tpu.strided_load %arg51[%c2_187, %c1_188, %c0_189] {strides = array<i32: 2, 2, 1>} : memref<18x18x128xf32, #tpu.memory_space<vmem>>, vector<8x8x128xf32>
    %c7_190 = arith.constant 7 : index
    %c0_191 = arith.constant 0 : index
    %245 = vector.load %arg11[%c7_190, %c0_191] : memref<9x128xf32, #tpu.memory_space<vmem>>, vector<1x128xf32>
    %246 = vector.shape_cast %245 : vector<1x128xf32> to vector<1x1x128xf32>
    %247 = vector.broadcast %246 : vector<1x1x128xf32> to vector<8x8x128xf32>
    %248 = arith.mulf %244, %247 : vector<8x8x128xf32>
    %249 = arith.addf %243, %248 : vector<8x8x128xf32>
    %c2_192 = arith.constant 2 : index
    %c2_193 = arith.constant 2 : index
    %c0_194 = arith.constant 0 : index
    %250 = tpu.strided_load %arg51[%c2_192, %c2_193, %c0_194] {strides = array<i32: 2, 2, 1>} : memref<18x18x128xf32, #tpu.memory_space<vmem>>, vector<8x8x128xf32>
    %c8_195 = arith.constant 8 : index
    %c0_196 = arith.constant 0 : index
    %251 = vector.load %arg11[%c8_195, %c0_196] : memref<9x128xf32, #tpu.memory_space<vmem>>, vector<1x128xf32>
    %252 = vector.shape_cast %251 : vector<1x128xf32> to vector<1x1x128xf32>
    %253 = vector.broadcast %252 : vector<1x1x128xf32> to vector<8x8x128xf32>
    %254 = arith.mulf %250, %253 : vector<8x8x128xf32>
    %255 = arith.addf %249, %254 : vector<8x8x128xf32>
    %256 = vector.shape_cast %195 : vector<1x128xf32> to vector<1x1x128xf32>
    %257 = vector.broadcast %256 : vector<1x1x128xf32> to vector<8x8x128xf32>
    %258 = arith.mulf %255, %257 : vector<8x8x128xf32>
    %259 = vector.shape_cast %196 : vector<1x128xf32> to vector<1x1x128xf32>
    %260 = vector.broadcast %259 : vector<1x1x128xf32> to vector<8x8x128xf32>
    %261 = arith.addf %258, %260 : vector<8x8x128xf32>
    %cst_197 = arith.constant 0.000000e+00 : f32
    %cst_198 = arith.constant 6.000000e+00 : f32
    %262 = vector.broadcast %cst_197 : f32 to vector<8x8x128xf32>
    %263 = arith.maximumf %262, %261 : vector<8x8x128xf32>
    %264 = vector.broadcast %cst_198 : f32 to vector<8x8x128xf32>
    %265 = arith.minimumf %264, %263 : vector<8x8x128xf32>
    %266 = arith.truncf %265 : vector<8x8x128xf32> to vector<8x8x128xbf16>
    %267 = vector.shape_cast %266 : vector<8x8x128xbf16> to vector<64x128xbf16>
    %cst_199 = arith.constant dense<0.000000e+00> : vector<64x128xf32>
    %268 = tpu.matmul %267, %194, %cst_199 {dimension_numbers = #tpu.dot_dimension_numbers<[1], [0], [0], [1], [0, 0, 1, 1], [], []>} : vector<64x128xbf16>, vector<128x128xbf16>, vector<64x128xf32> -> vector<64x128xf32>
    %269 = vector.broadcast %197 : vector<1x128xf32> to vector<64x128xf32>
    %270 = arith.mulf %268, %269 : vector<64x128xf32>
    %271 = vector.broadcast %198 : vector<1x128xf32> to vector<64x128xf32>
    %272 = arith.addf %270, %271 : vector<64x128xf32>
    %cst_200 = arith.constant 0.000000e+00 : f32
    %cst_201 = arith.constant 6.000000e+00 : f32
    %273 = vector.broadcast %cst_200 : f32 to vector<64x128xf32>
    %274 = arith.maximumf %273, %272 : vector<64x128xf32>
    %275 = vector.broadcast %cst_201 : f32 to vector<64x128xf32>
    %276 = arith.minimumf %275, %274 : vector<64x128xf32>
    %277 = vector.shape_cast %276 : vector<64x128xf32> to vector<8x8x128xf32>
    %c1_202 = arith.constant 1 : index
    %c1_203 = arith.constant 1 : index
    %c0_204 = arith.constant 0 : index
    %278 = vector.load %arg52[%c1_202, %c1_203, %c0_204] : memref<10x10x128xf32, #tpu.memory_space<vmem>>, vector<8x8x128xf32>
    tpu.vector_store %arg52[%c1_202, %c1_203, %c0_204], %277 {strides = array<i32>} : memref<10x10x128xf32, #tpu.memory_space<vmem>>, vector<8x8x128xf32>,
    %c0_205 = arith.constant 0 : index
    %c0_206 = arith.constant 0 : index
    %279 = vector.load %arg20[%c0_205, %c0_206] : memref<128x128xbf16, #tpu.memory_space<vmem>>, vector<128x128xbf16>
    %c0_207 = arith.constant 0 : index
    %c0_208 = arith.constant 0 : index
    %280 = vector.load %arg18[%c0_207, %c0_208] : memref<1x128xf32, #tpu.memory_space<vmem>>, vector<1x128xf32>
    %c0_209 = arith.constant 0 : index
    %c0_210 = arith.constant 0 : index
    %281 = vector.load %arg19[%c0_209, %c0_210] : memref<1x128xf32, #tpu.memory_space<vmem>>, vector<1x128xf32>
    %c0_211 = arith.constant 0 : index
    %c0_212 = arith.constant 0 : index
    %282 = vector.load %arg21[%c0_211, %c0_212] : memref<1x128xf32, #tpu.memory_space<vmem>>, vector<1x128xf32>
    %c0_213 = arith.constant 0 : index
    %c0_214 = arith.constant 0 : index
    %283 = vector.load %arg22[%c0_213, %c0_214] : memref<1x128xf32, #tpu.memory_space<vmem>>, vector<1x128xf32>
    %cst_215 = arith.constant 0.000000e+00 : f32
    %284 = vector.broadcast %cst_215 : f32 to vector<10x10x128xf32>
    %c0_216 = arith.constant 0 : index
    %c0_217 = arith.constant 0 : index
    %c0_218 = arith.constant 0 : index
    %285 = vector.load %arg53[%c0_216, %c0_217, %c0_218] : memref<10x10x128xf32, #tpu.memory_space<vmem>>, vector<10x10x128xf32>
    tpu.vector_store %arg53[%c0_216, %c0_217, %c0_218], %284 {strides = array<i32>} : memref<10x10x128xf32, #tpu.memory_space<vmem>>, vector<10x10x128xf32>,
    %cst_219 = arith.constant 0.000000e+00 : f32
    %286 = vector.broadcast %cst_219 : f32 to vector<8x8x128xf32>
    %c0_220 = arith.constant 0 : index
    %c0_221 = arith.constant 0 : index
    %c0_222 = arith.constant 0 : index
    %287 = vector.load %arg52[%c0_220, %c0_221, %c0_222] : memref<10x10x128xf32, #tpu.memory_space<vmem>>, vector<8x8x128xf32>
    %c0_223 = arith.constant 0 : index
    %c0_224 = arith.constant 0 : index
    %288 = vector.load %arg17[%c0_223, %c0_224] : memref<9x128xf32, #tpu.memory_space<vmem>>, vector<1x128xf32>
    %289 = vector.shape_cast %288 : vector<1x128xf32> to vector<1x1x128xf32>
    %290 = vector.broadcast %289 : vector<1x1x128xf32> to vector<8x8x128xf32>
    %291 = arith.mulf %287, %290 : vector<8x8x128xf32>
    %292 = arith.addf %286, %291 : vector<8x8x128xf32>
    %c0_225 = arith.constant 0 : index
    %c1_226 = arith.constant 1 : index
    %c0_227 = arith.constant 0 : index
    %293 = vector.load %arg52[%c0_225, %c1_226, %c0_227] : memref<10x10x128xf32, #tpu.memory_space<vmem>>, vector<8x8x128xf32>
    %c1_228 = arith.constant 1 : index
    %c0_229 = arith.constant 0 : index
    %294 = vector.load %arg17[%c1_228, %c0_229] : memref<9x128xf32, #tpu.memory_space<vmem>>, vector<1x128xf32>
    %295 = vector.shape_cast %294 : vector<1x128xf32> to vector<1x1x128xf32>
    %296 = vector.broadcast %295 : vector<1x1x128xf32> to vector<8x8x128xf32>
    %297 = arith.mulf %293, %296 : vector<8x8x128xf32>
    %298 = arith.addf %292, %297 : vector<8x8x128xf32>
    %c0_230 = arith.constant 0 : index
    %c2_231 = arith.constant 2 : index
    %c0_232 = arith.constant 0 : index
    %299 = vector.load %arg52[%c0_230, %c2_231, %c0_232] : memref<10x10x128xf32, #tpu.memory_space<vmem>>, vector<8x8x128xf32>
    %c2_233 = arith.constant 2 : index
    %c0_234 = arith.constant 0 : index
    %300 = vector.load %arg17[%c2_233, %c0_234] : memref<9x128xf32, #tpu.memory_space<vmem>>, vector<1x128xf32>
    %301 = vector.shape_cast %300 : vector<1x128xf32> to vector<1x1x128xf32>
    %302 = vector.broadcast %301 : vector<1x1x128xf32> to vector<8x8x128xf32>
    %303 = arith.mulf %299, %302 : vector<8x8x128xf32>
    %304 = arith.addf %298, %303 : vector<8x8x128xf32>
    %c1_235 = arith.constant 1 : index
    %c0_236 = arith.constant 0 : index
    %c0_237 = arith.constant 0 : index
    %305 = vector.load %arg52[%c1_235, %c0_236, %c0_237] : memref<10x10x128xf32, #tpu.memory_space<vmem>>, vector<8x8x128xf32>
    %c3_238 = arith.constant 3 : index
    %c0_239 = arith.constant 0 : index
    %306 = vector.load %arg17[%c3_238, %c0_239] : memref<9x128xf32, #tpu.memory_space<vmem>>, vector<1x128xf32>
    %307 = vector.shape_cast %306 : vector<1x128xf32> to vector<1x1x128xf32>
    %308 = vector.broadcast %307 : vector<1x1x128xf32> to vector<8x8x128xf32>
    %309 = arith.mulf %305, %308 : vector<8x8x128xf32>
    %310 = arith.addf %304, %309 : vector<8x8x128xf32>
    %c1_240 = arith.constant 1 : index
    %c1_241 = arith.constant 1 : index
    %c0_242 = arith.constant 0 : index
    %311 = vector.load %arg52[%c1_240, %c1_241, %c0_242] : memref<10x10x128xf32, #tpu.memory_space<vmem>>, vector<8x8x128xf32>
    %c4_243 = arith.constant 4 : index
    %c0_244 = arith.constant 0 : index
    %312 = vector.load %arg17[%c4_243, %c0_244] : memref<9x128xf32, #tpu.memory_space<vmem>>, vector<1x128xf32>
    %313 = vector.shape_cast %312 : vector<1x128xf32> to vector<1x1x128xf32>
    %314 = vector.broadcast %313 : vector<1x1x128xf32> to vector<8x8x128xf32>
    %315 = arith.mulf %311, %314 : vector<8x8x128xf32>
    %316 = arith.addf %310, %315 : vector<8x8x128xf32>
    %c1_245 = arith.constant 1 : index
    %c2_246 = arith.constant 2 : index
    %c0_247 = arith.constant 0 : index
    %317 = vector.load %arg52[%c1_245, %c2_246, %c0_247] : memref<10x10x128xf32, #tpu.memory_space<vmem>>, vector<8x8x128xf32>
    %c5_248 = arith.constant 5 : index
    %c0_249 = arith.constant 0 : index
    %318 = vector.load %arg17[%c5_248, %c0_249] : memref<9x128xf32, #tpu.memory_space<vmem>>, vector<1x128xf32>
    %319 = vector.shape_cast %318 : vector<1x128xf32> to vector<1x1x128xf32>
    %320 = vector.broadcast %319 : vector<1x1x128xf32> to vector<8x8x128xf32>
    %321 = arith.mulf %317, %320 : vector<8x8x128xf32>
    %322 = arith.addf %316, %321 : vector<8x8x128xf32>
    %c2_250 = arith.constant 2 : index
    %c0_251 = arith.constant 0 : index
    %c0_252 = arith.constant 0 : index
    %323 = vector.load %arg52[%c2_250, %c0_251, %c0_252] : memref<10x10x128xf32, #tpu.memory_space<vmem>>, vector<8x8x128xf32>
    %c6_253 = arith.constant 6 : index
    %c0_254 = arith.constant 0 : index
    %324 = vector.load %arg17[%c6_253, %c0_254] : memref<9x128xf32, #tpu.memory_space<vmem>>, vector<1x128xf32>
    %325 = vector.shape_cast %324 : vector<1x128xf32> to vector<1x1x128xf32>
    %326 = vector.broadcast %325 : vector<1x1x128xf32> to vector<8x8x128xf32>
    %327 = arith.mulf %323, %326 : vector<8x8x128xf32>
    %328 = arith.addf %322, %327 : vector<8x8x128xf32>
    %c2_255 = arith.constant 2 : index
    %c1_256 = arith.constant 1 : index
    %c0_257 = arith.constant 0 : index
    %329 = vector.load %arg52[%c2_255, %c1_256, %c0_257] : memref<10x10x128xf32, #tpu.memory_space<vmem>>, vector<8x8x128xf32>
    %c7_258 = arith.constant 7 : index
    %c0_259 = arith.constant 0 : index
    %330 = vector.load %arg17[%c7_258, %c0_259] : memref<9x128xf32, #tpu.memory_space<vmem>>, vector<1x128xf32>
    %331 = vector.shape_cast %330 : vector<1x128xf32> to vector<1x1x128xf32>
    %332 = vector.broadcast %331 : vector<1x1x128xf32> to vector<8x8x128xf32>
    %333 = arith.mulf %329, %332 : vector<8x8x128xf32>
    %334 = arith.addf %328, %333 : vector<8x8x128xf32>
    %c2_260 = arith.constant 2 : index
    %c2_261 = arith.constant 2 : index
    %c0_262 = arith.constant 0 : index
    %335 = vector.load %arg52[%c2_260, %c2_261, %c0_262] : memref<10x10x128xf32, #tpu.memory_space<vmem>>, vector<8x8x128xf32>
    %c8_263 = arith.constant 8 : index
    %c0_264 = arith.constant 0 : index
    %336 = vector.load %arg17[%c8_263, %c0_264] : memref<9x128xf32, #tpu.memory_space<vmem>>, vector<1x128xf32>
    %337 = vector.shape_cast %336 : vector<1x128xf32> to vector<1x1x128xf32>
    %338 = vector.broadcast %337 : vector<1x1x128xf32> to vector<8x8x128xf32>
    %339 = arith.mulf %335, %338 : vector<8x8x128xf32>
    %340 = arith.addf %334, %339 : vector<8x8x128xf32>
    %341 = vector.shape_cast %280 : vector<1x128xf32> to vector<1x1x128xf32>
    %342 = vector.broadcast %341 : vector<1x1x128xf32> to vector<8x8x128xf32>
    %343 = arith.mulf %340, %342 : vector<8x8x128xf32>
    %344 = vector.shape_cast %281 : vector<1x128xf32> to vector<1x1x128xf32>
    %345 = vector.broadcast %344 : vector<1x1x128xf32> to vector<8x8x128xf32>
    %346 = arith.addf %343, %345 : vector<8x8x128xf32>
    %cst_265 = arith.constant 0.000000e+00 : f32
    %cst_266 = arith.constant 6.000000e+00 : f32
    %347 = vector.broadcast %cst_265 : f32 to vector<8x8x128xf32>
    %348 = arith.maximumf %347, %346 : vector<8x8x128xf32>
    %349 = vector.broadcast %cst_266 : f32 to vector<8x8x128xf32>
    %350 = arith.minimumf %349, %348 : vector<8x8x128xf32>
    %351 = arith.truncf %350 : vector<8x8x128xf32> to vector<8x8x128xbf16>
    %352 = vector.shape_cast %351 : vector<8x8x128xbf16> to vector<64x128xbf16>
    %cst_267 = arith.constant dense<0.000000e+00> : vector<64x128xf32>
    %353 = tpu.matmul %352, %279, %cst_267 {dimension_numbers = #tpu.dot_dimension_numbers<[1], [0], [0], [1], [0, 0, 1, 1], [], []>} : vector<64x128xbf16>, vector<128x128xbf16>, vector<64x128xf32> -> vector<64x128xf32>
    %354 = vector.broadcast %282 : vector<1x128xf32> to vector<64x128xf32>
    %355 = arith.mulf %353, %354 : vector<64x128xf32>
    %356 = vector.broadcast %283 : vector<1x128xf32> to vector<64x128xf32>
    %357 = arith.addf %355, %356 : vector<64x128xf32>
    %cst_268 = arith.constant 0.000000e+00 : f32
    %cst_269 = arith.constant 6.000000e+00 : f32
    %358 = vector.broadcast %cst_268 : f32 to vector<64x128xf32>
    %359 = arith.maximumf %358, %357 : vector<64x128xf32>
    %360 = vector.broadcast %cst_269 : f32 to vector<64x128xf32>
    %361 = arith.minimumf %360, %359 : vector<64x128xf32>
    %362 = vector.shape_cast %361 : vector<64x128xf32> to vector<8x8x128xf32>
    %c1_270 = arith.constant 1 : index
    %c1_271 = arith.constant 1 : index
    %c0_272 = arith.constant 0 : index
    %363 = vector.load %arg53[%c1_270, %c1_271, %c0_272] : memref<10x10x128xf32, #tpu.memory_space<vmem>>, vector<8x8x128xf32>
    tpu.vector_store %arg53[%c1_270, %c1_271, %c0_272], %362 {strides = array<i32>} : memref<10x10x128xf32, #tpu.memory_space<vmem>>, vector<8x8x128xf32>,
    %c0_273 = arith.constant 0 : index
    %c0_274 = arith.constant 0 : index
    %364 = vector.load %arg26[%c0_273, %c0_274] : memref<128x256xbf16, #tpu.memory_space<vmem>>, vector<128x256xbf16>
    %c0_275 = arith.constant 0 : index
    %c0_276 = arith.constant 0 : index
    %365 = vector.load %arg24[%c0_275, %c0_276] : memref<1x128xf32, #tpu.memory_space<vmem>>, vector<1x128xf32>
    %c0_277 = arith.constant 0 : index
    %c0_278 = arith.constant 0 : index
    %366 = vector.load %arg25[%c0_277, %c0_278] : memref<1x128xf32, #tpu.memory_space<vmem>>, vector<1x128xf32>
    %c0_279 = arith.constant 0 : index
    %c0_280 = arith.constant 0 : index
    %367 = vector.load %arg27[%c0_279, %c0_280] : memref<1x256xf32, #tpu.memory_space<vmem>>, vector<1x256xf32>
    %c0_281 = arith.constant 0 : index
    %c0_282 = arith.constant 0 : index
    %368 = vector.load %arg28[%c0_281, %c0_282] : memref<1x256xf32, #tpu.memory_space<vmem>>, vector<1x256xf32>
    %cst_283 = arith.constant 0.000000e+00 : f32
    %369 = vector.broadcast %cst_283 : f32 to vector<6x6x256xf32>
    %c0_284 = arith.constant 0 : index
    %c0_285 = arith.constant 0 : index
    %c0_286 = arith.constant 0 : index
    %370 = vector.load %arg54[%c0_284, %c0_285, %c0_286] : memref<6x6x256xf32, #tpu.memory_space<vmem>>, vector<6x6x256xf32>
    tpu.vector_store %arg54[%c0_284, %c0_285, %c0_286], %369 {strides = array<i32>} : memref<6x6x256xf32, #tpu.memory_space<vmem>>, vector<6x6x256xf32>,
    %cst_287 = arith.constant 0.000000e+00 : f32
    %371 = vector.broadcast %cst_287 : f32 to vector<4x4x128xf32>
    %c0_288 = arith.constant 0 : index
    %c0_289 = arith.constant 0 : index
    %c0_290 = arith.constant 0 : index
    %372 = tpu.strided_load %arg53[%c0_288, %c0_289, %c0_290] {strides = array<i32: 2, 2, 1>} : memref<10x10x128xf32, #tpu.memory_space<vmem>>, vector<4x4x128xf32>
    %c0_291 = arith.constant 0 : index
    %c0_292 = arith.constant 0 : index
    %373 = vector.load %arg23[%c0_291, %c0_292] : memref<9x128xf32, #tpu.memory_space<vmem>>, vector<1x128xf32>
    %374 = vector.shape_cast %373 : vector<1x128xf32> to vector<1x1x128xf32>
    %375 = vector.broadcast %374 : vector<1x1x128xf32> to vector<4x4x128xf32>
    %376 = arith.mulf %372, %375 : vector<4x4x128xf32>
    %377 = arith.addf %371, %376 : vector<4x4x128xf32>
    %c0_293 = arith.constant 0 : index
    %c1_294 = arith.constant 1 : index
    %c0_295 = arith.constant 0 : index
    %378 = tpu.strided_load %arg53[%c0_293, %c1_294, %c0_295] {strides = array<i32: 2, 2, 1>} : memref<10x10x128xf32, #tpu.memory_space<vmem>>, vector<4x4x128xf32>
    %c1_296 = arith.constant 1 : index
    %c0_297 = arith.constant 0 : index
    %379 = vector.load %arg23[%c1_296, %c0_297] : memref<9x128xf32, #tpu.memory_space<vmem>>, vector<1x128xf32>
    %380 = vector.shape_cast %379 : vector<1x128xf32> to vector<1x1x128xf32>
    %381 = vector.broadcast %380 : vector<1x1x128xf32> to vector<4x4x128xf32>
    %382 = arith.mulf %378, %381 : vector<4x4x128xf32>
    %383 = arith.addf %377, %382 : vector<4x4x128xf32>
    %c0_298 = arith.constant 0 : index
    %c2_299 = arith.constant 2 : index
    %c0_300 = arith.constant 0 : index
    %384 = tpu.strided_load %arg53[%c0_298, %c2_299, %c0_300] {strides = array<i32: 2, 2, 1>} : memref<10x10x128xf32, #tpu.memory_space<vmem>>, vector<4x4x128xf32>
    %c2_301 = arith.constant 2 : index
    %c0_302 = arith.constant 0 : index
    %385 = vector.load %arg23[%c2_301, %c0_302] : memref<9x128xf32, #tpu.memory_space<vmem>>, vector<1x128xf32>
    %386 = vector.shape_cast %385 : vector<1x128xf32> to vector<1x1x128xf32>
    %387 = vector.broadcast %386 : vector<1x1x128xf32> to vector<4x4x128xf32>
    %388 = arith.mulf %384, %387 : vector<4x4x128xf32>
    %389 = arith.addf %383, %388 : vector<4x4x128xf32>
    %c1_303 = arith.constant 1 : index
    %c0_304 = arith.constant 0 : index
    %c0_305 = arith.constant 0 : index
    %390 = tpu.strided_load %arg53[%c1_303, %c0_304, %c0_305] {strides = array<i32: 2, 2, 1>} : memref<10x10x128xf32, #tpu.memory_space<vmem>>, vector<4x4x128xf32>
    %c3_306 = arith.constant 3 : index
    %c0_307 = arith.constant 0 : index
    %391 = vector.load %arg23[%c3_306, %c0_307] : memref<9x128xf32, #tpu.memory_space<vmem>>, vector<1x128xf32>
    %392 = vector.shape_cast %391 : vector<1x128xf32> to vector<1x1x128xf32>
    %393 = vector.broadcast %392 : vector<1x1x128xf32> to vector<4x4x128xf32>
    %394 = arith.mulf %390, %393 : vector<4x4x128xf32>
    %395 = arith.addf %389, %394 : vector<4x4x128xf32>
    %c1_308 = arith.constant 1 : index
    %c1_309 = arith.constant 1 : index
    %c0_310 = arith.constant 0 : index
    %396 = tpu.strided_load %arg53[%c1_308, %c1_309, %c0_310] {strides = array<i32: 2, 2, 1>} : memref<10x10x128xf32, #tpu.memory_space<vmem>>, vector<4x4x128xf32>
    %c4_311 = arith.constant 4 : index
    %c0_312 = arith.constant 0 : index
    %397 = vector.load %arg23[%c4_311, %c0_312] : memref<9x128xf32, #tpu.memory_space<vmem>>, vector<1x128xf32>
    %398 = vector.shape_cast %397 : vector<1x128xf32> to vector<1x1x128xf32>
    %399 = vector.broadcast %398 : vector<1x1x128xf32> to vector<4x4x128xf32>
    %400 = arith.mulf %396, %399 : vector<4x4x128xf32>
    %401 = arith.addf %395, %400 : vector<4x4x128xf32>
    %c1_313 = arith.constant 1 : index
    %c2_314 = arith.constant 2 : index
    %c0_315 = arith.constant 0 : index
    %402 = tpu.strided_load %arg53[%c1_313, %c2_314, %c0_315] {strides = array<i32: 2, 2, 1>} : memref<10x10x128xf32, #tpu.memory_space<vmem>>, vector<4x4x128xf32>
    %c5_316 = arith.constant 5 : index
    %c0_317 = arith.constant 0 : index
    %403 = vector.load %arg23[%c5_316, %c0_317] : memref<9x128xf32, #tpu.memory_space<vmem>>, vector<1x128xf32>
    %404 = vector.shape_cast %403 : vector<1x128xf32> to vector<1x1x128xf32>
    %405 = vector.broadcast %404 : vector<1x1x128xf32> to vector<4x4x128xf32>
    %406 = arith.mulf %402, %405 : vector<4x4x128xf32>
    %407 = arith.addf %401, %406 : vector<4x4x128xf32>
    %c2_318 = arith.constant 2 : index
    %c0_319 = arith.constant 0 : index
    %c0_320 = arith.constant 0 : index
    %408 = tpu.strided_load %arg53[%c2_318, %c0_319, %c0_320] {strides = array<i32: 2, 2, 1>} : memref<10x10x128xf32, #tpu.memory_space<vmem>>, vector<4x4x128xf32>
    %c6_321 = arith.constant 6 : index
    %c0_322 = arith.constant 0 : index
    %409 = vector.load %arg23[%c6_321, %c0_322] : memref<9x128xf32, #tpu.memory_space<vmem>>, vector<1x128xf32>
    %410 = vector.shape_cast %409 : vector<1x128xf32> to vector<1x1x128xf32>
    %411 = vector.broadcast %410 : vector<1x1x128xf32> to vector<4x4x128xf32>
    %412 = arith.mulf %408, %411 : vector<4x4x128xf32>
    %413 = arith.addf %407, %412 : vector<4x4x128xf32>
    %c2_323 = arith.constant 2 : index
    %c1_324 = arith.constant 1 : index
    %c0_325 = arith.constant 0 : index
    %414 = tpu.strided_load %arg53[%c2_323, %c1_324, %c0_325] {strides = array<i32: 2, 2, 1>} : memref<10x10x128xf32, #tpu.memory_space<vmem>>, vector<4x4x128xf32>
    %c7_326 = arith.constant 7 : index
    %c0_327 = arith.constant 0 : index
    %415 = vector.load %arg23[%c7_326, %c0_327] : memref<9x128xf32, #tpu.memory_space<vmem>>, vector<1x128xf32>
    %416 = vector.shape_cast %415 : vector<1x128xf32> to vector<1x1x128xf32>
    %417 = vector.broadcast %416 : vector<1x1x128xf32> to vector<4x4x128xf32>
    %418 = arith.mulf %414, %417 : vector<4x4x128xf32>
    %419 = arith.addf %413, %418 : vector<4x4x128xf32>
    %c2_328 = arith.constant 2 : index
    %c2_329 = arith.constant 2 : index
    %c0_330 = arith.constant 0 : index
    %420 = tpu.strided_load %arg53[%c2_328, %c2_329, %c0_330] {strides = array<i32: 2, 2, 1>} : memref<10x10x128xf32, #tpu.memory_space<vmem>>, vector<4x4x128xf32>
    %c8_331 = arith.constant 8 : index
    %c0_332 = arith.constant 0 : index
    %421 = vector.load %arg23[%c8_331, %c0_332] : memref<9x128xf32, #tpu.memory_space<vmem>>, vector<1x128xf32>
    %422 = vector.shape_cast %421 : vector<1x128xf32> to vector<1x1x128xf32>
    %423 = vector.broadcast %422 : vector<1x1x128xf32> to vector<4x4x128xf32>
    %424 = arith.mulf %420, %423 : vector<4x4x128xf32>
    %425 = arith.addf %419, %424 : vector<4x4x128xf32>
    %426 = vector.shape_cast %365 : vector<1x128xf32> to vector<1x1x128xf32>
    %427 = vector.broadcast %426 : vector<1x1x128xf32> to vector<4x4x128xf32>
    %428 = arith.mulf %425, %427 : vector<4x4x128xf32>
    %429 = vector.shape_cast %366 : vector<1x128xf32> to vector<1x1x128xf32>
    %430 = vector.broadcast %429 : vector<1x1x128xf32> to vector<4x4x128xf32>
    %431 = arith.addf %428, %430 : vector<4x4x128xf32>
    %cst_333 = arith.constant 0.000000e+00 : f32
    %cst_334 = arith.constant 6.000000e+00 : f32
    %432 = vector.broadcast %cst_333 : f32 to vector<4x4x128xf32>
    %433 = arith.maximumf %432, %431 : vector<4x4x128xf32>
    %434 = vector.broadcast %cst_334 : f32 to vector<4x4x128xf32>
    %435 = arith.minimumf %434, %433 : vector<4x4x128xf32>
    %436 = arith.truncf %435 : vector<4x4x128xf32> to vector<4x4x128xbf16>
    %437 = vector.extract_strided_slice %436 {offsets = [0, 0, 0], sizes = [1, 4, 128], strides = [1, 1, 1]} : vector<4x4x128xbf16> to vector<1x4x128xbf16>
    %438 = vector.shape_cast %437 : vector<1x4x128xbf16> to vector<4x128xbf16>
    %cst_335 = arith.constant dense<0.000000e+00> : vector<4x256xf32>
    %439 = tpu.matmul %438, %364, %cst_335 {dimension_numbers = #tpu.dot_dimension_numbers<[1], [0], [0], [1], [0, 0, 1, 1], [], []>} : vector<4x128xbf16>, vector<128x256xbf16>, vector<4x256xf32> -> vector<4x256xf32>
    %440 = vector.broadcast %367 : vector<1x256xf32> to vector<4x256xf32>
    %441 = arith.mulf %439, %440 : vector<4x256xf32>
    %442 = vector.broadcast %368 : vector<1x256xf32> to vector<4x256xf32>
    %443 = arith.addf %441, %442 : vector<4x256xf32>
    %cst_336 = arith.constant 0.000000e+00 : f32
    %cst_337 = arith.constant 6.000000e+00 : f32
    %444 = vector.broadcast %cst_336 : f32 to vector<4x256xf32>
    %445 = arith.maximumf %444, %443 : vector<4x256xf32>
    %446 = vector.broadcast %cst_337 : f32 to vector<4x256xf32>
    %447 = arith.minimumf %446, %445 : vector<4x256xf32>
    %c1_338 = arith.constant 1 : index
    %c1_339 = arith.constant 1 : index
    %c0_340 = arith.constant 0 : index
    %448 = vector.load %arg54[%c1_338, %c1_339, %c0_340] : memref<6x6x256xf32, #tpu.memory_space<vmem>>, vector<1x4x256xf32>
    %449 = vector.shape_cast %448 : vector<1x4x256xf32> to vector<4x256xf32>
    %450 = vector.shape_cast %447 : vector<4x256xf32> to vector<1x4x256xf32>
    tpu.vector_store %arg54[%c1_338, %c1_339, %c0_340], %450 {strides = array<i32>} : memref<6x6x256xf32, #tpu.memory_space<vmem>>, vector<1x4x256xf32>,
    %451 = vector.extract_strided_slice %436 {offsets = [1, 0, 0], sizes = [1, 4, 128], strides = [1, 1, 1]} : vector<4x4x128xbf16> to vector<1x4x128xbf16>
    %452 = vector.shape_cast %451 : vector<1x4x128xbf16> to vector<4x128xbf16>
    %cst_341 = arith.constant dense<0.000000e+00> : vector<4x256xf32>
    %453 = tpu.matmul %452, %364, %cst_341 {dimension_numbers = #tpu.dot_dimension_numbers<[1], [0], [0], [1], [0, 0, 1, 1], [], []>} : vector<4x128xbf16>, vector<128x256xbf16>, vector<4x256xf32> -> vector<4x256xf32>
    %454 = vector.broadcast %367 : vector<1x256xf32> to vector<4x256xf32>
    %455 = arith.mulf %453, %454 : vector<4x256xf32>
    %456 = vector.broadcast %368 : vector<1x256xf32> to vector<4x256xf32>
    %457 = arith.addf %455, %456 : vector<4x256xf32>
    %cst_342 = arith.constant 0.000000e+00 : f32
    %cst_343 = arith.constant 6.000000e+00 : f32
    %458 = vector.broadcast %cst_342 : f32 to vector<4x256xf32>
    %459 = arith.maximumf %458, %457 : vector<4x256xf32>
    %460 = vector.broadcast %cst_343 : f32 to vector<4x256xf32>
    %461 = arith.minimumf %460, %459 : vector<4x256xf32>
    %c2_344 = arith.constant 2 : index
    %c1_345 = arith.constant 1 : index
    %c0_346 = arith.constant 0 : index
    %462 = vector.load %arg54[%c2_344, %c1_345, %c0_346] : memref<6x6x256xf32, #tpu.memory_space<vmem>>, vector<1x4x256xf32>
    %463 = vector.shape_cast %462 : vector<1x4x256xf32> to vector<4x256xf32>
    %464 = vector.shape_cast %461 : vector<4x256xf32> to vector<1x4x256xf32>
    tpu.vector_store %arg54[%c2_344, %c1_345, %c0_346], %464 {strides = array<i32>} : memref<6x6x256xf32, #tpu.memory_space<vmem>>, vector<1x4x256xf32>,
    %465 = vector.extract_strided_slice %436 {offsets = [2, 0, 0], sizes = [1, 4, 128], strides = [1, 1, 1]} : vector<4x4x128xbf16> to vector<1x4x128xbf16>
    %466 = vector.shape_cast %465 : vector<1x4x128xbf16> to vector<4x128xbf16>
    %cst_347 = arith.constant dense<0.000000e+00> : vector<4x256xf32>
    %467 = tpu.matmul %466, %364, %cst_347 {dimension_numbers = #tpu.dot_dimension_numbers<[1], [0], [0], [1], [0, 0, 1, 1], [], []>} : vector<4x128xbf16>, vector<128x256xbf16>, vector<4x256xf32> -> vector<4x256xf32>
    %468 = vector.broadcast %367 : vector<1x256xf32> to vector<4x256xf32>
    %469 = arith.mulf %467, %468 : vector<4x256xf32>
    %470 = vector.broadcast %368 : vector<1x256xf32> to vector<4x256xf32>
    %471 = arith.addf %469, %470 : vector<4x256xf32>
    %cst_348 = arith.constant 0.000000e+00 : f32
    %cst_349 = arith.constant 6.000000e+00 : f32
    %472 = vector.broadcast %cst_348 : f32 to vector<4x256xf32>
    %473 = arith.maximumf %472, %471 : vector<4x256xf32>
    %474 = vector.broadcast %cst_349 : f32 to vector<4x256xf32>
    %475 = arith.minimumf %474, %473 : vector<4x256xf32>
    %c3_350 = arith.constant 3 : index
    %c1_351 = arith.constant 1 : index
    %c0_352 = arith.constant 0 : index
    %476 = vector.load %arg54[%c3_350, %c1_351, %c0_352] : memref<6x6x256xf32, #tpu.memory_space<vmem>>, vector<1x4x256xf32>
    %477 = vector.shape_cast %476 : vector<1x4x256xf32> to vector<4x256xf32>
    %478 = vector.shape_cast %475 : vector<4x256xf32> to vector<1x4x256xf32>
    tpu.vector_store %arg54[%c3_350, %c1_351, %c0_352], %478 {strides = array<i32>} : memref<6x6x256xf32, #tpu.memory_space<vmem>>, vector<1x4x256xf32>,
    %479 = vector.extract_strided_slice %436 {offsets = [3, 0, 0], sizes = [1, 4, 128], strides = [1, 1, 1]} : vector<4x4x128xbf16> to vector<1x4x128xbf16>
    %480 = vector.shape_cast %479 : vector<1x4x128xbf16> to vector<4x128xbf16>
    %cst_353 = arith.constant dense<0.000000e+00> : vector<4x256xf32>
    %481 = tpu.matmul %480, %364, %cst_353 {dimension_numbers = #tpu.dot_dimension_numbers<[1], [0], [0], [1], [0, 0, 1, 1], [], []>} : vector<4x128xbf16>, vector<128x256xbf16>, vector<4x256xf32> -> vector<4x256xf32>
    %482 = vector.broadcast %367 : vector<1x256xf32> to vector<4x256xf32>
    %483 = arith.mulf %481, %482 : vector<4x256xf32>
    %484 = vector.broadcast %368 : vector<1x256xf32> to vector<4x256xf32>
    %485 = arith.addf %483, %484 : vector<4x256xf32>
    %cst_354 = arith.constant 0.000000e+00 : f32
    %cst_355 = arith.constant 6.000000e+00 : f32
    %486 = vector.broadcast %cst_354 : f32 to vector<4x256xf32>
    %487 = arith.maximumf %486, %485 : vector<4x256xf32>
    %488 = vector.broadcast %cst_355 : f32 to vector<4x256xf32>
    %489 = arith.minimumf %488, %487 : vector<4x256xf32>
    %c4_356 = arith.constant 4 : index
    %c1_357 = arith.constant 1 : index
    %c0_358 = arith.constant 0 : index
    %490 = vector.load %arg54[%c4_356, %c1_357, %c0_358] : memref<6x6x256xf32, #tpu.memory_space<vmem>>, vector<1x4x256xf32>
    %491 = vector.shape_cast %490 : vector<1x4x256xf32> to vector<4x256xf32>
    %492 = vector.shape_cast %489 : vector<4x256xf32> to vector<1x4x256xf32>
    tpu.vector_store %arg54[%c4_356, %c1_357, %c0_358], %492 {strides = array<i32>} : memref<6x6x256xf32, #tpu.memory_space<vmem>>, vector<1x4x256xf32>,
    %c0_359 = arith.constant 0 : index
    %c0_360 = arith.constant 0 : index
    %493 = vector.load %arg32[%c0_359, %c0_360] : memref<256x256xbf16, #tpu.memory_space<vmem>>, vector<256x256xbf16>
    %c0_361 = arith.constant 0 : index
    %c0_362 = arith.constant 0 : index
    %494 = vector.load %arg30[%c0_361, %c0_362] : memref<1x256xf32, #tpu.memory_space<vmem>>, vector<1x256xf32>
    %c0_363 = arith.constant 0 : index
    %c0_364 = arith.constant 0 : index
    %495 = vector.load %arg31[%c0_363, %c0_364] : memref<1x256xf32, #tpu.memory_space<vmem>>, vector<1x256xf32>
    %c0_365 = arith.constant 0 : index
    %c0_366 = arith.constant 0 : index
    %496 = vector.load %arg33[%c0_365, %c0_366] : memref<1x256xf32, #tpu.memory_space<vmem>>, vector<1x256xf32>
    %c0_367 = arith.constant 0 : index
    %c0_368 = arith.constant 0 : index
    %497 = vector.load %arg34[%c0_367, %c0_368] : memref<1x256xf32, #tpu.memory_space<vmem>>, vector<1x256xf32>
    %cst_369 = arith.constant 0.000000e+00 : f32
    %498 = vector.broadcast %cst_369 : f32 to vector<6x6x256xf32>
    %c0_370 = arith.constant 0 : index
    %c0_371 = arith.constant 0 : index
    %c0_372 = arith.constant 0 : index
    %499 = vector.load %arg55[%c0_370, %c0_371, %c0_372] : memref<6x6x256xf32, #tpu.memory_space<vmem>>, vector<6x6x256xf32>
    tpu.vector_store %arg55[%c0_370, %c0_371, %c0_372], %498 {strides = array<i32>} : memref<6x6x256xf32, #tpu.memory_space<vmem>>, vector<6x6x256xf32>,
    %cst_373 = arith.constant 0.000000e+00 : f32
    %500 = vector.broadcast %cst_373 : f32 to vector<4x4x256xf32>
    %c0_374 = arith.constant 0 : index
    %c0_375 = arith.constant 0 : index
    %c0_376 = arith.constant 0 : index
    %501 = vector.load %arg54[%c0_374, %c0_375, %c0_376] : memref<6x6x256xf32, #tpu.memory_space<vmem>>, vector<4x4x256xf32>
    %c0_377 = arith.constant 0 : index
    %c0_378 = arith.constant 0 : index
    %502 = vector.load %arg29[%c0_377, %c0_378] : memref<9x256xf32, #tpu.memory_space<vmem>>, vector<1x256xf32>
    %503 = vector.shape_cast %502 : vector<1x256xf32> to vector<1x1x256xf32>
    %504 = vector.broadcast %503 : vector<1x1x256xf32> to vector<4x4x256xf32>
    %505 = arith.mulf %501, %504 : vector<4x4x256xf32>
    %506 = arith.addf %500, %505 : vector<4x4x256xf32>
    %c0_379 = arith.constant 0 : index
    %c1_380 = arith.constant 1 : index
    %c0_381 = arith.constant 0 : index
    %507 = vector.load %arg54[%c0_379, %c1_380, %c0_381] : memref<6x6x256xf32, #tpu.memory_space<vmem>>, vector<4x4x256xf32>
    %c1_382 = arith.constant 1 : index
    %c0_383 = arith.constant 0 : index
    %508 = vector.load %arg29[%c1_382, %c0_383] : memref<9x256xf32, #tpu.memory_space<vmem>>, vector<1x256xf32>
    %509 = vector.shape_cast %508 : vector<1x256xf32> to vector<1x1x256xf32>
    %510 = vector.broadcast %509 : vector<1x1x256xf32> to vector<4x4x256xf32>
    %511 = arith.mulf %507, %510 : vector<4x4x256xf32>
    %512 = arith.addf %506, %511 : vector<4x4x256xf32>
    %c0_384 = arith.constant 0 : index
    %c2_385 = arith.constant 2 : index
    %c0_386 = arith.constant 0 : index
    %513 = vector.load %arg54[%c0_384, %c2_385, %c0_386] : memref<6x6x256xf32, #tpu.memory_space<vmem>>, vector<4x4x256xf32>
    %c2_387 = arith.constant 2 : index
    %c0_388 = arith.constant 0 : index
    %514 = vector.load %arg29[%c2_387, %c0_388] : memref<9x256xf32, #tpu.memory_space<vmem>>, vector<1x256xf32>
    %515 = vector.shape_cast %514 : vector<1x256xf32> to vector<1x1x256xf32>
    %516 = vector.broadcast %515 : vector<1x1x256xf32> to vector<4x4x256xf32>
    %517 = arith.mulf %513, %516 : vector<4x4x256xf32>
    %518 = arith.addf %512, %517 : vector<4x4x256xf32>
    %c1_389 = arith.constant 1 : index
    %c0_390 = arith.constant 0 : index
    %c0_391 = arith.constant 0 : index
    %519 = vector.load %arg54[%c1_389, %c0_390, %c0_391] : memref<6x6x256xf32, #tpu.memory_space<vmem>>, vector<4x4x256xf32>
    %c3_392 = arith.constant 3 : index
    %c0_393 = arith.constant 0 : index
    %520 = vector.load %arg29[%c3_392, %c0_393] : memref<9x256xf32, #tpu.memory_space<vmem>>, vector<1x256xf32>
    %521 = vector.shape_cast %520 : vector<1x256xf32> to vector<1x1x256xf32>
    %522 = vector.broadcast %521 : vector<1x1x256xf32> to vector<4x4x256xf32>
    %523 = arith.mulf %519, %522 : vector<4x4x256xf32>
    %524 = arith.addf %518, %523 : vector<4x4x256xf32>
    %c1_394 = arith.constant 1 : index
    %c1_395 = arith.constant 1 : index
    %c0_396 = arith.constant 0 : index
    %525 = vector.load %arg54[%c1_394, %c1_395, %c0_396] : memref<6x6x256xf32, #tpu.memory_space<vmem>>, vector<4x4x256xf32>
    %c4_397 = arith.constant 4 : index
    %c0_398 = arith.constant 0 : index
    %526 = vector.load %arg29[%c4_397, %c0_398] : memref<9x256xf32, #tpu.memory_space<vmem>>, vector<1x256xf32>
    %527 = vector.shape_cast %526 : vector<1x256xf32> to vector<1x1x256xf32>
    %528 = vector.broadcast %527 : vector<1x1x256xf32> to vector<4x4x256xf32>
    %529 = arith.mulf %525, %528 : vector<4x4x256xf32>
    %530 = arith.addf %524, %529 : vector<4x4x256xf32>
    %c1_399 = arith.constant 1 : index
    %c2_400 = arith.constant 2 : index
    %c0_401 = arith.constant 0 : index
    %531 = vector.load %arg54[%c1_399, %c2_400, %c0_401] : memref<6x6x256xf32, #tpu.memory_space<vmem>>, vector<4x4x256xf32>
    %c5_402 = arith.constant 5 : index
    %c0_403 = arith.constant 0 : index
    %532 = vector.load %arg29[%c5_402, %c0_403] : memref<9x256xf32, #tpu.memory_space<vmem>>, vector<1x256xf32>
    %533 = vector.shape_cast %532 : vector<1x256xf32> to vector<1x1x256xf32>
    %534 = vector.broadcast %533 : vector<1x1x256xf32> to vector<4x4x256xf32>
    %535 = arith.mulf %531, %534 : vector<4x4x256xf32>
    %536 = arith.addf %530, %535 : vector<4x4x256xf32>
    %c2_404 = arith.constant 2 : index
    %c0_405 = arith.constant 0 : index
    %c0_406 = arith.constant 0 : index
    %537 = vector.load %arg54[%c2_404, %c0_405, %c0_406] : memref<6x6x256xf32, #tpu.memory_space<vmem>>, vector<4x4x256xf32>
    %c6_407 = arith.constant 6 : index
    %c0_408 = arith.constant 0 : index
    %538 = vector.load %arg29[%c6_407, %c0_408] : memref<9x256xf32, #tpu.memory_space<vmem>>, vector<1x256xf32>
    %539 = vector.shape_cast %538 : vector<1x256xf32> to vector<1x1x256xf32>
    %540 = vector.broadcast %539 : vector<1x1x256xf32> to vector<4x4x256xf32>
    %541 = arith.mulf %537, %540 : vector<4x4x256xf32>
    %542 = arith.addf %536, %541 : vector<4x4x256xf32>
    %c2_409 = arith.constant 2 : index
    %c1_410 = arith.constant 1 : index
    %c0_411 = arith.constant 0 : index
    %543 = vector.load %arg54[%c2_409, %c1_410, %c0_411] : memref<6x6x256xf32, #tpu.memory_space<vmem>>, vector<4x4x256xf32>
    %c7_412 = arith.constant 7 : index
    %c0_413 = arith.constant 0 : index
    %544 = vector.load %arg29[%c7_412, %c0_413] : memref<9x256xf32, #tpu.memory_space<vmem>>, vector<1x256xf32>
    %545 = vector.shape_cast %544 : vector<1x256xf32> to vector<1x1x256xf32>
    %546 = vector.broadcast %545 : vector<1x1x256xf32> to vector<4x4x256xf32>
    %547 = arith.mulf %543, %546 : vector<4x4x256xf32>
    %548 = arith.addf %542, %547 : vector<4x4x256xf32>
    %c2_414 = arith.constant 2 : index
    %c2_415 = arith.constant 2 : index
    %c0_416 = arith.constant 0 : index
    %549 = vector.load %arg54[%c2_414, %c2_415, %c0_416] : memref<6x6x256xf32, #tpu.memory_space<vmem>>, vector<4x4x256xf32>
    %c8_417 = arith.constant 8 : index
    %c0_418 = arith.constant 0 : index
    %550 = vector.load %arg29[%c8_417, %c0_418] : memref<9x256xf32, #tpu.memory_space<vmem>>, vector<1x256xf32>
    %551 = vector.shape_cast %550 : vector<1x256xf32> to vector<1x1x256xf32>
    %552 = vector.broadcast %551 : vector<1x1x256xf32> to vector<4x4x256xf32>
    %553 = arith.mulf %549, %552 : vector<4x4x256xf32>
    %554 = arith.addf %548, %553 : vector<4x4x256xf32>
    %555 = vector.shape_cast %494 : vector<1x256xf32> to vector<1x1x256xf32>
    %556 = vector.broadcast %555 : vector<1x1x256xf32> to vector<4x4x256xf32>
    %557 = arith.mulf %554, %556 : vector<4x4x256xf32>
    %558 = vector.shape_cast %495 : vector<1x256xf32> to vector<1x1x256xf32>
    %559 = vector.broadcast %558 : vector<1x1x256xf32> to vector<4x4x256xf32>
    %560 = arith.addf %557, %559 : vector<4x4x256xf32>
    %cst_419 = arith.constant 0.000000e+00 : f32
    %cst_420 = arith.constant 6.000000e+00 : f32
    %561 = vector.broadcast %cst_419 : f32 to vector<4x4x256xf32>
    %562 = arith.maximumf %561, %560 : vector<4x4x256xf32>
    %563 = vector.broadcast %cst_420 : f32 to vector<4x4x256xf32>
    %564 = arith.minimumf %563, %562 : vector<4x4x256xf32>
    %565 = arith.truncf %564 : vector<4x4x256xf32> to vector<4x4x256xbf16>
    %566 = vector.extract_strided_slice %565 {offsets = [0, 0, 0], sizes = [1, 4, 256], strides = [1, 1, 1]} : vector<4x4x256xbf16> to vector<1x4x256xbf16>
    %567 = vector.shape_cast %566 : vector<1x4x256xbf16> to vector<4x256xbf16>
    %cst_421 = arith.constant dense<0.000000e+00> : vector<4x256xf32>
    %568 = tpu.matmul %567, %493, %cst_421 {dimension_numbers = #tpu.dot_dimension_numbers<[1], [0], [0], [1], [0, 0, 1, 1], [], []>} : vector<4x256xbf16>, vector<256x256xbf16>, vector<4x256xf32> -> vector<4x256xf32>
    %569 = vector.broadcast %496 : vector<1x256xf32> to vector<4x256xf32>
    %570 = arith.mulf %568, %569 : vector<4x256xf32>
    %571 = vector.broadcast %497 : vector<1x256xf32> to vector<4x256xf32>
    %572 = arith.addf %570, %571 : vector<4x256xf32>
    %cst_422 = arith.constant 0.000000e+00 : f32
    %cst_423 = arith.constant 6.000000e+00 : f32
    %573 = vector.broadcast %cst_422 : f32 to vector<4x256xf32>
    %574 = arith.maximumf %573, %572 : vector<4x256xf32>
    %575 = vector.broadcast %cst_423 : f32 to vector<4x256xf32>
    %576 = arith.minimumf %575, %574 : vector<4x256xf32>
    %c1_424 = arith.constant 1 : index
    %c1_425 = arith.constant 1 : index
    %c0_426 = arith.constant 0 : index
    %577 = vector.load %arg55[%c1_424, %c1_425, %c0_426] : memref<6x6x256xf32, #tpu.memory_space<vmem>>, vector<1x4x256xf32>
    %578 = vector.shape_cast %577 : vector<1x4x256xf32> to vector<4x256xf32>
    %579 = vector.shape_cast %576 : vector<4x256xf32> to vector<1x4x256xf32>
    tpu.vector_store %arg55[%c1_424, %c1_425, %c0_426], %579 {strides = array<i32>} : memref<6x6x256xf32, #tpu.memory_space<vmem>>, vector<1x4x256xf32>,
    %580 = vector.extract_strided_slice %565 {offsets = [1, 0, 0], sizes = [1, 4, 256], strides = [1, 1, 1]} : vector<4x4x256xbf16> to vector<1x4x256xbf16>
    %581 = vector.shape_cast %580 : vector<1x4x256xbf16> to vector<4x256xbf16>
    %cst_427 = arith.constant dense<0.000000e+00> : vector<4x256xf32>
    %582 = tpu.matmul %581, %493, %cst_427 {dimension_numbers = #tpu.dot_dimension_numbers<[1], [0], [0], [1], [0, 0, 1, 1], [], []>} : vector<4x256xbf16>, vector<256x256xbf16>, vector<4x256xf32> -> vector<4x256xf32>
    %583 = vector.broadcast %496 : vector<1x256xf32> to vector<4x256xf32>
    %584 = arith.mulf %582, %583 : vector<4x256xf32>
    %585 = vector.broadcast %497 : vector<1x256xf32> to vector<4x256xf32>
    %586 = arith.addf %584, %585 : vector<4x256xf32>
    %cst_428 = arith.constant 0.000000e+00 : f32
    %cst_429 = arith.constant 6.000000e+00 : f32
    %587 = vector.broadcast %cst_428 : f32 to vector<4x256xf32>
    %588 = arith.maximumf %587, %586 : vector<4x256xf32>
    %589 = vector.broadcast %cst_429 : f32 to vector<4x256xf32>
    %590 = arith.minimumf %589, %588 : vector<4x256xf32>
    %c2_430 = arith.constant 2 : index
    %c1_431 = arith.constant 1 : index
    %c0_432 = arith.constant 0 : index
    %591 = vector.load %arg55[%c2_430, %c1_431, %c0_432] : memref<6x6x256xf32, #tpu.memory_space<vmem>>, vector<1x4x256xf32>
    %592 = vector.shape_cast %591 : vector<1x4x256xf32> to vector<4x256xf32>
    %593 = vector.shape_cast %590 : vector<4x256xf32> to vector<1x4x256xf32>
    tpu.vector_store %arg55[%c2_430, %c1_431, %c0_432], %593 {strides = array<i32>} : memref<6x6x256xf32, #tpu.memory_space<vmem>>, vector<1x4x256xf32>,
    %594 = vector.extract_strided_slice %565 {offsets = [2, 0, 0], sizes = [1, 4, 256], strides = [1, 1, 1]} : vector<4x4x256xbf16> to vector<1x4x256xbf16>
    %595 = vector.shape_cast %594 : vector<1x4x256xbf16> to vector<4x256xbf16>
    %cst_433 = arith.constant dense<0.000000e+00> : vector<4x256xf32>
    %596 = tpu.matmul %595, %493, %cst_433 {dimension_numbers = #tpu.dot_dimension_numbers<[1], [0], [0], [1], [0, 0, 1, 1], [], []>} : vector<4x256xbf16>, vector<256x256xbf16>, vector<4x256xf32> -> vector<4x256xf32>
    %597 = vector.broadcast %496 : vector<1x256xf32> to vector<4x256xf32>
    %598 = arith.mulf %596, %597 : vector<4x256xf32>
    %599 = vector.broadcast %497 : vector<1x256xf32> to vector<4x256xf32>
    %600 = arith.addf %598, %599 : vector<4x256xf32>
    %cst_434 = arith.constant 0.000000e+00 : f32
    %cst_435 = arith.constant 6.000000e+00 : f32
    %601 = vector.broadcast %cst_434 : f32 to vector<4x256xf32>
    %602 = arith.maximumf %601, %600 : vector<4x256xf32>
    %603 = vector.broadcast %cst_435 : f32 to vector<4x256xf32>
    %604 = arith.minimumf %603, %602 : vector<4x256xf32>
    %c3_436 = arith.constant 3 : index
    %c1_437 = arith.constant 1 : index
    %c0_438 = arith.constant 0 : index
    %605 = vector.load %arg55[%c3_436, %c1_437, %c0_438] : memref<6x6x256xf32, #tpu.memory_space<vmem>>, vector<1x4x256xf32>
    %606 = vector.shape_cast %605 : vector<1x4x256xf32> to vector<4x256xf32>
    %607 = vector.shape_cast %604 : vector<4x256xf32> to vector<1x4x256xf32>
    tpu.vector_store %arg55[%c3_436, %c1_437, %c0_438], %607 {strides = array<i32>} : memref<6x6x256xf32, #tpu.memory_space<vmem>>, vector<1x4x256xf32>,
    %608 = vector.extract_strided_slice %565 {offsets = [3, 0, 0], sizes = [1, 4, 256], strides = [1, 1, 1]} : vector<4x4x256xbf16> to vector<1x4x256xbf16>
    %609 = vector.shape_cast %608 : vector<1x4x256xbf16> to vector<4x256xbf16>
    %cst_439 = arith.constant dense<0.000000e+00> : vector<4x256xf32>
    %610 = tpu.matmul %609, %493, %cst_439 {dimension_numbers = #tpu.dot_dimension_numbers<[1], [0], [0], [1], [0, 0, 1, 1], [], []>} : vector<4x256xbf16>, vector<256x256xbf16>, vector<4x256xf32> -> vector<4x256xf32>
    %611 = vector.broadcast %496 : vector<1x256xf32> to vector<4x256xf32>
    %612 = arith.mulf %610, %611 : vector<4x256xf32>
    %613 = vector.broadcast %497 : vector<1x256xf32> to vector<4x256xf32>
    %614 = arith.addf %612, %613 : vector<4x256xf32>
    %cst_440 = arith.constant 0.000000e+00 : f32
    %cst_441 = arith.constant 6.000000e+00 : f32
    %615 = vector.broadcast %cst_440 : f32 to vector<4x256xf32>
    %616 = arith.maximumf %615, %614 : vector<4x256xf32>
    %617 = vector.broadcast %cst_441 : f32 to vector<4x256xf32>
    %618 = arith.minimumf %617, %616 : vector<4x256xf32>
    %c4_442 = arith.constant 4 : index
    %c1_443 = arith.constant 1 : index
    %c0_444 = arith.constant 0 : index
    %619 = vector.load %arg55[%c4_442, %c1_443, %c0_444] : memref<6x6x256xf32, #tpu.memory_space<vmem>>, vector<1x4x256xf32>
    %620 = vector.shape_cast %619 : vector<1x4x256xf32> to vector<4x256xf32>
    %621 = vector.shape_cast %618 : vector<4x256xf32> to vector<1x4x256xf32>
    tpu.vector_store %arg55[%c4_442, %c1_443, %c0_444], %621 {strides = array<i32>} : memref<6x6x256xf32, #tpu.memory_space<vmem>>, vector<1x4x256xf32>,
    %c0_445 = arith.constant 0 : index
    %c0_446 = arith.constant 0 : index
    %622 = vector.load %arg38[%c0_445, %c0_446] : memref<256x256xbf16, #tpu.memory_space<vmem>>, vector<256x256xbf16>
    %c0_447 = arith.constant 0 : index
    %c0_448 = arith.constant 0 : index
    %623 = vector.load %arg36[%c0_447, %c0_448] : memref<1x256xf32, #tpu.memory_space<vmem>>, vector<1x256xf32>
    %c0_449 = arith.constant 0 : index
    %c0_450 = arith.constant 0 : index
    %624 = vector.load %arg37[%c0_449, %c0_450] : memref<1x256xf32, #tpu.memory_space<vmem>>, vector<1x256xf32>
    %c0_451 = arith.constant 0 : index
    %c0_452 = arith.constant 0 : index
    %625 = vector.load %arg39[%c0_451, %c0_452] : memref<1x256xf32, #tpu.memory_space<vmem>>, vector<1x256xf32>
    %c0_453 = arith.constant 0 : index
    %c0_454 = arith.constant 0 : index
    %626 = vector.load %arg40[%c0_453, %c0_454] : memref<1x256xf32, #tpu.memory_space<vmem>>, vector<1x256xf32>
    %cst_455 = arith.constant 0.000000e+00 : f32
    %627 = vector.broadcast %cst_455 : f32 to vector<6x6x256xf32>
    %c0_456 = arith.constant 0 : index
    %c0_457 = arith.constant 0 : index
    %c0_458 = arith.constant 0 : index
    %628 = vector.load %arg56[%c0_456, %c0_457, %c0_458] : memref<6x6x256xf32, #tpu.memory_space<vmem>>, vector<6x6x256xf32>
    tpu.vector_store %arg56[%c0_456, %c0_457, %c0_458], %627 {strides = array<i32>} : memref<6x6x256xf32, #tpu.memory_space<vmem>>, vector<6x6x256xf32>,
    %cst_459 = arith.constant 0.000000e+00 : f32
    %629 = vector.broadcast %cst_459 : f32 to vector<4x4x256xf32>
    %c0_460 = arith.constant 0 : index
    %c0_461 = arith.constant 0 : index
    %c0_462 = arith.constant 0 : index
    %630 = vector.load %arg55[%c0_460, %c0_461, %c0_462] : memref<6x6x256xf32, #tpu.memory_space<vmem>>, vector<4x4x256xf32>
    %c0_463 = arith.constant 0 : index
    %c0_464 = arith.constant 0 : index
    %631 = vector.load %arg35[%c0_463, %c0_464] : memref<9x256xf32, #tpu.memory_space<vmem>>, vector<1x256xf32>
    %632 = vector.shape_cast %631 : vector<1x256xf32> to vector<1x1x256xf32>
    %633 = vector.broadcast %632 : vector<1x1x256xf32> to vector<4x4x256xf32>
    %634 = arith.mulf %630, %633 : vector<4x4x256xf32>
    %635 = arith.addf %629, %634 : vector<4x4x256xf32>
    %c0_465 = arith.constant 0 : index
    %c1_466 = arith.constant 1 : index
    %c0_467 = arith.constant 0 : index
    %636 = vector.load %arg55[%c0_465, %c1_466, %c0_467] : memref<6x6x256xf32, #tpu.memory_space<vmem>>, vector<4x4x256xf32>
    %c1_468 = arith.constant 1 : index
    %c0_469 = arith.constant 0 : index
    %637 = vector.load %arg35[%c1_468, %c0_469] : memref<9x256xf32, #tpu.memory_space<vmem>>, vector<1x256xf32>
    %638 = vector.shape_cast %637 : vector<1x256xf32> to vector<1x1x256xf32>
    %639 = vector.broadcast %638 : vector<1x1x256xf32> to vector<4x4x256xf32>
    %640 = arith.mulf %636, %639 : vector<4x4x256xf32>
    %641 = arith.addf %635, %640 : vector<4x4x256xf32>
    %c0_470 = arith.constant 0 : index
    %c2_471 = arith.constant 2 : index
    %c0_472 = arith.constant 0 : index
    %642 = vector.load %arg55[%c0_470, %c2_471, %c0_472] : memref<6x6x256xf32, #tpu.memory_space<vmem>>, vector<4x4x256xf32>
    %c2_473 = arith.constant 2 : index
    %c0_474 = arith.constant 0 : index
    %643 = vector.load %arg35[%c2_473, %c0_474] : memref<9x256xf32, #tpu.memory_space<vmem>>, vector<1x256xf32>
    %644 = vector.shape_cast %643 : vector<1x256xf32> to vector<1x1x256xf32>
    %645 = vector.broadcast %644 : vector<1x1x256xf32> to vector<4x4x256xf32>
    %646 = arith.mulf %642, %645 : vector<4x4x256xf32>
    %647 = arith.addf %641, %646 : vector<4x4x256xf32>
    %c1_475 = arith.constant 1 : index
    %c0_476 = arith.constant 0 : index
    %c0_477 = arith.constant 0 : index
    %648 = vector.load %arg55[%c1_475, %c0_476, %c0_477] : memref<6x6x256xf32, #tpu.memory_space<vmem>>, vector<4x4x256xf32>
    %c3_478 = arith.constant 3 : index
    %c0_479 = arith.constant 0 : index
    %649 = vector.load %arg35[%c3_478, %c0_479] : memref<9x256xf32, #tpu.memory_space<vmem>>, vector<1x256xf32>
    %650 = vector.shape_cast %649 : vector<1x256xf32> to vector<1x1x256xf32>
    %651 = vector.broadcast %650 : vector<1x1x256xf32> to vector<4x4x256xf32>
    %652 = arith.mulf %648, %651 : vector<4x4x256xf32>
    %653 = arith.addf %647, %652 : vector<4x4x256xf32>
    %c1_480 = arith.constant 1 : index
    %c1_481 = arith.constant 1 : index
    %c0_482 = arith.constant 0 : index
    %654 = vector.load %arg55[%c1_480, %c1_481, %c0_482] : memref<6x6x256xf32, #tpu.memory_space<vmem>>, vector<4x4x256xf32>
    %c4_483 = arith.constant 4 : index
    %c0_484 = arith.constant 0 : index
    %655 = vector.load %arg35[%c4_483, %c0_484] : memref<9x256xf32, #tpu.memory_space<vmem>>, vector<1x256xf32>
    %656 = vector.shape_cast %655 : vector<1x256xf32> to vector<1x1x256xf32>
    %657 = vector.broadcast %656 : vector<1x1x256xf32> to vector<4x4x256xf32>
    %658 = arith.mulf %654, %657 : vector<4x4x256xf32>
    %659 = arith.addf %653, %658 : vector<4x4x256xf32>
    %c1_485 = arith.constant 1 : index
    %c2_486 = arith.constant 2 : index
    %c0_487 = arith.constant 0 : index
    %660 = vector.load %arg55[%c1_485, %c2_486, %c0_487] : memref<6x6x256xf32, #tpu.memory_space<vmem>>, vector<4x4x256xf32>
    %c5_488 = arith.constant 5 : index
    %c0_489 = arith.constant 0 : index
    %661 = vector.load %arg35[%c5_488, %c0_489] : memref<9x256xf32, #tpu.memory_space<vmem>>, vector<1x256xf32>
    %662 = vector.shape_cast %661 : vector<1x256xf32> to vector<1x1x256xf32>
    %663 = vector.broadcast %662 : vector<1x1x256xf32> to vector<4x4x256xf32>
    %664 = arith.mulf %660, %663 : vector<4x4x256xf32>
    %665 = arith.addf %659, %664 : vector<4x4x256xf32>
    %c2_490 = arith.constant 2 : index
    %c0_491 = arith.constant 0 : index
    %c0_492 = arith.constant 0 : index
    %666 = vector.load %arg55[%c2_490, %c0_491, %c0_492] : memref<6x6x256xf32, #tpu.memory_space<vmem>>, vector<4x4x256xf32>
    %c6_493 = arith.constant 6 : index
    %c0_494 = arith.constant 0 : index
    %667 = vector.load %arg35[%c6_493, %c0_494] : memref<9x256xf32, #tpu.memory_space<vmem>>, vector<1x256xf32>
    %668 = vector.shape_cast %667 : vector<1x256xf32> to vector<1x1x256xf32>
    %669 = vector.broadcast %668 : vector<1x1x256xf32> to vector<4x4x256xf32>
    %670 = arith.mulf %666, %669 : vector<4x4x256xf32>
    %671 = arith.addf %665, %670 : vector<4x4x256xf32>
    %c2_495 = arith.constant 2 : index
    %c1_496 = arith.constant 1 : index
    %c0_497 = arith.constant 0 : index
    %672 = vector.load %arg55[%c2_495, %c1_496, %c0_497] : memref<6x6x256xf32, #tpu.memory_space<vmem>>, vector<4x4x256xf32>
    %c7_498 = arith.constant 7 : index
    %c0_499 = arith.constant 0 : index
    %673 = vector.load %arg35[%c7_498, %c0_499] : memref<9x256xf32, #tpu.memory_space<vmem>>, vector<1x256xf32>
    %674 = vector.shape_cast %673 : vector<1x256xf32> to vector<1x1x256xf32>
    %675 = vector.broadcast %674 : vector<1x1x256xf32> to vector<4x4x256xf32>
    %676 = arith.mulf %672, %675 : vector<4x4x256xf32>
    %677 = arith.addf %671, %676 : vector<4x4x256xf32>
    %c2_500 = arith.constant 2 : index
    %c2_501 = arith.constant 2 : index
    %c0_502 = arith.constant 0 : index
    %678 = vector.load %arg55[%c2_500, %c2_501, %c0_502] : memref<6x6x256xf32, #tpu.memory_space<vmem>>, vector<4x4x256xf32>
    %c8_503 = arith.constant 8 : index
    %c0_504 = arith.constant 0 : index
    %679 = vector.load %arg35[%c8_503, %c0_504] : memref<9x256xf32, #tpu.memory_space<vmem>>, vector<1x256xf32>
    %680 = vector.shape_cast %679 : vector<1x256xf32> to vector<1x1x256xf32>
    %681 = vector.broadcast %680 : vector<1x1x256xf32> to vector<4x4x256xf32>
    %682 = arith.mulf %678, %681 : vector<4x4x256xf32>
    %683 = arith.addf %677, %682 : vector<4x4x256xf32>
    %684 = vector.shape_cast %623 : vector<1x256xf32> to vector<1x1x256xf32>
    %685 = vector.broadcast %684 : vector<1x1x256xf32> to vector<4x4x256xf32>
    %686 = arith.mulf %683, %685 : vector<4x4x256xf32>
    %687 = vector.shape_cast %624 : vector<1x256xf32> to vector<1x1x256xf32>
    %688 = vector.broadcast %687 : vector<1x1x256xf32> to vector<4x4x256xf32>
    %689 = arith.addf %686, %688 : vector<4x4x256xf32>
    %cst_505 = arith.constant 0.000000e+00 : f32
    %cst_506 = arith.constant 6.000000e+00 : f32
    %690 = vector.broadcast %cst_505 : f32 to vector<4x4x256xf32>
    %691 = arith.maximumf %690, %689 : vector<4x4x256xf32>
    %692 = vector.broadcast %cst_506 : f32 to vector<4x4x256xf32>
    %693 = arith.minimumf %692, %691 : vector<4x4x256xf32>
    %694 = arith.truncf %693 : vector<4x4x256xf32> to vector<4x4x256xbf16>
    %695 = vector.extract_strided_slice %694 {offsets = [0, 0, 0], sizes = [1, 4, 256], strides = [1, 1, 1]} : vector<4x4x256xbf16> to vector<1x4x256xbf16>
    %696 = vector.shape_cast %695 : vector<1x4x256xbf16> to vector<4x256xbf16>
    %cst_507 = arith.constant dense<0.000000e+00> : vector<4x256xf32>
    %697 = tpu.matmul %696, %622, %cst_507 {dimension_numbers = #tpu.dot_dimension_numbers<[1], [0], [0], [1], [0, 0, 1, 1], [], []>} : vector<4x256xbf16>, vector<256x256xbf16>, vector<4x256xf32> -> vector<4x256xf32>
    %698 = vector.broadcast %625 : vector<1x256xf32> to vector<4x256xf32>
    %699 = arith.mulf %697, %698 : vector<4x256xf32>
    %700 = vector.broadcast %626 : vector<1x256xf32> to vector<4x256xf32>
    %701 = arith.addf %699, %700 : vector<4x256xf32>
    %cst_508 = arith.constant 0.000000e+00 : f32
    %cst_509 = arith.constant 6.000000e+00 : f32
    %702 = vector.broadcast %cst_508 : f32 to vector<4x256xf32>
    %703 = arith.maximumf %702, %701 : vector<4x256xf32>
    %704 = vector.broadcast %cst_509 : f32 to vector<4x256xf32>
    %705 = arith.minimumf %704, %703 : vector<4x256xf32>
    %c1_510 = arith.constant 1 : index
    %c1_511 = arith.constant 1 : index
    %c0_512 = arith.constant 0 : index
    %706 = vector.load %arg56[%c1_510, %c1_511, %c0_512] : memref<6x6x256xf32, #tpu.memory_space<vmem>>, vector<1x4x256xf32>
    %707 = vector.shape_cast %706 : vector<1x4x256xf32> to vector<4x256xf32>
    %708 = vector.shape_cast %705 : vector<4x256xf32> to vector<1x4x256xf32>
    tpu.vector_store %arg56[%c1_510, %c1_511, %c0_512], %708 {strides = array<i32>} : memref<6x6x256xf32, #tpu.memory_space<vmem>>, vector<1x4x256xf32>,
    %709 = vector.extract_strided_slice %694 {offsets = [1, 0, 0], sizes = [1, 4, 256], strides = [1, 1, 1]} : vector<4x4x256xbf16> to vector<1x4x256xbf16>
    %710 = vector.shape_cast %709 : vector<1x4x256xbf16> to vector<4x256xbf16>
    %cst_513 = arith.constant dense<0.000000e+00> : vector<4x256xf32>
    %711 = tpu.matmul %710, %622, %cst_513 {dimension_numbers = #tpu.dot_dimension_numbers<[1], [0], [0], [1], [0, 0, 1, 1], [], []>} : vector<4x256xbf16>, vector<256x256xbf16>, vector<4x256xf32> -> vector<4x256xf32>
    %712 = vector.broadcast %625 : vector<1x256xf32> to vector<4x256xf32>
    %713 = arith.mulf %711, %712 : vector<4x256xf32>
    %714 = vector.broadcast %626 : vector<1x256xf32> to vector<4x256xf32>
    %715 = arith.addf %713, %714 : vector<4x256xf32>
    %cst_514 = arith.constant 0.000000e+00 : f32
    %cst_515 = arith.constant 6.000000e+00 : f32
    %716 = vector.broadcast %cst_514 : f32 to vector<4x256xf32>
    %717 = arith.maximumf %716, %715 : vector<4x256xf32>
    %718 = vector.broadcast %cst_515 : f32 to vector<4x256xf32>
    %719 = arith.minimumf %718, %717 : vector<4x256xf32>
    %c2_516 = arith.constant 2 : index
    %c1_517 = arith.constant 1 : index
    %c0_518 = arith.constant 0 : index
    %720 = vector.load %arg56[%c2_516, %c1_517, %c0_518] : memref<6x6x256xf32, #tpu.memory_space<vmem>>, vector<1x4x256xf32>
    %721 = vector.shape_cast %720 : vector<1x4x256xf32> to vector<4x256xf32>
    %722 = vector.shape_cast %719 : vector<4x256xf32> to vector<1x4x256xf32>
    tpu.vector_store %arg56[%c2_516, %c1_517, %c0_518], %722 {strides = array<i32>} : memref<6x6x256xf32, #tpu.memory_space<vmem>>, vector<1x4x256xf32>,
    %723 = vector.extract_strided_slice %694 {offsets = [2, 0, 0], sizes = [1, 4, 256], strides = [1, 1, 1]} : vector<4x4x256xbf16> to vector<1x4x256xbf16>
    %724 = vector.shape_cast %723 : vector<1x4x256xbf16> to vector<4x256xbf16>
    %cst_519 = arith.constant dense<0.000000e+00> : vector<4x256xf32>
    %725 = tpu.matmul %724, %622, %cst_519 {dimension_numbers = #tpu.dot_dimension_numbers<[1], [0], [0], [1], [0, 0, 1, 1], [], []>} : vector<4x256xbf16>, vector<256x256xbf16>, vector<4x256xf32> -> vector<4x256xf32>
    %726 = vector.broadcast %625 : vector<1x256xf32> to vector<4x256xf32>
    %727 = arith.mulf %725, %726 : vector<4x256xf32>
    %728 = vector.broadcast %626 : vector<1x256xf32> to vector<4x256xf32>
    %729 = arith.addf %727, %728 : vector<4x256xf32>
    %cst_520 = arith.constant 0.000000e+00 : f32
    %cst_521 = arith.constant 6.000000e+00 : f32
    %730 = vector.broadcast %cst_520 : f32 to vector<4x256xf32>
    %731 = arith.maximumf %730, %729 : vector<4x256xf32>
    %732 = vector.broadcast %cst_521 : f32 to vector<4x256xf32>
    %733 = arith.minimumf %732, %731 : vector<4x256xf32>
    %c3_522 = arith.constant 3 : index
    %c1_523 = arith.constant 1 : index
    %c0_524 = arith.constant 0 : index
    %734 = vector.load %arg56[%c3_522, %c1_523, %c0_524] : memref<6x6x256xf32, #tpu.memory_space<vmem>>, vector<1x4x256xf32>
    %735 = vector.shape_cast %734 : vector<1x4x256xf32> to vector<4x256xf32>
    %736 = vector.shape_cast %733 : vector<4x256xf32> to vector<1x4x256xf32>
    tpu.vector_store %arg56[%c3_522, %c1_523, %c0_524], %736 {strides = array<i32>} : memref<6x6x256xf32, #tpu.memory_space<vmem>>, vector<1x4x256xf32>,
    %737 = vector.extract_strided_slice %694 {offsets = [3, 0, 0], sizes = [1, 4, 256], strides = [1, 1, 1]} : vector<4x4x256xbf16> to vector<1x4x256xbf16>
    %738 = vector.shape_cast %737 : vector<1x4x256xbf16> to vector<4x256xbf16>
    %cst_525 = arith.constant dense<0.000000e+00> : vector<4x256xf32>
    %739 = tpu.matmul %738, %622, %cst_525 {dimension_numbers = #tpu.dot_dimension_numbers<[1], [0], [0], [1], [0, 0, 1, 1], [], []>} : vector<4x256xbf16>, vector<256x256xbf16>, vector<4x256xf32> -> vector<4x256xf32>
    %740 = vector.broadcast %625 : vector<1x256xf32> to vector<4x256xf32>
    %741 = arith.mulf %739, %740 : vector<4x256xf32>
    %742 = vector.broadcast %626 : vector<1x256xf32> to vector<4x256xf32>
    %743 = arith.addf %741, %742 : vector<4x256xf32>
    %cst_526 = arith.constant 0.000000e+00 : f32
    %cst_527 = arith.constant 6.000000e+00 : f32
    %744 = vector.broadcast %cst_526 : f32 to vector<4x256xf32>
    %745 = arith.maximumf %744, %743 : vector<4x256xf32>
    %746 = vector.broadcast %cst_527 : f32 to vector<4x256xf32>
    %747 = arith.minimumf %746, %745 : vector<4x256xf32>
    %c4_528 = arith.constant 4 : index
    %c1_529 = arith.constant 1 : index
    %c0_530 = arith.constant 0 : index
    %748 = vector.load %arg56[%c4_528, %c1_529, %c0_530] : memref<6x6x256xf32, #tpu.memory_space<vmem>>, vector<1x4x256xf32>
    %749 = vector.shape_cast %748 : vector<1x4x256xf32> to vector<4x256xf32>
    %750 = vector.shape_cast %747 : vector<4x256xf32> to vector<1x4x256xf32>
    tpu.vector_store %arg56[%c4_528, %c1_529, %c0_530], %750 {strides = array<i32>} : memref<6x6x256xf32, #tpu.memory_space<vmem>>, vector<1x4x256xf32>,
    %c0_531 = arith.constant 0 : index
    %c0_532 = arith.constant 0 : index
    %751 = vector.load %arg44[%c0_531, %c0_532] : memref<256x256xbf16, #tpu.memory_space<vmem>>, vector<256x256xbf16>
    %c0_533 = arith.constant 0 : index
    %c0_534 = arith.constant 0 : index
    %752 = vector.load %arg42[%c0_533, %c0_534] : memref<1x256xf32, #tpu.memory_space<vmem>>, vector<1x256xf32>
    %c0_535 = arith.constant 0 : index
    %c0_536 = arith.constant 0 : index
    %753 = vector.load %arg43[%c0_535, %c0_536] : memref<1x256xf32, #tpu.memory_space<vmem>>, vector<1x256xf32>
    %c0_537 = arith.constant 0 : index
    %c0_538 = arith.constant 0 : index
    %754 = vector.load %arg45[%c0_537, %c0_538] : memref<1x256xf32, #tpu.memory_space<vmem>>, vector<1x256xf32>
    %c0_539 = arith.constant 0 : index
    %c0_540 = arith.constant 0 : index
    %755 = vector.load %arg46[%c0_539, %c0_540] : memref<1x256xf32, #tpu.memory_space<vmem>>, vector<1x256xf32>
    %cst_541 = arith.constant 0.000000e+00 : f32
    %756 = vector.broadcast %cst_541 : f32 to vector<4x4x256xf32>
    %c0_542 = arith.constant 0 : index
    %c0_543 = arith.constant 0 : index
    %c0_544 = arith.constant 0 : index
    %757 = vector.load %arg56[%c0_542, %c0_543, %c0_544] : memref<6x6x256xf32, #tpu.memory_space<vmem>>, vector<4x4x256xf32>
    %c0_545 = arith.constant 0 : index
    %c0_546 = arith.constant 0 : index
    %758 = vector.load %arg41[%c0_545, %c0_546] : memref<9x256xf32, #tpu.memory_space<vmem>>, vector<1x256xf32>
    %759 = vector.shape_cast %758 : vector<1x256xf32> to vector<1x1x256xf32>
    %760 = vector.broadcast %759 : vector<1x1x256xf32> to vector<4x4x256xf32>
    %761 = arith.mulf %757, %760 : vector<4x4x256xf32>
    %762 = arith.addf %756, %761 : vector<4x4x256xf32>
    %c0_547 = arith.constant 0 : index
    %c1_548 = arith.constant 1 : index
    %c0_549 = arith.constant 0 : index
    %763 = vector.load %arg56[%c0_547, %c1_548, %c0_549] : memref<6x6x256xf32, #tpu.memory_space<vmem>>, vector<4x4x256xf32>
    %c1_550 = arith.constant 1 : index
    %c0_551 = arith.constant 0 : index
    %764 = vector.load %arg41[%c1_550, %c0_551] : memref<9x256xf32, #tpu.memory_space<vmem>>, vector<1x256xf32>
    %765 = vector.shape_cast %764 : vector<1x256xf32> to vector<1x1x256xf32>
    %766 = vector.broadcast %765 : vector<1x1x256xf32> to vector<4x4x256xf32>
    %767 = arith.mulf %763, %766 : vector<4x4x256xf32>
    %768 = arith.addf %762, %767 : vector<4x4x256xf32>
    %c0_552 = arith.constant 0 : index
    %c2_553 = arith.constant 2 : index
    %c0_554 = arith.constant 0 : index
    %769 = vector.load %arg56[%c0_552, %c2_553, %c0_554] : memref<6x6x256xf32, #tpu.memory_space<vmem>>, vector<4x4x256xf32>
    %c2_555 = arith.constant 2 : index
    %c0_556 = arith.constant 0 : index
    %770 = vector.load %arg41[%c2_555, %c0_556] : memref<9x256xf32, #tpu.memory_space<vmem>>, vector<1x256xf32>
    %771 = vector.shape_cast %770 : vector<1x256xf32> to vector<1x1x256xf32>
    %772 = vector.broadcast %771 : vector<1x1x256xf32> to vector<4x4x256xf32>
    %773 = arith.mulf %769, %772 : vector<4x4x256xf32>
    %774 = arith.addf %768, %773 : vector<4x4x256xf32>
    %c1_557 = arith.constant 1 : index
    %c0_558 = arith.constant 0 : index
    %c0_559 = arith.constant 0 : index
    %775 = vector.load %arg56[%c1_557, %c0_558, %c0_559] : memref<6x6x256xf32, #tpu.memory_space<vmem>>, vector<4x4x256xf32>
    %c3_560 = arith.constant 3 : index
    %c0_561 = arith.constant 0 : index
    %776 = vector.load %arg41[%c3_560, %c0_561] : memref<9x256xf32, #tpu.memory_space<vmem>>, vector<1x256xf32>
    %777 = vector.shape_cast %776 : vector<1x256xf32> to vector<1x1x256xf32>
    %778 = vector.broadcast %777 : vector<1x1x256xf32> to vector<4x4x256xf32>
    %779 = arith.mulf %775, %778 : vector<4x4x256xf32>
    %780 = arith.addf %774, %779 : vector<4x4x256xf32>
    %c1_562 = arith.constant 1 : index
    %c1_563 = arith.constant 1 : index
    %c0_564 = arith.constant 0 : index
    %781 = vector.load %arg56[%c1_562, %c1_563, %c0_564] : memref<6x6x256xf32, #tpu.memory_space<vmem>>, vector<4x4x256xf32>
    %c4_565 = arith.constant 4 : index
    %c0_566 = arith.constant 0 : index
    %782 = vector.load %arg41[%c4_565, %c0_566] : memref<9x256xf32, #tpu.memory_space<vmem>>, vector<1x256xf32>
    %783 = vector.shape_cast %782 : vector<1x256xf32> to vector<1x1x256xf32>
    %784 = vector.broadcast %783 : vector<1x1x256xf32> to vector<4x4x256xf32>
    %785 = arith.mulf %781, %784 : vector<4x4x256xf32>
    %786 = arith.addf %780, %785 : vector<4x4x256xf32>
    %c1_567 = arith.constant 1 : index
    %c2_568 = arith.constant 2 : index
    %c0_569 = arith.constant 0 : index
    %787 = vector.load %arg56[%c1_567, %c2_568, %c0_569] : memref<6x6x256xf32, #tpu.memory_space<vmem>>, vector<4x4x256xf32>
    %c5_570 = arith.constant 5 : index
    %c0_571 = arith.constant 0 : index
    %788 = vector.load %arg41[%c5_570, %c0_571] : memref<9x256xf32, #tpu.memory_space<vmem>>, vector<1x256xf32>
    %789 = vector.shape_cast %788 : vector<1x256xf32> to vector<1x1x256xf32>
    %790 = vector.broadcast %789 : vector<1x1x256xf32> to vector<4x4x256xf32>
    %791 = arith.mulf %787, %790 : vector<4x4x256xf32>
    %792 = arith.addf %786, %791 : vector<4x4x256xf32>
    %c2_572 = arith.constant 2 : index
    %c0_573 = arith.constant 0 : index
    %c0_574 = arith.constant 0 : index
    %793 = vector.load %arg56[%c2_572, %c0_573, %c0_574] : memref<6x6x256xf32, #tpu.memory_space<vmem>>, vector<4x4x256xf32>
    %c6_575 = arith.constant 6 : index
    %c0_576 = arith.constant 0 : index
    %794 = vector.load %arg41[%c6_575, %c0_576] : memref<9x256xf32, #tpu.memory_space<vmem>>, vector<1x256xf32>
    %795 = vector.shape_cast %794 : vector<1x256xf32> to vector<1x1x256xf32>
    %796 = vector.broadcast %795 : vector<1x1x256xf32> to vector<4x4x256xf32>
    %797 = arith.mulf %793, %796 : vector<4x4x256xf32>
    %798 = arith.addf %792, %797 : vector<4x4x256xf32>
    %c2_577 = arith.constant 2 : index
    %c1_578 = arith.constant 1 : index
    %c0_579 = arith.constant 0 : index
    %799 = vector.load %arg56[%c2_577, %c1_578, %c0_579] : memref<6x6x256xf32, #tpu.memory_space<vmem>>, vector<4x4x256xf32>
    %c7_580 = arith.constant 7 : index
    %c0_581 = arith.constant 0 : index
    %800 = vector.load %arg41[%c7_580, %c0_581] : memref<9x256xf32, #tpu.memory_space<vmem>>, vector<1x256xf32>
    %801 = vector.shape_cast %800 : vector<1x256xf32> to vector<1x1x256xf32>
    %802 = vector.broadcast %801 : vector<1x1x256xf32> to vector<4x4x256xf32>
    %803 = arith.mulf %799, %802 : vector<4x4x256xf32>
    %804 = arith.addf %798, %803 : vector<4x4x256xf32>
    %c2_582 = arith.constant 2 : index
    %c2_583 = arith.constant 2 : index
    %c0_584 = arith.constant 0 : index
    %805 = vector.load %arg56[%c2_582, %c2_583, %c0_584] : memref<6x6x256xf32, #tpu.memory_space<vmem>>, vector<4x4x256xf32>
    %c8_585 = arith.constant 8 : index
    %c0_586 = arith.constant 0 : index
    %806 = vector.load %arg41[%c8_585, %c0_586] : memref<9x256xf32, #tpu.memory_space<vmem>>, vector<1x256xf32>
    %807 = vector.shape_cast %806 : vector<1x256xf32> to vector<1x1x256xf32>
    %808 = vector.broadcast %807 : vector<1x1x256xf32> to vector<4x4x256xf32>
    %809 = arith.mulf %805, %808 : vector<4x4x256xf32>
    %810 = arith.addf %804, %809 : vector<4x4x256xf32>
    %811 = vector.shape_cast %752 : vector<1x256xf32> to vector<1x1x256xf32>
    %812 = vector.broadcast %811 : vector<1x1x256xf32> to vector<4x4x256xf32>
    %813 = arith.mulf %810, %812 : vector<4x4x256xf32>
    %814 = vector.shape_cast %753 : vector<1x256xf32> to vector<1x1x256xf32>
    %815 = vector.broadcast %814 : vector<1x1x256xf32> to vector<4x4x256xf32>
    %816 = arith.addf %813, %815 : vector<4x4x256xf32>
    %cst_587 = arith.constant 0.000000e+00 : f32
    %cst_588 = arith.constant 6.000000e+00 : f32
    %817 = vector.broadcast %cst_587 : f32 to vector<4x4x256xf32>
    %818 = arith.maximumf %817, %816 : vector<4x4x256xf32>
    %819 = vector.broadcast %cst_588 : f32 to vector<4x4x256xf32>
    %820 = arith.minimumf %819, %818 : vector<4x4x256xf32>
    %821 = arith.truncf %820 : vector<4x4x256xf32> to vector<4x4x256xbf16>
    %822 = vector.extract_strided_slice %821 {offsets = [0, 0, 0], sizes = [1, 4, 256], strides = [1, 1, 1]} : vector<4x4x256xbf16> to vector<1x4x256xbf16>
    %823 = vector.shape_cast %822 : vector<1x4x256xbf16> to vector<4x256xbf16>
    %cst_589 = arith.constant dense<0.000000e+00> : vector<4x256xf32>
    %824 = tpu.matmul %823, %751, %cst_589 {dimension_numbers = #tpu.dot_dimension_numbers<[1], [0], [0], [1], [0, 0, 1, 1], [], []>} : vector<4x256xbf16>, vector<256x256xbf16>, vector<4x256xf32> -> vector<4x256xf32>
    %825 = vector.broadcast %754 : vector<1x256xf32> to vector<4x256xf32>
    %826 = arith.mulf %824, %825 : vector<4x256xf32>
    %827 = vector.broadcast %755 : vector<1x256xf32> to vector<4x256xf32>
    %828 = arith.addf %826, %827 : vector<4x256xf32>
    %cst_590 = arith.constant 0.000000e+00 : f32
    %cst_591 = arith.constant 6.000000e+00 : f32
    %829 = vector.broadcast %cst_590 : f32 to vector<4x256xf32>
    %830 = arith.maximumf %829, %828 : vector<4x256xf32>
    %831 = vector.broadcast %cst_591 : f32 to vector<4x256xf32>
    %832 = arith.minimumf %831, %830 : vector<4x256xf32>
    %cst_592 = arith.constant dense<0.000000e+00> : vector<256xf32>
    %833 = vector.multi_reduction <add>, %832, %cst_592 [0] : vector<4x256xf32> to vector<256xf32>
    %834 = vector.shape_cast %833 : vector<256xf32> to vector<1x256xf32>
    %835 = vector.extract_strided_slice %821 {offsets = [1, 0, 0], sizes = [1, 4, 256], strides = [1, 1, 1]} : vector<4x4x256xbf16> to vector<1x4x256xbf16>
    %836 = vector.shape_cast %835 : vector<1x4x256xbf16> to vector<4x256xbf16>
    %cst_593 = arith.constant dense<0.000000e+00> : vector<4x256xf32>
    %837 = tpu.matmul %836, %751, %cst_593 {dimension_numbers = #tpu.dot_dimension_numbers<[1], [0], [0], [1], [0, 0, 1, 1], [], []>} : vector<4x256xbf16>, vector<256x256xbf16>, vector<4x256xf32> -> vector<4x256xf32>
    %838 = vector.broadcast %754 : vector<1x256xf32> to vector<4x256xf32>
    %839 = arith.mulf %837, %838 : vector<4x256xf32>
    %840 = vector.broadcast %755 : vector<1x256xf32> to vector<4x256xf32>
    %841 = arith.addf %839, %840 : vector<4x256xf32>
    %cst_594 = arith.constant 0.000000e+00 : f32
    %cst_595 = arith.constant 6.000000e+00 : f32
    %842 = vector.broadcast %cst_594 : f32 to vector<4x256xf32>
    %843 = arith.maximumf %842, %841 : vector<4x256xf32>
    %844 = vector.broadcast %cst_595 : f32 to vector<4x256xf32>
    %845 = arith.minimumf %844, %843 : vector<4x256xf32>
    %cst_596 = arith.constant dense<0.000000e+00> : vector<256xf32>
    %846 = vector.multi_reduction <add>, %845, %cst_596 [0] : vector<4x256xf32> to vector<256xf32>
    %847 = vector.shape_cast %846 : vector<256xf32> to vector<1x256xf32>
    %848 = arith.addf %834, %847 : vector<1x256xf32>
    %849 = vector.extract_strided_slice %821 {offsets = [2, 0, 0], sizes = [1, 4, 256], strides = [1, 1, 1]} : vector<4x4x256xbf16> to vector<1x4x256xbf16>
    %850 = vector.shape_cast %849 : vector<1x4x256xbf16> to vector<4x256xbf16>
    %cst_597 = arith.constant dense<0.000000e+00> : vector<4x256xf32>
    %851 = tpu.matmul %850, %751, %cst_597 {dimension_numbers = #tpu.dot_dimension_numbers<[1], [0], [0], [1], [0, 0, 1, 1], [], []>} : vector<4x256xbf16>, vector<256x256xbf16>, vector<4x256xf32> -> vector<4x256xf32>
    %852 = vector.broadcast %754 : vector<1x256xf32> to vector<4x256xf32>
    %853 = arith.mulf %851, %852 : vector<4x256xf32>
    %854 = vector.broadcast %755 : vector<1x256xf32> to vector<4x256xf32>
    %855 = arith.addf %853, %854 : vector<4x256xf32>
    %cst_598 = arith.constant 0.000000e+00 : f32
    %cst_599 = arith.constant 6.000000e+00 : f32
    %856 = vector.broadcast %cst_598 : f32 to vector<4x256xf32>
    %857 = arith.maximumf %856, %855 : vector<4x256xf32>
    %858 = vector.broadcast %cst_599 : f32 to vector<4x256xf32>
    %859 = arith.minimumf %858, %857 : vector<4x256xf32>
    %cst_600 = arith.constant dense<0.000000e+00> : vector<256xf32>
    %860 = vector.multi_reduction <add>, %859, %cst_600 [0] : vector<4x256xf32> to vector<256xf32>
    %861 = vector.shape_cast %860 : vector<256xf32> to vector<1x256xf32>
    %862 = arith.addf %848, %861 : vector<1x256xf32>
    %863 = vector.extract_strided_slice %821 {offsets = [3, 0, 0], sizes = [1, 4, 256], strides = [1, 1, 1]} : vector<4x4x256xbf16> to vector<1x4x256xbf16>
    %864 = vector.shape_cast %863 : vector<1x4x256xbf16> to vector<4x256xbf16>
    %cst_601 = arith.constant dense<0.000000e+00> : vector<4x256xf32>
    %865 = tpu.matmul %864, %751, %cst_601 {dimension_numbers = #tpu.dot_dimension_numbers<[1], [0], [0], [1], [0, 0, 1, 1], [], []>} : vector<4x256xbf16>, vector<256x256xbf16>, vector<4x256xf32> -> vector<4x256xf32>
    %866 = vector.broadcast %754 : vector<1x256xf32> to vector<4x256xf32>
    %867 = arith.mulf %865, %866 : vector<4x256xf32>
    %868 = vector.broadcast %755 : vector<1x256xf32> to vector<4x256xf32>
    %869 = arith.addf %867, %868 : vector<4x256xf32>
    %cst_602 = arith.constant 0.000000e+00 : f32
    %cst_603 = arith.constant 6.000000e+00 : f32
    %870 = vector.broadcast %cst_602 : f32 to vector<4x256xf32>
    %871 = arith.maximumf %870, %869 : vector<4x256xf32>
    %872 = vector.broadcast %cst_603 : f32 to vector<4x256xf32>
    %873 = arith.minimumf %872, %871 : vector<4x256xf32>
    %cst_604 = arith.constant dense<0.000000e+00> : vector<256xf32>
    %874 = vector.multi_reduction <add>, %873, %cst_604 [0] : vector<4x256xf32> to vector<256xf32>
    %875 = vector.shape_cast %874 : vector<256xf32> to vector<1x256xf32>
    %876 = arith.addf %862, %875 : vector<1x256xf32>
    %cst_605 = arith.constant 6.250000e-02 : f32
    %877 = vector.broadcast %cst_605 : f32 to vector<1x256xf32>
    %878 = arith.mulf %876, %877 : vector<1x256xf32>
    %879 = arith.truncf %878 : vector<1x256xf32> to vector<1x256xbf16>
    %c0_606 = arith.constant 0 : index
    %c0_607 = arith.constant 0 : index
    %880 = vector.load %arg47[%c0_606, %c0_607] : memref<256x128xbf16, #tpu.memory_space<vmem>>, vector<256x128xbf16>
    %cst_608 = arith.constant dense<0.000000e+00> : vector<1x128xf32>
    %881 = tpu.matmul %879, %880, %cst_608 {dimension_numbers = #tpu.dot_dimension_numbers<[1], [0], [0], [1], [0, 0, 1, 1], [], []>} : vector<1x256xbf16>, vector<256x128xbf16>, vector<1x128xf32> -> vector<1x128xf32>
    %c0_609 = arith.constant 0 : index
    %c0_610 = arith.constant 0 : index
    %882 = vector.load %arg48[%c0_609, %c0_610] : memref<1x128xf32, #tpu.memory_space<vmem>>, vector<1x128xf32>
    %883 = arith.addf %881, %882 : vector<1x128xf32>
    %884 = vector.shape_cast %883 : vector<1x128xf32> to vector<1x1x128xf32>
    %c0_611 = arith.constant 0 : index
    %c0_612 = arith.constant 0 : index
    %c0_613 = arith.constant 0 : index
    %885 = vector.load %arg49[%c0_611, %c0_612, %c0_613] : memref<1x1x128xf32, #tpu.memory_space<vmem>>, vector<1x1x128xf32>
    tpu.vector_store %arg49[%c0_611, %c0_612, %c0_613], %884 {strides = array<i32>} : memref<1x1x128xf32, #tpu.memory_space<vmem>>, vector<1x1x128xf32>,
    return
  }
  func.func @transform_0(%arg0: i32) -> (i32, i32, i32) {
    %c0_i32 = arith.constant 0 : i32
    %c0_i32_0 = arith.constant 0 : i32
    %c0_i32_1 = arith.constant 0 : i32
    return %arg0, %c0_i32, %c0_i32_0 : i32, i32, i32
  }
  func.func @transform_1(%arg0: i32) -> (i32, i32) {
    %c0_i32 = arith.constant 0 : i32
    %c0_i32_0 = arith.constant 0 : i32
    %c0_i32_1 = arith.constant 0 : i32
    return %c0_i32, %c0_i32_0 : i32, i32
  }
  func.func @transform_2(%arg0: i32) -> (i32, i32) {
    %c0_i32 = arith.constant 0 : i32
    %c0_i32_0 = arith.constant 0 : i32
    %c0_i32_1 = arith.constant 0 : i32
    return %c0_i32, %c0_i32_0 : i32, i32
  }
  func.func @transform_3(%arg0: i32) -> (i32, i32) {
    %c0_i32 = arith.constant 0 : i32
    %c0_i32_0 = arith.constant 0 : i32
    %c0_i32_1 = arith.constant 0 : i32
    return %c0_i32, %c0_i32_0 : i32, i32
  }
  func.func @transform_4(%arg0: i32) -> (i32, i32) {
    %c0_i32 = arith.constant 0 : i32
    %c0_i32_0 = arith.constant 0 : i32
    %c0_i32_1 = arith.constant 0 : i32
    return %c0_i32, %c0_i32_0 : i32, i32
  }
  func.func @transform_5(%arg0: i32) -> (i32, i32) {
    %c0_i32 = arith.constant 0 : i32
    %c0_i32_0 = arith.constant 0 : i32
    %c0_i32_1 = arith.constant 0 : i32
    return %c0_i32, %c0_i32_0 : i32, i32
  }
  func.func @transform_6(%arg0: i32) -> (i32, i32) {
    %c0_i32 = arith.constant 0 : i32
    %c0_i32_0 = arith.constant 0 : i32
    %c0_i32_1 = arith.constant 0 : i32
    return %c0_i32, %c0_i32_0 : i32, i32
  }
  func.func @transform_7(%arg0: i32) -> (i32, i32) {
    %c0_i32 = arith.constant 0 : i32
    %c0_i32_0 = arith.constant 0 : i32
    %c0_i32_1 = arith.constant 0 : i32
    return %c0_i32, %c0_i32_0 : i32, i32
  }
  func.func @transform_8(%arg0: i32) -> (i32, i32) {
    %c0_i32 = arith.constant 0 : i32
    %c0_i32_0 = arith.constant 0 : i32
    %c0_i32_1 = arith.constant 0 : i32
    return %c0_i32, %c0_i32_0 : i32, i32
  }
  func.func @transform_9(%arg0: i32) -> (i32, i32) {
    %c0_i32 = arith.constant 0 : i32
    %c0_i32_0 = arith.constant 0 : i32
    %c0_i32_1 = arith.constant 0 : i32
    return %c0_i32, %c0_i32_0 : i32, i32
  }
  func.func @transform_10(%arg0: i32) -> (i32, i32) {
    %c0_i32 = arith.constant 0 : i32
    %c0_i32_0 = arith.constant 0 : i32
    %c0_i32_1 = arith.constant 0 : i32
    return %c0_i32, %c0_i32_0 : i32, i32
  }
  func.func @transform_11(%arg0: i32) -> (i32, i32) {
    %c0_i32 = arith.constant 0 : i32
    %c0_i32_0 = arith.constant 0 : i32
    %c0_i32_1 = arith.constant 0 : i32
    return %c0_i32, %c0_i32_0 : i32, i32
  }
  func.func @transform_12(%arg0: i32) -> (i32, i32) {
    %c0_i32 = arith.constant 0 : i32
    %c0_i32_0 = arith.constant 0 : i32
    %c0_i32_1 = arith.constant 0 : i32
    return %c0_i32, %c0_i32_0 : i32, i32
  }
  func.func @transform_13(%arg0: i32) -> (i32, i32) {
    %c0_i32 = arith.constant 0 : i32
    %c0_i32_0 = arith.constant 0 : i32
    %c0_i32_1 = arith.constant 0 : i32
    return %c0_i32, %c0_i32_0 : i32, i32
  }
  func.func @transform_14(%arg0: i32) -> (i32, i32) {
    %c0_i32 = arith.constant 0 : i32
    %c0_i32_0 = arith.constant 0 : i32
    %c0_i32_1 = arith.constant 0 : i32
    return %c0_i32, %c0_i32_0 : i32, i32
  }
  func.func @transform_15(%arg0: i32) -> (i32, i32) {
    %c0_i32 = arith.constant 0 : i32
    %c0_i32_0 = arith.constant 0 : i32
    %c0_i32_1 = arith.constant 0 : i32
    return %c0_i32, %c0_i32_0 : i32, i32
  }
  func.func @transform_16(%arg0: i32) -> (i32, i32) {
    %c0_i32 = arith.constant 0 : i32
    %c0_i32_0 = arith.constant 0 : i32
    %c0_i32_1 = arith.constant 0 : i32
    return %c0_i32, %c0_i32_0 : i32, i32
  }
  func.func @transform_17(%arg0: i32) -> (i32, i32) {
    %c0_i32 = arith.constant 0 : i32
    %c0_i32_0 = arith.constant 0 : i32
    %c0_i32_1 = arith.constant 0 : i32
    return %c0_i32, %c0_i32_0 : i32, i32
  }
  func.func @transform_18(%arg0: i32) -> (i32, i32) {
    %c0_i32 = arith.constant 0 : i32
    %c0_i32_0 = arith.constant 0 : i32
    %c0_i32_1 = arith.constant 0 : i32
    return %c0_i32, %c0_i32_0 : i32, i32
  }
  func.func @transform_19(%arg0: i32) -> (i32, i32) {
    %c0_i32 = arith.constant 0 : i32
    %c0_i32_0 = arith.constant 0 : i32
    %c0_i32_1 = arith.constant 0 : i32
    return %c0_i32, %c0_i32_0 : i32, i32
  }
  func.func @transform_20(%arg0: i32) -> (i32, i32) {
    %c0_i32 = arith.constant 0 : i32
    %c0_i32_0 = arith.constant 0 : i32
    %c0_i32_1 = arith.constant 0 : i32
    return %c0_i32, %c0_i32_0 : i32, i32
  }
  func.func @transform_21(%arg0: i32) -> (i32, i32) {
    %c0_i32 = arith.constant 0 : i32
    %c0_i32_0 = arith.constant 0 : i32
    %c0_i32_1 = arith.constant 0 : i32
    return %c0_i32, %c0_i32_0 : i32, i32
  }
  func.func @transform_22(%arg0: i32) -> (i32, i32) {
    %c0_i32 = arith.constant 0 : i32
    %c0_i32_0 = arith.constant 0 : i32
    %c0_i32_1 = arith.constant 0 : i32
    return %c0_i32, %c0_i32_0 : i32, i32
  }
  func.func @transform_23(%arg0: i32) -> (i32, i32) {
    %c0_i32 = arith.constant 0 : i32
    %c0_i32_0 = arith.constant 0 : i32
    %c0_i32_1 = arith.constant 0 : i32
    return %c0_i32, %c0_i32_0 : i32, i32
  }
  func.func @transform_24(%arg0: i32) -> (i32, i32) {
    %c0_i32 = arith.constant 0 : i32
    %c0_i32_0 = arith.constant 0 : i32
    %c0_i32_1 = arith.constant 0 : i32
    return %c0_i32, %c0_i32_0 : i32, i32
  }
  func.func @transform_25(%arg0: i32) -> (i32, i32) {
    %c0_i32 = arith.constant 0 : i32
    %c0_i32_0 = arith.constant 0 : i32
    %c0_i32_1 = arith.constant 0 : i32
    return %c0_i32, %c0_i32_0 : i32, i32
  }
  func.func @transform_26(%arg0: i32) -> (i32, i32) {
    %c0_i32 = arith.constant 0 : i32
    %c0_i32_0 = arith.constant 0 : i32
    %c0_i32_1 = arith.constant 0 : i32
    return %c0_i32, %c0_i32_0 : i32, i32
  }
  func.func @transform_27(%arg0: i32) -> (i32, i32) {
    %c0_i32 = arith.constant 0 : i32
    %c0_i32_0 = arith.constant 0 : i32
    %c0_i32_1 = arith.constant 0 : i32
    return %c0_i32, %c0_i32_0 : i32, i32
  }
  func.func @transform_28(%arg0: i32) -> (i32, i32) {
    %c0_i32 = arith.constant 0 : i32
    %c0_i32_0 = arith.constant 0 : i32
    %c0_i32_1 = arith.constant 0 : i32
    return %c0_i32, %c0_i32_0 : i32, i32
  }
  func.func @transform_29(%arg0: i32) -> (i32, i32) {
    %c0_i32 = arith.constant 0 : i32
    %c0_i32_0 = arith.constant 0 : i32
    %c0_i32_1 = arith.constant 0 : i32
    return %c0_i32, %c0_i32_0 : i32, i32
  }
  func.func @transform_30(%arg0: i32) -> (i32, i32) {
    %c0_i32 = arith.constant 0 : i32
    %c0_i32_0 = arith.constant 0 : i32
    %c0_i32_1 = arith.constant 0 : i32
    return %c0_i32, %c0_i32_0 : i32, i32
  }
  func.func @transform_31(%arg0: i32) -> (i32, i32) {
    %c0_i32 = arith.constant 0 : i32
    %c0_i32_0 = arith.constant 0 : i32
    %c0_i32_1 = arith.constant 0 : i32
    return %c0_i32, %c0_i32_0 : i32, i32
  }
  func.func @transform_32(%arg0: i32) -> (i32, i32) {
    %c0_i32 = arith.constant 0 : i32
    %c0_i32_0 = arith.constant 0 : i32
    %c0_i32_1 = arith.constant 0 : i32
    return %c0_i32, %c0_i32_0 : i32, i32
  }
  func.func @transform_33(%arg0: i32) -> (i32, i32) {
    %c0_i32 = arith.constant 0 : i32
    %c0_i32_0 = arith.constant 0 : i32
    %c0_i32_1 = arith.constant 0 : i32
    return %c0_i32, %c0_i32_0 : i32, i32
  }
  func.func @transform_34(%arg0: i32) -> (i32, i32) {
    %c0_i32 = arith.constant 0 : i32
    %c0_i32_0 = arith.constant 0 : i32
    %c0_i32_1 = arith.constant 0 : i32
    return %c0_i32, %c0_i32_0 : i32, i32
  }
  func.func @transform_35(%arg0: i32) -> (i32, i32) {
    %c0_i32 = arith.constant 0 : i32
    %c0_i32_0 = arith.constant 0 : i32
    %c0_i32_1 = arith.constant 0 : i32
    return %c0_i32, %c0_i32_0 : i32, i32
  }
  func.func @transform_36(%arg0: i32) -> (i32, i32) {
    %c0_i32 = arith.constant 0 : i32
    %c0_i32_0 = arith.constant 0 : i32
    %c0_i32_1 = arith.constant 0 : i32
    return %c0_i32, %c0_i32_0 : i32, i32
  }
  func.func @transform_37(%arg0: i32) -> (i32, i32) {
    %c0_i32 = arith.constant 0 : i32
    %c0_i32_0 = arith.constant 0 : i32
    %c0_i32_1 = arith.constant 0 : i32
    return %c0_i32, %c0_i32_0 : i32, i32
  }
  func.func @transform_38(%arg0: i32) -> (i32, i32) {
    %c0_i32 = arith.constant 0 : i32
    %c0_i32_0 = arith.constant 0 : i32
    %c0_i32_1 = arith.constant 0 : i32
    return %c0_i32, %c0_i32_0 : i32, i32
  }
  func.func @transform_39(%arg0: i32) -> (i32, i32) {
    %c0_i32 = arith.constant 0 : i32
    %c0_i32_0 = arith.constant 0 : i32
    %c0_i32_1 = arith.constant 0 : i32
    return %c0_i32, %c0_i32_0 : i32, i32
  }
  func.func @transform_40(%arg0: i32) -> (i32, i32) {
    %c0_i32 = arith.constant 0 : i32
    %c0_i32_0 = arith.constant 0 : i32
    %c0_i32_1 = arith.constant 0 : i32
    return %c0_i32, %c0_i32_0 : i32, i32
  }
  func.func @transform_41(%arg0: i32) -> (i32, i32) {
    %c0_i32 = arith.constant 0 : i32
    %c0_i32_0 = arith.constant 0 : i32
    %c0_i32_1 = arith.constant 0 : i32
    return %c0_i32, %c0_i32_0 : i32, i32
  }
  func.func @transform_42(%arg0: i32) -> (i32, i32) {
    %c0_i32 = arith.constant 0 : i32
    %c0_i32_0 = arith.constant 0 : i32
    %c0_i32_1 = arith.constant 0 : i32
    return %c0_i32, %c0_i32_0 : i32, i32
  }
  func.func @transform_43(%arg0: i32) -> (i32, i32) {
    %c0_i32 = arith.constant 0 : i32
    %c0_i32_0 = arith.constant 0 : i32
    %c0_i32_1 = arith.constant 0 : i32
    return %c0_i32, %c0_i32_0 : i32, i32
  }
  func.func @transform_44(%arg0: i32) -> (i32, i32) {
    %c0_i32 = arith.constant 0 : i32
    %c0_i32_0 = arith.constant 0 : i32
    %c0_i32_1 = arith.constant 0 : i32
    return %c0_i32, %c0_i32_0 : i32, i32
  }
  func.func @transform_45(%arg0: i32) -> (i32, i32) {
    %c0_i32 = arith.constant 0 : i32
    %c0_i32_0 = arith.constant 0 : i32
    %c0_i32_1 = arith.constant 0 : i32
    return %c0_i32, %c0_i32_0 : i32, i32
  }
  func.func @transform_46(%arg0: i32) -> (i32, i32) {
    %c0_i32 = arith.constant 0 : i32
    %c0_i32_0 = arith.constant 0 : i32
    %c0_i32_1 = arith.constant 0 : i32
    return %c0_i32, %c0_i32_0 : i32, i32
  }
  func.func @transform_47(%arg0: i32) -> (i32, i32) {
    %c0_i32 = arith.constant 0 : i32
    %c0_i32_0 = arith.constant 0 : i32
    %c0_i32_1 = arith.constant 0 : i32
    return %c0_i32, %c0_i32_0 : i32, i32
  }
  func.func @transform_48(%arg0: i32) -> (i32, i32, i32) {
    %c0_i32 = arith.constant 0 : i32
    %c0_i32_0 = arith.constant 0 : i32
    %c0_i32_1 = arith.constant 0 : i32
    return %arg0, %c0_i32, %c0_i32_0 : i32, i32, i32
  }
}

</mosaic_0001>

<bundles_post_ra>
// kernel: student_net_forward.1
= control target key start
LH: loop header
LB: loop body
LE: loop exit
PB: predicated region body
PF: predicated region fallthrough
CT: control target
= control target key end

     0   :  { %s10193_s6 = smov 1   ;;  %s10194_s10 = smov 2   ;;  %s13770_s0 = inlined_call_operand.smem [shape: u32[49], index: -1, kind: input, shape index: {}] }
   0x1   :  { %s10259_s5 = sld [smem:[%s13770_s0]]   ;;  %s10195_s14 = smov 3  }
   0x2   :  { %s10264_s9 = sld [smem:[%s13770_s0 + %s10193_s6]]   ;;  %s10196_s18 = smov 4  }
   0x3   :  { %s10269_s13 = sld [smem:[%s13770_s0 + %s10194_s10]]   ;;  %s10197_s22 = smov 5  }
   0x4   :  { %s10274_s17 = sld [smem:[%s13770_s0 + %s10195_s14]]   ;;  %s10198_s26 = smov 6  }
   0x5   :  { %s10279_s21 = sld [smem:[%s13770_s0 + %s10196_s18]]   ;;  %s10199_s30 = smov 7  }
   0x6   :  { %s10284_s25 = sld [smem:[%s13770_s0 + %s10197_s22]]   ;;  %s10200_s4 = smov 8  }
   0x7   :  { %13936 = sst [smem:[#allocation27_spill]] %s10259_s5  ;;  %s10201_s10 = smov 9  }
   0x8   :  { %13937 = sst [smem:[#allocation28_spill]] %s10264_s9  ;;  %s10202_s15 = smov 10  }
   0x9   :  { %s10289_s29 = sld [smem:[%s13770_s0 + %s10198_s26]]   ;;  %s10203_s20 = smov 11  }
   0xa   :  { %s10294_s3 = sld [smem:[%s13770_s0 + %s10199_s30]]   ;;  %s10204_s26 = smov 12  }
   0xb   :  { %s10299_s8 = sld [smem:[%s13770_s0 + %s10200_s4]]   ;;  %s10205_s1 = smov 13  }
   0xc   :  { %s10304_s14 = sld [smem:[%s13770_s0 + %s10201_s10]]   ;;  %s10206_s7 = smov 14  }
   0xd   :  { %s10309_s19 = sld [smem:[%s13770_s0 + %s10202_s15]]   ;;  %s10207_s15 = smov 15  }
   0xe   :  { %s10314_s24 = sld [smem:[%s13770_s0 + %s10203_s20]]   ;;  %s10208_s22 = smov 16  }
   0xf   :  { %s10319_s30 = sld [smem:[%s13770_s0 + %s10204_s26]]   ;;  %s10209_s28 = smov 17  }
  0x10   :  { %13938 = sst [smem:[#allocation29_spill]] %s10294_s3 }
  0x11   :  { %13939 = sst [smem:[#allocation30_spill]] %s10299_s8 }
  0x12   :  { %13940 = sst [smem:[#allocation31_spill]] %s10304_s14 }
  0x13   :  { %13941 = sst [smem:[#allocation32_spill]] %s10309_s19 }
  0x14   :  { %13942 = sst [smem:[#allocation33_spill]] %s10314_s24 }
  0x15   :  { %13943 = sst [smem:[#allocation34_spill]] %s10319_s30 }
  0x16   :  { %s10324_s6 = sld [smem:[%s13770_s0 + %s10205_s1]]  }
  0x17   :  { %s10329_s12 = sld [smem:[%s13770_s0 + %s10206_s7]]   ;;  %s10210_s7 = smov 18  }
  0x18   :  { %s10334_s20 = sld [smem:[%s13770_s0 + %s10207_s15]]   ;;  %s10211_s15 = smov 19  }
  0x19   :  { %s10339_s27 = sld [smem:[%s13770_s0 + %s10208_s22]]   ;;  %s10212_s22 = smov 20  }
  0x1a   :  { %s10344_s4 = sld [smem:[%s13770_s0 + %s10209_s28]]   ;;  %s10213_s28 = smov 21  }
  0x1b   :  { %s10364_s30 = sld [smem:[%s13770_s0 + %s10213_s28]]   ;;  %s10217_s28 = smov 25  }
  0x1c   :  { %13944 = sst [smem:[#allocation35_spill]] %s10324_s6 }
  0x1d   :  { %13945 = sst [smem:[#allocation36_spill]] %s10329_s12 }
  0x1e   :  { %13946 = sst [smem:[#allocation37_spill]] %s10334_s20 }
  0x1f   :  { %13947 = sst [smem:[#allocation38_spill]] %s10339_s27 }
  0x20   :  { %13948 = sst [smem:[#allocation39_spill]] %s10344_s4 }
  0x21   :  { %s10349_s12 = sld [smem:[%s13770_s0 + %s10210_s7]]   ;;  %s10214_s7 = smov 22  }
  0x22   :  { %s10354_s20 = sld [smem:[%s13770_s0 + %s10211_s15]]   ;;  %s10215_s15 = smov 23  }
  0x23   :  { %s10359_s27 = sld [smem:[%s13770_s0 + %s10212_s22]]   ;;  %s10216_s22 = smov 24  }
  0x24   :  { %13951 = sst [smem:[#allocation42_spill]] %s10364_s30 }
  0x25   :  { %s10369_s24 = sld [smem:[%s13770_s0 + %s10214_s7]]   ;;  %s10218_s7 = smov 26  }
  0x26   :  { %s10379_s19 = sld [smem:[%s13770_s0 + %s10216_s22]]   ;;  %s10220_s22 = smov 28  }
  0x27   :  { %13949 = sst [smem:[#allocation40_spill]] %s10349_s12 }
  0x28   :  { %13950 = sst [smem:[#allocation41_spill]] %s10354_s20 }
  0x29   :  { %s10374_s20 = sld [smem:[%s13770_s0 + %s10215_s15]]   ;;  %s10219_s15 = smov 27  }
  0x2a   :  { %s10384_s14 = sld [smem:[%s13770_s0 + %s10217_s28]]   ;;  %s10221_s28 = smov 29  }
  0x2b   :  { %13952 = sst [smem:[#allocation43_spill]] %s10369_s24 }
  0x2c   :  { %s10389_s24 = sld [smem:[%s13770_s0 + %s10218_s7]]   ;;  %s10222_s7 = smov 30  }
  0x2d   :  { %s10394_s8 = sld [smem:[%s13770_s0 + %s10219_s15]]   ;;  %s10223_s15 = smov 31  }
  0x2e   :  { %s10399_s6 = sld [smem:[%s13770_s0 + %s10220_s22]]   ;;  %s10224_s22 = smov 32  }
  0x30   :  { %13953 = sst [smem:[#allocation44_spill]] %s10384_s14 }
  0x31   :  { %s10404_s14 = sld [smem:[%s13770_s0 + %s10221_s28]]   ;;  %s10225_s28 = smov 33  }
  0x32   :  { %13954 = sst [smem:[#allocation45_spill]] %s10389_s24 }
  0x33   :  { %13955 = sst [smem:[#allocation46_spill]] %s10394_s8 }
  0x34   :  { %13956 = sst [smem:[#allocation47_spill]] %s10399_s6 }
  0x35   :  { %s10409_s24 = sld [smem:[%s13770_s0 + %s10222_s7]]   ;;  %s10226_s7 = smov 34  }
  0x36   :  { %s10414_s8 = sld [smem:[%s13770_s0 + %s10223_s15]]   ;;  %s10227_s15 = smov 35  }
  0x37   :  { %13957 = sst [smem:[#allocation48_spill]] %s10404_s14 }
  0x38   :  { %s10419_s6 = sld [smem:[%s13770_s0 + %s10224_s22]]   ;;  %s10228_s22 = smov 36  }
  0x39   :  { %s10424_s14 = sld [smem:[%s13770_s0 + %s10225_s28]]   ;;  %s10229_s28 = smov 37  }
  0x3b   :  { %13958 = sst [smem:[#allocation49_spill]] %s10409_s24 }
  0x3c   :  { %13959 = sst [smem:[#allocation50_spill]] %s10414_s8 }
  0x3d   :  { %s10429_s24 = sld [smem:[%s13770_s0 + %s10226_s7]]   ;;  %s10230_s7 = smov 38  }
  0x3e   :  { %13960 = sst [smem:[#allocation51_spill]] %s10419_s6 }
  0x3f   :  { %13961 = sst [smem:[#allocation52_spill]] %s10424_s14 }
  0x40   :  { %s10434_s8 = sld [smem:[%s13770_s0 + %s10227_s15]]   ;;  %s10231_s15 = smov 39  }
  0x41   :  { %s10439_s6 = sld [smem:[%s13770_s0 + %s10228_s22]]   ;;  %s10232_s22 = smov 40  }
  0x42   :  { %s10444_s14 = sld [smem:[%s13770_s0 + %s10229_s28]]   ;;  %s10233_s28 = smov 41  }
  0x43   :  { %13962 = sst [smem:[#allocation53_spill]] %s10429_s24 }
  0x44   :  { %s10449_s24 = sld [smem:[%s13770_s0 + %s10230_s7]]   ;;  %s10234_s7 = smov 42  }
  0x46   :  { %13963 = sst [smem:[#allocation54_spill]] %s10434_s8 }
  0x47   :  { %13964 = sst [smem:[#allocation55_spill]] %s10439_s6 }
  0x48   :  { %13965 = sst [smem:[#allocation56_spill]] %s10444_s14 }
  0x49   :  { %s10454_s8 = sld [smem:[%s13770_s0 + %s10231_s15]]   ;;  %s10235_s15 = smov 43  }
  0x4a   :  { %13966 = sst [smem:[#allocation57_spill]] %s10449_s24 }
  0x4b   :  { %s10459_s6 = sld [smem:[%s13770_s0 + %s10232_s22]]   ;;  %s10236_s22 = smov 44  }
  0x4c   :  { %s10464_s14 = sld [smem:[%s13770_s0 + %s10233_s28]]   ;;  %s10237_s28 = smov 45  }
  0x4d   :  { %s10469_s24 = sld [smem:[%s13770_s0 + %s10234_s7]]   ;;  %s10238_s7 = smov 46  }
  0x4f   :  { %13967 = sst [smem:[#allocation58_spill]] %s10454_s8 }
  0x50   :  { %s10474_s8 = sld [smem:[%s13770_s0 + %s10235_s15]]   ;;  %s10239_s15 = smov 47  }
  0x51   :  { %13968 = sst [smem:[#allocation59_spill]] %s10459_s6 }
  0x52   :  { %13969 = sst [smem:[#allocation60_spill]] %s10464_s14 }
  0x53   :  { %13970 = sst [smem:[#allocation61_spill]] %s10469_s24 }
  0x54   :  { %s10479_s6 = sld [smem:[%s13770_s0 + %s10236_s22]]   ;;  %s10240_s22 = smov 48  }
  0x55   :  { %s10484_s14 = sld [smem:[%s13770_s0 + %s10237_s28]]  }
  0x56   :  { %13971 = sst [smem:[#allocation62_spill]] %s10474_s8 }
  0x57   :  { %s10489_s24 = sld [smem:[%s13770_s0 + %s10238_s7]]  }
  0x58   :  { %s10494_s8 = sld [smem:[%s13770_s0 + %s10239_s15]]  }
  0x5a   :  { %13972 = sst [smem:[#allocation63_spill]] %s10479_s6 }
  0x5b   :  { %s10499_s6 = sld [smem:[%s13770_s0 + %s10240_s22]]  }
  0x5e   :  { %13973 = sst [smem:[#allocation64_spill]] %s10494_s8 }
  0x5f   :  { %102 = vsyncpa [#allocation10], 0 }
  0x60   :  { %103 = vsyncpa [#allocation13], 0 }
  0x61   :  { %104 = vsyncpa [#allocation16], 0 }
  0x62   :  { %105 = vsyncpa [#allocation19], 0 }
  0x63   :  { %106 = vsyncpa [#allocation11], 0 }
  0x64   :  { %108 = vsyncpa [#allocation11 + $0x1], 0  ;;  %s10501_s28 = smov 0   ;;  %s10503_s1 = smov 0  }
  0x65   :  { %s10505_s2 = smov 0   ;;  %s10507_s7 = smov 0  }
  0x66 LB: > { %s13974_s9 = sld [smem:[#allocation28_spill]]  ;;  %s13975_s8 = sld [smem:[#allocation64_spill]]  ;;  %s10183_s1 = sphi %s10503_s1, %s14181_s1   ;;  %s10179_s28 = sphi %s10501_s28, %s14180_s28   ;;  %s10191_s7 = sphi %s10507_s7, %s14177_s7   ;;  %s10187_s2 = sphi %s10505_s2, %s14179_s2  }
  0x67   : > { %s13976_s4 = sld [smem:[#allocation39_spill]]  ;;  %s13977_s3 = sld [smem:[#allocation29_spill]] }
  0x68   : > { %s13978_s30 = sld [smem:[#allocation42_spill]]  ;;  %s13979_s12 = sld [smem:[#allocation40_spill]] }
  0x69   : > { %13980 = sst [smem:[#allocation65_spill]] %s10179_s28  ;;  %s10522_s0 = sadd.s32 4294967295, %s10191_s7  }
  0x6a   : > { %13981 = sst [smem:[#allocation66_spill]] %s10187_s2  ;;  %s8924_s10 = sadd.s32 4294967294, %s10191_s7  }
  0x6b   : > { %s10526_s11 = sadd.s32 1, %s10191_s7   ;;  %s1134_s15 = sadd.s32 1, %s10187_s2 }
  0x6c   : > { %13982 = sst [smem:[#allocation67_spill]] %s10526_s11  ;;  %s1131_s16 = ssub.s32 %s10191_s7, %s10526_s11 }
  0x6d   : > { %p1144_p0 = scmp.ne.s32.totalorder %s10187_s2, %s10183_s1  ;;  %p1132_p1 = scmp.eq.s32.totalorder %s1131_s16, 0 }
  0x6e   : > { %p1145_p2 = scmp.eq.s32.totalorder %s10522_s0, 1  ;;  %p1150_p3 = scmp.ne.s32.totalorder %s10183_s1, %s10179_s28 }
  0x6f   : > { %p1151_p4 = scmp.eq.s32.totalorder %s8924_s10, 1  ;;  %p8925_p7 = scmp.ge.s32.totalorder %s10191_s7, 1 }
  0x70   : > { %s10537_s18 = scalar_select %p1132_p1, %s10187_s2, %s1134_s15  }
  0x71   : > { %p10539_p5 = por %p1145_p2, %p1144_p0  ;;  %p10543_p6 = por %p1151_p4, %p1150_p3 }
  0x72   : > { %13983 = sst [smem:[#allocation68_spill]] %s10537_s18  ;;  %p1158_p8 = scmp.lt.s32.totalorder %s10191_s7, 3 }
  0x73   : > { %s13984_s22 = scalar_select %p10539_p5, 1, 0 }
  0x74   : > { %s13985_s23 = scalar_select %p10543_p6, 1, 0 }
  0x75   : > { %p13788_p9 = scmp.eq.s32.totalorder %s10522_s0, 0  ;;  %p10550_p10 = pnand %p8925_p7, %p1158_p8 }
  0x76   : > { %13986 = sst [smem:[#allocation69_spill]] %s13985_s23  ;;  %s10241_s10 = smov [#allocation12]  }
  0x77   : > { %s13987_s26 = scalar_select %p10550_p10, 1, 0 }
  0x78   : > { %s1230_s15 = sshll.u32 %s10241_s10, 4  ;;  %p9541_p11 = pneg %p10550_p10  ;;  %s1231_s15 = int_to_ptr.vmem [resolvable:$true] %s1230_s15 }
  0x79   : > { %s10242_s16 = smov [#allocation15]   ;;  %s10243_s11 = smov [#allocation18]  }
  0x7a   : > { %s1255_s18 = sshll.u32 %s10242_s16, 4  ;;  %p10558_p12 = pnand %p13788_p9, %p9541_p11  ;;  %s10562_s18 = int_to_ptr.vmem [resolvable:$true] %s1255_s18 }
  0x7b   : > { %s1280_s23 = sshll.u32 %s10243_s11, 4  ;;  %s9917_s28 = scalar_lea.hbm %s13979_s12, 16  ;;  %s10564_s23 = int_to_ptr.vmem [resolvable:$true] %s1280_s23 }
  0x7c   : > { %p9918_p13 = scmp.ne.s32.totalorder %s13979_s12, %s9917_s28  ;;  %p10570_p0 = pneg %p10558_p12 }
  0x7d   : > { %p9924_p3 = scmp.lt.u32.totalorder %s9917_s28, %s13979_s12 }
  0x7e   : > { %p9920_p1 = pnand %p10570_p0, %p9918_p13 }
  0x80   : > { %p9921_p2 = pneg %p9920_p1 }
  0x82   : > { %p9926_p4 = pnand %p9924_p3, %p9921_p2 }
  0x84   : > { %9929 = shalt.err (!%p9926_p4)
}
  0x85   : > { %s9930_s16 = scalar_lea.vmem %s1231_s15, 16  ;;  %s9937_s11 = scalar_lea.vmem %s1231_s15, 32 }
  0x86   : > { %p9931_p7 = scmp.ne.s32.totalorder %s1231_s15, %s9930_s16  ;;  %p9938_p9 = scmp.lt.s32.totalorder %s1231_s15, %s1231_s15 }
  0x87   : > { %p9939_p6 = scmp.lt.s32.totalorder %s9937_s11, %s9930_s16 }
  0x88   : > { %p9933_p8 = pnand %p9931_p7, %p10570_p0 }
  0x89   : > { %p9940_p5 = por %p9939_p6, %p9938_p9 }
  0x8a   : > { %p9934_p11 = pneg %p9933_p8 }
  0x8c   : > { %p9941_p10 = pnand %p9940_p5, %p9934_p11 }
  0x8e   : > { %9944 = shalt.err (!%p9941_p10)
}
  0x8f   : > { %9547 = dma.hbm_to_vmem [thread:$0]  (!%p10558_p12), %s13979_s12, 16, %s1231_s15, [#allocation13]  }
  0x90   : > { %s9945_s28 = scalar_lea.hbm %s13978_s30, 16 }
  0x91   : > { %p9946_p13 = scmp.ne.s32.totalorder %s13978_s30, %s9945_s28  ;;  %p9952_p3 = scmp.lt.u32.totalorder %s9945_s28, %s13978_s30 }
  0x93   : > { %p9948_p1 = pnand %p9946_p13, %p10570_p0 }
  0x95   : > { %p9949_p2 = pneg %p9948_p1 }
  0x97   : > { %p9954_p4 = pnand %p9952_p3, %p9949_p2 }
  0x99   : > { %9957 = shalt.err (!%p9954_p4)
}
  0x9a   : > { %s9958_s16 = scalar_lea.vmem %s10562_s18, 16  ;;  %s9965_s11 = scalar_lea.vmem %s10562_s18, 32 }
  0x9b   : > { %p9959_p5 = scmp.ne.s32.totalorder %s10562_s18, %s9958_s16  ;;  %p9966_p10 = scmp.lt.s32.totalorder %s10562_s18, %s10562_s18 }
  0x9c   : > { %p9967_p7 = scmp.lt.s32.totalorder %s9965_s11, %s9958_s16 }
  0x9d   : > { %p9961_p6 = pnand %p9959_p5, %p10570_p0 }
  0x9e   : > { %p9968_p8 = por %p9967_p7, %p9966_p10 }
  0x9f   : > { %p9962_p9 = pneg %p9961_p6 }
  0xa1   : > { %p9969_p11 = pnand %p9968_p8, %p9962_p9 }
  0xa3   : > { %9972 = shalt.err (!%p9969_p11)
}
  0xa4   : > { %9553 = dma.hbm_to_vmem [thread:$0]  (!%p10558_p12), %s13978_s30, 16, %s10562_s18, [#allocation16]  }
  0xa5   : > { %s9973_s15 = scalar_lea.hbm %s10379_s19, 16 }
  0xa6   : > { %p9974_p13 = scmp.ne.s32.totalorder %s10379_s19, %s9973_s15  ;;  %p9980_p3 = scmp.lt.u32.totalorder %s9973_s15, %s10379_s19 }
  0xa8   : > { %p9976_p1 = pnand %p9974_p13, %p10570_p0 }
  0xaa   : > { %p9977_p2 = pneg %p9976_p1 }
  0xac   : > { %p9982_p4 = pnand %p9980_p3, %p9977_p2 }
  0xae   : > { %9985 = shalt.err (!%p9982_p4)
}
  0xaf   : > { %s9986_s28 = scalar_lea.vmem %s10564_s23, 16  ;;  %s9993_s16 = scalar_lea.vmem %s10564_s23, 32 }
  0xb0   : > { %p9987_p5 = scmp.ne.s32.totalorder %s10564_s23, %s9986_s28  ;;  %p9994_p10 = scmp.lt.s32.totalorder %s10564_s23, %s10564_s23 }
  0xb1   : > { %p9995_p7 = scmp.lt.s32.totalorder %s9993_s16, %s9986_s28 }
  0xb2   : > { %p9989_p6 = pnand %p9987_p5, %p10570_p0 }
  0xb3   : > { %p9996_p8 = por %p9995_p7, %p9994_p10 }
  0xb4   : > { %p9990_p9 = pneg %p9989_p6 }
  0xb6   : > { %p9997_p11 = pnand %p9996_p8, %p9990_p9 }
  0xb8   : > { %10000 = shalt.err (!%p9997_p11)
}
  0xb9   : > { %9559 = dma.hbm_to_vmem [thread:$0]  (!%p10558_p12), %s10379_s19, 16, %s10564_s23, [#allocation19]  }
  0xba   : > { %s10244_s18 = smov [#allocation9]   ;;  %s10245_s15 = smov [#allocation14]  }
  0xbb   : > { %s1219_s11 = sshll.u32 %s10244_s18, 4  ;;  %s1244_s12 = sshll.u32 %s10245_s15, 4  ;;  %s1220_s11 = int_to_ptr.vmem [resolvable:$true] %s1219_s11  ;;  %s1245_s12 = int_to_ptr.vmem [resolvable:$true] %s1244_s12 }
  0xbc   : > { %s10001_s30 = scalar_lea.hbm %s13976_s4, 16 }
  0xbd   : > { %p10002_p13 = scmp.ne.s32.totalorder %s13976_s4, %s10001_s30  ;;  %p10008_p3 = scmp.lt.u32.totalorder %s10001_s30, %s13976_s4 }
  0xbf   : > { %p10004_p1 = pnand %p10002_p13, %p10570_p0 }
  0xc1   : > { %p10005_p2 = pneg %p10004_p1 }
  0xc3   : > { %p10010_p4 = pnand %p10008_p3, %p10005_p2 }
  0xc5   : > { %10013 = shalt.err (!%p10010_p4)
}
  0xc6   : > { %s10014_s28 = scalar_lea.vmem %s1220_s11, 16  ;;  %s10021_s23 = scalar_lea.vmem %s1220_s11, 32 }
  0xc7   : > { %p10015_p5 = scmp.ne.s32.totalorder %s1220_s11, %s10014_s28  ;;  %p10022_p10 = scmp.lt.s32.totalorder %s1220_s11, %s1220_s11 }
  0xc8   : > { %p10023_p7 = scmp.lt.s32.totalorder %s10021_s23, %s10014_s28 }
  0xc9   : > { %p10017_p6 = pnand %p10015_p5, %p10570_p0 }
  0xca   : > { %p10024_p8 = por %p10023_p7, %p10022_p10 }
  0xcb   : > { %p10018_p9 = pneg %p10017_p6 }
  0xcd   : > { %p10025_p11 = pnand %p10024_p8, %p10018_p9 }
  0xcf   : > { %10028 = shalt.err (!%p10025_p11)
}
  0xd0   : > { %9544 = dma.hbm_to_vmem [thread:$0]  (!%p10558_p12), %s13976_s4, 16, %s1220_s11, [#allocation10]  }
  0xd1   : > { %s10029_s30 = scalar_lea.hbm %s10359_s27, 16 }
  0xd2   : > { %p10030_p13 = scmp.ne.s32.totalorder %s10359_s27, %s10029_s30  ;;  %p10036_p3 = scmp.lt.u32.totalorder %s10029_s30, %s10359_s27 }
  0xd4   : > { %p10032_p1 = pnand %p10030_p13, %p10570_p0 }
  0xd6   : > { %p10033_p2 = pneg %p10032_p1 }
  0xd8   : > { %p10038_p4 = pnand %p10036_p3, %p10033_p2 }
  0xda   : > { %10041 = shalt.err (!%p10038_p4)
}
  0xdb   : > { %s10042_s16 = scalar_lea.vmem %s1245_s12, 16  ;;  %s10049_s18 = scalar_lea.vmem %s1245_s12, 32 }
  0xdc   : > { %p10043_p5 = scmp.ne.s32.totalorder %s1245_s12, %s10042_s16  ;;  %p10050_p10 = scmp.lt.s32.totalorder %s1245_s12, %s1245_s12 }
  0xdd   : > { %p10051_p7 = scmp.lt.s32.totalorder %s10049_s18, %s10042_s16 }
  0xde   : > { %p10045_p6 = pnand %p10043_p5, %p10570_p0 }
  0xdf   : > { %p10052_p8 = por %p10051_p7, %p10050_p10 }
  0xe0   : > { %p10046_p9 = pneg %p10045_p6 }
  0xe2   : > { %p10053_p11 = pnand %p10052_p8, %p10046_p9 }
  0xe4   : > { %10056 = shalt.err (!%p10053_p11)
}
  0xe5   : > { %9550 = dma.hbm_to_vmem [thread:$0]  (!%p10558_p12), %s10359_s27, 16, %s1245_s12, [#allocation13]  }
  0xe6   : > { %s10246_s11 = smov [#allocation17]   ;;  %s10247_s28 = smov [#allocation20]  }
  0xe7   : > { %s1269_s15 = sshll.u32 %s10246_s11, 4  ;;  %s1357_s23 = sshll.u32 %s10247_s28, 4  ;;  %s1270_s15 = int_to_ptr.vmem [resolvable:$true] %s1269_s15  ;;  %s1358_s23 = int_to_ptr.vmem [resolvable:$true] %s1357_s23 }
  0xe8   : > { %s10057_s30 = scalar_lea.hbm %s10374_s20, 16 }
  0xe9   : > { %p10058_p13 = scmp.ne.s32.totalorder %s10374_s20, %s10057_s30  ;;  %p10064_p3 = scmp.lt.u32.totalorder %s10057_s30, %s10374_s20 }
  0xeb   : > { %p10060_p1 = pnand %p10058_p13, %p10570_p0 }
  0xed   : > { %p10061_p2 = pneg %p10060_p1 }
  0xef   : > { %p10066_p4 = pnand %p10064_p3, %p10061_p2 }
  0xf1   : > { %10069 = shalt.err (!%p10066_p4)
}
  0xf2   : > { %s10070_s16 = scalar_lea.vmem %s1270_s15, 16  ;;  %s10077_s12 = scalar_lea.vmem %s1270_s15, 32 }
  0xf3   : > { %p10071_p5 = scmp.ne.s32.totalorder %s1270_s15, %s10070_s16  ;;  %p10078_p10 = scmp.lt.s32.totalorder %s1270_s15, %s1270_s15 }
  0xf4   : > { %p10079_p7 = scmp.lt.s32.totalorder %s10077_s12, %s10070_s16 }
  0xf5   : > { %p10073_p6 = pnand %p10071_p5, %p10570_p0 }
  0xf6   : > { %p10080_p8 = por %p10079_p7, %p10078_p10 }
  0xf7   : > { %p10074_p9 = pneg %p10073_p6 }
  0xf9   : > { %p10081_p11 = pnand %p10080_p8, %p10074_p9 }
  0xfb   : > { %10084 = shalt.err (!%p10081_p11)
}
  0xfc   : > { %9556 = dma.hbm_to_vmem [thread:$0]  (!%p10558_p12), %s10374_s20, 16, %s1270_s15, [#allocation16]  }
  0xfd   : > { %s10085_s18 = scalar_lea.hbm %s13975_s8, 16 }
  0xfe   : > { %p10086_p13 = scmp.ne.s32.totalorder %s13975_s8, %s10085_s18  ;;  %p10092_p3 = scmp.lt.u32.totalorder %s10085_s18, %s13975_s8 }
 0x100   : > { %p10088_p1 = pnand %p10086_p13, %p10570_p0 }
 0x102   : > { %p10089_p2 = pneg %p10088_p1 }
 0x104   : > { %p10094_p4 = pnand %p10092_p3, %p10089_p2 }
 0x106   : > { %10097 = shalt.err (!%p10094_p4)
}
 0x107   : > { %s10098_s11 = scalar_lea.vmem %s1358_s23, 16  ;;  %s10105_s28 = scalar_lea.vmem %s1358_s23, 32 }
 0x108   : > { %p10099_p5 = scmp.ne.s32.totalorder %s1358_s23, %s10098_s11  ;;  %p10106_p10 = scmp.lt.s32.totalorder %s1358_s23, %s1358_s23 }
 0x109   : > { %p10107_p7 = scmp.lt.s32.totalorder %s10105_s28, %s10098_s11 }
 0x10a   : > { %p10101_p6 = pnand %p10099_p5, %p10570_p0 }
 0x10b   : > { %p10108_p8 = por %p10107_p7, %p10106_p10 }
 0x10c   : > { %p10102_p9 = pneg %p10101_p6 }
 0x10e   : > { %p10109_p11 = pnand %p10108_p8, %p10102_p9 }
 0x110   : > { %10112 = shalt.err (!%p10109_p11)
}
 0x111   : > { %9562 = dma.hbm_to_vmem [thread:$0]  (!%p10558_p12), %s13975_s8, 16, %s1358_s23, [#allocation19]  }
 0x112   : > { %p13990_p13 = scmp.ne.s32.totalorder %s13987_s26, 0 }
 0x114   : > { %1378 = sbr.rel (%p13990_p13) target bundleno = 2896 (0xb50), region = 212 }
 0x11b   : > { %p13991_p1 = scmp.eq.s32.totalorder %s10522_s0, 0 }
 0x11d   : > { %10158 = dma.done.wait (%p13991_p1), [#allocation10], 16   ;;  %p13992_p2 = pmov %p13991_p1 }
 0x11e   : > { %p13993_p0 = pmov %p13991_p1 }
 0x11f   : > { %10160 = vsyncadd (%p13992_p2), [#allocation10], 4294967280 }
 0x120   : > { %10162 = dma.done.wait (%p13993_p0), [#allocation13], 32   ;;  %p13994_p3 = pmov %p13993_p0 }
 0x121   : > { %p13995_p4 = pmov %p13993_p0 }
 0x122   : > { %10164 = vsyncadd (%p13994_p3), [#allocation13], 4294967264 }
 0x123   : > { %10166 = dma.done.wait (%p13995_p4), [#allocation16], 32   ;;  %p13996_p12 = pmov %p13993_p0 }
 0x124   : > { %p13997_p5 = pmov %p13993_p0 }
 0x125   : > { %10168 = vsyncadd (%p13996_p12), [#allocation16], 4294967264 }
 0x126   : > { %10170 = dma.done.wait (%p13997_p5), [#allocation19], 32   ;;  %p13998_p6 = pmov %p13993_p0 }
 0x127   : > { %v10248_v0 = vmov 0.0   ;;  %s13999_s5 = sld [smem:[#allocation27_spill]]  ;;  %p1515_p9 = scmp.lt.s32.totalorder %s10522_s0, 1  ;;  %v9671_v1 = vld [vmem:[%s13974_s9] sm:$0xff]   ;;  %v9672_v2 = vld [vmem:[%s13974_s9 + $0x8] sm:$0xff]   ;;  %v9673_v3 = vld [vmem:[%s13974_s9 + $0x10] sm:$0xff]  }
 0x128   : > { %10172 = vsyncadd (%p13998_p6), [#allocation19], 4294967264  ;;  %2208 = vst [vmem:[#allocation3 + $0x198] sm:$0xff] %v10248_v0  ;;  %9335 = vmatprep.subr.bf16.mxu0 %v9671_v1  ;;  %9367 = vmatprep.subr.bf16.mxu1 %v9671_v1  ;;  %v9674_v4 = vld [vmem:[%s13974_s9 + $0x18] sm:$0xff]   ;;  %v9675_v6 = vld [vmem:[%s13974_s9 + $0x20] sm:$0xff]   ;;  %s14000_s15 = sld [smem:[#allocation35_spill]] }
 0x129   : > { %1521 = vst [vmem:[#allocation2] sm:$0xff] %v10248_v0  ;;  %1522 = vst [vmem:[#allocation2 + $0x8] sm:$0xff] %v10248_v0  ;;  %s1516_s2 = scalar_select %p1515_p9, %s10522_s0, 1  ;;  %9336 = vmatpush3.bf16.msra.mxu0 %v9671_v1  ;;  %9368 = vmatpush3.bf16.msra.mxu1 %v9671_v1  ;;  %v9676_v8 = vld [vmem:[%s13974_s9 + $0x28] sm:$0xff]   ;;  %v9677_v9 = vld [vmem:[%s13974_s9 + $0x30] sm:$0xff]   ;;  %vm8287_vm0 = vcmask 1043456  }
 0x12a   : > { %1523 = vst [vmem:[#allocation2 + $0x10] sm:$0x3] %v10248_v0  ;;  %1524 = vst [vmem:[#allocation2 + $0x18] sm:$0xff] %v10248_v0  ;;  %9337 = vmatprep.subr.bf16.mxu0 %v9672_v2  ;;  %9369 = vmatprep.subr.bf16.mxu1 %v9672_v2  ;;  %v9678_v10 = vld [vmem:[%s13974_s9 + $0x38] sm:$0xff]   ;;  %v9695_v25 = vld [vmem:[%s13977_s3] sm:$0xff]   ;;  %s14001_s23 = sld [smem:[#allocation30_spill]] }
 0x12b   : > { %1525 = vst [vmem:[#allocation2 + $0x20] sm:$0xff] %v10248_v0  ;;  %1526 = vst [vmem:[#allocation2 + $0x28] sm:$0x3] %v10248_v0  ;;  %s9216_s26 = sshll.u32 %s1516_s2, 7  ;;  %v9696_v26 = vld [vmem:[%s13977_s3 + $0x8] sm:$0xff]   ;;  %v9697_v27 = vld [vmem:[%s13977_s3 + $0x10] sm:$0xff]  }
 0x12c   : > { %1527 = vst [vmem:[#allocation2 + $0x30] sm:$0xff] %v10248_v0  ;;  %1528 = vst [vmem:[#allocation2 + $0x38] sm:$0xff] %v10248_v0  ;;  %v9698_v28 = vld [vmem:[%s13977_s3 + $0x18] sm:$0xff]   ;;  %v9699_v29 = vld [vmem:[%s13977_s3 + $0x20] sm:$0xff]   ;;  %s14002_s30 = sld [smem:[#allocation31_spill]]  ;;  %s14003_s16 = sld [smem:[#allocation32_spill]] }
 0x12d   : > { %1529 = vst [vmem:[#allocation2 + $0x40] sm:$0x3] %v10248_v0  ;;  %1530 = vst [vmem:[#allocation2 + $0x48] sm:$0xff] %v10248_v0  ;;  %s10858_s10 = scalar_lea.vmem %s13999_s5, %s9216_s26  ;;  %9338 = vmatpush3.bf16.msra.mxu0 %v9672_v2  ;;  %9370 = vmatpush3.bf16.msra.mxu1 %v9672_v2  ;;  %v9700_v30 = vld [vmem:[%s13977_s3 + $0x28] sm:$0xff]   ;;  %v9701_v31 = vld [vmem:[%s13977_s3 + $0x30] sm:$0xff]   ;;  %s14004_s12 = sld [smem:[#allocation33_spill]] }
 0x12e   : > { %1531 = vst [vmem:[#allocation2 + $0x50] sm:$0xff] %v10248_v0  ;;  %1532 = vst [vmem:[#allocation2 + $0x58] sm:$0x3] %v10248_v0  ;;  %9339 = vmatprep.subr.bf16.mxu0 %v9673_v3  ;;  %9371 = vmatprep.subr.bf16.mxu1 %v9673_v3  ;;  %v9679_v5 = vld [vmem:[%s10858_s10] sm:$0xff]   ;;  %v9680_v11 = vld [vmem:[%s10858_s10 + $0x8] sm:$0xff]   ;;  %s14005_s18 = sld [smem:[#allocation34_spill]] }
 0x12f   : > { %1533 = vst [vmem:[#allocation2 + $0x60] sm:$0xff] %v10248_v0  ;;  %1534 = vst [vmem:[#allocation2 + $0x68] sm:$0xff] %v10248_v0  ;;  %9351 = vmatprep.mubr.bf16.mxu0 %v9679_v5  ;;  %v9683_v7 = vld [vmem:[%s10858_s10 + $0x40] sm:$0xff]   ;;  %v9684_v12 = vld [vmem:[%s10858_s10 + $0x48] sm:$0xff]   ;;  %s14006_s11 = sld [smem:[#allocation41_spill]]  ;;  %s14007_s28 = sld [smem:[#allocation36_spill]] }
 0x130   : > { %1535 = vst [vmem:[#allocation2 + $0x70] sm:$0x3] %v10248_v0  ;;  %1536 = vst [vmem:[#allocation2 + $0x78] sm:$0xff] %v10248_v0  ;;  %9383 = vmatprep.mubr.bf16.mxu1 %v9683_v7  ;;  %v9681_v13 = vld [vmem:[%s10858_s10 + $0x10] sm:$0xff]   ;;  %v9682_v15 = vld [vmem:[%s10858_s10 + $0x18] sm:$0xff]   ;;  %s14008_s2 = sld [smem:[#allocation37_spill]] }
 0x131   : > { %1537 = vst [vmem:[#allocation2 + $0x80] sm:$0xff] %v10248_v0  ;;  %1538 = vst [vmem:[#allocation2 + $0x88] sm:$0x3] %v10248_v0  ;;  %9340 = vmatpush3.bf16.msra.mxu0 %v9673_v3  ;;  %9372 = vmatpush3.bf16.msra.mxu1 %v9673_v3  ;;  %v9687_v14 = vld [vmem:[%s10858_s10 + $0x50] sm:$0xff]   ;;  %v9688_v16 = vld [vmem:[%s10858_s10 + $0x58] sm:$0xff]   ;;  %s14009_s26 = sld [smem:[#allocation38_spill]] }
 0x132   : > { %1539 = vst [vmem:[#allocation2 + $0x90] sm:$0xff] %v10248_v0  ;;  %1540 = vst [vmem:[#allocation2 + $0x98] sm:$0xff] %v10248_v0  ;;  %9341 = vmatprep.subr.bf16.mxu0 %v9674_v4  ;;  %9373 = vmatprep.subr.bf16.mxu1 %v9674_v4  ;;  %v9685_v17 = vld [vmem:[%s10858_s10 + $0x20] sm:$0xff]   ;;  %v9686_v19 = vld [vmem:[%s10858_s10 + $0x28] sm:$0xff]   ;;  %p14173_p7 = scmp.ne.s32.totalorder %s13984_s22, 0 }
 0x133   : > { %1541 = vst [vmem:[#allocation2 + $0xa0] sm:$0x3] %v10248_v0  ;;  %1542 = vst [vmem:[#allocation2 + $0xa8] sm:$0xff] %v10248_v0  ;;  %v9691_v18 = vld [vmem:[%s10858_s10 + $0x60] sm:$0xff]   ;;  %v9692_v20 = vld [vmem:[%s10858_s10 + $0x68] sm:$0xff]  }
 0x134   : > { %1543 = vst [vmem:[#allocation2 + $0xb0] sm:$0xff] %v10248_v0  ;;  %1544 = vst [vmem:[#allocation2 + $0xb8] sm:$0x3] %v10248_v0  ;;  %v9689_v21 = vld [vmem:[%s10858_s10 + $0x30] sm:$0xff]   ;;  %v9690_v23 = vld [vmem:[%s10858_s10 + $0x38] sm:$0xff]  }
 0x135   : > { %1545 = vst [vmem:[#allocation2 + $0xc0] sm:$0xff] %v10248_v0  ;;  %1546 = vst [vmem:[#allocation2 + $0xc8] sm:$0xff] %v10248_v0  ;;  %9342 = vmatpush3.bf16.msra.mxu0 %v9674_v4  ;;  %9374 = vmatpush3.bf16.msra.mxu1 %v9674_v4  ;;  %v9693_v22 = vld [vmem:[%s10858_s10 + $0x70] sm:$0xff]   ;;  %v9694_v24 = vld [vmem:[%s10858_s10 + $0x78] sm:$0xff]   ;;  %s14010_s10 = sld [smem:[#allocation44_spill]] }
 0x136   : > { %1547 = vst [vmem:[#allocation2 + $0xd0] sm:$0x3] %v10248_v0  ;;  %1548 = vst [vmem:[#allocation2 + $0xd8] sm:$0xff] %v10248_v0  ;;  %9343 = vmatprep.subr.bf16.mxu0 %v9675_v6  ;;  %9375 = vmatprep.subr.bf16.mxu1 %v9675_v6  ;;  %v9702_v32 = vld [vmem:[%s13977_s3 + $0x38] sm:$0xff]   ;;  %v10890_v33 = vld [vmem:[%s10279_s21] ss:$0 sm:$0xff] }
 0x137   : > { %1549 = vst [vmem:[#allocation2 + $0xe0] sm:$0xff] %v10248_v0  ;;  %1550 = vst [vmem:[#allocation2 + $0xe8] sm:$0x3] %v10248_v0  ;;  %v2264_v34 = vld [vmem:[#allocation2 + $0x1] sm:$0xff]  ;;  %v2265_v35 = vld [vmem:[#allocation2 + $0x9] sm:$0xff] }
 0x138   : > { %1551 = vst [vmem:[#allocation2 + $0xf0] sm:$0xff] %v10248_v0  ;;  %1552 = vst [vmem:[#allocation2 + $0xf8] sm:$0xff] %v10248_v0  ;;  %v10893_v36 = vld [vmem:[%s10279_s21 + $0x1] ss:$0 sm:$0xff]  ;;  %v9903_v37 = vld [vmem:[#allocation3 + $0x198] sm:$0xff] }
 0x139   : > { %1553 = vst [vmem:[#allocation2 + $0x100] sm:$0x3] %v10248_v0  ;;  %1554 = vst [vmem:[#allocation2 + $0x108] sm:$0xff] %v10248_v0  ;;  %9344 = vmatpush3.bf16.msra.mxu0 %v9675_v6  ;;  %9376 = vmatpush3.bf16.msra.mxu1 %v9675_v6  ;;  %v2232_v38 = vmul.f32 %v9903_v37, %v10890_v33  ;;  %v2285_v39 = vmul.f32 %v10893_v36, %v2264_v34  ;;  %v2317_v41 = vld [vmem:[#allocation2 + $0x2] sm:$0xff]  ;;  %v2318_v42 = vld [vmem:[#allocation2 + $0xa] sm:$0xff] }
 0x13a   : > { %1555 = vst [vmem:[#allocation2 + $0x110] sm:$0xff] %v10248_v0  ;;  %1556 = vst [vmem:[#allocation2 + $0x118] sm:$0x3] %v10248_v0  ;;  %9345 = vmatprep.subr.bf16.mxu0 %v9676_v8  ;;  %9377 = vmatprep.subr.bf16.mxu1 %v9676_v8  ;;  %v2286_v40 = vmul.f32 %v10893_v36, %v2265_v35  ;;  %v10899_v43 = vld [vmem:[%s10279_s21 + $0x2] ss:$0 sm:$0xff] }
 0x13b   : > { %1557 = vst [vmem:[#allocation2 + $0x120] sm:$0xff] %v10248_v0  ;;  %1558 = vst [vmem:[#allocation2 + $0x128] sm:$0xff] %v10248_v0  ;;  %v10902_v44 = vld [vmem:[%s10269_s13] ss:$0 sm:$0xff]  ;;  %v2301_v45 = vadd.f32 %v2285_v39, %v2232_v38  ;;  %v2338_v47 = vmul.f32 %v10899_v43, %v2317_v41  ;;  %v2339_v48 = vmul.f32 %v10899_v43, %v2318_v42 }
 0x13c   : > { %1559 = vst [vmem:[#allocation2 + $0x130] sm:$0x3] %v10248_v0  ;;  %1560 = vst [vmem:[#allocation2 + $0x138] sm:$0xff] %v10248_v0  ;;  %v2302_v46 = vadd.f32 %v2286_v40, %v2232_v38  ;;  %v10907_v49 = vld [vmem:[%s10274_s17] ss:$0 sm:$0xff] }
 0x13d   : > { %1561 = vst [vmem:[#allocation2 + $0x140] sm:$0xff] %v10248_v0  ;;  %1562 = vst [vmem:[#allocation2 + $0x148] sm:$0x3] %v10248_v0  ;;  %9346 = vmatpush3.bf16.msra.mxu0 %v9676_v8  ;;  %9378 = vmatpush3.bf16.msra.mxu1 %v9676_v8  ;;  %v10913_v60 = vadd.f32 %v2338_v47, %v2301_v45 }
 0x13e   : > { %1563 = vst [vmem:[#allocation2 + $0x150] sm:$0xff] %v10248_v0  ;;  %1564 = vst [vmem:[#allocation2 + $0x158] sm:$0xff] %v10248_v0  ;;  %9347 = vmatprep.subr.bf16.mxu0 %v9677_v9  ;;  %9379 = vmatprep.subr.bf16.mxu1 %v9677_v9  ;;  %v10915_v61 = vadd.f32 %v2339_v48, %v2302_v46 }
 0x13f   : > { %1565 = vst [vmem:[#allocation2 + $0x160] sm:$0x3] %v10248_v0  ;;  %1566 = vst [vmem:[#allocation2 + $0x168] sm:$0xff] %v10248_v0 }
 0x140   : > { %1567 = vst [vmem:[#allocation2 + $0x170] sm:$0xff] %v10248_v0  ;;  %1568 = vst [vmem:[#allocation2 + $0x178] sm:$0x3] %v10248_v0 }
 0x141   : > { %1569 = vst [vmem:[#allocation2 + $0x180] sm:$0xff] %v10248_v0  ;;  %1570 = vst [vmem:[#allocation2 + $0x188] sm:$0xff] %v10248_v0  ;;  %9348 = vmatpush3.bf16.msra.mxu0 %v9677_v9  ;;  %9380 = vmatpush3.bf16.msra.mxu1 %v9677_v9 }
 0x142   : > { %1571 = vst [vmem:[#allocation2 + $0x190] sm:$0x3] %v10248_v0  ;;  %1572 = vst [vmem:[#allocation2 + $0x198] sm:$0xff] %v10248_v0  ;;  %9349 = vmatprep.subr.bf16.mxu0 %v9678_v10  ;;  %9381 = vmatprep.subr.bf16.mxu1 %v9678_v10 }
 0x143   : > { %1573 = vst [vmem:[#allocation2 + $0x1a0] sm:$0xff] %v10248_v0  ;;  %1574 = vst [vmem:[#allocation2 + $0x1a8] sm:$0x3] %v10248_v0 }
 0x144   : > { %2157 = vst [vmem:[#allocation3] sm:$0xff] %v10248_v0  ;;  %2158 = vst [vmem:[#allocation3 + $0x8] sm:$0xff] %v10248_v0 }
 0x145   : > { %2159 = vst [vmem:[#allocation3 + $0x10] sm:$0x3] %v10248_v0  ;;  %2160 = vst [vmem:[#allocation3 + $0x18] sm:$0xff] %v10248_v0  ;;  %9350 = vmatpush3.bf16.msra.mxu0 %v9678_v10  ;;  %9382 = vmatpush3.bf16.msra.mxu1 %v9678_v10 }
 0x146   : > { %2161 = vst [vmem:[#allocation3 + $0x20] sm:$0xff] %v10248_v0  ;;  %2162 = vst [vmem:[#allocation3 + $0x28] sm:$0x3] %v10248_v0  ;;  %9399 = vmatprep.subr.bf16.mxu0 %v9695_v25  ;;  %9431 = vmatprep.subr.bf16.mxu1 %v9695_v25 }
 0x147   : > { %2163 = vst [vmem:[#allocation3 + $0x30] sm:$0xff] %v10248_v0  ;;  %2164 = vst [vmem:[#allocation3 + $0x38] sm:$0xff] %v10248_v0 }
 0x148   : > { %2165 = vst [vmem:[#allocation3 + $0x40] sm:$0x3] %v10248_v0  ;;  %2166 = vst [vmem:[#allocation3 + $0x48] sm:$0xff] %v10248_v0  ;;  %9352 = vmatmul.mubr.bf16.vlgmr.msra.gmra.mrb[0].mxu0 %v9680_v11  ;;  %9384 = vmatmul.mubr.bf16.vlgmr.msra.gmra.mrb[0].mxu1 %v9684_v12 }
 0x149   : > { %2167 = vst [vmem:[#allocation3 + $0x50] sm:$0xff] %v10248_v0  ;;  %2168 = vst [vmem:[#allocation3 + $0x58] sm:$0x3] %v10248_v0  ;;  %9355 = vmatprep.mubr.bf16.mxu0 %v9681_v13  ;;  %9387 = vmatprep.mubr.bf16.mxu1 %v9687_v14 }
 0x14a   : > { %2169 = vst [vmem:[#allocation3 + $0x60] sm:$0xff] %v10248_v0  ;;  %2170 = vst [vmem:[#allocation3 + $0x68] sm:$0xff] %v10248_v0  ;;  %9400 = vmatpush3.bf16.msra.mxu0 %v9695_v25  ;;  %9432 = vmatpush3.bf16.msra.mxu1 %v9695_v25 }
 0x14b   : > { %2171 = vst [vmem:[#allocation3 + $0x70] sm:$0x3] %v10248_v0  ;;  %2172 = vst [vmem:[#allocation3 + $0x78] sm:$0xff] %v10248_v0  ;;  %9401 = vmatprep.subr.bf16.mxu0 %v9696_v26  ;;  %9433 = vmatprep.subr.bf16.mxu1 %v9696_v26 }
 0x14c   : > { %2173 = vst [vmem:[#allocation3 + $0x80] sm:$0xff] %v10248_v0  ;;  %2174 = vst [vmem:[#allocation3 + $0x88] sm:$0x3] %v10248_v0 }
 0x14d   : > { %2175 = vst [vmem:[#allocation3 + $0x90] sm:$0xff] %v10248_v0  ;;  %2176 = vst [vmem:[#allocation3 + $0x98] sm:$0xff] %v10248_v0 }
 0x14e   : > { %2177 = vst [vmem:[#allocation3 + $0xa0] sm:$0x3] %v10248_v0  ;;  %2178 = vst [vmem:[#allocation3 + $0xa8] sm:$0xff] %v10248_v0  ;;  %9402 = vmatpush3.bf16.msra.mxu0 %v9696_v26  ;;  %9434 = vmatpush3.bf16.msra.mxu1 %v9696_v26 }
 0x14f   : > { %2179 = vst [vmem:[#allocation3 + $0xb0] sm:$0xff] %v10248_v0  ;;  %2180 = vst [vmem:[#allocation3 + $0xb8] sm:$0x3] %v10248_v0  ;;  %9403 = vmatprep.subr.bf16.mxu0 %v9697_v27  ;;  %9435 = vmatprep.subr.bf16.mxu1 %v9697_v27 }
 0x150   : > { %2181 = vst [vmem:[#allocation3 + $0xc0] sm:$0xff] %v10248_v0  ;;  %2182 = vst [vmem:[#allocation3 + $0xc8] sm:$0xff] %v10248_v0  ;;  %9356 = vmatmul.mubr.bf16.gmra.mrb[4].mxu0 %v9682_v15  ;;  %9388 = vmatmul.mubr.bf16.gmra.mrb[4].mxu1 %v9688_v16 }
 0x151   : > { %2183 = vst [vmem:[#allocation3 + $0xd0] sm:$0x3] %v10248_v0  ;;  %2184 = vst [vmem:[#allocation3 + $0xd8] sm:$0xff] %v10248_v0  ;;  %9359 = vmatprep.mubr.bf16.mxu0 %v9685_v17  ;;  %9391 = vmatprep.mubr.bf16.mxu1 %v9691_v18 }
 0x152   : > { %2185 = vst [vmem:[#allocation3 + $0xe0] sm:$0xff] %v10248_v0  ;;  %2186 = vst [vmem:[#allocation3 + $0xe8] sm:$0x3] %v10248_v0  ;;  %9404 = vmatpush3.bf16.msra.mxu0 %v9697_v27  ;;  %9436 = vmatpush3.bf16.msra.mxu1 %v9697_v27 }
 0x153   : > { %2187 = vst [vmem:[#allocation3 + $0xf0] sm:$0xff] %v10248_v0  ;;  %2188 = vst [vmem:[#allocation3 + $0xf8] sm:$0xff] %v10248_v0  ;;  %9405 = vmatprep.subr.bf16.mxu0 %v9698_v28  ;;  %9437 = vmatprep.subr.bf16.mxu1 %v9698_v28 }
 0x154   : > { %2189 = vst [vmem:[#allocation3 + $0x100] sm:$0x3] %v10248_v0  ;;  %2190 = vst [vmem:[#allocation3 + $0x108] sm:$0xff] %v10248_v0 }
 0x155   : > { %2191 = vst [vmem:[#allocation3 + $0x110] sm:$0xff] %v10248_v0  ;;  %2192 = vst [vmem:[#allocation3 + $0x118] sm:$0x3] %v10248_v0 }
 0x156   : > { %2193 = vst [vmem:[#allocation3 + $0x120] sm:$0xff] %v10248_v0  ;;  %2194 = vst [vmem:[#allocation3 + $0x128] sm:$0xff] %v10248_v0  ;;  %9406 = vmatpush3.bf16.msra.mxu0 %v9698_v28  ;;  %9438 = vmatpush3.bf16.msra.mxu1 %v9698_v28 }
 0x157   : > { %2195 = vst [vmem:[#allocation3 + $0x130] sm:$0x3] %v10248_v0  ;;  %2196 = vst [vmem:[#allocation3 + $0x138] sm:$0xff] %v10248_v0  ;;  %9407 = vmatprep.subr.bf16.mxu0 %v9699_v29  ;;  %9439 = vmatprep.subr.bf16.mxu1 %v9699_v29 }
 0x158   : > { %2197 = vst [vmem:[#allocation3 + $0x140] sm:$0xff] %v10248_v0  ;;  %2198 = vst [vmem:[#allocation3 + $0x148] sm:$0x3] %v10248_v0  ;;  %9360 = vmatmul.mubr.bf16.gmra.mrb[8].mxu0 %v9686_v19  ;;  %9392 = vmatmul.mubr.bf16.gmra.mrb[8].mxu1 %v9692_v20 }
 0x159   : > { %2199 = vst [vmem:[#allocation3 + $0x150] sm:$0xff] %v10248_v0  ;;  %2200 = vst [vmem:[#allocation3 + $0x158] sm:$0xff] %v10248_v0  ;;  %9363 = vmatprep.mubr.bf16.mxu0 %v9689_v21  ;;  %9395 = vmatprep.mubr.bf16.mxu1 %v9693_v22 }
 0x15a   : > { %2201 = vst [vmem:[#allocation3 + $0x160] sm:$0x3] %v10248_v0  ;;  %2202 = vst [vmem:[#allocation3 + $0x168] sm:$0xff] %v10248_v0  ;;  %9408 = vmatpush3.bf16.msra.mxu0 %v9699_v29  ;;  %9440 = vmatpush3.bf16.msra.mxu1 %v9699_v29 }
 0x15b   : > { %2203 = vst [vmem:[#allocation3 + $0x170] sm:$0xff] %v10248_v0  ;;  %2204 = vst [vmem:[#allocation3 + $0x178] sm:$0x3] %v10248_v0  ;;  %9409 = vmatprep.subr.bf16.mxu0 %v9700_v30  ;;  %9441 = vmatprep.subr.bf16.mxu1 %v9700_v30 }
 0x15c   : > { %2205 = vst [vmem:[#allocation3 + $0x180] sm:$0xff] %v10248_v0  ;;  %2206 = vst [vmem:[#allocation3 + $0x188] sm:$0xff] %v10248_v0 }
 0x15d   : > { %2207 = vst [vmem:[#allocation3 + $0x190] sm:$0x3] %v10248_v0  ;;  %3760 = vst [vmem:[#allocation4] sm:$0xff] %v10248_v0 }
 0x15e   : > { %3761 = vst [vmem:[#allocation4 + $0x8] sm:$0x3] %v10248_v0  ;;  %3762 = vst [vmem:[#allocation4 + $0x10] sm:$0xff] %v10248_v0  ;;  %9410 = vmatpush3.bf16.msra.mxu0 %v9700_v30  ;;  %9442 = vmatpush3.bf16.msra.mxu1 %v9700_v30 }
 0x15f   : > { %3763 = vst [vmem:[#allocation4 + $0x18] sm:$0x3] %v10248_v0  ;;  %3764 = vst [vmem:[#allocation4 + $0x20] sm:$0xff] %v10248_v0  ;;  %9411 = vmatprep.subr.bf16.mxu0 %v9701_v31  ;;  %9443 = vmatprep.subr.bf16.mxu1 %v9701_v31 }
 0x160   : > { %3765 = vst [vmem:[#allocation4 + $0x28] sm:$0x3] %v10248_v0  ;;  %3766 = vst [vmem:[#allocation4 + $0x30] sm:$0xff] %v10248_v0  ;;  %9364 = vmatmul.mubr.bf16.gmra.mrb[12].mxu0 %v9690_v23  ;;  %9396 = vmatmul.mubr.bf16.gmra.mrb[12].mxu1 %v9694_v24 }
 0x161   : > { %3767 = vst [vmem:[#allocation4 + $0x38] sm:$0x3] %v10248_v0  ;;  %3768 = vst [vmem:[#allocation4 + $0x40] sm:$0xff] %v10248_v0 }
 0x162   : > { %3769 = vst [vmem:[#allocation4 + $0x48] sm:$0x3] %v10248_v0  ;;  %3770 = vst [vmem:[#allocation4 + $0x50] sm:$0xff] %v10248_v0  ;;  %9412 = vmatpush3.bf16.msra.mxu0 %v9701_v31  ;;  %9444 = vmatpush3.bf16.msra.mxu1 %v9701_v31 }
 0x163   : > { %3771 = vst [vmem:[#allocation4 + $0x58] sm:$0x3] %v10248_v0  ;;  %3772 = vst [vmem:[#allocation4 + $0x60] sm:$0xff] %v10248_v0  ;;  %9413 = vmatprep.subr.bf16.mxu0 %v9702_v32  ;;  %9445 = vmatprep.subr.bf16.mxu1 %v9702_v32 }
 0x164   : > { %3773 = vst [vmem:[#allocation4 + $0x68] sm:$0x3] %v10248_v0  ;;  %3774 = vst [vmem:[#allocation4 + $0x70] sm:$0xff] %v10248_v0 }
 0x165   : > { %3775 = vst [vmem:[#allocation4 + $0x78] sm:$0x3] %v10248_v0  ;;  %3776 = vst [vmem:[#allocation4 + $0x80] sm:$0xff] %v10248_v0 }
 0x166   : > { %3777 = vst [vmem:[#allocation4 + $0x88] sm:$0x3] %v10248_v0  ;;  %3778 = vst [vmem:[#allocation4 + $0x90] sm:$0xff] %v10248_v0  ;;  %9414 = vmatpush3.bf16.msra.mxu0 %v9702_v32  ;;  %9446 = vmatpush3.bf16.msra.mxu1 %v9702_v32 }
 0x167   : > { %3779 = vst [vmem:[#allocation4 + $0x98] sm:$0x3] %v10248_v0  ;;  %4373 = vst [vmem:[#allocation5] sm:$0xff] %v10248_v0 }
 0x168   : > { %4374 = vst [vmem:[#allocation5 + $0x8] sm:$0x3] %v10248_v0  ;;  %4375 = vst [vmem:[#allocation5 + $0x10] sm:$0xff] %v10248_v0 }
 0x169   : > { %4376 = vst [vmem:[#allocation5 + $0x18] sm:$0x3] %v10248_v0  ;;  %4377 = vst [vmem:[#allocation5 + $0x20] sm:$0xff] %v10248_v0 }
 0x16a   : > { %4378 = vst [vmem:[#allocation5 + $0x28] sm:$0x3] %v10248_v0  ;;  %4379 = vst [vmem:[#allocation5 + $0x30] sm:$0xff] %v10248_v0 }
 0x16b   : > { %4380 = vst [vmem:[#allocation5 + $0x38] sm:$0x3] %v10248_v0  ;;  %4381 = vst [vmem:[#allocation5 + $0x40] sm:$0xff] %v10248_v0 }
 0x16c   : > { %4382 = vst [vmem:[#allocation5 + $0x48] sm:$0x3] %v10248_v0  ;;  %4383 = vst [vmem:[#allocation5 + $0x50] sm:$0xff] %v10248_v0 }
 0x16d   : > { %4384 = vst [vmem:[#allocation5 + $0x58] sm:$0x3] %v10248_v0  ;;  %4385 = vst [vmem:[#allocation5 + $0x60] sm:$0xff] %v10248_v0 }
 0x16e   : > { %4386 = vst [vmem:[#allocation5 + $0x68] sm:$0x3] %v10248_v0  ;;  %4387 = vst [vmem:[#allocation5 + $0x70] sm:$0xff] %v10248_v0 }
 0x16f   : > { %4388 = vst [vmem:[#allocation5 + $0x78] sm:$0x3] %v10248_v0  ;;  %4389 = vst [vmem:[#allocation5 + $0x80] sm:$0xff] %v10248_v0 }
 0x170   : > { %4390 = vst [vmem:[#allocation5 + $0x88] sm:$0x3] %v10248_v0  ;;  %4917 = vst [vmem:[#allocation6] sm:$0x3f] %v10248_v0 }
 0x171   : > { %4918 = vst [vmem:[#allocation6 + $0x8] sm:$0x3f] %v10248_v0  ;;  %4919 = vst [vmem:[#allocation6 + $0x10] sm:$0x3f] %v10248_v0 }
 0x172   : > { %4920 = vst [vmem:[#allocation6 + $0x18] sm:$0x3f] %v10248_v0  ;;  %4921 = vst [vmem:[#allocation6 + $0x20] sm:$0x3f] %v10248_v0 }
 0x173   : > { %4922 = vst [vmem:[#allocation6 + $0x28] sm:$0x3f] %v10248_v0  ;;  %4923 = vst [vmem:[#allocation6 + $0x30] sm:$0x3f] %v10248_v0 }
 0x174   : > { %4924 = vst [vmem:[#allocation6 + $0x38] sm:$0x3f] %v10248_v0  ;;  %4925 = vst [vmem:[#allocation6 + $0x40] sm:$0x3f] %v10248_v0 }
 0x175   : > { %4926 = vst [vmem:[#allocation6 + $0x48] sm:$0x3f] %v10248_v0  ;;  %4927 = vst [vmem:[#allocation6 + $0x50] sm:$0x3f] %v10248_v0 }
 0x176   : > { %4928 = vst [vmem:[#allocation6 + $0x58] sm:$0x3f] %v10248_v0  ;;  %5518 = vst [vmem:[#allocation7] sm:$0x3f] %v10248_v0 }
 0x177   : > { %5519 = vst [vmem:[#allocation7 + $0x8] sm:$0x3f] %v10248_v0  ;;  %5520 = vst [vmem:[#allocation7 + $0x10] sm:$0x3f] %v10248_v0 }
 0x178   : > { %5521 = vst [vmem:[#allocation7 + $0x18] sm:$0x3f] %v10248_v0  ;;  %5522 = vst [vmem:[#allocation7 + $0x20] sm:$0x3f] %v10248_v0 }
 0x179   : > { %5523 = vst [vmem:[#allocation7 + $0x28] sm:$0x3f] %v10248_v0  ;;  %5524 = vst [vmem:[#allocation7 + $0x30] sm:$0x3f] %v10248_v0 }
 0x17a   : > { %5525 = vst [vmem:[#allocation7 + $0x38] sm:$0x3f] %v10248_v0  ;;  %5526 = vst [vmem:[#allocation7 + $0x40] sm:$0x3f] %v10248_v0 }
 0x17b   : > { %5527 = vst [vmem:[#allocation7 + $0x48] sm:$0x3f] %v10248_v0  ;;  %5528 = vst [vmem:[#allocation7 + $0x50] sm:$0x3f] %v10248_v0 }
 0x17c   : > { %5529 = vst [vmem:[#allocation7 + $0x58] sm:$0x3f] %v10248_v0  ;;  %6518 = vst [vmem:[#allocation8] sm:$0x3f] %v10248_v0 }
 0x17d   : > { %6519 = vst [vmem:[#allocation8 + $0x8] sm:$0x3f] %v10248_v0  ;;  %6520 = vst [vmem:[#allocation8 + $0x10] sm:$0x3f] %v10248_v0 }
 0x17e   : > { %6521 = vst [vmem:[#allocation8 + $0x18] sm:$0x3f] %v10248_v0  ;;  %6522 = vst [vmem:[#allocation8 + $0x20] sm:$0x3f] %v10248_v0 }
 0x17f   : > { %6523 = vst [vmem:[#allocation8 + $0x28] sm:$0x3f] %v10248_v0  ;;  %6524 = vst [vmem:[#allocation8 + $0x30] sm:$0x3f] %v10248_v0 }
 0x180   : > { %6525 = vst [vmem:[#allocation8 + $0x38] sm:$0x3f] %v10248_v0  ;;  %6526 = vst [vmem:[#allocation8 + $0x40] sm:$0x3f] %v10248_v0 }
 0x181   : > { %6527 = vst [vmem:[#allocation8 + $0x48] sm:$0x3f] %v10248_v0  ;;  %6528 = vst [vmem:[#allocation8 + $0x50] sm:$0x3f] %v10248_v0 }
 0x182   : > { %6529 = vst [vmem:[#allocation8 + $0x58] sm:$0x3f] %v10248_v0 }
 0x21b   : > { %v9353_v50 = vpop.f32.mrb[0].mxu0  ;;  %v9385_v51 = vpop.f32.mrb[0].mxu1 }
 0x21c   : > { %v1810_v52 = vmul.f32 %v9353_v50, %v10902_v44  ;;  %v1739_v53 = vpop.f32.mrb[1].mxu0  ;;  %v2058_v54 = vmul.f32 %v9385_v51, %v10902_v44  ;;  %v1993_v55 = vpop.f32.mrb[1].mxu1 }
 0x21d   : > { %v1808_v56 = vmul.f32 %v10902_v44, %v1739_v53  ;;  %v9354_v57 = vpop.f32.mrb[2].mxu0  ;;  %v2056_v58 = vmul.f32 %v10902_v44, %v1993_v55  ;;  %v9386_v59 = vpop.f32.mrb[2].mxu1 }
 0x21e   : > { %v1832_v62 = vadd.f32 %v10907_v49, %v1810_v52  ;;  %v1811_v63 = vmul.f32 %v9354_v57, %v10902_v44  ;;  %v1742_v0 = vpop.f32.mrb[3].mxu0  ;;  %v2074_v1 = vadd.f32 %v10907_v49, %v2058_v54  ;;  %v2059_v2 = vmul.f32 %v9386_v59, %v10902_v44  ;;  %v1996_v3 = vpop.f32.mrb[3].mxu1 }
 0x21f   : > { %v1830_v4 = vadd.f32 %v10907_v49, %v1808_v56  ;;  %v1809_v5 = vmul.f32 %v10902_v44, %v1742_v0  ;;  %v2072_v6 = vadd.f32 %v10907_v49, %v2056_v58  ;;  %v2057_v7 = vmul.f32 %v10902_v44, %v1996_v3 }
 0x220   : > { %v1848_v8 = vmax.f32 %v1832_v62, 0.0  ;;  %v1833_v9 = vadd.f32 %v10907_v49, %v1811_v63  ;;  %v2090_v10 = vmax.f32 %v2074_v1, 0.0  ;;  %v2075_v11 = vadd.f32 %v10907_v49, %v2059_v2 }
 0x221   : > { %v1846_v12 = vmax.f32 %v1830_v4, 0.0  ;;  %v1831_v13 = vadd.f32 %v10907_v49, %v1809_v5  ;;  %v2088_v14 = vmax.f32 %v2072_v6, 0.0  ;;  %v2073_v15 = vadd.f32 %v10907_v49, %v2057_v7 }
 0x222   : > { %v10929_v16 = vmin.f32 %v1848_v8, 6.0  ;;  %v1849_v17 = vmax.f32 %v1833_v9, 0.0  ;;  %v2106_v18 = vmin.f32 %v2090_v10, 6.0  ;;  %v2091_v19 = vmax.f32 %v2075_v11, 0.0 }
 0x223   : > { %v10931_v20 = vmin.f32 %v1846_v12, 6.0  ;;  %v1847_v21 = vmax.f32 %v1831_v13, 0.0  ;;  %v9357_v22 = vpop.f32.mrb[4].mxu0  ;;  %v2104_v23 = vmin.f32 %v2088_v14, 6.0  ;;  %v2089_v24 = vmax.f32 %v2073_v15, 0.0  ;;  %v9389_v25 = vpop.f32.mrb[4].mxu1 }
 0x224   : > { %1881 = vst [vmem:[#allocation2 + $0x31] sm:$0xff] %v10929_v16  ;;  %v10934_v26 = vmin.f32 %v1849_v17, 6.0  ;;  %v1814_v27 = vmul.f32 %v9357_v22, %v10902_v44  ;;  %v1755_v28 = vpop.f32.mrb[5].mxu0  ;;  %2123 = vst [vmem:[#allocation2 + $0xf1] sm:$0xff] %v2106_v18  ;;  %v2107_v29 = vmin.f32 %v2091_v19, 6.0  ;;  %v2062_v30 = vmul.f32 %v9389_v25, %v10902_v44  ;;  %v2009_v31 = vpop.f32.mrb[5].mxu1 }
 0x225   : > { %1879 = vst [vmem:[#allocation2 + $0x19] sm:$0xff] %v10931_v20  ;;  %v10939_v32 = vmin.f32 %v1847_v21, 6.0  ;;  %v1812_v34 = vmul.f32 %v10902_v44, %v1755_v28  ;;  %v9358_v35 = vpop.f32.mrb[6].mxu0  ;;  %2121 = vst [vmem:[#allocation2 + $0xd9] sm:$0xff] %v2104_v23  ;;  %v2105_v37 = vmin.f32 %v2089_v24, 6.0  ;;  %v2060_v38 = vmul.f32 %v10902_v44, %v2009_v31  ;;  %v9390_v39 = vpop.f32.mrb[6].mxu1 }
 0x226   : > { %1882 = vst [vmem:[#allocation2 + $0x39] sm:$0xff] %v10934_v26  ;;  %v1836_v40 = vadd.f32 %v10907_v49, %v1814_v27  ;;  %v1815_v41 = vmul.f32 %v9358_v35, %v10902_v44  ;;  %v1758_v42 = vpop.f32.mrb[7].mxu0  ;;  %2124 = vst [vmem:[#allocation2 + $0xf9] sm:$0xff] %v2107_v29  ;;  %v2078_v45 = vadd.f32 %v10907_v49, %v2062_v30  ;;  %v2012_v47 = vpop.f32.mrb[7].mxu1 }
 0x227   : > { %v2063_v46 = vmul.f32 %v9390_v39, %v10902_v44  ;;  %1880 = vst [vmem:[#allocation2 + $0x21] sm:$0xff] %v10939_v32  ;;  %v1834_v48 = vadd.f32 %v10907_v49, %v1812_v34  ;;  %v1813_v50 = vmul.f32 %v10902_v44, %v1758_v42  ;;  %2122 = vst [vmem:[#allocation2 + $0xe1] sm:$0xff] %v2105_v37 }
 0x228   : > { %v2076_v51 = vadd.f32 %v10907_v49, %v2060_v38  ;;  %v2061_v52 = vmul.f32 %v10902_v44, %v2012_v47  ;;  %v1852_v53 = vmax.f32 %v1836_v40, 0.0  ;;  %v1837_v54 = vadd.f32 %v10907_v49, %v1815_v41 }
 0x229   : > { %v2094_v55 = vmax.f32 %v2078_v45, 0.0  ;;  %v2079_v56 = vadd.f32 %v10907_v49, %v2063_v46  ;;  %v1850_v57 = vmax.f32 %v1834_v48, 0.0  ;;  %v1835_v58 = vadd.f32 %v10907_v49, %v1813_v50 }
 0x22a   : > { %v2092_v59 = vmax.f32 %v2076_v51, 0.0  ;;  %v2077_v62 = vadd.f32 %v10907_v49, %v2061_v52  ;;  %v10957_v63 = vmin.f32 %v1852_v53, 6.0  ;;  %v1853_v0 = vmax.f32 %v1837_v54, 0.0 }
 0x22b   : > { %v2110_v1 = vmin.f32 %v2094_v55, 6.0  ;;  %v2095_v2 = vmax.f32 %v2079_v56, 0.0  ;;  %v10959_v3 = vmin.f32 %v1850_v57, 6.0  ;;  %v1851_v4 = vmax.f32 %v1835_v58, 0.0  ;;  %v9361_v5 = vpop.f32.mrb[8].mxu0  ;;  %v9393_v8 = vpop.f32.mrb[8].mxu1 }
 0x22c   : > { %v2108_v6 = vmin.f32 %v2092_v59, 6.0  ;;  %v2093_v7 = vmax.f32 %v2077_v62, 0.0  ;;  %1885 = vst [vmem:[#allocation2 + $0x61] sm:$0xff] %v10957_v63  ;;  %v10962_v9 = vmin.f32 %v1853_v0, 6.0  ;;  %v1818_v10 = vmul.f32 %v9361_v5, %v10902_v44  ;;  %v1771_v11 = vpop.f32.mrb[9].mxu0  ;;  %v2025_v14 = vpop.f32.mrb[9].mxu1 }
 0x22d   : > { %2127 = vst [vmem:[#allocation2 + $0x121] sm:$0xff] %v2110_v1  ;;  %v2111_v12 = vmin.f32 %v2095_v2, 6.0  ;;  %v2066_v13 = vmul.f32 %v9393_v8, %v10902_v44  ;;  %1883 = vst [vmem:[#allocation2 + $0x49] sm:$0xff] %v10959_v3  ;;  %v10967_v15 = vmin.f32 %v1851_v4, 6.0  ;;  %v1816_v17 = vmul.f32 %v10902_v44, %v1771_v11  ;;  %v9362_v18 = vpop.f32.mrb[10].mxu0  ;;  %v9394_v22 = vpop.f32.mrb[10].mxu1 }
 0x22e   : > { %2125 = vst [vmem:[#allocation2 + $0x109] sm:$0xff] %v2108_v6  ;;  %v2109_v19 = vmin.f32 %v2093_v7, 6.0  ;;  %v2064_v21 = vmul.f32 %v10902_v44, %v2025_v14  ;;  %1886 = vst [vmem:[#allocation2 + $0x69] sm:$0xff] %v10962_v9  ;;  %v1840_v23 = vadd.f32 %v10907_v49, %v1818_v10  ;;  %v1819_v24 = vmul.f32 %v9362_v18, %v10902_v44  ;;  %v1774_v25 = vpop.f32.mrb[11].mxu0  ;;  %v2028_v29 = vpop.f32.mrb[11].mxu1 }
 0x22f   : > { %2128 = vst [vmem:[#allocation2 + $0x129] sm:$0xff] %v2111_v12  ;;  %v2082_v27 = vadd.f32 %v10907_v49, %v2066_v13  ;;  %v2067_v28 = vmul.f32 %v9394_v22, %v10902_v44  ;;  %1884 = vst [vmem:[#allocation2 + $0x51] sm:$0xff] %v10967_v15  ;;  %v1838_v30 = vadd.f32 %v10907_v49, %v1816_v17 }
 0x230   : > { %v1817_v31 = vmul.f32 %v10902_v44, %v1774_v25  ;;  %2126 = vst [vmem:[#allocation2 + $0x111] sm:$0xff] %v2109_v19  ;;  %v2080_v34 = vadd.f32 %v10907_v49, %v2064_v21  ;;  %v2065_v35 = vmul.f32 %v10902_v44, %v2028_v29  ;;  %v1856_v37 = vmax.f32 %v1840_v23, 0.0  ;;  %v11012_v29 = vld [vmem:[%s10279_s21 + $0x3] ss:$0 sm:$0xff] }
 0x231   : > { %v1841_v38 = vadd.f32 %v10907_v49, %v1819_v24  ;;  %v2098_v39 = vmax.f32 %v2082_v27, 0.0  ;;  %v2083_v40 = vadd.f32 %v10907_v49, %v2067_v28  ;;  %v1854_v41 = vmax.f32 %v1838_v30, 0.0 }
 0x232   : > { %v1839_v42 = vadd.f32 %v10907_v49, %v1817_v31  ;;  %v2096_v45 = vmax.f32 %v2080_v34, 0.0  ;;  %v2081_v46 = vadd.f32 %v10907_v49, %v2065_v35  ;;  %v10985_v47 = vmin.f32 %v1856_v37, 6.0  ;;  %v2370_v37 = vld [vmem:[#allocation2 + $0x18] sm:$0xff] }
 0x233   : > { %v1857_v48 = vmax.f32 %v1841_v38, 0.0  ;;  %v2114_v50 = vmin.f32 %v2098_v39, 6.0  ;;  %v2099_v51 = vmax.f32 %v2083_v40, 0.0  ;;  %v10987_v52 = vmin.f32 %v1854_v41, 6.0  ;;  %v9365_v54 = vpop.f32.mrb[12].mxu0  ;;  %v9397_v57 = vpop.f32.mrb[12].mxu1 }
 0x234   : > { %v1855_v53 = vmax.f32 %v1839_v42, 0.0  ;;  %v2112_v55 = vmin.f32 %v2096_v45, 6.0  ;;  %v2097_v56 = vmax.f32 %v2081_v46, 0.0  ;;  %1889 = vst [vmem:[#allocation2 + $0x91] sm:$0xff] %v10985_v47  ;;  %v1822_v59 = vmul.f32 %v9365_v54, %v10902_v44  ;;  %v1787_v62 = vpop.f32.mrb[13].mxu0  ;;  %v2041_v2 = vpop.f32.mrb[13].mxu1 }
 0x235   : > { %v10990_v58 = vmin.f32 %v1857_v48, 6.0  ;;  %2131 = vst [vmem:[#allocation2 + $0x151] sm:$0xff] %v2114_v50  ;;  %v2115_v0 = vmin.f32 %v2099_v51, 6.0  ;;  %v2070_v1 = vmul.f32 %v9397_v57, %v10902_v44  ;;  %1887 = vst [vmem:[#allocation2 + $0x79] sm:$0xff] %v10987_v52  ;;  %v1820_v5 = vmul.f32 %v10902_v44, %v1787_v62  ;;  %v9366_v6 = vpop.f32.mrb[14].mxu0  ;;  %v9398_v10 = vpop.f32.mrb[14].mxu1 }
 0x236   : > { %v10995_v4 = vmin.f32 %v1855_v53, 6.0  ;;  %2129 = vst [vmem:[#allocation2 + $0x139] sm:$0xff] %v2112_v55  ;;  %v2113_v7 = vmin.f32 %v2097_v56, 6.0  ;;  %v2068_v8 = vmul.f32 %v10902_v44, %v2041_v2  ;;  %v1844_v11 = vadd.f32 %v10907_v49, %v1822_v59  ;;  %v1790_v13 = vpop.f32.mrb[15].mxu0  ;;  %v2044_v18 = vpop.f32.mrb[15].mxu1  ;;  %v2371_v38 = vld [vmem:[#allocation2 + $0x20] sm:$0xff] }
 0x237   : > { %1890 = vst [vmem:[#allocation2 + $0x99] sm:$0xff] %v10990_v58  ;;  %v1823_v12 = vmul.f32 %v9366_v6, %v10902_v44  ;;  %2132 = vst [vmem:[#allocation2 + $0x159] sm:$0xff] %v2115_v0  ;;  %v2086_v14 = vadd.f32 %v10907_v49, %v2070_v1  ;;  %v2071_v17 = vmul.f32 %v9398_v10, %v10902_v44  ;;  %v11017_v39 = vld [vmem:[%s10279_s21 + $0x4] ss:$0 sm:$0xff]  ;;  %v11020_v45 = vld [vmem:[%s10279_s21 + $0x5] ss:$0 sm:$0xff] }
 0x238   : > { %1888 = vst [vmem:[#allocation2 + $0x81] sm:$0xff] %v10995_v4  ;;  %v1842_v19 = vadd.f32 %v10907_v49, %v1820_v5  ;;  %v1821_v21 = vmul.f32 %v10902_v44, %v1790_v13  ;;  %2130 = vst [vmem:[#allocation2 + $0x141] sm:$0xff] %v2113_v7  ;;  %v2084_v22 = vadd.f32 %v10907_v49, %v2068_v8  ;;  %v1860_v24 = vmax.f32 %v1844_v11, 0.0  ;;  %v11023_v46 = vld [vmem:[%s10279_s21 + $0x7] ss:$0 sm:$0xff]  ;;  %v2476_v54 = vld [vmem:[#allocation2 + $0x1a] sm:$0xff] }
 0x239   : > { %v2069_v23 = vmul.f32 %v10902_v44, %v2044_v18  ;;  %v1845_v25 = vadd.f32 %v10907_v49, %v1823_v12  ;;  %v2102_v27 = vmax.f32 %v2086_v14, 0.0  ;;  %v2087_v28 = vadd.f32 %v10907_v49, %v2071_v17  ;;  %v11029_v62 = vld [vmem:[#allocation2 + $0x30] sm:$0xff]  ;;  %v11031_v0 = vld [vmem:[#allocation2 + $0x38] sm:$0xff]  ;;  %v11034_v1 = vld [vmem:[%s10279_s21 + $0x6] ss:$0 sm:$0xff] }
 0x23a   : > { %v1858_v30 = vmax.f32 %v1842_v19, 0.0  ;;  %v1843_v31 = vadd.f32 %v10907_v49, %v1821_v21  ;;  %v2100_v34 = vmax.f32 %v2084_v22, 0.0  ;;  %v1876_v44 = vmin.f32 %v1860_v24, 6.0  ;;  %v11043_v8 = vld [vmem:[#allocation2 + $0x32] sm:$0xff]  ;;  %v11045_v10 = vld [vmem:[#allocation2 + $0x3a] sm:$0xff] }
 0x23b   : > { %v2085_v35 = vadd.f32 %v10907_v49, %v2069_v23  ;;  %v1861_v40 = vmax.f32 %v1845_v25, 0.0  ;;  %v2118_v41 = vmin.f32 %v2102_v27, 6.0  ;;  %v2103_v42 = vmax.f32 %v2087_v28, 0.0  ;;  %v2477_v49 = vld [vmem:[#allocation2 + $0x22] sm:$0xff] }
 0x23c   : > { %v11025_v48 = vmin.f32 %v1858_v30, 6.0  ;;  %v1859_v50 = vmax.f32 %v1843_v31, 0.0  ;;  %v2116_v51 = vmin.f32 %v2100_v34, 6.0  ;;  %1893 = vst [vmem:[#allocation2 + $0xc1] sm:$0xff] %v1876_v44  ;;  %v2391_v57 = vmul.f32 %v11012_v29, %v2370_v37  ;;  %v11048_v11 = vld [vmem:[%s10279_s21 + $0x8] ss:$0 sm:$0xff] }
 0x23d   : > { %v2101_v53 = vmax.f32 %v2085_v35, 0.0  ;;  %v1877_v55 = vmin.f32 %v1861_v40, 6.0  ;;  %2135 = vst [vmem:[#allocation2 + $0x181] sm:$0xff] %v2118_v41  ;;  %v2119_v56 = vmin.f32 %v2103_v42, 6.0  ;;  %v2392_v59 = vmul.f32 %v11012_v29, %v2371_v38 }
 0x23e   : > { %1891 = vst [vmem:[#allocation2 + $0xa9] sm:$0xff] %v11025_v48  ;;  %v11037_v2 = vmin.f32 %v1859_v50, 6.0  ;;  %2133 = vst [vmem:[#allocation2 + $0x169] sm:$0xff] %v2116_v51  ;;  %v2444_v6 = vmul.f32 %v11017_v39, %v10931_v20  ;;  %v2445_v7 = vmul.f32 %v11017_v39, %v10939_v32  ;;  %v2407_v12 = vadd.f32 %v2391_v57, %v10913_v60  ;;  %v11091_v57 = vld [vmem:[#allocation2 + $0x4a] sm:$0xff] }
 0x23f   : > { %v2117_v5 = vmin.f32 %v2101_v53, 6.0  ;;  %1894 = vst [vmem:[#allocation2 + $0xc9] sm:$0xff] %v1877_v55  ;;  %2136 = vst [vmem:[#allocation2 + $0x189] sm:$0xff] %v2119_v56  ;;  %v2408_v13 = vadd.f32 %v2392_v59, %v10915_v61  ;;  %v2497_v14 = vmul.f32 %v11020_v45, %v2476_v54  ;;  %v2498_v17 = vmul.f32 %v11020_v45, %v2477_v49  ;;  %v11093_v59 = vld [vmem:[#allocation2 + $0x52] sm:$0xff] }
 0x240   : > { %1892 = vst [vmem:[#allocation2 + $0xb1] sm:$0xff] %v11037_v2  ;;  %v2551_v18 = vmul.f32 %v11034_v1, %v11029_v62  ;;  %v2552_v19 = vmul.f32 %v11034_v1, %v11031_v0  ;;  %v2604_v21 = vmul.f32 %v11023_v46, %v10929_v16  ;;  %v2605_v60 = vmul.f32 %v11023_v46, %v10934_v26 }
 0x241   : > { %2134 = vst [vmem:[#allocation2 + $0x171] sm:$0xff] %v2117_v5  ;;  %v2460_v61 = vadd.f32 %v2444_v6, %v2407_v12  ;;  %v2461_v22 = vadd.f32 %v2445_v7, %v2408_v13  ;;  %v2657_v23 = vmul.f32 %v11048_v11, %v11043_v8  ;;  %v2658_v24 = vmul.f32 %v11048_v11, %v11045_v10  ;;  %v11100_v13 = vld [vmem:[%s10284_s25] ss:$0 sm:$0xff] }
 0x242   : > { %v2234_v25 = vmul.f32 %v10890_v33, %v2370_v37  ;;  %v2235_v27 = vmul.f32 %v10890_v33, %v2371_v38  ;;  %v2287_v28 = vmul.f32 %v10893_v36, %v10931_v20  ;;  %v2288_v30 = vmul.f32 %v10893_v36, %v10939_v32  ;;  %v11079_v38 = vld [vmem:[#allocation2 + $0x48] sm:$0xff]  ;;  %v11081_v20 = vld [vmem:[#allocation2 + $0x50] sm:$0xff] }
 0x243   : > { %v2513_v31 = vadd.f32 %v2497_v14, %v2460_v61  ;;  %v2514_v34 = vadd.f32 %v2498_v17, %v2461_v22  ;;  %v2340_v35 = vmul.f32 %v10899_v43, %v2476_v54  ;;  %v2341_v44 = vmul.f32 %v10899_v43, %v2477_v49 }
 0x244   : > { %v2303_v40 = vadd.f32 %v2287_v28, %v2234_v25  ;;  %v2304_v41 = vadd.f32 %v2288_v30, %v2235_v27  ;;  %v2393_v42 = vmul.f32 %v11012_v29, %v11029_v62  ;;  %v2394_v37 = vmul.f32 %v11012_v29, %v11031_v0  ;;  %v11111_v25 = vld [vmem:[%s10289_s29] ss:$0 sm:$0xff] }
 0x245   : > { %v2567_v32 = vadd.f32 %v2551_v18, %v2513_v31  ;;  %v2568_v50 = vadd.f32 %v2552_v19, %v2514_v34  ;;  %v2446_v51 = vmul.f32 %v11017_v39, %v10929_v16  ;;  %v2447_v53 = vmul.f32 %v11017_v39, %v10934_v26 }
 0x246   : > { %v2356_v54 = vadd.f32 %v2340_v35, %v2303_v40  ;;  %v2357_v49 = vadd.f32 %v2341_v44, %v2304_v41  ;;  %v2499_v55 = vmul.f32 %v11020_v45, %v11043_v8  ;;  %v2500_v56 = vmul.f32 %v11020_v45, %v11045_v10 }
 0x247   : > { %v2620_v5 = vadd.f32 %v2604_v21, %v2567_v32  ;;  %v2621_v6 = vadd.f32 %v2605_v60, %v2568_v50  ;;  %v2553_v7 = vmul.f32 %v11034_v1, %v11079_v38  ;;  %v2554_v12 = vmul.f32 %v11034_v1, %v11081_v20 }
 0x248   : > { %v2409_v14 = vadd.f32 %v2393_v42, %v2356_v54  ;;  %v2410_v17 = vadd.f32 %v2394_v37, %v2357_v49  ;;  %v2606_v18 = vmul.f32 %v11023_v46, %v10959_v3  ;;  %v2607_v19 = vmul.f32 %v11023_v46, %v10967_v15 }
 0x249   : > { %v2673_v61 = vadd.f32 %v2657_v23, %v2620_v5  ;;  %v2674_v22 = vadd.f32 %v2658_v24, %v2621_v6  ;;  %v2659_v21 = vmul.f32 %v11048_v11, %v11091_v57  ;;  %v2660_v60 = vmul.f32 %v11048_v11, %v11093_v59  ;;  %v11137_v6 = vld [vmem:[#allocation2 + $0x60] sm:$0xff] }
 0x24a   : > { %v2462_v27 = vadd.f32 %v2446_v51, %v2409_v14  ;;  %v2463_v28 = vadd.f32 %v2447_v53, %v2410_v17  ;;  %v2236_v30 = vmul.f32 %v10890_v33, %v11029_v62  ;;  %v2237_v31 = vmul.f32 %v10890_v33, %v11031_v0 }
 0x24b   : > { %v2695_v34 = vmul.f32 %v11100_v13, %v2673_v61  ;;  %v2696_v23 = vmul.f32 %v11100_v13, %v2674_v22  ;;  %v2289_v24 = vmul.f32 %v10893_v36, %v10929_v16  ;;  %v2290_v35 = vmul.f32 %v10893_v36, %v10934_v26  ;;  %v11139_v61 = vld [vmem:[#allocation2 + $0x68] sm:$0xff] }
 0x24c   : > { %v2515_v44 = vadd.f32 %v2499_v55, %v2462_v27  ;;  %v2516_v40 = vadd.f32 %v2500_v56, %v2463_v28  ;;  %v2342_v41 = vmul.f32 %v10899_v43, %v11043_v8  ;;  %v2343_v62 = vmul.f32 %v10899_v43, %v11045_v10  ;;  %v11145_v28 = vld [vmem:[#allocation2 + $0x62] sm:$0xff] }
 0x24d   : > { %v2717_v0 = vadd.f32 %v11111_v25, %v2695_v34  ;;  %v2718_v42 = vadd.f32 %v11111_v25, %v2696_v23  ;;  %v2305_v37 = vadd.f32 %v2289_v24, %v2236_v30  ;;  %v2306_v32 = vadd.f32 %v2290_v35, %v2237_v31  ;;  %v11149_v24 = vld [vmem:[#allocation2 + $0x6a] sm:$0xff] }
 0x24e   : > { %v2569_v50 = vadd.f32 %v2553_v7, %v2515_v44  ;;  %v2570_v51 = vadd.f32 %v2554_v12, %v2516_v40  ;;  %v2395_v16 = vmul.f32 %v11012_v29, %v11079_v38  ;;  %v2396_v26 = vmul.f32 %v11012_v29, %v11081_v20 }
 0x24f   : > { %v2733_v53 = vmax.f32 %v2717_v0, 0.0  ;;  %v2734_v54 = vmax.f32 %v2718_v42, 0.0  ;;  %v2358_v8 = vadd.f32 %v2342_v41, %v2305_v37  ;;  %v2359_v49 = vadd.f32 %v2343_v62, %v2306_v32 }
 0x250   : > { %v2622_v55 = vadd.f32 %v2606_v18, %v2569_v50  ;;  %v2623_v10 = vadd.f32 %v2607_v19, %v2570_v51  ;;  %v2448_v56 = vmul.f32 %v11017_v39, %v10959_v3  ;;  %v2449_v5 = vmul.f32 %v11017_v39, %v10967_v15 }
 0x251   : > { %v2749_v7 = vmin.f32 %v2733_v53, 6.0  ;;  %v2750_v12 = vmin.f32 %v2734_v54, 6.0  ;;  %v2411_v14 = vadd.f32 %v2395_v16, %v2358_v8  ;;  %v2412_v17 = vadd.f32 %v2396_v26, %v2359_v49 }
 0x252   : > { %v2675_v22 = vadd.f32 %v2659_v21, %v2622_v55  ;;  %v2676_v27 = vadd.f32 %v2660_v60, %v2623_v10  ;;  %v2501_v18 = vmul.f32 %v11020_v45, %v11091_v57  ;;  %v2502_v19 = vmul.f32 %v11020_v45, %v11093_v59 }
 0x253   : > { %v2765_v30 = vpack.c.bf16 %v2750_v12, %v2749_v7  ;;  %v2464_v31 = vadd.f32 %v2448_v56, %v2411_v14  ;;  %v2465_v34 = vadd.f32 %v2449_v5, %v2412_v17  ;;  %v2555_v23 = vmul.f32 %v11034_v1, %v11137_v6 }
 0x254   : > { %v2697_v35 = vmul.f32 %v11100_v13, %v2675_v22  ;;  %v2698_v21 = vmul.f32 %v11100_v13, %v2676_v27  ;;  %v2556_v60 = vmul.f32 %v11034_v1, %v11139_v61  ;;  %v2608_v44 = vmul.f32 %v11023_v46, %v10957_v63  ;;  %v11181_v27 = vld [vmem:[#allocation2 + $0x78] sm:$0xff] }
 0x255   : > { %9415 = vmatprep.mubr.bf16.mxu0 %v2765_v30  ;;  %v2517_v40 = vadd.f32 %v2501_v18, %v2464_v31  ;;  %v2518_v41 = vadd.f32 %v2502_v19, %v2465_v34  ;;  %v2609_v62 = vmul.f32 %v11023_v46, %v10962_v9  ;;  %v2661_v0 = vmul.f32 %v11048_v11, %v11145_v28 }
 0x256   : > { %v2719_v42 = vadd.f32 %v11111_v25, %v2697_v35  ;;  %v2720_v37 = vadd.f32 %v11111_v25, %v2698_v21  ;;  %v2662_v32 = vmul.f32 %v11048_v11, %v11149_v24  ;;  %v2238_v50 = vmul.f32 %v10890_v33, %v11079_v38  ;;  %v11193_v21 = vld [vmem:[#allocation2 + $0x7a] sm:$0xff] }
 0x257   : > { %v2571_v51 = vadd.f32 %v2555_v23, %v2517_v40  ;;  %v2572_v16 = vadd.f32 %v2556_v60, %v2518_v41  ;;  %v2239_v26 = vmul.f32 %v10890_v33, %v11081_v20  ;;  %v2291_v53 = vmul.f32 %v10893_v36, %v10959_v3  ;;  %v11195_v60 = vld [vmem:[#allocation2 + $0x82] sm:$0xff] }
 0x258   : > { %v2735_v54 = vmax.f32 %v2719_v42, 0.0  ;;  %v2736_v8 = vmax.f32 %v2720_v37, 0.0  ;;  %v2292_v49 = vmul.f32 %v10893_v36, %v10967_v15  ;;  %v2344_v55 = vmul.f32 %v10899_v43, %v11091_v57  ;;  %v11183_v57 = vld [vmem:[#allocation2 + $0x80] sm:$0xff] }
 0x259   : > { %v2624_v10 = vadd.f32 %v2608_v44, %v2571_v51  ;;  %v2625_v56 = vadd.f32 %v2609_v62, %v2572_v16  ;;  %v2307_v5 = vadd.f32 %v2291_v53, %v2238_v50  ;;  %v2345_v38 = vmul.f32 %v10899_v43, %v11093_v59 }
 0x25a   : > { %v2751_v7 = vmin.f32 %v2735_v54, 6.0  ;;  %v2752_v12 = vmin.f32 %v2736_v8, 6.0  ;;  %v2308_v20 = vadd.f32 %v2292_v49, %v2239_v26  ;;  %v2397_v3 = vmul.f32 %v11012_v29, %v11137_v6 }
 0x25b   : > { %v2677_v14 = vadd.f32 %v2661_v0, %v2624_v10  ;;  %v2678_v17 = vadd.f32 %v2662_v32, %v2625_v56  ;;  %v2360_v22 = vadd.f32 %v2344_v55, %v2307_v5  ;;  %v2398_v15 = vmul.f32 %v11012_v29, %v11139_v61 }
 0x25c   : > { %v2766_v18 = vpack.c.bf16 %v2752_v12, %v2751_v7  ;;  %v2361_v19 = vadd.f32 %v2345_v38, %v2308_v20  ;;  %v2450_v59 = vmul.f32 %v11017_v39, %v10957_v63  ;;  %v2451_v30 = vmul.f32 %v11017_v39, %v10962_v9 }
 0x25d   : > { %v2699_v31 = vmul.f32 %v11100_v13, %v2677_v14  ;;  %v2700_v34 = vmul.f32 %v11100_v13, %v2678_v17  ;;  %v2413_v23 = vadd.f32 %v2397_v3, %v2360_v22  ;;  %v2503_v35 = vmul.f32 %v11020_v45, %v11145_v28 }
 0x25e   : > { %9416 = vmatmul.mubr.bf16.vlgmr.msra.gmra.mrb[16].mxu0 %v2766_v18  ;;  %v2414_v44 = vadd.f32 %v2398_v15, %v2361_v19  ;;  %v2504_v40 = vmul.f32 %v11020_v45, %v11149_v24  ;;  %v2557_v41 = vmul.f32 %v11034_v1, %v11181_v27  ;;  %v2558_v62 = vmul.f32 %v11034_v1, %v11183_v57  ;;  %v11229_v15 = vld [vmem:[#allocation2 + $0x90] sm:$0xff] }
 0x25f   : > { %v2721_v0 = vadd.f32 %v11111_v25, %v2699_v31  ;;  %v2722_v42 = vadd.f32 %v11111_v25, %v2700_v34  ;;  %v2466_v37 = vadd.f32 %v2450_v59, %v2413_v23  ;;  %v2610_v32 = vmul.f32 %v11023_v46, %v10987_v52 }
 0x260   : > { %v2467_v50 = vadd.f32 %v2451_v30, %v2414_v44  ;;  %v2611_v51 = vmul.f32 %v11023_v46, %v10995_v4  ;;  %v2663_v16 = vmul.f32 %v11048_v11, %v11193_v21  ;;  %v2664_v26 = vmul.f32 %v11048_v11, %v11195_v60  ;;  %v11233_v30 = vld [vmem:[#allocation2 + $0x98] sm:$0xff] }
 0x261   : > { %v2737_v53 = vmax.f32 %v2721_v0, 0.0  ;;  %v2738_v54 = vmax.f32 %v2722_v42, 0.0  ;;  %v2519_v8 = vadd.f32 %v2503_v35, %v2466_v37  ;;  %v2240_v49 = vmul.f32 %v10890_v33, %v11137_v6  ;;  %v11241_v35 = vld [vmem:[#allocation2 + $0x92] sm:$0xff]  ;;  %v11245_v0 = vld [vmem:[#allocation2 + $0x9a] sm:$0xff] }
 0x262   : > { %v2520_v55 = vadd.f32 %v2504_v40, %v2467_v50  ;;  %v2241_v10 = vmul.f32 %v10890_v33, %v11139_v61  ;;  %v2293_v56 = vmul.f32 %v10893_v36, %v10957_v63  ;;  %v2294_v5 = vmul.f32 %v10893_v36, %v10962_v9 }
 0x263   : > { %v2753_v38 = vmin.f32 %v2737_v53, 6.0  ;;  %v2754_v7 = vmin.f32 %v2738_v54, 6.0  ;;  %v2573_v12 = vadd.f32 %v2557_v41, %v2519_v8  ;;  %v2346_v20 = vmul.f32 %v10899_v43, %v11145_v28 }
 0x264   : > { %v2574_v3 = vadd.f32 %v2558_v62, %v2520_v55  ;;  %v2309_v14 = vadd.f32 %v2293_v56, %v2240_v49  ;;  %v2310_v17 = vadd.f32 %v2294_v5, %v2241_v10  ;;  %v2347_v6 = vmul.f32 %v10899_v43, %v11149_v24 }
 0x265   : > { %v2767_v22 = vpack.c.bf16 %v2754_v7, %v2753_v38  ;;  %v2626_v61 = vadd.f32 %v2610_v32, %v2573_v12  ;;  %v2399_v63 = vmul.f32 %v11012_v29, %v11181_v27  ;;  %v2400_v9 = vmul.f32 %v11012_v29, %v11183_v57 }
 0x266   : > { %v2627_v18 = vadd.f32 %v2611_v51, %v2574_v3  ;;  %v2362_v19 = vadd.f32 %v2346_v20, %v2309_v14  ;;  %v2363_v59 = vadd.f32 %v2347_v6, %v2310_v17  ;;  %v2452_v28 = vmul.f32 %v11017_v39, %v10987_v52  ;;  %v2433_v17 = vld [vmem:[#allocation2 + $0x91] sm:$0xff] }
 0x267   : > { %9419 = vmatprep.mubr.bf16.mxu0 %v2767_v22  ;;  %v2679_v24 = vadd.f32 %v2663_v16, %v2626_v61  ;;  %v2453_v31 = vmul.f32 %v11017_v39, %v10995_v4  ;;  %v2505_v34 = vmul.f32 %v11020_v45, %v11193_v21  ;;  %v2506_v23 = vmul.f32 %v11020_v45, %v11195_v60 }
 0x268   : > { %v2680_v44 = vadd.f32 %v2664_v26, %v2627_v18  ;;  %v2415_v40 = vadd.f32 %v2399_v63, %v2362_v19  ;;  %v2416_v41 = vadd.f32 %v2400_v9, %v2363_v59  ;;  %v2559_v62 = vmul.f32 %v11034_v1, %v11229_v15  ;;  %v11277_v18 = vld [vmem:[#allocation2 + $0xa8] sm:$0xff] }
 0x269   : > { %v2701_v42 = vmul.f32 %v11100_v13, %v2679_v24  ;;  %v2560_v37 = vmul.f32 %v11034_v1, %v11233_v30  ;;  %v2612_v32 = vmul.f32 %v11023_v46, %v10985_v47  ;;  %v2613_v50 = vmul.f32 %v11023_v46, %v10990_v58 }
 0x26a   : > { %v2702_v51 = vmul.f32 %v11100_v13, %v2680_v44  ;;  %v2468_v16 = vadd.f32 %v2452_v28, %v2415_v40  ;;  %v2469_v26 = vadd.f32 %v2453_v31, %v2416_v41  ;;  %v2665_v53 = vmul.f32 %v11048_v11, %v11241_v35  ;;  %v11286_v40 = vld [vmem:[#allocation2 + $0xaa] sm:$0xff]  ;;  %v11288_v41 = vld [vmem:[#allocation2 + $0xb2] sm:$0xff] }
 0x26b   : > { %v2723_v54 = vadd.f32 %v11111_v25, %v2701_v42  ;;  %v2666_v8 = vmul.f32 %v11048_v11, %v11245_v0  ;;  %v2242_v49 = vmul.f32 %v10890_v33, %v11181_v27  ;;  %v2243_v47 = vmul.f32 %v10890_v33, %v11183_v57 }
 0x26c   : > { %v2724_v55 = vadd.f32 %v11111_v25, %v2702_v51  ;;  %v2521_v10 = vadd.f32 %v2505_v34, %v2468_v16  ;;  %v2522_v56 = vadd.f32 %v2506_v23, %v2469_v26  ;;  %v2295_v5 = vmul.f32 %v10893_v36, %v10987_v52  ;;  %v2277_v26 = vld [vmem:[#allocation2 + $0x99] sm:$0xff] }
 0x26d   : > { %v2739_v38 = vmax.f32 %v2723_v54, 0.0  ;;  %v2296_v7 = vmul.f32 %v10893_v36, %v10995_v4  ;;  %v2348_v12 = vmul.f32 %v10899_v43, %v11193_v21  ;;  %v2349_v27 = vmul.f32 %v10899_v43, %v11195_v60  ;;  %v11279_v60 = vld [vmem:[#allocation2 + $0xb0] sm:$0xff] }
 0x26e   : > { %v2740_v20 = vmax.f32 %v2724_v55, 0.0  ;;  %v2575_v3 = vadd.f32 %v2559_v62, %v2521_v10  ;;  %v2576_v57 = vadd.f32 %v2560_v37, %v2522_v56  ;;  %v2311_v14 = vadd.f32 %v2295_v5, %v2242_v49 }
 0x26f   : > { %v2755_v6 = vmin.f32 %v2739_v38, 6.0  ;;  %v2312_v22 = vadd.f32 %v2296_v7, %v2243_v47  ;;  %v2401_v52 = vmul.f32 %v11012_v29, %v11229_v15  ;;  %v2402_v61 = vmul.f32 %v11012_v29, %v11233_v30 }
 0x270   : > { %v2756_v4 = vmin.f32 %v2740_v20, 6.0  ;;  %v2628_v63 = vadd.f32 %v2612_v32, %v2575_v3  ;;  %v2629_v9 = vadd.f32 %v2613_v50, %v2576_v57  ;;  %v2364_v21 = vadd.f32 %v2348_v12, %v2311_v14 }
 0x271   : > { %v2365_v19 = vadd.f32 %v2349_v27, %v2312_v22  ;;  %v2454_v59 = vmul.f32 %v11017_v39, %v2433_v17  ;;  %v2455_v28 = vmul.f32 %v11017_v39, %v10990_v58  ;;  %v2507_v24 = vmul.f32 %v11020_v45, %v11241_v35 }
 0x272   : > { %v2768_v31 = vpack.c.bf16 %v2756_v4, %v2755_v6  ;;  %v2681_v34 = vadd.f32 %v2665_v53, %v2628_v63  ;;  %v2682_v23 = vadd.f32 %v2666_v8, %v2629_v9  ;;  %v2417_v44 = vadd.f32 %v2401_v52, %v2364_v21  ;;  %v11322_v9 = vld [vmem:[#allocation2 + $0xc0] sm:$0xff] }
 0x273   : > { %v2418_v62 = vadd.f32 %v2402_v61, %v2365_v19  ;;  %v2508_v42 = vmul.f32 %v11020_v45, %v11245_v0  ;;  %v2561_v37 = vmul.f32 %v11034_v1, %v11277_v18  ;;  %v2562_v58 = vmul.f32 %v11034_v1, %v11279_v60 }
 0x274   : > { %9420 = vmatmul.mubr.bf16.gmra.mrb[20].mxu0 %v2768_v31  ;;  %v2703_v32 = vmul.f32 %v11100_v13, %v2681_v34  ;;  %v2704_v50 = vmul.f32 %v11100_v13, %v2682_v23  ;;  %v2470_v51 = vadd.f32 %v2454_v59, %v2417_v44  ;;  %v2614_v16 = vmul.f32 %v11023_v46, %v11025_v48  ;;  %v11330_v59 = vld [vmem:[#allocation2 + $0xc1] sm:$0xff]  ;;  %v11334_v23 = vld [vmem:[#allocation2 + $0xc9] sm:$0xff] }
 0x275   : > { %v2471_v53 = vadd.f32 %v2455_v28, %v2418_v62  ;;  %v2615_v54 = vmul.f32 %v11023_v46, %v11037_v2  ;;  %v2667_v8 = vmul.f32 %v11048_v11, %v11286_v40  ;;  %v2668_v49 = vmul.f32 %v11048_v11, %v11288_v41  ;;  %v11336_v44 = vld [vmem:[#allocation2 + $0xc2] sm:$0xff]  ;;  %v11338_v62 = vld [vmem:[#allocation2 + $0xca] sm:$0xff] }
 0x276   : > { %v2725_v47 = vadd.f32 %v11111_v25, %v2703_v32  ;;  %v2726_v55 = vadd.f32 %v11111_v25, %v2704_v50  ;;  %v2523_v10 = vadd.f32 %v2507_v24, %v2470_v51  ;;  %v2244_v56 = vmul.f32 %v10890_v33, %v11229_v15 }
 0x277   : > { %v2524_v5 = vadd.f32 %v2508_v42, %v2471_v53  ;;  %v2245_v38 = vmul.f32 %v10890_v33, %v11233_v30  ;;  %v2297_v7 = vmul.f32 %v10893_v36, %v2433_v17  ;;  %v2298_v12 = vmul.f32 %v10893_v36, %v2277_v26 }
 0x278   : > { %v2741_v27 = vmax.f32 %v2725_v47, 0.0  ;;  %v2742_v20 = vmax.f32 %v2726_v55, 0.0  ;;  %v2577_v3 = vadd.f32 %v2561_v37, %v2523_v10  ;;  %v2350_v57 = vmul.f32 %v10899_v43, %v11241_v35  ;;  %v11324_v35 = vld [vmem:[#allocation2 + $0xc8] sm:$0xff]  ;;  %v11359_v55 = vld [vmem:[%s10279_s21] ss:$0 sm:$0xff] }
 0x279   : > { %v2578_v14 = vadd.f32 %v2562_v58, %v2524_v5  ;;  %v2313_v6 = vadd.f32 %v2297_v7, %v2244_v56  ;;  %v2314_v22 = vadd.f32 %v2298_v12, %v2245_v38  ;;  %v2351_v15 = vmul.f32 %v10899_v43, %v11245_v0  ;;  %v11366_v38 = vld [vmem:[%s10279_s21 + $0x1] ss:$0 sm:$0xff] }
 0x27a   : > { %v2757_v52 = vmin.f32 %v2741_v27, 6.0  ;;  %v2758_v61 = vmin.f32 %v2742_v20, 6.0  ;;  %v2630_v4 = vadd.f32 %v2614_v16, %v2577_v3  ;;  %v2403_v33 = vmul.f32 %v11012_v29, %v11277_v18 }
 0x27b   : > { %v2631_v30 = vadd.f32 %v2615_v54, %v2578_v14  ;;  %v2366_v36 = vadd.f32 %v2350_v57, %v2313_v6  ;;  %v2367_v17 = vadd.f32 %v2351_v15, %v2314_v22  ;;  %v2404_v63 = vmul.f32 %v11012_v29, %v11279_v60  ;;  %v11373_v57 = vld [vmem:[%s10279_s21 + $0x2] ss:$0 sm:$0xff] }
 0x27c   : > { %v2769_v21 = vpack.c.bf16 %v2758_v61, %v2757_v52  ;;  %v2683_v19 = vadd.f32 %v2667_v8, %v2630_v4  ;;  %v2456_v43 = vmul.f32 %v11017_v39, %v11025_v48  ;;  %v2457_v0 = vmul.f32 %v11017_v39, %v11037_v2  ;;  %v11379_v61 = vld [vmem:[#allocation2 + $0xd8] sm:$0xff] }
 0x27d   : > { %v2684_v28 = vadd.f32 %v2668_v49, %v2631_v30  ;;  %v2419_v24 = vadd.f32 %v2403_v33, %v2366_v36  ;;  %v2420_v31 = vadd.f32 %v2404_v63, %v2367_v17  ;;  %v2509_v34 = vmul.f32 %v11020_v45, %v11286_v40  ;;  %v11381_v36 = vld [vmem:[#allocation2 + $0xe0] sm:$0xff] }
 0x27e   : > { %9423 = vmatprep.mubr.bf16.mxu0 %v2769_v21  ;;  %v2705_v48 = vmul.f32 %v11100_v13, %v2683_v19  ;;  %v2510_v2 = vmul.f32 %v11020_v45, %v11288_v41  ;;  %v2563_v42 = vmul.f32 %v11034_v1, %v11322_v9  ;;  %v2564_v37 = vmul.f32 %v11034_v1, %v11324_v35  ;;  %v11385_v63 = vld [vmem:[#allocation2 + $0xd9] sm:$0xff] }
 0x27f   : > { %v2706_v58 = vmul.f32 %v11100_v13, %v2684_v28  ;;  %v2472_v32 = vadd.f32 %v2456_v43, %v2419_v24  ;;  %v2473_v50 = vadd.f32 %v2457_v0, %v2420_v31  ;;  %v2616_v51 = vmul.f32 %v11023_v46, %v11330_v59  ;;  %v11389_v0 = vld [vmem:[#allocation2 + $0xe1] sm:$0xff] }
 0x280   : > { %v2727_v16 = vadd.f32 %v11111_v25, %v2705_v48  ;;  %v2617_v26 = vmul.f32 %v11023_v46, %v11334_v23  ;;  %v2669_v53 = vmul.f32 %v11048_v11, %v11336_v44  ;;  %v2670_v54 = vmul.f32 %v11048_v11, %v11338_v62 }
 0x281   : > { %v2728_v8 = vadd.f32 %v11111_v25, %v2706_v58  ;;  %v2525_v49 = vadd.f32 %v2509_v34, %v2472_v32  ;;  %v2526_v47 = vadd.f32 %v2510_v2, %v2473_v50  ;;  %v3033_v10 = vmul.f32 %v11359_v55, %v11322_v9  ;;  %v11395_v2 = vld [vmem:[#allocation2 + $0xda] sm:$0xff] }
 0x282   : > { %v2743_v56 = vmax.f32 %v2727_v16, 0.0  ;;  %v3034_v5 = vmul.f32 %v11359_v55, %v11324_v35  ;;  %v3086_v7 = vmul.f32 %v11366_v38, %v11330_v59  ;;  %v3087_v12 = vmul.f32 %v11366_v38, %v11334_v23  ;;  %v11405_v16 = vld [vmem:[#allocation2 + $0xf8] sm:$0xff] }
 0x283   : > { %v2744_v27 = vmax.f32 %v2728_v8, 0.0  ;;  %v2579_v20 = vadd.f32 %v2563_v42, %v2525_v49  ;;  %v2580_v3 = vadd.f32 %v2564_v37, %v2526_v47  ;;  %v3139_v14 = vmul.f32 %v11373_v57, %v11336_v44  ;;  %v11397_v42 = vld [vmem:[#allocation2 + $0xe2] sm:$0xff]  ;;  %v11413_v49 = vld [vmem:[#allocation2 + $0xf1] sm:$0xff]  ;;  %v11415_v47 = vld [vmem:[#allocation2 + $0xf9] sm:$0xff] }
 0x284   : > { %v2759_v6 = vmin.f32 %v2743_v56, 6.0  ;;  %v3102_v22 = vadd.f32 %v3086_v7, %v3033_v10  ;;  %v3103_v15 = vadd.f32 %v3087_v12, %v3034_v5  ;;  %v3140_v52 = vmul.f32 %v11373_v57, %v11338_v62  ;;  %v11417_v10 = vld [vmem:[#allocation2 + $0xf2] sm:$0xff] }
 0x285   : > { %v2760_v4 = vmin.f32 %v2744_v27, 6.0  ;;  %v2632_v33 = vadd.f32 %v2616_v51, %v2579_v20  ;;  %v2633_v30 = vadd.f32 %v2617_v26, %v2580_v3  ;;  %v3192_v17 = vmul.f32 %v11012_v29, %v11379_v61  ;;  %v11403_v51 = vld [vmem:[#allocation2 + $0xf0] sm:$0xff]  ;;  %v11423_v27 = vld [vmem:[#allocation2 + $0xfa] sm:$0xff] }
 0x286   : > { %v3155_v21 = vadd.f32 %v3139_v14, %v3102_v22  ;;  %v3156_v19 = vadd.f32 %v3140_v52, %v3103_v15  ;;  %v3193_v43 = vmul.f32 %v11012_v29, %v11381_v36  ;;  %v3245_v28 = vmul.f32 %v11017_v39, %v11385_v63  ;;  %v2278_v20 = vld [vmem:[#allocation2 + $0xa9] sm:$0xff]  ;;  %v2279_v3 = vld [vmem:[#allocation2 + $0xb1] sm:$0xff] }
 0x287   : > { %v2770_v24 = vpack.c.bf16 %v2760_v4, %v2759_v6  ;;  %v2685_v31 = vadd.f32 %v2669_v53, %v2632_v33  ;;  %v2686_v34 = vadd.f32 %v2670_v54, %v2633_v30  ;;  %v3246_v48 = vmul.f32 %v11017_v39, %v11389_v0 }
 0x288   : > { %v3208_v37 = vadd.f32 %v3192_v17, %v3155_v21  ;;  %v3209_v58 = vadd.f32 %v3193_v43, %v3156_v19  ;;  %v3298_v32 = vmul.f32 %v11020_v45, %v11395_v2  ;;  %v3299_v50 = vmul.f32 %v11020_v45, %v11397_v42 }
 0x289   : > { %9424 = vmatmul.mubr.bf16.gmra.mrb[24].mxu0 %v2770_v24  ;;  %v2707_v26 = vmul.f32 %v11100_v13, %v2685_v31  ;;  %v2708_v53 = vmul.f32 %v11100_v13, %v2686_v34  ;;  %v3352_v54 = vmul.f32 %v11034_v1, %v11403_v51  ;;  %v3353_v8 = vmul.f32 %v11034_v1, %v11405_v16 }
 0x28a   : > { %v3261_v56 = vadd.f32 %v3245_v28, %v3208_v37  ;;  %v3262_v5 = vadd.f32 %v3246_v48, %v3209_v58  ;;  %v3405_v7 = vmul.f32 %v11023_v46, %v11413_v49  ;;  %v3406_v12 = vmul.f32 %v11023_v46, %v11415_v47 }
 0x28b   : > { %v2729_v14 = vadd.f32 %v11111_v25, %v2707_v26  ;;  %v2730_v6 = vadd.f32 %v11111_v25, %v2708_v53  ;;  %v3458_v22 = vmul.f32 %v11048_v11, %v11417_v10  ;;  %v3459_v15 = vmul.f32 %v11048_v11, %v11423_v27 }
 0x28c   : > { %v3314_v52 = vadd.f32 %v3298_v32, %v3261_v56  ;;  %v3315_v4 = vadd.f32 %v3299_v50, %v3262_v5  ;;  %v2246_v33 = vmul.f32 %v11359_v55, %v11277_v18  ;;  %v2247_v30 = vmul.f32 %v11359_v55, %v11279_v60 }
 0x28d   : > { %v2745_v17 = vmax.f32 %v2729_v14, 0.0  ;;  %v2746_v21 = vmax.f32 %v2730_v6, 0.0  ;;  %v2299_v19 = vmul.f32 %v11366_v38, %v2278_v20  ;;  %v2300_v43 = vmul.f32 %v11366_v38, %v2279_v3 }
 0x28e   : > { %v3368_v28 = vadd.f32 %v3352_v54, %v3314_v52  ;;  %v3369_v24 = vadd.f32 %v3353_v8, %v3315_v4  ;;  %v2352_v31 = vmul.f32 %v11373_v57, %v11286_v40  ;;  %v2353_v34 = vmul.f32 %v11373_v57, %v11288_v41 }
 0x28f   : > { %v2761_v48 = vmin.f32 %v2745_v17, 6.0  ;;  %v2762_v37 = vmin.f32 %v2746_v21, 6.0  ;;  %v2315_v18 = vadd.f32 %v2299_v19, %v2246_v33  ;;  %v2316_v58 = vadd.f32 %v2300_v43, %v2247_v30 }
 0x290   : > { %v3421_v32 = vadd.f32 %v3405_v7, %v3368_v28  ;;  %v3422_v60 = vadd.f32 %v3406_v12, %v3369_v24  ;;  %v2405_v50 = vmul.f32 %v11012_v29, %v11322_v9  ;;  %v2406_v26 = vmul.f32 %v11012_v29, %v11324_v35 }
 0x291   : > { %v2771_v53 = vpack.c.bf16 %v2762_v37, %v2761_v48  ;;  %v2368_v54 = vadd.f32 %v2352_v31, %v2315_v18  ;;  %v2369_v8 = vadd.f32 %v2353_v34, %v2316_v58  ;;  %v2458_v40 = vmul.f32 %v11017_v39, %v11330_v59 }
 0x292   : > { %v3474_v56 = vadd.f32 %v3458_v22, %v3421_v32  ;;  %v3475_v41 = vadd.f32 %v3459_v15, %v3422_v60  ;;  %v2459_v5 = vmul.f32 %v11017_v39, %v11334_v23  ;;  %v2511_v7 = vmul.f32 %v11020_v45, %v11336_v44 }
 0x293   : > { %9427 = vmatprep.mubr.bf16.mxu0 %v2771_v53  ;;  %v2421_v12 = vadd.f32 %v2405_v50, %v2368_v54  ;;  %v2422_v9 = vadd.f32 %v2406_v26, %v2369_v8  ;;  %v2512_v35 = vmul.f32 %v11020_v45, %v11338_v62  ;;  %v2565_v20 = vmul.f32 %v11034_v1, %v11379_v61 }
 0x294   : > { %v3490_v3 = vmul.f32 %v11100_v13, %v3474_v56  ;;  %v3491_v59 = vmul.f32 %v11100_v13, %v3475_v41  ;;  %v2566_v14 = vmul.f32 %v11034_v1, %v11381_v36  ;;  %v2618_v23 = vmul.f32 %v11023_v46, %v11385_v63  ;;  %v11491_v41 = vld [vmem:[#allocation2 + $0x108] sm:$0xff] }
 0x295   : > { %v2474_v44 = vadd.f32 %v2458_v40, %v2421_v12  ;;  %v2475_v6 = vadd.f32 %v2459_v5, %v2422_v9  ;;  %v2619_v22 = vmul.f32 %v11023_v46, %v11389_v0  ;;  %v2671_v62 = vmul.f32 %v11048_v11, %v11395_v2  ;;  %v11493_v5 = vld [vmem:[#allocation2 + $0x110] sm:$0xff] }
 0x296   : > { %v3506_v15 = vadd.f32 %v11111_v25, %v3490_v3  ;;  %v3507_v52 = vadd.f32 %v11111_v25, %v3491_v59  ;;  %v2672_v4 = vmul.f32 %v11048_v11, %v11397_v42  ;;  %v3035_v33 = vmul.f32 %v11359_v55, %v11379_v61 }
 0x297   : > { %v2527_v30 = vadd.f32 %v2511_v7, %v2474_v44  ;;  %v2528_v17 = vadd.f32 %v2512_v35, %v2475_v6  ;;  %v3036_v21 = vmul.f32 %v11359_v55, %v11381_v36  ;;  %v3088_v19 = vmul.f32 %v11366_v38, %v11385_v63  ;;  %v11509_v6 = vld [vmem:[#allocation2 + $0x10a] sm:$0xff] }
 0x298   : > { %v3522_v43 = vmax.f32 %v3506_v15, 0.0  ;;  %v3523_v28 = vmax.f32 %v3507_v52, 0.0  ;;  %v3089_v24 = vmul.f32 %v11366_v38, %v11389_v0  ;;  %v3141_v31 = vmul.f32 %v11373_v57, %v11395_v2 }
 0x299   : > { %v2581_v34 = vadd.f32 %v2565_v20, %v2527_v30  ;;  %v2582_v48 = vadd.f32 %v2566_v14, %v2528_v17  ;;  %v3104_v37 = vadd.f32 %v3088_v19, %v3035_v33  ;;  %v3142_v61 = vmul.f32 %v11373_v57, %v11397_v42  ;;  %v11501_v20 = vld [vmem:[#allocation2 + $0x109] sm:$0xff] }
 0x29a   : > { %v3538_v18 = vmin.f32 %v3522_v43, 6.0  ;;  %v3539_v58 = vmin.f32 %v3523_v28, 6.0  ;;  %v3105_v36 = vadd.f32 %v3089_v24, %v3036_v21  ;;  %v3194_v63 = vmul.f32 %v11012_v29, %v11403_v51 }
 0x29b   : > { %v2634_v32 = vadd.f32 %v2618_v23, %v2581_v34  ;;  %v2635_v60 = vadd.f32 %v2619_v22, %v2582_v48  ;;  %v3157_v50 = vadd.f32 %v3141_v31, %v3104_v37  ;;  %v3195_v0 = vmul.f32 %v11012_v29, %v11405_v16  ;;  %v11505_v23 = vld [vmem:[#allocation2 + $0x111] sm:$0xff] }
 0x29c   : > { %v3554_v26 = vpack.c.bf16 %v3539_v58, %v3538_v18  ;;  %v3158_v2 = vadd.f32 %v3142_v61, %v3105_v36  ;;  %v3247_v53 = vmul.f32 %v11017_v39, %v11413_v49  ;;  %v3248_v42 = vmul.f32 %v11017_v39, %v11415_v47  ;;  %v11511_v22 = vld [vmem:[#allocation2 + $0x112] sm:$0xff] }
 0x29d   : > { %v2687_v54 = vadd.f32 %v2671_v62, %v2634_v32  ;;  %v2688_v8 = vadd.f32 %v2672_v4, %v2635_v60  ;;  %v3210_v40 = vadd.f32 %v3194_v63, %v3157_v50  ;;  %v3300_v56 = vmul.f32 %v11020_v45, %v11417_v10  ;;  %v11536_v60 = vld [vmem:[%s10279_s21 + $0x3] ss:$0 sm:$0xff] }
 0x29e   : > { %9447 = vmatprep.mubr.bf16.mxu1 %v3554_v26  ;;  %v3211_v7 = vadd.f32 %v3195_v0, %v3158_v2  ;;  %v3301_v12 = vmul.f32 %v11020_v45, %v11423_v27  ;;  %v3354_v9 = vmul.f32 %v11034_v1, %v11491_v41  ;;  %v3355_v35 = vmul.f32 %v11034_v1, %v11493_v5  ;;  %v11543_v26 = vld [vmem:[%s10279_s21 + $0x4] ss:$0 sm:$0xff] }
 0x29f   : > { %v2709_v3 = vmul.f32 %v11100_v13, %v2687_v54  ;;  %v2710_v59 = vmul.f32 %v11100_v13, %v2688_v8  ;;  %v3263_v14 = vadd.f32 %v3247_v53, %v3210_v40  ;;  %v3407_v44 = vmul.f32 %v11023_v46, %v11501_v20  ;;  %v11549_v8 = vld [vmem:[#allocation2 + $0x120] sm:$0xff]  ;;  %v11551_v40 = vld [vmem:[#allocation2 + $0x128] sm:$0xff] }
 0x2a0   : > { %v3264_v62 = vadd.f32 %v3248_v42, %v3211_v7  ;;  %v3408_v15 = vmul.f32 %v11023_v46, %v11505_v23  ;;  %v3460_v52 = vmul.f32 %v11048_v11, %v11509_v6  ;;  %v3461_v4 = vmul.f32 %v11048_v11, %v11511_v22 }
 0x2a1   : > { %v2731_v33 = vadd.f32 %v11111_v25, %v2709_v3  ;;  %v2732_v30 = vadd.f32 %v11111_v25, %v2710_v59  ;;  %v3316_v17 = vadd.f32 %v3300_v56, %v3263_v14  ;;  %v3037_v21 = vmul.f32 %v11359_v55, %v11403_v51  ;;  %v11566_v14 = vld [vmem:[#allocation2 + $0x129] sm:$0xff] }
 0x2a2   : > { %v3317_v19 = vadd.f32 %v3301_v12, %v3264_v62  ;;  %v3038_v43 = vmul.f32 %v11359_v55, %v11405_v16  ;;  %v3090_v46 = vmul.f32 %v11366_v38, %v11413_v49  ;;  %v3091_v28 = vmul.f32 %v11366_v38, %v11415_v47 }
 0x2a3   : > { %v2747_v24 = vmax.f32 %v2731_v33, 0.0  ;;  %v2748_v31 = vmax.f32 %v2732_v30, 0.0  ;;  %v3370_v34 = vadd.f32 %v3354_v9, %v3316_v17  ;;  %v3143_v48 = vmul.f32 %v11373_v57, %v11417_v10 }
 0x2a4   : > { %v3371_v37 = vadd.f32 %v3355_v35, %v3317_v19  ;;  %v3106_v51 = vadd.f32 %v3090_v46, %v3037_v21  ;;  %v3107_v61 = vadd.f32 %v3091_v28, %v3038_v43  ;;  %v3144_v16 = vmul.f32 %v11373_v57, %v11423_v27  ;;  %v11563_v35 = vld [vmem:[#allocation2 + $0x121] sm:$0xff] }
 0x2a5   : > { %v2763_v18 = vmin.f32 %v2747_v24, 6.0  ;;  %v2764_v58 = vmin.f32 %v2748_v31, 6.0  ;;  %v3423_v49 = vadd.f32 %v3407_v44, %v3370_v34  ;;  %v3196_v47 = vmul.f32 %v11012_v29, %v11491_v41  ;;  %v11569_v44 = vld [vmem:[%s10279_s21 + $0x7] ss:$0 sm:$0xff] }
 0x2a6   : > { %v3424_v36 = vadd.f32 %v3408_v15, %v3371_v37  ;;  %v3159_v63 = vadd.f32 %v3143_v48, %v3106_v51  ;;  %v3160_v32 = vadd.f32 %v3144_v16, %v3107_v61  ;;  %v3197_v10 = vmul.f32 %v11536_v60, %v11493_v5  ;;  %v11573_v15 = vld [vmem:[#allocation2 + $0x122] sm:$0xff] }
 0x2a7   : > { %v2772_v50 = vpack.c.bf16 %v2764_v58, %v2763_v18  ;;  %v3476_v0 = vadd.f32 %v3460_v52, %v3423_v49  ;;  %v3249_v27 = vmul.f32 %v11017_v39, %v11501_v20  ;;  %v3250_v2 = vmul.f32 %v11543_v26, %v11505_v23  ;;  %v11555_v39 = vld [vmem:[%s10279_s21 + $0x5] ss:$0 sm:$0xff]  ;;  %v11575_v52 = vld [vmem:[#allocation2 + $0x12a] sm:$0xff] }
 0x2a8   : > { %v3477_v29 = vadd.f32 %v3461_v4, %v3424_v36  ;;  %v3212_v53 = vadd.f32 %v3196_v47, %v3159_v63  ;;  %v3213_v42 = vadd.f32 %v3197_v10, %v3160_v32  ;;  %v3302_v54 = vmul.f32 %v11020_v45, %v11509_v6 }
 0x2a9   : > { %9428 = vmatmul.mubr.bf16.gmra.mrb[28].mxu0 %v2772_v50  ;;  %v3492_v56 = vmul.f32 %v11100_v13, %v3476_v0  ;;  %v3303_v7 = vmul.f32 %v11555_v39, %v11511_v22  ;;  %v3356_v12 = vmul.f32 %v11034_v1, %v11549_v8  ;;  %v3357_v9 = vmul.f32 %v11034_v1, %v11551_v40 }
 0x2aa   : > { %v3493_v45 = vmul.f32 %v11100_v13, %v3477_v29  ;;  %v3265_v3 = vadd.f32 %v3249_v27, %v3212_v53  ;;  %v3266_v59 = vadd.f32 %v3250_v2, %v3213_v42  ;;  %v3409_v62 = vmul.f32 %v11569_v44, %v11563_v35  ;;  %v11609_v2 = vld [vmem:[#allocation2 + $0x138] sm:$0xff]  ;;  %v11611_v29 = vld [vmem:[#allocation2 + $0x140] sm:$0xff] }
 0x2ab   : > { %v3508_v4 = vadd.f32 %v11111_v25, %v3492_v56  ;;  %v3410_v1 = vmul.f32 %v11569_v44, %v11566_v14  ;;  %v3462_v33 = vmul.f32 %v11048_v11, %v11573_v15  ;;  %v3463_v30 = vmul.f32 %v11048_v11, %v11575_v52 }
 0x2ac   : > { %v3509_v17 = vadd.f32 %v11111_v25, %v3493_v45  ;;  %v3318_v21 = vadd.f32 %v3302_v54, %v3265_v3  ;;  %v3319_v19 = vadd.f32 %v3303_v7, %v3266_v59  ;;  %v3039_v43 = vmul.f32 %v11359_v55, %v11491_v41  ;;  %v11616_v54 = vld [vmem:[%s10279_s21 + $0x6] ss:$0 sm:$0xff] }
 0x2ad   : > { %v3524_v46 = vmax.f32 %v3508_v4, 0.0  ;;  %v3040_v28 = vmul.f32 %v11359_v55, %v11493_v5  ;;  %v3092_v24 = vmul.f32 %v11366_v38, %v11501_v20  ;;  %v3093_v31 = vmul.f32 %v11366_v38, %v11505_v23  ;;  %v11632_v4 = vld [vmem:[#allocation2 + $0x142] sm:$0xff] }
 0x2ae   : > { %v3525_v34 = vmax.f32 %v3509_v17, 0.0  ;;  %v3372_v48 = vadd.f32 %v3356_v12, %v3318_v21  ;;  %v3373_v11 = vadd.f32 %v3357_v9, %v3319_v19  ;;  %v3145_v37 = vmul.f32 %v11373_v57, %v11509_v6  ;;  %v11622_v12 = vld [vmem:[#allocation2 + $0x139] sm:$0xff]  ;;  %v11624_v9 = vld [vmem:[#allocation2 + $0x141] sm:$0xff] }
 0x2af   : > { %v3540_v51 = vmin.f32 %v3524_v46, 6.0  ;;  %v3108_v61 = vadd.f32 %v3092_v24, %v3039_v43  ;;  %v3109_v16 = vadd.f32 %v3093_v31, %v3040_v28  ;;  %v3146_v41 = vmul.f32 %v11373_v57, %v11511_v22 }
 0x2b0   : > { %v3541_v18 = vmin.f32 %v3525_v34, 6.0  ;;  %v3425_v5 = vadd.f32 %v3409_v62, %v3372_v48  ;;  %v3426_v58 = vadd.f32 %v3410_v1, %v3373_v11  ;;  %v3198_v20 = vmul.f32 %v11536_v60, %v11549_v8  ;;  %v11630_v62 = vld [vmem:[#allocation2 + $0x13a] sm:$0xff] }
 0x2b1   : > { %v3161_v49 = vadd.f32 %v3145_v37, %v3108_v61  ;;  %v3162_v23 = vadd.f32 %v3146_v41, %v3109_v16  ;;  %v3199_v47 = vmul.f32 %v11536_v60, %v11551_v40  ;;  %v3251_v6 = vmul.f32 %v11543_v26, %v11563_v35 }
 0x2b2   : > { %v3555_v36 = vpack.c.bf16 %v3541_v18, %v3540_v51  ;;  %v3478_v63 = vadd.f32 %v3462_v33, %v3425_v5  ;;  %v3479_v32 = vadd.f32 %v3463_v30, %v3426_v58  ;;  %v3252_v22 = vmul.f32 %v11543_v26, %v11566_v14  ;;  %v11637_v30 = vld [vmem:[%s10279_s21 + $0x8] ss:$0 sm:$0xff] }
 0x2b3   : > { %v3214_v10 = vadd.f32 %v3198_v20, %v3161_v49  ;;  %v3215_v50 = vadd.f32 %v3199_v47, %v3162_v23  ;;  %v3304_v0 = vmul.f32 %v11555_v39, %v11573_v15  ;;  %v3305_v27 = vmul.f32 %v11555_v39, %v11575_v52 }
 0x2b4   : > { %9448 = vmatmul.mubr.bf16.vlgmr.msra.gmra.mrb[16].mxu1 %v3555_v36  ;;  %v3494_v53 = vmul.f32 %v11100_v13, %v3478_v63  ;;  %v3495_v42 = vmul.f32 %v11100_v13, %v3479_v32  ;;  %v3358_v56 = vmul.f32 %v11616_v54, %v11609_v2  ;;  %v3359_v7 = vmul.f32 %v11616_v54, %v11611_v29 }
 0x2b5   : > { %v3267_v45 = vadd.f32 %v3251_v6, %v3214_v10  ;;  %v3268_v3 = vadd.f32 %v3252_v22, %v3215_v50  ;;  %v3411_v59 = vmul.f32 %v11569_v44, %v11622_v12  ;;  %v3412_v13 = vmul.f32 %v11569_v44, %v11624_v9  ;;  %v11665_v6 = vld [vmem:[#allocation2 + $0x150] sm:$0xff]  ;;  %v11669_v22 = vld [vmem:[#allocation2 + $0x158] sm:$0xff] }
 0x2b6   : > { %v3510_v1 = vadd.f32 %v11111_v25, %v3494_v53  ;;  %v3511_v33 = vadd.f32 %v11111_v25, %v3495_v42  ;;  %v3464_v17 = vmul.f32 %v11637_v30, %v11630_v62  ;;  %v3465_v21 = vmul.f32 %v11637_v30, %v11632_v4  ;;  %v11673_v50 = vld [vmem:[#allocation2 + $0x151] sm:$0xff] }
 0x2b7   : > { %v3320_v19 = vadd.f32 %v3304_v0, %v3267_v45  ;;  %v3321_v43 = vadd.f32 %v3305_v27, %v3268_v3  ;;  %v3041_v46 = vmul.f32 %v11359_v55, %v11549_v8  ;;  %v3042_v28 = vmul.f32 %v11359_v55, %v11551_v40  ;;  %v11676_v0 = vld [vmem:[%s10284_s25] ss:$0 sm:$0xff]  ;;  %v11686_v45 = vld [vmem:[#allocation2 + $0x152] sm:$0xff] }
 0x2b8   : > { %v3526_v24 = vmax.f32 %v3510_v1, 0.0  ;;  %v3527_v31 = vmax.f32 %v3511_v33, 0.0  ;;  %v3094_v25 = vmul.f32 %v11366_v38, %v11563_v35  ;;  %v3095_v34 = vmul.f32 %v11366_v38, %v11566_v14  ;;  %v11690_v1 = vld [vmem:[#allocation2 + $0x15a] sm:$0xff] }
 0x2b9   : > { %v3374_v48 = vadd.f32 %v3358_v56, %v3320_v19  ;;  %v3375_v11 = vadd.f32 %v3359_v7, %v3321_v43  ;;  %v3147_v37 = vmul.f32 %v11373_v57, %v11573_v15  ;;  %v3148_v51 = vmul.f32 %v11373_v57, %v11575_v52  ;;  %v11682_v56 = vld [vmem:[#allocation2 + $0x159] sm:$0xff] }
 0x2ba   : > { %v3542_v8 = vmin.f32 %v3526_v24, 6.0  ;;  %v3543_v61 = vmin.f32 %v3527_v31, 6.0  ;;  %v3110_v16 = vadd.f32 %v3094_v25, %v3041_v46  ;;  %v3111_v40 = vadd.f32 %v3095_v34, %v3042_v28 }
 0x2bb   : > { %v3427_v41 = vadd.f32 %v3411_v59, %v3374_v48  ;;  %v3428_v18 = vadd.f32 %v3412_v13, %v3375_v11  ;;  %v3200_v35 = vmul.f32 %v11536_v60, %v11609_v2  ;;  %v3201_v14 = vmul.f32 %v11536_v60, %v11611_v29 }
 0x2bc   : > { %v3556_v5 = vpack.c.bf16 %v3543_v61, %v3542_v8  ;;  %v3163_v58 = vadd.f32 %v3147_v37, %v3110_v16  ;;  %v3164_v20 = vadd.f32 %v3148_v51, %v3111_v40  ;;  %v3253_v15 = vmul.f32 %v11543_v26, %v11622_v12 }
 0x2bd   : > { %v3480_v52 = vadd.f32 %v3464_v17, %v3427_v41  ;;  %v3481_v49 = vadd.f32 %v3465_v21, %v3428_v18  ;;  %v3254_v23 = vmul.f32 %v11543_v26, %v11624_v9  ;;  %v3306_v47 = vmul.f32 %v11555_v39, %v11630_v62  ;;  %v11695_v17 = vld [vmem:[%s10289_s29] ss:$0 sm:$0xff] }
 0x2be   : > { %9451 = vmatprep.mubr.bf16.mxu1 %v3556_v5  ;;  %v3216_v36 = vadd.f32 %v3200_v35, %v3163_v58  ;;  %v3217_v63 = vadd.f32 %v3201_v14, %v3164_v20  ;;  %v3307_v32 = vmul.f32 %v11555_v39, %v11632_v4  ;;  %v3360_v10 = vmul.f32 %v11616_v54, %v11665_v6 }
 0x2bf   : > { %v3496_v27 = vmul.f32 %v11676_v0, %v3480_v52  ;;  %v3497_v53 = vmul.f32 %v11676_v0, %v3481_v49  ;;  %v3361_v42 = vmul.f32 %v11616_v54, %v11669_v22  ;;  %v3413_v7 = vmul.f32 %v11569_v44, %v11673_v50  ;;  %v11723_v49 = vld [vmem:[#allocation2 + $0x168] sm:$0xff] }
 0x2c0   : > { %v3269_v3 = vadd.f32 %v3253_v15, %v3216_v36  ;;  %v3270_v59 = vadd.f32 %v3254_v23, %v3217_v63  ;;  %v3414_v13 = vmul.f32 %v11569_v44, %v11682_v56  ;;  %v3466_v33 = vmul.f32 %v11637_v30, %v11686_v45  ;;  %v11725_v23 = vld [vmem:[#allocation2 + $0x170] sm:$0xff] }
 0x2c1   : > { %v3512_v21 = vadd.f32 %v11695_v17, %v3496_v27  ;;  %v3513_v19 = vadd.f32 %v11695_v17, %v3497_v53  ;;  %v3467_v43 = vmul.f32 %v11637_v30, %v11690_v1  ;;  %v3043_v46 = vmul.f32 %v11359_v55, %v11609_v2 }
 0x2c2   : > { %v3322_v28 = vadd.f32 %v3306_v47, %v3269_v3  ;;  %v3323_v24 = vadd.f32 %v3307_v32, %v3270_v59  ;;  %v3044_v31 = vmul.f32 %v11359_v55, %v11611_v29  ;;  %v3096_v25 = vmul.f32 %v11366_v38, %v11622_v12  ;;  %v11741_v59 = vld [vmem:[#allocation2 + $0x16a] sm:$0xff] }
 0x2c3   : > { %v3528_v34 = vmax.f32 %v3512_v21, 0.0  ;;  %v3529_v48 = vmax.f32 %v3513_v19, 0.0  ;;  %v3097_v11 = vmul.f32 %v11366_v38, %v11624_v9  ;;  %v3149_v37 = vmul.f32 %v11373_v57, %v11630_v62 }
 0x2c4   : > { %v3376_v51 = vadd.f32 %v3360_v10, %v3322_v28  ;;  %v3377_v8 = vadd.f32 %v3361_v42, %v3323_v24  ;;  %v3112_v61 = vadd.f32 %v3096_v25, %v3043_v46  ;;  %v3150_v2 = vmul.f32 %v11373_v57, %v11632_v4  ;;  %v11733_v10 = vld [vmem:[#allocation2 + $0x169] sm:$0xff] }
 0x2c5   : > { %v3544_v16 = vmin.f32 %v3528_v34, 6.0  ;;  %v3545_v40 = vmin.f32 %v3529_v48, 6.0  ;;  %v3113_v29 = vadd.f32 %v3097_v11, %v3044_v31  ;;  %v3202_v12 = vmul.f32 %v11536_v60, %v11665_v6 }
 0x2c6   : > { %v3429_v41 = vadd.f32 %v3413_v7, %v3376_v51  ;;  %v3430_v18 = vadd.f32 %v3414_v13, %v3377_v8  ;;  %v3165_v35 = vadd.f32 %v3149_v37, %v3112_v61  ;;  %v3203_v9 = vmul.f32 %v11536_v60, %v11669_v22  ;;  %v11737_v7 = vld [vmem:[#allocation2 + $0x171] sm:$0xff] }
 0x2c7   : > { %v3557_v14 = vpack.c.bf16 %v3545_v40, %v3544_v16  ;;  %v3166_v62 = vadd.f32 %v3150_v2, %v3113_v29  ;;  %v3255_v5 = vmul.f32 %v11543_v26, %v11673_v50  ;;  %v3256_v4 = vmul.f32 %v11543_v26, %v11682_v56  ;;  %v11743_v13 = vld [vmem:[#allocation2 + $0x172] sm:$0xff] }
 0x2c8   : > { %v3482_v58 = vadd.f32 %v3466_v33, %v3429_v41  ;;  %v3483_v20 = vadd.f32 %v3467_v43, %v3430_v18  ;;  %v3218_v15 = vadd.f32 %v3202_v12, %v3165_v35  ;;  %v3308_v52 = vmul.f32 %v11555_v39, %v11686_v45 }
 0x2c9   : > { %9452 = vmatmul.mubr.bf16.gmra.mrb[20].mxu1 %v3557_v14  ;;  %v3219_v47 = vadd.f32 %v3203_v9, %v3166_v62  ;;  %v3309_v36 = vmul.f32 %v11555_v39, %v11690_v1  ;;  %v3362_v63 = vmul.f32 %v11616_v54, %v11723_v49  ;;  %v3363_v32 = vmul.f32 %v11616_v54, %v11725_v23  ;;  %v3343_v9 = vld [vmem:[#allocation2 + $0x180] sm:$0xff] }
 0x2ca   : > { %v3498_v27 = vmul.f32 %v11676_v0, %v3482_v58  ;;  %v3499_v53 = vmul.f32 %v11676_v0, %v3483_v20  ;;  %v3271_v42 = vadd.f32 %v3255_v5, %v3218_v15  ;;  %v3415_v3 = vmul.f32 %v11569_v44, %v11733_v10 }
 0x2cb   : > { %v3272_v33 = vadd.f32 %v3256_v4, %v3219_v47  ;;  %v3416_v21 = vmul.f32 %v11569_v44, %v11737_v7  ;;  %v3468_v19 = vmul.f32 %v11637_v30, %v11741_v59  ;;  %v3469_v43 = vmul.f32 %v11637_v30, %v11743_v13  ;;  %v3396_v4 = vld [vmem:[#allocation2 + $0x181] sm:$0xff]  ;;  %v3397_v47 = vld [vmem:[#allocation2 + $0x189] sm:$0xff] }
 0x2cc   : > { %v3514_v46 = vadd.f32 %v11695_v17, %v3498_v27  ;;  %v3515_v28 = vadd.f32 %v11695_v17, %v3499_v53  ;;  %v3324_v24 = vadd.f32 %v3308_v52, %v3271_v42  ;;  %v3045_v31 = vmul.f32 %v11359_v55, %v11665_v6 }
 0x2cd   : > { %v3325_v25 = vadd.f32 %v3309_v36, %v3272_v33  ;;  %v3046_v34 = vmul.f32 %v11359_v55, %v11669_v22  ;;  %v3098_v48 = vmul.f32 %v11366_v38, %v11673_v50  ;;  %v3099_v11 = vmul.f32 %v11366_v38, %v11682_v56  ;;  %v3449_v36 = vld [vmem:[#allocation2 + $0x182] sm:$0xff] }
 0x2ce   : > { %v3530_v37 = vmax.f32 %v3514_v46, 0.0  ;;  %v3531_v51 = vmax.f32 %v3515_v28, 0.0  ;;  %v3378_v8 = vadd.f32 %v3362_v63, %v3324_v24  ;;  %v3151_v61 = vmul.f32 %v11373_v57, %v11686_v45  ;;  %v3344_v45 = vld [vmem:[#allocation2 + $0x188] sm:$0xff] }
 0x2cf   : > { %v3379_v2 = vadd.f32 %v3363_v32, %v3325_v25  ;;  %v3114_v16 = vadd.f32 %v3098_v48, %v3045_v31  ;;  %v3115_v40 = vadd.f32 %v3099_v11, %v3046_v34  ;;  %v3152_v6 = vmul.f32 %v11373_v57, %v11690_v1  ;;  %v3450_v63 = vld [vmem:[#allocation2 + $0x18a] sm:$0xff] }
 0x2d0   : > { %v3546_v29 = vmin.f32 %v3530_v37, 6.0  ;;  %v3547_v22 = vmin.f32 %v3531_v51, 6.0  ;;  %v3431_v12 = vadd.f32 %v3415_v3, %v3378_v8  ;;  %v3204_v50 = vmul.f32 %v11536_v60, %v11723_v49 }
 0x2d1   : > { %v3432_v41 = vadd.f32 %v3416_v21, %v3379_v2  ;;  %v3167_v56 = vadd.f32 %v3151_v61, %v3114_v16  ;;  %v3168_v18 = vadd.f32 %v3152_v6, %v3115_v40  ;;  %v3205_v35 = vmul.f32 %v11536_v60, %v11725_v23 }
 0x2d2   : > { %v3558_v14 = vpack.c.bf16 %v3547_v22, %v3546_v29  ;;  %v3484_v62 = vadd.f32 %v3468_v19, %v3431_v12  ;;  %v3257_v5 = vmul.f32 %v11543_v26, %v11733_v10  ;;  %v3258_v1 = vmul.f32 %v11543_v26, %v11737_v7 }
 0x2d3   : > { %v3485_v58 = vadd.f32 %v3469_v43, %v3432_v41  ;;  %v3220_v20 = vadd.f32 %v3204_v50, %v3167_v56  ;;  %v3221_v15 = vadd.f32 %v3205_v35, %v3168_v18  ;;  %v3310_v52 = vmul.f32 %v11555_v39, %v11741_v59 }
 0x2d4   : > { %9455 = vmatprep.mubr.bf16.mxu1 %v3558_v14  ;;  %v3500_v32 = vmul.f32 %v11676_v0, %v3484_v62  ;;  %v3311_v27 = vmul.f32 %v11555_v39, %v11743_v13  ;;  %v3364_v53 = vmul.f32 %v11616_v54, %v3343_v9  ;;  %v3365_v42 = vmul.f32 %v11616_v54, %v3344_v45 }
 0x2d5   : > { %v3501_v3 = vmul.f32 %v11676_v0, %v3485_v58  ;;  %v3273_v33 = vadd.f32 %v3257_v5, %v3220_v20  ;;  %v3274_v21 = vadd.f32 %v3258_v1, %v3221_v15  ;;  %v3417_v19 = vmul.f32 %v11569_v44, %v3396_v4  ;;  %v3398_v1 = vld [vmem:[#allocation2 + $0x199] sm:$0xff]  ;;  %v9915_v58 = vld [vmem:[#allocation3 + $0x198] sm:$0xff] }
 0x2d6   : > { %v3516_v43 = vadd.f32 %v11695_v17, %v3500_v32  ;;  %v3418_v46 = vmul.f32 %v11569_v44, %v3397_v47  ;;  %v3470_v28 = vmul.f32 %v11637_v30, %v3449_v36  ;;  %v3471_v24 = vmul.f32 %v11637_v30, %v3450_v63 }
 0x2d7   : > { %v3517_v31 = vadd.f32 %v11695_v17, %v3501_v3  ;;  %v3326_v25 = vadd.f32 %v3310_v52, %v3273_v33  ;;  %v3327_v34 = vadd.f32 %v3311_v27, %v3274_v21  ;;  %v3047_v48 = vmul.f32 %v11359_v55, %v11723_v49  ;;  %v3451_v52 = vld [vmem:[#allocation2 + $0x19a] sm:$0xff] }
 0x2d8   : > { %v3532_v11 = vmax.f32 %v3516_v43, 0.0  ;;  %v3048_v37 = vmul.f32 %v11359_v55, %v11725_v23  ;;  %v3100_v51 = vmul.f32 %v11366_v38, %v11733_v10  ;;  %v3101_v8 = vmul.f32 %v11366_v38, %v11737_v7 }
 0x2d9   : > { %v3533_v61 = vmax.f32 %v3517_v31, 0.0  ;;  %v3380_v2 = vadd.f32 %v3364_v53, %v3326_v25  ;;  %v3381_v16 = vadd.f32 %v3365_v42, %v3327_v34  ;;  %v3153_v40 = vmul.f32 %v11373_v57, %v11741_v59 }
 0x2da   : > { %v3548_v6 = vmin.f32 %v3532_v11, 6.0  ;;  %v3116_v29 = vadd.f32 %v3100_v51, %v3047_v48  ;;  %v3117_v22 = vadd.f32 %v3101_v8, %v3048_v37  ;;  %v3154_v49 = vmul.f32 %v11373_v57, %v11743_v13 }
 0x2db   : > { %v3549_v12 = vmin.f32 %v3533_v61, 6.0  ;;  %v3433_v55 = vadd.f32 %v3417_v19, %v3380_v2  ;;  %v3434_v23 = vadd.f32 %v3418_v46, %v3381_v16  ;;  %v3206_v10 = vmul.f32 %v11536_v60, %v3343_v9  ;;  %v9703_v61 = vld [vmem:[%s14000_s15] sm:$0xff]  }
 0x2dc   : > { %v3169_v50 = vadd.f32 %v3153_v40, %v3116_v29  ;;  %v3170_v41 = vadd.f32 %v3154_v49, %v3117_v22  ;;  %v3207_v38 = vmul.f32 %v11536_v60, %v3344_v45  ;;  %v3259_v7 = vmul.f32 %v11543_v26, %v3396_v4  ;;  %v3399_v60 = vld [vmem:[#allocation2 + $0x1a1] sm:$0xff]  ;;  %9463 = vmatprep.subr.bf16.mxu0 %v9703_v61  ;;  %v11820_v2 = vld [vmem:[%s14001_s23] ss:$0 sm:$0xff]  ;;  %s14011_s23 = sld [smem:[#allocation43_spill]] }
 0x2dd   : > { %v3559_v56 = vpack.c.bf16 %v3549_v12, %v3548_v6  ;;  %v3486_v18 = vadd.f32 %v3470_v28, %v3433_v55  ;;  %v3487_v59 = vadd.f32 %v3471_v24, %v3434_v23  ;;  %v3260_v35 = vmul.f32 %v11543_v26, %v3397_v47  ;;  %v3452_v47 = vld [vmem:[#allocation2 + $0x1a2] sm:$0xff]  ;;  %9464 = vmatpush3.bf16.msra.mxu0 %v9703_v61  ;;  %v11823_v16 = vld [vmem:[%s14002_s30] ss:$0 sm:$0xff]  ;;  %s14012_s30 = sld [smem:[#allocation50_spill]] }
 0x2de   : > { %v3222_v14 = vadd.f32 %v3206_v10, %v3169_v50  ;;  %v3223_v62 = vadd.f32 %v3207_v38, %v3170_v41  ;;  %v3312_v57 = vmul.f32 %v11555_v39, %v3449_v36  ;;  %v3313_v13 = vmul.f32 %v11555_v39, %v3450_v63 }
 0x2df   : > { %9456 = vmatmul.mubr.bf16.gmra.mrb[24].mxu1 %v3559_v56  ;;  %v3502_v9 = vmul.f32 %v11676_v0, %v3486_v18  ;;  %v3503_v5 = vmul.f32 %v11676_v0, %v3487_v59  ;;  %v3366_v20 = vmul.f32 %v9915_v58, %v11616_v54  ;;  %v3419_v63 = vmul.f32 %v11569_v44, %v3398_v1  ;;  %v9705_v1 = vld [vmem:[%s14000_s15 + $0x10] sm:$0xff]   ;;  %v11844_v58 = vld [vmem:[%s14003_s16 + $0x2] ss:$0 sm:$0xff] }
 0x2e0   : > { %v3275_v45 = vadd.f32 %v3259_v7, %v3222_v14  ;;  %v3276_v4 = vadd.f32 %v3260_v35, %v3223_v62  ;;  %v3420_v32 = vmul.f32 %v11569_v44, %v3399_v60  ;;  %v3472_v33 = vmul.f32 %v11637_v30, %v3451_v52  ;;  %v3780_v14 = vld [vmem:[#allocation3] ss:$2 sm:$0xff]  ;;  %v11834_v62 = vld [vmem:[%s14003_s16] ss:$0 sm:$0xff] }
 0x2e1   : > { %v3518_v26 = vadd.f32 %v11695_v17, %v3502_v9  ;;  %v3519_v15 = vadd.f32 %v11695_v17, %v3503_v5  ;;  %v3473_v54 = vmul.f32 %v11637_v30, %v3452_v47  ;;  %v3817_v9 = vld [vmem:[#allocation3 + $0x1] ss:$2 sm:$0xff]  ;;  %v11838_v5 = vld [vmem:[%s14003_s16 + $0x1] ss:$0 sm:$0xff]  ;;  %v3800_v60 = vmul.f32 %v11834_v62, %v3780_v14 }
 0x2e2   : > { %v3328_v36 = vadd.f32 %v3312_v57, %v3275_v45  ;;  %v3329_v39 = vadd.f32 %v3313_v13, %v3276_v4  ;;  %v9704_v13 = vld [vmem:[%s14000_s15 + $0x8] sm:$0xff]   ;;  %v3837_v45 = vmul.f32 %v11838_v5, %v3817_v9  ;;  %v3854_v4 = vld [vmem:[#allocation3 + $0x2] ss:$2 sm:$0xff] }
 0x2e3   : > { %v3534_v27 = vmax.f32 %v3518_v26, 0.0  ;;  %v3535_v53 = vmax.f32 %v3519_v15, 0.0  ;;  %9465 = vmatprep.subr.bf16.mxu0 %v9704_v13  ;;  %v3874_v26 = vmul.f32 %v11844_v58, %v3854_v4  ;;  %v11848_v15 = vld [vmem:[%s14003_s16 + $0x3] ss:$0 sm:$0xff]  ;;  %v9709_v14 = vld [vmem:[%s14000_s15 + $0x30] sm:$0xff]  }
 0x2e4   : > { %v3382_v42 = vadd.f32 %v3366_v20, %v3328_v36  ;;  %v3383_v3 = vadd.f32 %v3366_v20, %v3329_v39  ;;  %9466 = vmatpush3.bf16.msra.mxu0 %v9704_v13  ;;  %v3845_v20 = vadd.f32 %v3837_v45, %v3800_v60  ;;  %v11883_v9 = vld [vmem:[%s14003_s16 + $0x8] ss:$0 sm:$0xff] }
 0x2e5   : > { %v3550_v21 = vmin.f32 %v3534_v27, 6.0  ;;  %v3551_v19 = vmin.f32 %v3535_v53, 6.0  ;;  %9467 = vmatprep.subr.bf16.mxu0 %v9705_v1 }
 0x2e6   : > { %v3435_v43 = vadd.f32 %v3419_v63, %v3382_v42  ;;  %v3436_v46 = vadd.f32 %v3420_v32, %v3383_v3  ;;  %v3882_v47 = vadd.f32 %v3874_v26, %v3845_v20  ;;  %v11854_v3 = vld [vmem:[%s14003_s16 + $0x4] ss:$0 sm:$0xff] }
 0x2e7   : > { %v3560_v28 = vpack.c.bf16 %v3551_v19, %v3550_v21 }
 0x2e8   : > { %v3488_v24 = vadd.f32 %v3472_v33, %v3435_v43  ;;  %v3489_v31 = vadd.f32 %v3473_v54, %v3436_v46  ;;  %9468 = vmatpush3.bf16.msra.mxu0 %v9705_v1 }
 0x2e9   : > { %9459 = vmatprep.mubr.bf16.mxu1 %v3560_v28 }
 0x2ea   : > { %v3504_v44 = vmul.f32 %v11676_v0, %v3488_v24  ;;  %v3505_v25 = vmul.f32 %v11676_v0, %v3489_v31 }
 0x2ec   : > { %v3520_v34 = vadd.f32 %v11695_v17, %v3504_v44  ;;  %v3521_v48 = vadd.f32 %v11695_v17, %v3505_v25 }
 0x2ee   : > { %v3536_v30 = vmax.f32 %v3520_v34, 0.0  ;;  %v3537_v11 = vmax.f32 %v3521_v48, 0.0  ;;  %v11864_v48 = vld [vmem:[%s14003_s16 + $0x5] ss:$0 sm:$0xff] }
 0x2f0   : > { %v3552_v37 = vmin.f32 %v3536_v30, 6.0  ;;  %v3553_v51 = vmin.f32 %v3537_v11, 6.0 }
 0x2f2   : > { %v3561_v8 = vpack.c.bf16 %v3553_v51, %v3552_v37 }
 0x2f4   : > { %9460 = vmatmul.mubr.bf16.gmra.mrb[28].mxu1 %v3561_v8 }
 0x331   : > { %v9417_v40 = vpop.f32.mrb[16].mxu0 }
 0x332   : > { %v2926_v0 = vmul.f32 %v9417_v40, %v11820_v2  ;;  %v2855_v6 = vpop.f32.mrb[17].mxu0  ;;  %v9706_v40 = vld [vmem:[%s14000_s15 + $0x18] sm:$0xff]  }
 0x333   : > { %v2924_v29 = vmul.f32 %v11820_v2, %v2855_v6  ;;  %v9418_v17 = vpop.f32.mrb[18].mxu0  ;;  %9469 = vmatprep.subr.bf16.mxu0 %v9706_v40 }
 0x334   : > { %v2948_v22 = vadd.f32 %v11823_v16, %v2926_v0  ;;  %v2927_v49 = vmul.f32 %v9418_v17, %v11820_v2  ;;  %v2858_v12 = vpop.f32.mrb[19].mxu0  ;;  %9470 = vmatpush3.bf16.msra.mxu0 %v9706_v40 }
 0x335   : > { %v2946_v55 = vadd.f32 %v11823_v16, %v2924_v29  ;;  %v2925_v23 = vmul.f32 %v11820_v2, %v2858_v12 }
 0x336   : > { %v2964_v10 = vmax.f32 %v2948_v22, 0.0  ;;  %v2949_v50 = vadd.f32 %v11823_v16, %v2927_v49  ;;  %v11869_v49 = vld [vmem:[%s14003_s16 + $0x6] ss:$0 sm:$0xff] }
 0x337   : > { %v2962_v41 = vmax.f32 %v2946_v55, 0.0  ;;  %v2947_v38 = vadd.f32 %v11823_v16, %v2925_v23  ;;  %v9707_v55 = vld [vmem:[%s14000_s15 + $0x20] sm:$0xff]  }
 0x338   : > { %v2980_v7 = vmin.f32 %v2964_v10, 6.0  ;;  %v2965_v56 = vmax.f32 %v2949_v50, 0.0  ;;  %9471 = vmatprep.subr.bf16.mxu0 %v9707_v55 }
 0x339   : > { %v2978_v18 = vmin.f32 %v2962_v41, 6.0  ;;  %v2963_v59 = vmax.f32 %v2947_v38, 0.0  ;;  %v9708_v41 = vld [vmem:[%s14000_s15 + $0x28] sm:$0xff]   ;;  %9472 = vmatpush3.bf16.msra.mxu0 %v9707_v55  ;;  %v11905_v55 = vld [vmem:[%s14005_s18] ss:$0 sm:$0xff]  ;;  %s14037_s18 = sld [smem:[#allocation46_spill]] }
 0x33a   : > { %2997 = vst [vmem:[#allocation3 + $0x31] sm:$0xff] %v2980_v7  ;;  %v2981_v35 = vmin.f32 %v2965_v56, 6.0  ;;  %v11877_v7 = vld [vmem:[%s14003_s16 + $0x7] ss:$0 sm:$0xff]  ;;  %9473 = vmatprep.subr.bf16.mxu0 %v9708_v41 }
 0x33b   : > { %2995 = vst [vmem:[#allocation3 + $0x19] sm:$0xff] %v2978_v18  ;;  %v2979_v57 = vmin.f32 %v2963_v59, 6.0 }
 0x33c   : > { %2998 = vst [vmem:[#allocation3 + $0x39] sm:$0xff] %v2981_v35 }
 0x33d   : > { %2996 = vst [vmem:[#allocation3 + $0x21] sm:$0xff] %v2979_v57  ;;  %9474 = vmatpush3.bf16.msra.mxu0 %v9708_v41 }
 0x33e   : > { %9475 = vmatprep.subr.bf16.mxu0 %v9709_v14 }
 0x341   : > { %9476 = vmatpush3.bf16.msra.mxu0 %v9709_v14 }
 0x343   : > { %v3782_v0 = vld [vmem:[#allocation3 + $0x30] ss:$2 sm:$0xff]  ;;  %v3819_v6 = vld [vmem:[#allocation3 + $0x31] ss:$2 sm:$0xff] }
 0x344   : > { %v3890_v52 = vld [vmem:[#allocation3 + $0x18] ss:$2 sm:$0xff]  ;;  %v3927_v42 = vld [vmem:[#allocation3 + $0x19] ss:$2 sm:$0xff]  ;;  %v3801_v23 = vmul.f32 %v11834_v62, %v3782_v0  ;;  %v3838_v10 = vmul.f32 %v11838_v5, %v3819_v6 }
 0x345   : > { %v3910_v36 = vmul.f32 %v11848_v15, %v3890_v52  ;;  %v3947_v31 = vmul.f32 %v11854_v3, %v3927_v42  ;;  %v3964_v34 = vld [vmem:[#allocation3 + $0x1a] ss:$2 sm:$0xff]  ;;  %v4038_v38 = vld [vmem:[#allocation3 + $0x31] ss:$2 sm:$0xff] }
 0x346   : > { %v3984_v29 = vmul.f32 %v11864_v48, %v3964_v34  ;;  %v4001_v22 = vld [vmem:[#allocation3 + $0x30] ss:$2 sm:$0xff]  ;;  %v3846_v59 = vadd.f32 %v3838_v10, %v3801_v23  ;;  %v4058_v35 = vmul.f32 %v11877_v7, %v4038_v38 }
 0x347   : > { %v9421_v39 = vpop.f32.mrb[20].mxu0  ;;  %v3918_v19 = vadd.f32 %v3910_v36, %v3882_v47  ;;  %v4021_v50 = vmul.f32 %v11869_v49, %v4001_v22  ;;  %v3856_v56 = vld [vmem:[#allocation3 + $0x32] ss:$2 sm:$0xff]  ;;  %v9710_v36 = vld [vmem:[%s14000_s15 + $0x38] sm:$0xff]  }
 0x348   : > { %v2930_v63 = vmul.f32 %v9421_v39, %v11820_v2  ;;  %v2871_v32 = vpop.f32.mrb[21].mxu0  ;;  %v3875_v57 = vmul.f32 %v11844_v58, %v3856_v56  ;;  %v4075_v13 = vld [vmem:[#allocation3 + $0x32] ss:$2 sm:$0xff]  ;;  %9477 = vmatprep.subr.bf16.mxu0 %v9710_v36 }
 0x349   : > { %v2928_v27 = vmul.f32 %v11820_v2, %v2871_v32  ;;  %v9422_v53 = vpop.f32.mrb[22].mxu0  ;;  %v3955_v37 = vadd.f32 %v3947_v31, %v3918_v19  ;;  %v4095_v47 = vmul.f32 %v11883_v9, %v4075_v13  ;;  %9478 = vmatpush3.bf16.msra.mxu0 %v9710_v36 }
 0x34a   : > { %v2952_v33 = vadd.f32 %v11823_v16, %v2930_v63  ;;  %v2931_v54 = vmul.f32 %v9422_v53, %v11820_v2  ;;  %v2874_v21 = vpop.f32.mrb[23].mxu0  ;;  %v3883_v4 = vadd.f32 %v3875_v57, %v3846_v59 }
 0x34b   : > { %v2950_v43 = vadd.f32 %v11823_v16, %v2928_v27  ;;  %v2929_v46 = vmul.f32 %v11820_v2, %v2874_v21  ;;  %v3992_v12 = vadd.f32 %v3984_v29, %v3955_v37 }
 0x34c   : > { %v2968_v28 = vmax.f32 %v2952_v33, 0.0  ;;  %v2953_v24 = vadd.f32 %v11823_v16, %v2931_v54 }
 0x34d   : > { %v2966_v44 = vmax.f32 %v2950_v43, 0.0  ;;  %v2951_v25 = vadd.f32 %v11823_v16, %v2929_v46  ;;  %v4029_v18 = vadd.f32 %v4021_v50, %v3992_v12  ;;  %v11894_v46 = vld [vmem:[%s14004_s12] ss:$0 sm:$0xff]  ;;  %s14035_s12 = sld [smem:[#allocation45_spill]] }
 0x34e   : > { %v2984_v30 = vmin.f32 %v2968_v28, 6.0  ;;  %v2969_v11 = vmax.f32 %v2953_v24, 0.0 }
 0x34f   : > { %v2982_v51 = vmin.f32 %v2966_v44, 6.0  ;;  %v2967_v8 = vmax.f32 %v2951_v25, 0.0  ;;  %v4066_v45 = vadd.f32 %v4058_v35, %v4029_v18 }
 0x350   : > { %3001 = vst [vmem:[#allocation3 + $0x61] sm:$0xff] %v2984_v30  ;;  %v2985_v61 = vmin.f32 %v2969_v11, 6.0 }
 0x351   : > { %2999 = vst [vmem:[#allocation3 + $0x49] sm:$0xff] %v2982_v51  ;;  %v2983_v17 = vmin.f32 %v2967_v8, 6.0  ;;  %v4103_v54 = vadd.f32 %v4095_v47, %v4066_v45 }
 0x352   : > { %3002 = vst [vmem:[#allocation3 + $0x69] sm:$0xff] %v2985_v61 }
 0x353   : > { %3000 = vst [vmem:[#allocation3 + $0x51] sm:$0xff] %v2983_v17  ;;  %v4117_v40 = vmul.f32 %v11894_v46, %v4103_v54 }
 0x355   : > { %v4131_v56 = vadd.f32 %v11905_v55, %v4117_v40 }
 0x357   : > { %v4139_v35 = vmax.f32 %v4131_v56, 0.0 }
 0x359   : > { %v4003_v33 = vld [vmem:[#allocation3 + $0x60] ss:$2 sm:$0xff]  ;;  %v4040_v25 = vld [vmem:[#allocation3 + $0x61] ss:$2 sm:$0xff]  ;;  %v4147_v57 = vmin.f32 %v4139_v35, 6.0 }
 0x35a   : > { %v3892_v1 = vld [vmem:[#allocation3 + $0x48] ss:$2 sm:$0xff]  ;;  %v3929_v60 = vld [vmem:[#allocation3 + $0x49] ss:$2 sm:$0xff]  ;;  %v4022_v37 = vmul.f32 %v11869_v49, %v4003_v33  ;;  %v4059_v17 = vmul.f32 %v11877_v7, %v4040_v25 }
 0x35b   : > { %v3911_v20 = vmul.f32 %v11848_v15, %v3892_v1  ;;  %v3966_v52 = vld [vmem:[#allocation3 + $0x4a] ss:$2 sm:$0xff]  ;;  %v3948_v27 = vmul.f32 %v11854_v3, %v3929_v60  ;;  %v3821_v45 = vld [vmem:[#allocation3 + $0x61] ss:$2 sm:$0xff] }
 0x35c   : > { %v9425_v26 = vpop.f32.mrb[24].mxu0  ;;  %v3985_v24 = vmul.f32 %v11864_v48, %v3966_v52  ;;  %v4077_v61 = vld [vmem:[#allocation3 + $0x62] ss:$2 sm:$0xff] }
 0x35d   : > { %v2934_v39 = vmul.f32 %v9425_v26, %v11820_v2  ;;  %v2887_v63 = vpop.f32.mrb[25].mxu0  ;;  %v3919_v32 = vadd.f32 %v3911_v20, %v3883_v4  ;;  %v4096_v50 = vmul.f32 %v11883_v9, %v4077_v61  ;;  %v3784_v60 = vld [vmem:[#allocation3 + $0x60] ss:$2 sm:$0xff]  ;;  %v3839_v20 = vmul.f32 %v11838_v5, %v3821_v45 }
 0x35e   : > { %v2932_v53 = vmul.f32 %v11820_v2, %v2887_v63  ;;  %v9426_v42 = vpop.f32.mrb[26].mxu0  ;;  %v3802_v4 = vmul.f32 %v11834_v62, %v3784_v60  ;;  %v3858_v26 = vld [vmem:[#allocation3 + $0x62] ss:$2 sm:$0xff] }
 0x35f   : > { %v2956_v21 = vadd.f32 %v11823_v16, %v2934_v39  ;;  %v2935_v19 = vmul.f32 %v9426_v42, %v11820_v2  ;;  %v2890_v43 = vpop.f32.mrb[27].mxu0  ;;  %v3956_v28 = vadd.f32 %v3948_v27, %v3919_v32  ;;  %v3876_v39 = vmul.f32 %v11844_v58, %v3858_v26 }
 0x360   : > { %v2954_v31 = vadd.f32 %v11823_v16, %v2932_v53  ;;  %v2933_v44 = vmul.f32 %v11820_v2, %v2890_v43  ;;  %v3847_v47 = vadd.f32 %v3839_v20, %v3802_v4 }
 0x361   : > { %v2972_v34 = vmax.f32 %v2956_v21, 0.0  ;;  %v2957_v30 = vadd.f32 %v11823_v16, %v2935_v19  ;;  %v3993_v11 = vadd.f32 %v3985_v24, %v3956_v28 }
 0x362   : > { %v2970_v51 = vmax.f32 %v2954_v31, 0.0  ;;  %v2955_v8 = vadd.f32 %v11823_v16, %v2933_v44  ;;  %v3884_v33 = vadd.f32 %v3876_v39, %v3847_v47 }
 0x363   : > { %v2988_v0 = vmin.f32 %v2972_v34, 6.0  ;;  %v2973_v6 = vmax.f32 %v2957_v30, 0.0  ;;  %v4030_v29 = vadd.f32 %v4022_v37, %v3993_v11 }
 0x364   : > { %v2986_v22 = vmin.f32 %v2970_v51, 6.0  ;;  %v2971_v12 = vmax.f32 %v2955_v8, 0.0 }
 0x365   : > { %3005 = vst [vmem:[#allocation3 + $0x91] sm:$0xff] %v2988_v0  ;;  %v2989_v23 = vmin.f32 %v2973_v6, 6.0  ;;  %v4067_v10 = vadd.f32 %v4059_v17, %v4030_v29 }
 0x366   : > { %3003 = vst [vmem:[#allocation3 + $0x79] sm:$0xff] %v2986_v22  ;;  %v2987_v41 = vmin.f32 %v2971_v12, 6.0 }
 0x367   : > { %3006 = vst [vmem:[#allocation3 + $0x99] sm:$0xff] %v2989_v23  ;;  %v4104_v38 = vadd.f32 %v4096_v50, %v4067_v10 }
 0x368   : > { %3004 = vst [vmem:[#allocation3 + $0x81] sm:$0xff] %v2987_v41 }
 0x369   : > { %v4118_v18 = vmul.f32 %v11894_v46, %v4104_v38 }
 0x36b   : > { %v4132_v59 = vadd.f32 %v11905_v55, %v4118_v18 }
 0x36d   : > { %v4140_v14 = vmax.f32 %v4132_v59, 0.0 }
 0x36e   : > { %v3786_v29 = vld [vmem:[#allocation3 + $0x90] ss:$2 sm:$0xff]  ;;  %v3823_v17 = vld [vmem:[#allocation3 + $0x91] ss:$2 sm:$0xff] }
 0x36f   : > { %v4148_v13 = vmin.f32 %v4140_v14, 6.0  ;;  %v3894_v52 = vld [vmem:[#allocation3 + $0x78] ss:$2 sm:$0xff]  ;;  %v3931_v43 = vld [vmem:[#allocation3 + $0x79] ss:$2 sm:$0xff]  ;;  %v3803_v38 = vmul.f32 %v11834_v62, %v3786_v29  ;;  %v3840_v56 = vmul.f32 %v11838_v5, %v3823_v17 }
 0x370   : > { %v3912_v63 = vmul.f32 %v11848_v15, %v3894_v52  ;;  %v3949_v11 = vmul.f32 %v11854_v3, %v3931_v43  ;;  %v3968_v8 = vld [vmem:[#allocation3 + $0x7a] ss:$2 sm:$0xff]  ;;  %v4042_v20 = vld [vmem:[#allocation3 + $0x91] ss:$2 sm:$0xff] }
 0x371   : > { %v9217_v1 = vpack.c.bf16 %v4148_v13, %v4147_v57  ;;  %v3986_v12 = vmul.f32 %v11864_v48, %v3968_v8  ;;  %v4005_v10 = vld [vmem:[#allocation3 + $0x90] ss:$2 sm:$0xff]  ;;  %v3848_v47 = vadd.f32 %v3840_v56, %v3803_v38 }
 0x372   : > { %v3920_v31 = vadd.f32 %v3912_v63, %v3884_v33  ;;  %v3860_v4 = vld [vmem:[#allocation3 + $0x92] ss:$2 sm:$0xff] }
 0x373   : > { %9479 = vmatprep.mubr.bf16.mxu0 %v9217_v1  ;;  %v4023_v1 = vmul.f32 %v11869_v49, %v4005_v10  ;;  %v4079_v33 = vld [vmem:[#allocation3 + $0x92] ss:$2 sm:$0xff] }
 0x374   : > { %v3957_v0 = vadd.f32 %v3949_v11, %v3920_v31  ;;  %v4097_v8 = vmul.f32 %v11883_v9, %v4079_v33 }
 0x376   : > { %v3994_v18 = vadd.f32 %v3986_v12, %v3957_v0 }
 0x37c   : > { %v9429_v36 = vpop.f32.mrb[28].mxu0 }
 0x37d   : > { %v2938_v32 = vmul.f32 %v9429_v36, %v11820_v2  ;;  %v2903_v27 = vpop.f32.mrb[29].mxu0  ;;  %v4031_v36 = vadd.f32 %v4023_v1, %v3994_v18 }
 0x37e   : > { %v2936_v53 = vmul.f32 %v11820_v2, %v2903_v27  ;;  %v9430_v42 = vpop.f32.mrb[30].mxu0 }
 0x37f   : > { %v2960_v54 = vadd.f32 %v11823_v16, %v2938_v32  ;;  %v2939_v21 = vmul.f32 %v9430_v42, %v11820_v2  ;;  %v2906_v19 = vpop.f32.mrb[31].mxu0  ;;  %v4060_v42 = vmul.f32 %v11877_v7, %v4042_v20 }
 0x380   : > { %v2958_v28 = vadd.f32 %v11823_v16, %v2936_v53  ;;  %v2937_v24 = vmul.f32 %v11820_v2, %v2906_v19  ;;  %v3877_v53 = vmul.f32 %v11844_v58, %v3860_v4 }
 0x381   : > { %v2976_v44 = vmax.f32 %v2960_v54, 0.0  ;;  %v2961_v25 = vadd.f32 %v11823_v16, %v2939_v21 }
 0x382   : > { %v2974_v34 = vmax.f32 %v2958_v28, 0.0  ;;  %v2959_v30 = vadd.f32 %v11823_v16, %v2937_v24  ;;  %v3885_v24 = vadd.f32 %v3877_v53, %v3848_v47 }
 0x383   : > { %v2992_v37 = vmin.f32 %v2976_v44, 6.0  ;;  %v2977_v51 = vmax.f32 %v2961_v25, 0.0  ;;  %v4068_v25 = vadd.f32 %v4060_v42, %v4031_v36 }
 0x384   : > { %v2990_v61 = vmin.f32 %v2974_v34, 6.0  ;;  %v2975_v40 = vmax.f32 %v2959_v30, 0.0 }
 0x385   : > { %3009 = vst [vmem:[#allocation3 + $0xc1] sm:$0xff] %v2992_v37  ;;  %v2993_v6 = vmin.f32 %v2977_v51, 6.0  ;;  %v4105_v17 = vadd.f32 %v4097_v8, %v4068_v25 }
 0x386   : > { %3007 = vst [vmem:[#allocation3 + $0xa9] sm:$0xff] %v2990_v61  ;;  %v2991_v22 = vmin.f32 %v2975_v40, 6.0 }
 0x387   : > { %v9449_v23 = vpop.f32.mrb[16].mxu1  ;;  %3010 = vst [vmem:[#allocation3 + $0xc9] sm:$0xff] %v2993_v6  ;;  %v4119_v18 = vmul.f32 %v11894_v46, %v4105_v17 }
 0x388   : > { %v3661_v50 = vmul.f32 %v9449_v23, %v11820_v2  ;;  %v3596_v41 = vpop.f32.mrb[17].mxu1  ;;  %3008 = vst [vmem:[#allocation3 + $0xb1] sm:$0xff] %v2991_v22 }
 0x389   : > { %v3659_v59 = vmul.f32 %v11820_v2, %v3596_v41  ;;  %v9450_v35 = vpop.f32.mrb[18].mxu1 }
 0x38a   : > { %v3677_v14 = vadd.f32 %v11823_v16, %v3661_v50  ;;  %v3662_v57 = vmul.f32 %v9450_v35, %v11820_v2  ;;  %v3599_v13 = vpop.f32.mrb[19].mxu1 }
 0x38b   : > { %v3675_v60 = vadd.f32 %v11823_v16, %v3659_v59  ;;  %v3660_v45 = vmul.f32 %v11820_v2, %v3599_v13 }
 0x38c   : > { %v3693_v26 = vmax.f32 %v3677_v14, 0.0  ;;  %v3678_v52 = vadd.f32 %v11823_v16, %v3662_v57 }
 0x38d   : > { %v3691_v39 = vmax.f32 %v3675_v60, 0.0  ;;  %v3676_v63 = vadd.f32 %v11823_v16, %v3660_v45  ;;  %v4133_v45 = vadd.f32 %v11905_v55, %v4119_v18 }
 0x38e   : > { %v3709_v32 = vmin.f32 %v3693_v26, 6.0  ;;  %v3694_v27 = vmax.f32 %v3678_v52, 0.0  ;;  %v3788_v30 = vld [vmem:[#allocation3 + $0xc0] ss:$2 sm:$0xff]  ;;  %v3825_v11 = vld [vmem:[#allocation3 + $0xc1] ss:$2 sm:$0xff] }
 0x38f   : > { %v3707_v54 = vmin.f32 %v3691_v39, 6.0  ;;  %v3692_v21 = vmax.f32 %v3676_v63, 0.0  ;;  %v3896_v19 = vld [vmem:[#allocation3 + $0xa8] ss:$2 sm:$0xff]  ;;  %v3933_v43 = vld [vmem:[#allocation3 + $0xa9] ss:$2 sm:$0xff]  ;;  %v3804_v40 = vmul.f32 %v11834_v62, %v3788_v30  ;;  %v3841_v0 = vmul.f32 %v11838_v5, %v3825_v11 }
 0x390   : > { %3726 = vst [vmem:[#allocation3 + $0xf1] sm:$0xff] %v3709_v32  ;;  %v3710_v28 = vmin.f32 %v3694_v27, 6.0  ;;  %v3913_v31 = vmul.f32 %v11848_v15, %v3896_v19  ;;  %v3970_v44 = vld [vmem:[#allocation3 + $0xaa] ss:$2 sm:$0xff]  ;;  %v3950_v51 = vmul.f32 %v11854_v3, %v3933_v43  ;;  %v4044_v22 = vld [vmem:[#allocation3 + $0xc1] ss:$2 sm:$0xff] }
 0x391   : > { %3724 = vst [vmem:[#allocation3 + $0xd9] sm:$0xff] %v3707_v54  ;;  %v3708_v34 = vmin.f32 %v3692_v21, 6.0  ;;  %v4007_v61 = vld [vmem:[#allocation3 + $0xc0] ss:$2 sm:$0xff]  ;;  %v3987_v29 = vmul.f32 %v11864_v48, %v3970_v44  ;;  %v3849_v41 = vadd.f32 %v3841_v0, %v3804_v40  ;;  %v4061_v56 = vmul.f32 %v11877_v7, %v4044_v22 }
 0x392   : > { %3727 = vst [vmem:[#allocation3 + $0xf9] sm:$0xff] %v3710_v28  ;;  %v3921_v37 = vadd.f32 %v3913_v31, %v3885_v24  ;;  %v4024_v23 = vmul.f32 %v11869_v49, %v4007_v61  ;;  %v3862_v10 = vld [vmem:[#allocation3 + $0xc2] ss:$2 sm:$0xff]  ;;  %v4141_v21 = vmax.f32 %v4133_v45, 0.0 }
 0x393   : > { %3725 = vst [vmem:[#allocation3 + $0xe1] sm:$0xff] %v3708_v34  ;;  %v4081_v50 = vld [vmem:[#allocation3 + $0xc2] ss:$2 sm:$0xff]  ;;  %v3878_v59 = vmul.f32 %v11844_v58, %v3862_v10 }
 0x394   : > { %v3958_v6 = vadd.f32 %v3950_v51, %v3921_v37  ;;  %v4098_v14 = vmul.f32 %v11883_v9, %v4081_v50  ;;  %v4149_v8 = vmin.f32 %v4141_v21, 6.0 }
 0x395   : > { %v3886_v13 = vadd.f32 %v3878_v59, %v3849_v41 }
 0x396   : > { %v3995_v12 = vadd.f32 %v3987_v29, %v3958_v6 }
 0x398   : > { %v4032_v38 = vadd.f32 %v4024_v23, %v3995_v12 }
 0x399   : > { %v3790_v0 = vld [vmem:[#allocation3 + $0xf0] ss:$2 sm:$0xff]  ;;  %v3827_v6 = vld [vmem:[#allocation3 + $0xf1] ss:$2 sm:$0xff] }
 0x39a   : > { %v4069_v35 = vadd.f32 %v4061_v56, %v4032_v38  ;;  %v3898_v57 = vld [vmem:[#allocation3 + $0xd8] ss:$2 sm:$0xff]  ;;  %v3935_v39 = vld [vmem:[#allocation3 + $0xd9] ss:$2 sm:$0xff]  ;;  %v3805_v10 = vmul.f32 %v11834_v62, %v3790_v0  ;;  %v3842_v50 = vmul.f32 %v11838_v5, %v3827_v6 }
 0x39b   : > { %v3914_v26 = vmul.f32 %v11848_v15, %v3898_v57  ;;  %v3951_v28 = vmul.f32 %v11854_v3, %v3935_v39  ;;  %v3972_v25 = vld [vmem:[#allocation3 + $0xda] ss:$2 sm:$0xff]  ;;  %v4046_v38 = vld [vmem:[#allocation3 + $0xf1] ss:$2 sm:$0xff] }
 0x39c   : > { %v9453_v1 = vpop.f32.mrb[20].mxu1  ;;  %v4106_v60 = vadd.f32 %v4098_v14, %v4069_v35  ;;  %v3988_v29 = vmul.f32 %v11864_v48, %v3972_v25  ;;  %v4009_v12 = vld [vmem:[#allocation3 + $0xf0] ss:$2 sm:$0xff]  ;;  %v3850_v59 = vadd.f32 %v3842_v50, %v3805_v10  ;;  %v4062_v35 = vmul.f32 %v11877_v7, %v4046_v38 }
 0x39d   : > { %v3665_v4 = vmul.f32 %v9453_v1, %v11820_v2  ;;  %v3612_v20 = vpop.f32.mrb[21].mxu1  ;;  %v3922_v53 = vadd.f32 %v3914_v26, %v3886_v13  ;;  %v4025_v41 = vmul.f32 %v11869_v49, %v4009_v12  ;;  %v3864_v56 = vld [vmem:[#allocation3 + $0xf2] ss:$2 sm:$0xff] }
 0x39e   : > { %v3663_v52 = vmul.f32 %v11820_v2, %v3612_v20  ;;  %v9454_v47 = vpop.f32.mrb[22].mxu1  ;;  %v4120_v36 = vmul.f32 %v11894_v46, %v4106_v60  ;;  %v3879_v14 = vmul.f32 %v11844_v58, %v3864_v56  ;;  %v4083_v57 = vld [vmem:[#allocation3 + $0xf2] ss:$2 sm:$0xff] }
 0x39f   : > { %v3681_v63 = vadd.f32 %v11823_v16, %v3665_v4  ;;  %v3666_v32 = vmul.f32 %v9454_v47, %v11820_v2  ;;  %v3615_v27 = vpop.f32.mrb[23].mxu1  ;;  %v3959_v11 = vadd.f32 %v3951_v28, %v3922_v53  ;;  %v4099_v26 = vmul.f32 %v11883_v9, %v4083_v57 }
 0x3a0   : > { %v3679_v42 = vadd.f32 %v11823_v16, %v3663_v52  ;;  %v3664_v33 = vmul.f32 %v11820_v2, %v3615_v27  ;;  %v4134_v54 = vadd.f32 %v11905_v55, %v4120_v36  ;;  %v3887_v45 = vadd.f32 %v3879_v14, %v3850_v59 }
 0x3a1   : > { %v3697_v19 = vmax.f32 %v3681_v63, 0.0  ;;  %v3682_v43 = vadd.f32 %v11823_v16, %v3666_v32  ;;  %v3996_v23 = vadd.f32 %v3988_v29, %v3959_v11 }
 0x3a2   : > { %v3695_v24 = vmax.f32 %v3679_v42, 0.0  ;;  %v3680_v31 = vadd.f32 %v11823_v16, %v3664_v33  ;;  %v4142_v44 = vmax.f32 %v4134_v54, 0.0 }
 0x3a3   : > { %v3713_v34 = vmin.f32 %v3697_v19, 6.0  ;;  %v3698_v30 = vmax.f32 %v3682_v43, 0.0  ;;  %v4033_v18 = vadd.f32 %v4025_v41, %v3996_v23 }
 0x3a4   : > { %v3711_v37 = vmin.f32 %v3695_v24, 6.0  ;;  %v3696_v51 = vmax.f32 %v3680_v31, 0.0  ;;  %v4150_v61 = vmin.f32 %v4142_v44, 6.0 }
 0x3a5   : > { %3730 = vst [vmem:[#allocation3 + $0x121] sm:$0xff] %v3713_v34  ;;  %v3714_v40 = vmin.f32 %v3698_v30, 6.0  ;;  %v4070_v60 = vadd.f32 %v4062_v35, %v4033_v18 }
 0x3a6   : > { %3728 = vst [vmem:[#allocation3 + $0x109] sm:$0xff] %v3711_v37  ;;  %v3712_v17 = vmin.f32 %v3696_v51, 6.0  ;;  %v9218_v22 = vpack.c.bf16 %v4150_v61, %v4149_v8 }
 0x3a7   : > { %3731 = vst [vmem:[#allocation3 + $0x129] sm:$0xff] %v3714_v40  ;;  %v4107_v27 = vadd.f32 %v4099_v26, %v4070_v60 }
 0x3a8   : > { %3729 = vst [vmem:[#allocation3 + $0x111] sm:$0xff] %v3712_v17  ;;  %9480 = vmatmul.mubr.bf16.vlgmr.msra.gmra.mrb[32].mxu0 %v9218_v22 }
 0x3a9   : > { %v4121_v37 = vmul.f32 %v11894_v46, %v4107_v27 }
 0x3ab   : > { %v4135_v41 = vadd.f32 %v11905_v55, %v4121_v37 }
 0x3ad   : > { %v4143_v35 = vmax.f32 %v4135_v41, 0.0 }
 0x3ae   : > { %v4011_v32 = vld [vmem:[#allocation3 + $0x120] ss:$2 sm:$0xff]  ;;  %v4048_v28 = vld [vmem:[#allocation3 + $0x121] ss:$2 sm:$0xff] }
 0x3af   : > { %v3900_v13 = vld [vmem:[#allocation3 + $0x108] ss:$2 sm:$0xff]  ;;  %v3937_v1 = vld [vmem:[#allocation3 + $0x109] ss:$2 sm:$0xff]  ;;  %v4026_v25 = vmul.f32 %v11869_v49, %v4011_v32  ;;  %v4063_v40 = vmul.f32 %v11877_v7, %v4048_v28 }
 0x3b0   : > { %v3915_v4 = vmul.f32 %v11848_v15, %v3900_v13  ;;  %v3974_v20 = vld [vmem:[#allocation3 + $0x10a] ss:$2 sm:$0xff]  ;;  %v3952_v36 = vmul.f32 %v11854_v3, %v3937_v1  ;;  %v3829_v18 = vld [vmem:[#allocation3 + $0x121] ss:$2 sm:$0xff]  ;;  %v4151_v1 = vmin.f32 %v4143_v35, 6.0 }
 0x3b1   : > { %v3989_v54 = vmul.f32 %v11864_v48, %v3974_v20  ;;  %v4085_v11 = vld [vmem:[#allocation3 + $0x122] ss:$2 sm:$0xff]  ;;  %v3843_v57 = vmul.f32 %v11838_v5, %v3829_v18 }
 0x3b2   : > { %v9457_v52 = vpop.f32.mrb[24].mxu1  ;;  %v3923_v47 = vadd.f32 %v3915_v4, %v3887_v45  ;;  %v4100_v12 = vmul.f32 %v11883_v9, %v4085_v11  ;;  %v3792_v56 = vld [vmem:[#allocation3 + $0x120] ss:$2 sm:$0xff] }
 0x3b3   : > { %v3669_v39 = vmul.f32 %v9457_v52, %v11820_v2  ;;  %v3628_v63 = vpop.f32.mrb[25].mxu1  ;;  %v3806_v14 = vmul.f32 %v11834_v62, %v3792_v56  ;;  %v3866_v45 = vld [vmem:[#allocation3 + $0x122] ss:$2 sm:$0xff] }
 0x3b4   : > { %v3667_v53 = vmul.f32 %v11820_v2, %v3628_v63  ;;  %v9458_v42 = vpop.f32.mrb[26].mxu1  ;;  %v3960_v33 = vadd.f32 %v3952_v36, %v3923_v47  ;;  %v3880_v47 = vmul.f32 %v11844_v58, %v3866_v45 }
 0x3b5   : > { %v3685_v21 = vadd.f32 %v11823_v16, %v3669_v39  ;;  %v3670_v19 = vmul.f32 %v9458_v42, %v11820_v2  ;;  %v3631_v43 = vpop.f32.mrb[27].mxu1  ;;  %v3851_v4 = vadd.f32 %v3843_v57, %v3806_v14 }
 0x3b6   : > { %v3683_v24 = vadd.f32 %v11823_v16, %v3667_v53  ;;  %v3668_v31 = vmul.f32 %v11820_v2, %v3631_v43  ;;  %v3997_v44 = vadd.f32 %v3989_v54, %v3960_v33 }
 0x3b7   : > { %v3701_v34 = vmax.f32 %v3685_v21, 0.0  ;;  %v3686_v30 = vadd.f32 %v11823_v16, %v3670_v19  ;;  %v3888_v53 = vadd.f32 %v3880_v47, %v3851_v4 }
 0x3b8   : > { %v3699_v51 = vmax.f32 %v3683_v24, 0.0  ;;  %v3684_v8 = vadd.f32 %v11823_v16, %v3668_v31  ;;  %v4034_v61 = vadd.f32 %v4026_v25, %v3997_v44 }
 0x3b9   : > { %v3717_v0 = vmin.f32 %v3701_v34, 6.0  ;;  %v3702_v6 = vmax.f32 %v3686_v30, 0.0 }
 0x3ba   : > { %v3715_v29 = vmin.f32 %v3699_v51, 6.0  ;;  %v3700_v17 = vmax.f32 %v3684_v8, 0.0  ;;  %v4071_v22 = vadd.f32 %v4063_v40, %v4034_v61 }
 0x3bb   : > { %3734 = vst [vmem:[#allocation3 + $0x151] sm:$0xff] %v3717_v0  ;;  %v3718_v23 = vmin.f32 %v3702_v6, 6.0 }
 0x3bc   : > { %3732 = vst [vmem:[#allocation3 + $0x139] sm:$0xff] %v3715_v29  ;;  %v3716_v10 = vmin.f32 %v3700_v17, 6.0  ;;  %v4108_v50 = vadd.f32 %v4100_v12, %v4071_v22 }
 0x3bd   : > { %3735 = vst [vmem:[#allocation3 + $0x159] sm:$0xff] %v3718_v23 }
 0x3be   : > { %3733 = vst [vmem:[#allocation3 + $0x141] sm:$0xff] %v3716_v10  ;;  %v4122_v38 = vmul.f32 %v11894_v46, %v4108_v50 }
 0x3c0   : > { %v4136_v59 = vadd.f32 %v11905_v55, %v4122_v38 }
 0x3c2   : > { %v4144_v13 = vmax.f32 %v4136_v59, 0.0 }
 0x3c4   : > { %v4152_v60 = vmin.f32 %v4144_v13, 6.0  ;;  %v3794_v0 = vld [vmem:[#allocation3 + $0x150] ss:$2 sm:$0xff]  ;;  %v3831_v6 = vld [vmem:[#allocation3 + $0x151] ss:$2 sm:$0xff] }
 0x3c5   : > { %v3902_v20 = vld [vmem:[#allocation3 + $0x138] ss:$2 sm:$0xff]  ;;  %v3939_v21 = vld [vmem:[#allocation3 + $0x139] ss:$2 sm:$0xff]  ;;  %v3844_v22 = vmul.f32 %v11838_v5, %v3831_v6 }
 0x3c6   : > { %v9219_v26 = vpack.c.bf16 %v4152_v60, %v4151_v1  ;;  %v3916_v36 = vmul.f32 %v11848_v15, %v3902_v20  ;;  %v3953_v34 = vmul.f32 %v11854_v3, %v3939_v21  ;;  %v3976_v37 = vld [vmem:[#allocation3 + $0x13a] ss:$2 sm:$0xff]  ;;  %v4050_v50 = vld [vmem:[#allocation3 + $0x151] ss:$2 sm:$0xff] }
 0x3c7   : > { %v9461_v52 = vpop.f32.mrb[28].mxu1  ;;  %v3990_v29 = vmul.f32 %v11864_v48, %v3976_v37  ;;  %v4013_v17 = vld [vmem:[#allocation3 + $0x150] ss:$2 sm:$0xff]  ;;  %v4064_v18 = vmul.f32 %v11877_v7, %v4050_v50 }
 0x3c8   : > { %v3673_v39 = vmul.f32 %v9461_v52, %v11820_v2  ;;  %v3644_v63 = vpop.f32.mrb[29].mxu1  ;;  %9483 = vmatprep.mubr.bf16.mxu0 %v9219_v26  ;;  %v3924_v28 = vadd.f32 %v3916_v36, %v3888_v53  ;;  %v4027_v23 = vmul.f32 %v11869_v49, %v4013_v17  ;;  %v3868_v10 = vld [vmem:[#allocation3 + $0x152] ss:$2 sm:$0xff] }
 0x3c9   : > { %v3671_v32 = vmul.f32 %v11820_v2, %v3644_v63  ;;  %v9462_v27 = vpop.f32.mrb[30].mxu1  ;;  %v3881_v56 = vmul.f32 %v11844_v58, %v3868_v10  ;;  %v4087_v14 = vld [vmem:[#allocation3 + $0x152] ss:$2 sm:$0xff] }
 0x3ca   : > { %v3689_v42 = vadd.f32 %v11823_v16, %v3673_v39  ;;  %v3674_v33 = vmul.f32 %v9462_v27, %v11820_v2  ;;  %v3647_v54 = vpop.f32.mrb[31].mxu1  ;;  %v3961_v61 = vadd.f32 %v3953_v34, %v3924_v28  ;;  %v4101_v45 = vmul.f32 %v11883_v9, %v4087_v14  ;;  %v9712_v28 = vld [vmem:[%s14006_s11 + $0x8] sm:$0xff]   ;;  %v12029_v34 = vld [vmem:[%s14008_s2] ss:$0 sm:$0xff]  ;;  %s14044_s2 = sld [smem:[#allocation48_spill]] }
 0x3cb   : > { %v3687_v19 = vadd.f32 %v11823_v16, %v3671_v32  ;;  %v3672_v43 = vmul.f32 %v11820_v2, %v3647_v54 }
 0x3cc   : > { %v3705_v24 = vmax.f32 %v3689_v42, 0.0  ;;  %v3690_v31 = vadd.f32 %v11823_v16, %v3674_v33  ;;  %v3998_v12 = vadd.f32 %v3990_v29, %v3961_v61 }
 0x3cd   : > { %v3703_v44 = vmax.f32 %v3687_v19, 0.0  ;;  %v3688_v25 = vadd.f32 %v11823_v16, %v3672_v43  ;;  %v3807_v16 = vmul.f32 %v11834_v62, %v3794_v0  ;;  %v9711_v43 = vld [vmem:[%s14006_s11] sm:$0xff]  }
 0x3ce   : > { %v3721_v30 = vmin.f32 %v3705_v24, 6.0  ;;  %v3706_v11 = vmax.f32 %v3690_v31, 0.0  ;;  %v4035_v38 = vadd.f32 %v4027_v23, %v3998_v12  ;;  %9487 = vmatprep.subr.bf16.mxu1 %v9711_v43  ;;  %v9716_v24 = vld [vmem:[%s14006_s11 + $0x28] sm:$0xff]   ;;  %v9717_v31 = vld [vmem:[%s14006_s11 + $0x30] sm:$0xff]  }
 0x3cf   : > { %v3719_v51 = vmin.f32 %v3703_v44, 6.0  ;;  %v3704_v8 = vmax.f32 %v3688_v25, 0.0  ;;  %v3852_v41 = vadd.f32 %v3844_v22, %v3807_v16  ;;  %9488 = vmatpush3.bf16.msra.mxu1 %v9711_v43  ;;  %v9718_v44 = vld [vmem:[%s14006_s11 + $0x38] sm:$0xff]   ;;  %v12026_v25 = vld [vmem:[%s14007_s28] ss:$0 sm:$0xff]  ;;  %v4422_v22 = vld [vmem:[#allocation4 + $0x1] sm:$0xff] }
 0x3d0   : > { %3738 = vst [vmem:[#allocation3 + $0x181] sm:$0xff] %v3721_v30  ;;  %v3722_v40 = vmin.f32 %v3706_v11, 6.0  ;;  %v4072_v62 = vadd.f32 %v4064_v18, %v4035_v38  ;;  %9489 = vmatprep.subr.bf16.mxu1 %v9712_v28  ;;  %v12039_v16 = vld [vmem:[%s14009_s26] ss:$0 sm:$0xff]  ;;  %v12047_v18 = vld [vmem:[#allocation3 + $0x198] sm:$0xff]  ;;  %s14039_s28 = sld [smem:[#allocation47_spill]] }
 0x3d1   : > { %3736 = vst [vmem:[#allocation3 + $0x169] sm:$0xff] %v3719_v51  ;;  %v3720_v2 = vmin.f32 %v3704_v8, 6.0  ;;  %v3889_v57 = vadd.f32 %v3881_v56, %v3852_v41  ;;  %v12045_v41 = vld [vmem:[%s14009_s26 + $0x1] ss:$0 sm:$0xff] }
 0x3d2   : > { %3739 = vst [vmem:[#allocation3 + $0x189] sm:$0xff] %v3722_v40  ;;  %v4109_v58 = vadd.f32 %v4101_v45, %v4072_v62 }
 0x3d3   : > { %3737 = vst [vmem:[#allocation3 + $0x171] sm:$0xff] %v3720_v2  ;;  %9490 = vmatpush3.bf16.msra.mxu1 %v9712_v28 }
 0x3d4   : > { %v4123_v32 = vmul.f32 %v11894_v46, %v4109_v58 }
 0x3d6   : > { %s14040_s3 = smov %s14039_s28 }
 0x3d9   : > { %v4015_v4 = vld [vmem:[#allocation3 + $0x180] ss:$2 sm:$0xff]  ;;  %v4052_v52 = vld [vmem:[#allocation3 + $0x181] ss:$2 sm:$0xff] }
 0x3da   : > { %v3904_v59 = vld [vmem:[#allocation3 + $0x168] ss:$2 sm:$0xff]  ;;  %v3941_v35 = vld [vmem:[#allocation3 + $0x169] ss:$2 sm:$0xff]  ;;  %v4028_v36 = vmul.f32 %v11869_v49, %v4015_v4 }
 0x3db   : > { %v3917_v13 = vmul.f32 %v11848_v15, %v3904_v59  ;;  %v3978_v1 = vld [vmem:[#allocation3 + $0x16a] ss:$2 sm:$0xff]  ;;  %v3954_v60 = vmul.f32 %v11854_v3, %v3941_v35  ;;  %v4065_v15 = vmul.f32 %v11877_v7, %v4052_v52  ;;  %v4406_v59 = vmul.f32 %v12047_v18, %v12039_v16 }
 0x3dc   : > { %v3991_v26 = vmul.f32 %v11864_v48, %v3978_v1  ;;  %v4089_v39 = vld [vmem:[#allocation3 + $0x182] ss:$2 sm:$0xff]  ;;  %v4137_v48 = vadd.f32 %v11905_v55, %v4123_v32  ;;  %v4435_v35 = vmul.f32 %v12045_v41, %v4422_v22  ;;  %v12064_v4 = vld [vmem:[%s14009_s26 + $0x4] ss:$0 sm:$0xff]  ;;  %v12073_v32 = vld [vmem:[%s14009_s26 + $0x5] ss:$0 sm:$0xff] }
 0x3dd   : > { %v3925_v5 = vadd.f32 %v3917_v13, %v3889_v57  ;;  %v4102_v27 = vmul.f32 %v11883_v9, %v4089_v39  ;;  %v9713_v9 = vld [vmem:[%s14006_s11 + $0x10] sm:$0xff]   ;;  %v4451_v57 = vld [vmem:[#allocation4 + $0x2] sm:$0xff] }
 0x3de   : > { %v4145_v33 = vmax.f32 %v4137_v48, 0.0  ;;  %9491 = vmatprep.subr.bf16.mxu1 %v9713_v9  ;;  %v12056_v13 = vld [vmem:[%s14009_s26 + $0x2] ss:$0 sm:$0xff]  ;;  %v4443_v1 = vadd.f32 %v4435_v35, %v4406_v59 }
 0x3df   : > { %v3962_v20 = vadd.f32 %v3954_v60, %v3925_v5  ;;  %9492 = vmatpush3.bf16.msra.mxu1 %v9713_v9  ;;  %v4464_v5 = vmul.f32 %v12056_v13, %v4451_v57  ;;  %v12061_v60 = vld [vmem:[%s14009_s26 + $0x3] ss:$0 sm:$0xff] }
 0x3e0   : > { %v4153_v21 = vmin.f32 %v4145_v33, 6.0 }
 0x3e1   : > { %v3999_v47 = vadd.f32 %v3991_v26, %v3962_v20  ;;  %v4472_v45 = vadd.f32 %v4464_v5, %v4443_v1  ;;  %v12109_v1 = vld [vmem:[#allocation9] ss:$0 sm:$0xff] }
 0x3e3   : > { %v4036_v63 = vadd.f32 %v4028_v36, %v3999_v47 }
 0x3e5   : > { %v4073_v3 = vadd.f32 %v4065_v15, %v4036_v63 }
 0x3e7   : > { %v4110_v53 = vadd.f32 %v4102_v27, %v4073_v3 }
 0x3e9   : > { %v4124_v42 = vmul.f32 %v11894_v46, %v4110_v53  ;;  %v9714_v46 = vld [vmem:[%s14006_s11 + $0x18] sm:$0xff]  }
 0x3ea   : > { %9493 = vmatprep.subr.bf16.mxu1 %v9714_v46 }
 0x3eb   : > { %v4138_v49 = vadd.f32 %v11905_v55, %v4124_v42  ;;  %v9715_v55 = vld [vmem:[%s14006_s11 + $0x20] sm:$0xff]   ;;  %9494 = vmatpush3.bf16.msra.mxu1 %v9714_v46 }
 0x3ec   : > { %9495 = vmatprep.subr.bf16.mxu1 %v9715_v55 }
 0x3ed   : > { %v4146_v54 = vmax.f32 %v4138_v49, 0.0 }
 0x3ef   : > { %v4154_v19 = vmin.f32 %v4146_v54, 6.0  ;;  %9496 = vmatpush3.bf16.msra.mxu1 %v9715_v55 }
 0x3f0   : > { %9497 = vmatprep.subr.bf16.mxu1 %v9716_v24 }
 0x3f1   : > { %v9220_v7 = vpack.c.bf16 %v4154_v19, %v4153_v21 }
 0x3f3   : > { %9484 = vmatmul.mubr.bf16.gmra.mrb[36].mxu0 %v9220_v7  ;;  %9498 = vmatpush3.bf16.msra.mxu1 %v9716_v24 }
 0x3f4   : > { %9499 = vmatprep.subr.bf16.mxu1 %v9717_v31 }
 0x3f7   : > { %9500 = vmatpush3.bf16.msra.mxu1 %v9717_v31 }
 0x3f8   : > { %9501 = vmatprep.subr.bf16.mxu1 %v9718_v44 }
 0x3fb   : > { %9502 = vmatpush3.bf16.msra.mxu1 %v9718_v44  ;;  %v12088_v44 = vld [vmem:[%s14009_s26 + $0x6] ss:$0 sm:$0xff] }
 0x47b   : > { %v9481_v30 = vpop.f32.mrb[32].mxu0 }
 0x47c   : > { %v4308_v11 = vmul.f32 %v9481_v30, %v12026_v25  ;;  %v4269_v37 = vpop.f32.mrb[33].mxu0 }
 0x47d   : > { %v4306_v51 = vmul.f32 %v12026_v25, %v4269_v37  ;;  %v9482_v8 = vpop.f32.mrb[34].mxu0 }
 0x47e   : > { %v4322_v61 = vadd.f32 %v12029_v34, %v4308_v11  ;;  %v4309_v40 = vmul.f32 %v9482_v8, %v12026_v25  ;;  %v4272_v0 = vpop.f32.mrb[35].mxu0 }
 0x47f   : > { %v4320_v6 = vadd.f32 %v12029_v34, %v4306_v51  ;;  %v4307_v2 = vmul.f32 %v12026_v25, %v4272_v0 }
 0x480   : > { %v4330_v29 = vmax.f32 %v4322_v61, 0.0  ;;  %v4323_v17 = vadd.f32 %v12029_v34, %v4309_v40  ;;  %v12095_v40 = vld [vmem:[%s14009_s26 + $0x7] ss:$0 sm:$0xff] }
 0x481   : > { %v4328_v12 = vmax.f32 %v4320_v6, 0.0  ;;  %v4321_v23 = vadd.f32 %v12029_v34, %v4307_v2 }
 0x482   : > { %v12042_v10 = vmin.f32 %v4330_v29, 6.0  ;;  %v4331_v50 = vmax.f32 %v4323_v17, 0.0 }
 0x483   : > { %v4336_v38 = vmin.f32 %v4328_v12, 6.0  ;;  %v4329_v56 = vmax.f32 %v4321_v23, 0.0 }
 0x484   : > { %4347 = vst [vmem:[#allocation4 + $0x31] sm:$0xff] %v12042_v10  ;;  %v12053_v14 = vmin.f32 %v4331_v50, 6.0  ;;  %v4438_v36 = vmul.f32 %v12045_v41, %v12042_v10  ;;  %v12103_v50 = vld [vmem:[%s14009_s26 + $0x8] ss:$0 sm:$0xff] }
 0x485   : > { %4345 = vst [vmem:[#allocation4 + $0x11] sm:$0xff] %v4336_v38  ;;  %v4337_v62 = vmin.f32 %v4329_v56, 6.0  ;;  %v4436_v63 = vmul.f32 %v12045_v41, %v4336_v38  ;;  %v4522_v53 = vmul.f32 %v12064_v4, %v4336_v38  ;;  %v4524_v56 = vmul.f32 %v12064_v4, %v12042_v10 }
 0x486   : > { %4348 = vst [vmem:[#allocation4 + $0x41] sm:$0xff] %v12053_v14  ;;  %v4525_v37 = vmul.f32 %v12064_v4, %v12053_v14 }
 0x487   : > { %4346 = vst [vmem:[#allocation4 + $0x21] sm:$0xff] %v4337_v62  ;;  %v4437_v43 = vmul.f32 %v12045_v41, %v4337_v62  ;;  %v4523_v31 = vmul.f32 %v12064_v4, %v4337_v62  ;;  %v4610_v6 = vmul.f32 %v12095_v40, %v4337_v62 }
 0x48b   : > { %v4569_v20 = vld [vmem:[#allocation4 + $0x30] sm:$0xff] }
 0x48c   : > { %v4394_v26 = vld [vmem:[#allocation4 + $0x10] sm:$0xff]  ;;  %v4409_v47 = vmul.f32 %v12039_v16, %v4569_v20  ;;  %v4495_v29 = vmul.f32 %v12061_v60, %v4569_v20  ;;  %v4582_v35 = vmul.f32 %v12088_v44, %v4569_v20 }
 0x48d   : > { %v4452_v58 = vld [vmem:[#allocation4 + $0x12] sm:$0xff]  ;;  %v4407_v39 = vmul.f32 %v12039_v16, %v4394_v26  ;;  %v4493_v15 = vmul.f32 %v12061_v60, %v4394_v26  ;;  %v12075_v3 = vld [vmem:[#allocation4 + $0x40] sm:$0xff] }
 0x48e   : > { %v4627_v52 = vld [vmem:[#allocation4 + $0x32] sm:$0xff]  ;;  %v4481_v27 = vld [vmem:[#allocation4 + $0x20] sm:$0xff]  ;;  %v4446_v48 = vadd.f32 %v4438_v36, %v4409_v47  ;;  %v4465_v49 = vmul.f32 %v12056_v13, %v4452_v58  ;;  %v4551_v19 = vmul.f32 %v12073_v32, %v4452_v58  ;;  %v4496_v28 = vmul.f32 %v12061_v60, %v12075_v3 }
 0x48f   : > { %v4444_v42 = vadd.f32 %v4436_v63, %v4407_v39  ;;  %v4501_v33 = vadd.f32 %v4493_v15, %v4472_v45  ;;  %v4539_v54 = vld [vmem:[#allocation4 + $0x22] sm:$0xff]  ;;  %v4467_v21 = vmul.f32 %v12056_v13, %v4627_v52  ;;  %v4408_v7 = vmul.f32 %v12039_v16, %v4481_v27 }
 0x490   : > { %v4494_v46 = vmul.f32 %v12061_v60, %v4481_v27  ;;  %v4466_v11 = vmul.f32 %v12056_v13, %v4539_v54  ;;  %v4581_v61 = vmul.f32 %v12088_v44, %v4481_v27  ;;  %v4552_v22 = vmul.f32 %v12073_v32, %v4539_v54  ;;  %v12114_v36 = vld [vmem:[#allocation12] ss:$0 sm:$0xff] }
 0x491   : > { %v4473_v9 = vadd.f32 %v4465_v49, %v4444_v42  ;;  %v4530_v55 = vadd.f32 %v4522_v53, %v4501_v33  ;;  %v4475_v24 = vadd.f32 %v4467_v21, %v4446_v48  ;;  %v4445_v30 = vadd.f32 %v4437_v43, %v4408_v7 }
 0x492   : > { %v4639_v62 = vmul.f32 %v12103_v50, %v4539_v54  ;;  %v4553_v45 = vmul.f32 %v12073_v32, %v4627_v52  ;;  %v4611_v58 = vmul.f32 %v12095_v40, %v12042_v10  ;;  %v4583_v63 = vmul.f32 %v12088_v44, %v12075_v3 }
 0x493   : > { %v4502_v51 = vadd.f32 %v4494_v46, %v4473_v9  ;;  %v4559_v8 = vadd.f32 %v4551_v19, %v4530_v55  ;;  %v4504_v0 = vadd.f32 %v4496_v28, %v4475_v24  ;;  %v4474_v2 = vadd.f32 %v4466_v11, %v4445_v30 }
 0x494   : > { %v4640_v15 = vmul.f32 %v12103_v50, %v4627_v52  ;;  %v4612_v48 = vmul.f32 %v12095_v40, %v12053_v14  ;;  %v4541_v52 = vld [vmem:[#allocation4 + $0x42] sm:$0xff] }
 0x495   : > { %v4531_v17 = vadd.f32 %v4523_v31, %v4502_v51  ;;  %v4589_v12 = vadd.f32 %v4581_v61, %v4559_v8  ;;  %v12100_v23 = vadd.f32 %v4525_v37, %v4504_v0  ;;  %v4503_v38 = vadd.f32 %v4495_v29, %v4474_v2 }
 0x496   : > { %v4641_v30 = vmul.f32 %v12103_v50, %v4541_v52 }
 0x497   : > { %v4560_v59 = vadd.f32 %v4552_v22, %v4531_v17  ;;  %v4618_v57 = vadd.f32 %v4610_v6, %v4589_v12  ;;  %v4532_v5 = vadd.f32 %v4524_v56, %v4503_v38 }
 0x499   : > { %v4590_v26 = vadd.f32 %v4582_v35, %v4560_v59  ;;  %v4647_v47 = vadd.f32 %v4639_v62, %v4618_v57  ;;  %v4561_v39 = vadd.f32 %v4553_v45, %v4532_v5  ;;  %v4410_v35 = vmul.f32 %v12039_v16, %v12075_v3  ;;  %v4604_v45 = vld [vmem:[#allocation4 + $0x91] sm:$0xff] }
 0x49a   : > { %v4439_v62 = vmul.f32 %v12045_v41, %v12053_v14  ;;  %v4468_v3 = vmul.f32 %v12056_v13, %v4541_v52 }
 0x49b   : > { %v4619_v20 = vadd.f32 %v4611_v58, %v4590_v26  ;;  %v4661_v27 = vmul.f32 %v12109_v1, %v4647_v47  ;;  %v4591_v53 = vadd.f32 %v4583_v63, %v4561_v39  ;;  %v4554_v26 = vmul.f32 %v12073_v32, %v4541_v52 }
 0x49c   : > { %v4447_v5 = vadd.f32 %v4439_v62, %v4410_v35  ;;  %v12152_v58 = vmul.f32 %v12047_v18, %v12088_v44 }
 0x49d   : > { %v4648_v42 = vadd.f32 %v4640_v15, %v4619_v20  ;;  %v4675_v49 = vadd.f32 %v12114_v36, %v4661_v27  ;;  %v4620_v10 = vadd.f32 %v4612_v48, %v4591_v53  ;;  %v4562_v47 = vadd.f32 %v4554_v26, %v12100_v23 }
 0x49e   : > { %v4476_v39 = vadd.f32 %v4468_v3, %v4447_v5  ;;  %v12157_v20 = vmul.f32 %v12095_v40, %v4604_v45 }
 0x49f   : > { %v4662_v33 = vmul.f32 %v12109_v1, %v4648_v42  ;;  %v4683_v21 = vmax.f32 %v4675_v49, 0.0  ;;  %v4649_v0 = vadd.f32 %v4641_v30, %v4620_v10 }
 0x4a1   : > { %v4676_v54 = vadd.f32 %v12114_v36, %v4662_v33  ;;  %v4691_v7 = vmin.f32 %v4683_v21, 6.0  ;;  %v4663_v59 = vmul.f32 %v12109_v1, %v4649_v0 }
 0x4a3   : > { %v4684_v19 = vmax.f32 %v4676_v54, 0.0 }
 0x4a5   : > { %v4692_v43 = vmin.f32 %v4684_v19, 6.0 }
 0x4a7   : > { %v9221_v28 = vpack.c.bf16 %v4692_v43, %v4691_v7 }
 0x4a9   : > { %9503 = vmatprep.mubr.bf16.mxu1 %v9221_v28 }
 0x4c6   : > { %v9485_v9 = vpop.f32.mrb[36].mxu0 }
 0x4c7   : > { %v4312_v46 = vmul.f32 %v9485_v9, %v12026_v25  ;;  %v4285_v55 = vpop.f32.mrb[37].mxu0 }
 0x4c8   : > { %v4310_v24 = vmul.f32 %v12026_v25, %v4285_v55  ;;  %v9486_v31 = vpop.f32.mrb[38].mxu0 }
 0x4c9   : > { %v4326_v11 = vadd.f32 %v12029_v34, %v4312_v46  ;;  %v4313_v37 = vmul.f32 %v9486_v31, %v12026_v25  ;;  %v4288_v51 = vpop.f32.mrb[39].mxu0 }
 0x4ca   : > { %v4324_v8 = vadd.f32 %v12029_v34, %v4310_v24  ;;  %v4311_v61 = vmul.f32 %v12026_v25, %v4288_v51 }
 0x4cb   : > { %v4334_v6 = vmax.f32 %v4326_v11, 0.0  ;;  %v4327_v2 = vadd.f32 %v12029_v34, %v4313_v37 }
 0x4cc   : > { %v4332_v29 = vmax.f32 %v4324_v8, 0.0  ;;  %v4325_v17 = vadd.f32 %v12029_v34, %v4311_v61  ;;  %v12146_v34 = vadd.f32 %v12114_v36, %v4663_v59 }
 0x4cd   : > { %v12134_v22 = vmin.f32 %v4334_v6, 6.0  ;;  %v4335_v12 = vmax.f32 %v4327_v2, 0.0 }
 0x4ce   : > { %v4340_v38 = vmin.f32 %v4332_v29, 6.0  ;;  %v4333_v56 = vmax.f32 %v4325_v17, 0.0  ;;  %v4685_v14 = vmax.f32 %v12146_v34, 0.0 }
 0x4cf   : > { %4351 = vst [vmem:[#allocation4 + $0x71] sm:$0xff] %v12134_v22  ;;  %v12140_v25 = vmin.f32 %v4335_v12, 6.0  ;;  %v4442_v18 = vmul.f32 %v12045_v41, %v12134_v22  ;;  %v4528_v23 = vmul.f32 %v12064_v4, %v12134_v22 }
 0x4d0   : > { %4349 = vst [vmem:[#allocation4 + $0x51] sm:$0xff] %v4340_v38  ;;  %v4341_v57 = vmin.f32 %v4333_v56, 6.0  ;;  %v4613_v27 = vmul.f32 %v12095_v40, %v4340_v38  ;;  %v4440_v33 = vmul.f32 %v12045_v41, %v4340_v38  ;;  %v4526_v54 = vmul.f32 %v12064_v4, %v4340_v38 }
 0x4d1   : > { %4352 = vst [vmem:[#allocation4 + $0x81] sm:$0xff] %v12140_v25  ;;  %v4529_v28 = vmul.f32 %v12064_v4, %v12140_v25 }
 0x4d2   : > { %4350 = vst [vmem:[#allocation4 + $0x61] sm:$0xff] %v4341_v57  ;;  %v4441_v7 = vmul.f32 %v12045_v41, %v4341_v57  ;;  %v4527_v56 = vmul.f32 %v12064_v4, %v4341_v57 }
 0x4d6   : > { %v4573_v63 = vld [vmem:[#allocation4 + $0x70] sm:$0xff] }
 0x4d7   : > { %v4571_v15 = vld [vmem:[#allocation4 + $0x50] sm:$0xff]  ;;  %v4413_v42 = vmul.f32 %v12039_v16, %v4573_v63  ;;  %v4499_v59 = vmul.f32 %v12061_v60, %v4573_v63 }
 0x4d8   : > { %v4629_v53 = vld [vmem:[#allocation4 + $0x52] sm:$0xff]  ;;  %v4584_v49 = vmul.f32 %v12088_v44, %v4571_v15  ;;  %v4411_v10 = vmul.f32 %v12039_v16, %v4571_v15  ;;  %v4497_v19 = vmul.f32 %v12061_v60, %v4571_v15  ;;  %v4487_v31 = vld [vmem:[#allocation4 + $0x80] sm:$0xff] }
 0x4d9   : > { %v12160_v48 = vld [vmem:[#allocation4 + $0x72] sm:$0xff]  ;;  %v4485_v21 = vld [vmem:[#allocation4 + $0x60] sm:$0xff]  ;;  %v4450_v43 = vadd.f32 %v4442_v18, %v4413_v42  ;;  %v4469_v46 = vmul.f32 %v12056_v13, %v4629_v53  ;;  %v4642_v30 = vmul.f32 %v12103_v50, %v4629_v53  ;;  %v4555_v37 = vmul.f32 %v12073_v32, %v4629_v53 }
 0x4da   : > { %v4592_v52 = vadd.f32 %v4584_v49, %v4562_v47  ;;  %v4448_v9 = vadd.f32 %v4440_v33, %v4411_v10  ;;  %v4543_v55 = vld [vmem:[#allocation4 + $0x62] sm:$0xff]  ;;  %v4471_v24 = vmul.f32 %v12056_v13, %v12160_v48  ;;  %v4505_v11 = vadd.f32 %v4497_v19, %v4476_v39  ;;  %v4633_v53 = vld [vmem:[#allocation4 + $0x92] sm:$0xff] }
 0x4db   : > { %v4412_v41 = vmul.f32 %v12039_v16, %v4485_v21  ;;  %v4498_v61 = vmul.f32 %v12061_v60, %v4485_v21  ;;  %v4470_v29 = vmul.f32 %v12056_v13, %v4543_v55  ;;  %v4500_v17 = vmul.f32 %v12061_v60, %v4487_v31  ;;  %v4545_v35 = vld [vmem:[#allocation4 + $0x82] sm:$0xff] }
 0x4dc   : > { %v4621_v51 = vadd.f32 %v4613_v27, %v4592_v52  ;;  %v4477_v8 = vadd.f32 %v4469_v46, %v4448_v9  ;;  %v4479_v0 = vadd.f32 %v4471_v24, %v4450_v43  ;;  %v4534_v6 = vadd.f32 %v4526_v54, %v4505_v11 }
 0x4dd   : > { %v4449_v2 = vadd.f32 %v4441_v7, %v4412_v41  ;;  %v4585_v16 = vmul.f32 %v12088_v44, %v4485_v21  ;;  %v4556_v47 = vmul.f32 %v12073_v32, %v4543_v55  ;;  %v4614_v13 = vmul.f32 %v12095_v40, %v4341_v57 }
 0x4de   : > { %v4650_v12 = vadd.f32 %v4642_v30, %v4621_v51  ;;  %v4506_v38 = vadd.f32 %v4498_v61, %v4477_v8  ;;  %v4563_v62 = vadd.f32 %v4555_v37, %v4534_v6  ;;  %v4508_v45 = vadd.f32 %v4500_v17, %v4479_v0 }
 0x4df   : > { %v4478_v5 = vadd.f32 %v4470_v29, %v4449_v2  ;;  %v4558_v4 = vmul.f32 %v12073_v32, %v4545_v35  ;;  %v4586_v18 = vmul.f32 %v12088_v44, %v4573_v63  ;;  %v4643_v49 = vmul.f32 %v12103_v50, %v4543_v55 }
 0x4e0   : > { %v4664_v26 = vmul.f32 %v12109_v1, %v4650_v12  ;;  %v4535_v3 = vadd.f32 %v4527_v56, %v4506_v38  ;;  %v4593_v39 = vadd.f32 %v4585_v16, %v4563_v62  ;;  %v4537_v27 = vadd.f32 %v4529_v28, %v4508_v45  ;;  %v12233_v62 = vld [vmem:[%s14010_s10 + $0x24] ss:$8 sps:$4 sm:$0xff]   ;;  %v12236_v16 = vld [vmem:[%s14010_s10 + $0x20] ss:$8 sps:$4 sm:$0xff]   ;;  %v12246_v45 = vld [vmem:[%s14010_s10 + $0x30] ss:$8 sps:$4 sm:$0xff]  }
 0x4e1   : > { %v4507_v15 = vadd.f32 %v4499_v59, %v4478_v5  ;;  %v4557_v54 = vmul.f32 %v12073_v32, %v12160_v48  ;;  %v4615_v7 = vmul.f32 %v12095_v40, %v12134_v22  ;;  %v4646_v43 = vmul.f32 %v12103_v50, %v4633_v53  ;;  %v12219_v59 = vld [vmem:[%s14010_s10] ss:$8 sps:$4 sm:$0xff]   ;;  %v12240_v5 = vld [vmem:[%s14010_s10 + $0x34] ss:$8 sps:$4 sm:$0xff]   ;;  %v12288_v53 = vld [vmem:[%s14010_s10 + $0x70] ss:$8 sps:$4 sm:$0xff]  }
 0x4e2   : > { %v4678_v60 = vadd.f32 %v12114_v36, %v4664_v26  ;;  %v4564_v42 = vadd.f32 %v4556_v47, %v4535_v3  ;;  %v4622_v10 = vadd.f32 %v4614_v13, %v4593_v39  ;;  %v4566_v21 = vadd.f32 %v4558_v4, %v4537_v27  ;;  %v12251_v26 = vld [vmem:[%s14010_s10 + $0x44] ss:$8 sps:$4 sm:$0xff]   ;;  %v12258_v47 = vld [vmem:[%s14010_s10 + $0x40] ss:$8 sps:$4 sm:$0xff]   ;;  %v12263_v13 = vld [vmem:[%s14010_s10 + $0x54] ss:$8 sps:$4 sm:$0xff]  }
 0x4e3   : > { %v4536_v33 = vadd.f32 %v4528_v23, %v4507_v15  ;;  %v4587_v9 = vmul.f32 %v12088_v44, %v4487_v31  ;;  %v4693_v23 = vmin.f32 %v4685_v14, 6.0  ;;  %v4644_v32 = vmul.f32 %v12103_v50, %v12160_v48  ;;  %v12268_v39 = vld [vmem:[%s14010_s10 + $0x50] ss:$8 sps:$4 sm:$0xff]   ;;  %v12273_v15 = vld [vmem:[%s14010_s10 + $0x64] ss:$8 sps:$4 sm:$0xff]  }
 0x4e4   : > { %v4686_v57 = vmax.f32 %v4678_v60, 0.0  ;;  %v4594_v19 = vadd.f32 %v4586_v18, %v4564_v42  ;;  %v4651_v28 = vadd.f32 %v4643_v49, %v4622_v10  ;;  %v4596_v63 = vadd.f32 %v12152_v58, %v4566_v21  ;;  %v12278_v27 = vld [vmem:[%s14010_s10 + $0x60] ss:$8 sps:$4 sm:$0xff]   ;;  %v12283_v4 = vld [vmem:[%s14010_s10 + $0x74] ss:$8 sps:$4 sm:$0xff]  }
 0x4e5   : > { %v4565_v52 = vadd.f32 %v4557_v54, %v4536_v33  ;;  %v4616_v22 = vmul.f32 %v12095_v40, %v12140_v25  ;;  %v4645_v34 = vmul.f32 %v12103_v50, %v4545_v35  ;;  %v12227_v35 = vld [vmem:[%s14010_s10 + $0x10] ss:$8 sps:$4 sm:$0xff]   ;;  %v10249_v3 = vmov 0   ;;  %v9048_v60 = vld [vmem:[#allocation14] ss:$0 sm:$0xff] }
 0x4e6   : > { %v4694_v46 = vmin.f32 %v4686_v57, 6.0  ;;  %v4623_v55 = vadd.f32 %v4615_v7, %v4594_v19  ;;  %v4665_v24 = vmul.f32 %v12109_v1, %v4651_v28  ;;  %v4625_v11 = vadd.f32 %v12157_v20, %v4596_v63  ;;  %5260 = vmatprep.mubr.bf16.mxu0 %v10249_v3  ;;  %v9049_v42 = vld [vmem:[#allocation15] ss:$0 sm:$0xff] }
 0x4e7   : > { %v4595_v30 = vadd.f32 %v4587_v9, %v4565_v52  ;;  %v4929_v28 = vld [vmem:[#allocation5] ss:$2 sm:$0xf] }
 0x4e8   : > { %v9222_v37 = vpack.c.bf16 %v4694_v46, %v4693_v23  ;;  %v4652_v44 = vadd.f32 %v4644_v32, %v4623_v55  ;;  %v4679_v58 = vadd.f32 %v12114_v36, %v4665_v24  ;;  %v4654_v14 = vadd.f32 %v4646_v43, %v4625_v11  ;;  %v12296_v52 = vld [vmem:[%s14011_s23] ss:$0 sm:$0xff]  ;;  %v4950_v23 = vld [vmem:[#allocation5 + $0x1] ss:$2 sm:$0xf] }
 0x4e9   : > { %v4624_v31 = vadd.f32 %v4616_v22, %v4595_v30  ;;  %v12299_v46 = vld [vmem:[%s14011_s23 + $0x1] ss:$0 sm:$0xff] }
 0x4ea   : > { %9504 = vmatmul.mubr.bf16.vlgmr.msra.gmra.mrb[32].mxu1 %v9222_v37  ;;  %v4666_v41 = vmul.f32 %v12109_v1, %v4652_v44  ;;  %v4668_v51 = vmul.f32 %v12109_v1, %v4654_v14  ;;  %v4687_v40 = vmax.f32 %v4679_v58, 0.0  ;;  %v4941_v37 = vmul.f32 %v12296_v52, %v4929_v28 }
 0x4eb   : > { %v4653_v48 = vadd.f32 %v4645_v34, %v4624_v31  ;;  %v4962_v44 = vmul.f32 %v12299_v46, %v4950_v23  ;;  %v4971_v31 = vld [vmem:[#allocation5 + $0x2] ss:$2 sm:$0xf] }
 0x4ec   : > { %v4680_v8 = vadd.f32 %v12114_v36, %v4666_v41  ;;  %v4682_v20 = vadd.f32 %v12114_v36, %v4668_v51  ;;  %v4695_v6 = vmin.f32 %v4687_v40, 6.0  ;;  %v12304_v34 = vld [vmem:[%s14011_s23 + $0x2] ss:$0 sm:$0xff] }
 0x4ed   : > { %v4667_v25 = vmul.f32 %v12109_v1, %v4653_v48  ;;  %v9719_v1 = vld [vmem:[%s14010_s10 + $0x4] ss:$8 sps:$4 sm:$0xff]   ;;  %v4966_v41 = vadd.f32 %v4962_v44, %v4941_v37  ;;  %v4983_v48 = vmul.f32 %v12304_v34, %v4971_v31  ;;  %v12326_v37 = vld [vmem:[%s14011_s23 + $0x8] ss:$0 sm:$0xff] }
 0x4ee   : > { %v4688_v61 = vmax.f32 %v4680_v8, 0.0  ;;  %v4690_v50 = vmax.f32 %v4682_v20, 0.0  ;;  %5228 = vmatprep.subr.bf16.mxu0 %v9719_v1  ;;  %5308 = vmatprep.subr.bf16.mxu1 %v9719_v1 }
 0x4ef   : > { %v4681_v0 = vadd.f32 %v12114_v36, %v4667_v25  ;;  %5229 = vmatpush1.bf16.msra.mxu0 %v12219_v59  ;;  %5309 = vmatpush1.bf16.msra.mxu1 %v12219_v59  ;;  %v12224_v36 = vld [vmem:[%s14010_s10 + $0x14] ss:$8 sps:$4 sm:$0xff]  }
 0x4f0   : > { %v4696_v2 = vmin.f32 %v4688_v61, 6.0  ;;  %v4698_v38 = vmin.f32 %v4690_v50, 6.0  ;;  %5230 = vmatprep.subr.bf16.mxu0 %v12224_v36  ;;  %5310 = vmatprep.subr.bf16.mxu1 %v12224_v36  ;;  %v12308_v61 = vld [vmem:[%s14011_s23 + $0x3] ss:$0 sm:$0xff] }
 0x4f1   : > { %v4689_v29 = vmax.f32 %v4681_v0, 0.0 }
 0x4f2   : > { %v9223_v17 = vpack.c.bf16 %v4696_v2, %v4695_v6  ;;  %v4987_v2 = vadd.f32 %v4983_v48, %v4966_v41 }
 0x4f3   : > { %v4697_v12 = vmin.f32 %v4689_v29, 6.0  ;;  %5231 = vmatpush1.bf16.msra.mxu0 %v12227_v35  ;;  %5311 = vmatpush1.bf16.msra.mxu1 %v12227_v35  ;;  %v12311_v29 = vld [vmem:[%s14011_s23 + $0x4] ss:$0 sm:$0xff] }
 0x4f4   : > { %9507 = vmatprep.mubr.bf16.mxu1 %v9223_v17  ;;  %5232 = vmatprep.subr.bf16.mxu0 %v12233_v62 }
 0x4f5   : > { %v9224_v56 = vpack.c.bf16 %v4698_v38, %v4697_v12  ;;  %5312 = vmatprep.subr.bf16.mxu1 %v12233_v62 }
 0x4f7   : > { %9508 = vmatmul.mubr.bf16.gmra.mrb[36].mxu1 %v9224_v56  ;;  %5233 = vmatpush1.bf16.msra.mxu0 %v12236_v16 }
 0x4f8   : > { %5313 = vmatpush1.bf16.msra.mxu1 %v12236_v16  ;;  %5234 = vmatprep.subr.bf16.mxu0 %v12240_v5 }
 0x4f9   : > { %5314 = vmatprep.subr.bf16.mxu1 %v12240_v5  ;;  %5340 = vmatprep.mubr.bf16.mxu1 %v10249_v3 }
 0x4fb   : > { %5235 = vmatpush1.bf16.msra.mxu0 %v12246_v45 }
 0x4fc   : > { %5315 = vmatpush1.bf16.msra.mxu1 %v12246_v45  ;;  %5236 = vmatprep.subr.bf16.mxu0 %v12251_v26 }
 0x4fd   : > { %5316 = vmatprep.subr.bf16.mxu1 %v12251_v26 }
 0x4ff   : > { %5237 = vmatpush1.bf16.msra.mxu0 %v12258_v47 }
 0x500   : > { %5317 = vmatpush1.bf16.msra.mxu1 %v12258_v47  ;;  %5238 = vmatprep.subr.bf16.mxu0 %v12263_v13 }
 0x501   : > { %5318 = vmatprep.subr.bf16.mxu1 %v12263_v13 }
 0x503   : > { %5239 = vmatpush1.bf16.msra.mxu0 %v12268_v39 }
 0x504   : > { %5319 = vmatpush1.bf16.msra.mxu1 %v12268_v39  ;;  %5240 = vmatprep.subr.bf16.mxu0 %v12273_v15 }
 0x505   : > { %5320 = vmatprep.subr.bf16.mxu1 %v12273_v15 }
 0x507   : > { %5241 = vmatpush1.bf16.msra.mxu0 %v12278_v27 }
 0x508   : > { %5321 = vmatpush1.bf16.msra.mxu1 %v12278_v27  ;;  %5242 = vmatprep.subr.bf16.mxu0 %v12283_v4 }
 0x509   : > { %5322 = vmatprep.subr.bf16.mxu1 %v12283_v4 }
 0x50b   : > { %5243 = vmatpush1.bf16.msra.mxu0 %v12288_v53 }
 0x50c   : > { %5323 = vmatpush1.bf16.msra.mxu1 %v12288_v53  ;;  %5366 = vmatprep.subr.bf16.mxu0 %v9719_v1 }
 0x50d   : > { %5424 = vmatprep.subr.bf16.mxu1 %v9719_v1 }
 0x5bd   : > { %v9505_v18 = vpop.f32.mrb[32].mxu1 }
 0x5be   : > { %v4852_v49 = vmul.f32 %v9505_v18, %v9048_v60  ;;  %v4813_v10 = vpop.f32.mrb[33].mxu1 }
 0x5bf   : > { %v4850_v33 = vmul.f32 %v9048_v60, %v4813_v10  ;;  %v9506_v54 = vpop.f32.mrb[34].mxu1  ;;  %v12315_v10 = vld [vmem:[%s14011_s23 + $0x5] ss:$0 sm:$0xff] }
 0x5c0   : > { %v4866_v21 = vadd.f32 %v9049_v42, %v4852_v49  ;;  %v4853_v57 = vmul.f32 %v9506_v54, %v9048_v60  ;;  %v4816_v19 = vpop.f32.mrb[35].mxu1 }
 0x5c1   : > { %v4864_v7 = vadd.f32 %v9049_v42, %v4850_v33  ;;  %v4851_v43 = vmul.f32 %v9048_v60, %v4816_v19 }
 0x5c2   : > { %v4874_v9 = vmax.f32 %v4866_v21, 0.0  ;;  %v4867_v63 = vadd.f32 %v9049_v42, %v4853_v57  ;;  %v12318_v57 = vld [vmem:[%s14011_s23 + $0x6] ss:$0 sm:$0xff] }
 0x5c3   : > { %v4872_v55 = vmax.f32 %v4864_v7, 0.0  ;;  %v4865_v32 = vadd.f32 %v9049_v42, %v4851_v43 }
 0x5c4   : > { %v4882_v24 = vmin.f32 %v4874_v9, 6.0  ;;  %v4875_v30 = vmax.f32 %v4867_v63, 0.0 }
 0x5c5   : > { %v4880_v22 = vmin.f32 %v4872_v55, 6.0  ;;  %v4873_v11 = vmax.f32 %v4865_v32, 0.0 }
 0x5c6   : > { %4891 = vst [vmem:[#allocation5 + $0x31] sm:$0xff] %v4882_v24  ;;  %v4883_v58 = vmin.f32 %v4875_v30, 6.0  ;;  %v12323_v30 = vld [vmem:[%s14011_s23 + $0x7] ss:$0 sm:$0xff] }
 0x5c7   : > { %4889 = vst [vmem:[#allocation5 + $0x11] sm:$0xff] %v4880_v22  ;;  %v4881_v14 = vmin.f32 %v4873_v11, 6.0 }
 0x5c8   : > { %4892 = vst [vmem:[#allocation5 + $0x41] sm:$0xff] %v4883_v58 }
 0x5c9   : > { %4890 = vst [vmem:[#allocation5 + $0x21] sm:$0xff] %v4881_v14 }
 0x5ca   : > { %v9509_v51 = vpop.f32.mrb[36].mxu1 }
 0x5cb   : > { %v4856_v8 = vmul.f32 %v9509_v51, %v9048_v60  ;;  %v4829_v40 = vpop.f32.mrb[37].mxu1 }
 0x5cc   : > { %v4854_v25 = vmul.f32 %v9048_v60, %v4829_v40  ;;  %v9510_v20 = vpop.f32.mrb[38].mxu1 }
 0x5cd   : > { %v4870_v0 = vadd.f32 %v9049_v42, %v4856_v8  ;;  %v4857_v50 = vmul.f32 %v9510_v20, %v9048_v60  ;;  %v4832_v6 = vpop.f32.mrb[39].mxu1  ;;  %v4993_v22 = vld [vmem:[#allocation5 + $0x30] ss:$2 sm:$0xf] }
 0x5ce   : > { %v4868_v17 = vadd.f32 %v9049_v42, %v4854_v25  ;;  %v4855_v12 = vmul.f32 %v9048_v60, %v4832_v6  ;;  %v4991_v38 = vld [vmem:[#allocation5 + $0x10] ss:$2 sm:$0xf]  ;;  %v5012_v56 = vld [vmem:[#allocation5 + $0x11] ss:$2 sm:$0xf]  ;;  %v5004_v6 = vmul.f32 %v12308_v61, %v4993_v22 }
 0x5cf   : > { %v4878_v1 = vmax.f32 %v4870_v0, 0.0  ;;  %v4871_v18 = vadd.f32 %v9049_v42, %v4857_v50  ;;  %v5003_v49 = vmul.f32 %v12308_v61, %v4991_v38  ;;  %v5033_v21 = vld [vmem:[#allocation5 + $0x12] ss:$2 sm:$0xf]  ;;  %v5024_v60 = vmul.f32 %v12311_v29, %v5012_v56 }
 0x5d0   : > { %v4876_v33 = vmax.f32 %v4868_v17, 0.0  ;;  %v4869_v54 = vadd.f32 %v9049_v42, %v4855_v12  ;;  %v5054_v28 = vld [vmem:[#allocation5 + $0x20] ss:$2 sm:$0xf]  ;;  %v5045_v24 = vmul.f32 %v12315_v10, %v5033_v21 }
 0x5d1   : > { %v4886_v19 = vmin.f32 %v4878_v1, 6.0  ;;  %v4879_v7 = vmax.f32 %v4871_v18, 0.0  ;;  %v5007_v43 = vadd.f32 %v5003_v49, %v4987_v2  ;;  %v5075_v23 = vld [vmem:[#allocation5 + $0x21] ss:$2 sm:$0xf]  ;;  %v5066_v14 = vmul.f32 %v12318_v57, %v5054_v28 }
 0x5d2   : > { %v4884_v9 = vmin.f32 %v4876_v33, 6.0  ;;  %v4877_v63 = vmax.f32 %v4869_v54, 0.0  ;;  %v4931_v42 = vld [vmem:[#allocation5 + $0x20] ss:$2 sm:$0xf]  ;;  %v5087_v40 = vmul.f32 %v12323_v30, %v5075_v23 }
 0x5d3   : > { %4895 = vst [vmem:[#allocation5 + $0x71] sm:$0xff] %v4886_v19  ;;  %v4887_v55 = vmin.f32 %v4879_v7, 6.0  ;;  %v5028_v32 = vadd.f32 %v5024_v60, %v5007_v43  ;;  %v4942_v44 = vmul.f32 %v12296_v52, %v4931_v42  ;;  %v4952_v58 = vld [vmem:[#allocation5 + $0x21] ss:$2 sm:$0xf] }
 0x5d4   : > { %4893 = vst [vmem:[#allocation5 + $0x51] sm:$0xff] %v4884_v9  ;;  %v4885_v11 = vmin.f32 %v4877_v63, 6.0  ;;  %v5096_v41 = vld [vmem:[#allocation5 + $0x22] ss:$2 sm:$0xf]  ;;  %v4963_v48 = vmul.f32 %v12299_v46, %v4952_v58 }
 0x5d5   : > { %4896 = vst [vmem:[#allocation5 + $0x81] sm:$0xff] %v4887_v55  ;;  %v5049_v31 = vadd.f32 %v5045_v24, %v5028_v32  ;;  %v4973_v51 = vld [vmem:[#allocation5 + $0x22] ss:$2 sm:$0xf]  ;;  %v5108_v50 = vmul.f32 %v12326_v37, %v5096_v41  ;;  %v12341_v9 = vld [vmem:[#allocation18] ss:$0 sm:$0xff] }
 0x5d6   : > { %4894 = vst [vmem:[#allocation5 + $0x61] sm:$0xff] %v4885_v11  ;;  %v4967_v25 = vadd.f32 %v4963_v48, %v4942_v44  ;;  %v4984_v20 = vmul.f32 %v12304_v34, %v4973_v51  ;;  %v5014_v0 = vld [vmem:[#allocation5 + $0x31] ss:$2 sm:$0xf]  ;;  %v12337_v49 = vld [vmem:[#allocation17] ss:$0 sm:$0xff] }
 0x5d7   : > { %v5070_v8 = vadd.f32 %v5066_v14, %v5049_v31  ;;  %v4933_v2 = vld [vmem:[#allocation5 + $0x40] ss:$2 sm:$0xf]  ;;  %v4954_v17 = vld [vmem:[#allocation5 + $0x41] ss:$2 sm:$0xf]  ;;  %v5025_v33 = vmul.f32 %v12311_v29, %v5014_v0 }
 0x5d8   : > { %v4988_v38 = vadd.f32 %v4984_v20, %v4967_v25  ;;  %v4943_v56 = vmul.f32 %v12296_v52, %v4933_v2  ;;  %v4964_v1 = vmul.f32 %v12299_v46, %v4954_v17  ;;  %v4975_v18 = vld [vmem:[#allocation5 + $0x42] ss:$2 sm:$0xf]  ;;  %v5035_v54 = vld [vmem:[#allocation5 + $0x32] ss:$2 sm:$0xf] }
 0x5d9   : > { %v5091_v12 = vadd.f32 %v5087_v40, %v5070_v8  ;;  %v5056_v7 = vld [vmem:[#allocation5 + $0x40] ss:$2 sm:$0xf]  ;;  %v4985_v60 = vmul.f32 %v12304_v34, %v4975_v18  ;;  %v5046_v24 = vmul.f32 %v12315_v10, %v5035_v54  ;;  %v5077_v11 = vld [vmem:[#allocation5 + $0x41] ss:$2 sm:$0xf] }
 0x5da   : > { %v5008_v19 = vadd.f32 %v5004_v6, %v4988_v38  ;;  %v4968_v43 = vadd.f32 %v4964_v1, %v4943_v56  ;;  %v5067_v22 = vmul.f32 %v12318_v57, %v5056_v7  ;;  %v5098_v8 = vld [vmem:[#allocation5 + $0x42] ss:$2 sm:$0xf]  ;;  %v5088_v6 = vmul.f32 %v12323_v30, %v5077_v11  ;;  %v4997_v38 = vld [vmem:[#allocation5 + $0x70] ss:$2 sm:$0xf] }
 0x5db   : > { %v5112_v21 = vadd.f32 %v5108_v50, %v5091_v12  ;;  %v4995_v28 = vld [vmem:[#allocation5 + $0x50] ss:$2 sm:$0xf]  ;;  %v5016_v23 = vld [vmem:[#allocation5 + $0x51] ss:$2 sm:$0xf]  ;;  %v5109_v18 = vmul.f32 %v12326_v37, %v5098_v8  ;;  %v5006_v7 = vmul.f32 %v12308_v61, %v4997_v38 }
 0x5dc   : > { %v5005_v63 = vmul.f32 %v12308_v61, %v4995_v28  ;;  %v5029_v32 = vadd.f32 %v5025_v33, %v5008_v19  ;;  %v4989_v42 = vadd.f32 %v4985_v60, %v4968_v43  ;;  %v5026_v41 = vmul.f32 %v12311_v29, %v5016_v23  ;;  %v5037_v40 = vld [vmem:[#allocation5 + $0x52] ss:$2 sm:$0xf]  ;;  %v5018_v43 = vld [vmem:[#allocation5 + $0x71] ss:$2 sm:$0xf] }
 0x5dd   : > { %v5122_v55 = vmul.f32 %v12337_v49, %v5112_v21  ;;  %v4935_v44 = vld [vmem:[#allocation5 + $0x60] ss:$2 sm:$0xf]  ;;  %v4956_v48 = vld [vmem:[#allocation5 + $0x61] ss:$2 sm:$0xf]  ;;  %v5047_v33 = vmul.f32 %v12315_v10, %v5037_v40 }
 0x5de   : > { %v5050_v31 = vadd.f32 %v5046_v24, %v5029_v32  ;;  %v5009_v14 = vadd.f32 %v5005_v63, %v4989_v42  ;;  %v4977_v51 = vld [vmem:[#allocation5 + $0x62] ss:$2 sm:$0xf]  ;;  %v4944_v25 = vmul.f32 %v12296_v52, %v4935_v44  ;;  %v4965_v20 = vmul.f32 %v12299_v46, %v4956_v48  ;;  %v5079_v63 = vld [vmem:[#allocation5 + $0x61] ss:$2 sm:$0xf] }
 0x5df   : > { %v5132_v58 = vadd.f32 %v12341_v9, %v5122_v55  ;;  %v4986_v12 = vmul.f32 %v12304_v34, %v4977_v51  ;;  %v5058_v54 = vld [vmem:[#allocation5 + $0x60] ss:$2 sm:$0xf]  ;;  %v5027_v32 = vmul.f32 %v12311_v29, %v5018_v43  ;;  %v5039_v61 = vld [vmem:[#allocation5 + $0x72] ss:$2 sm:$0xf]  ;;  %v5089_v42 = vmul.f32 %v12323_v30, %v5079_v63 }
 0x5e0   : > { %v5071_v50 = vadd.f32 %v5067_v22, %v5050_v31  ;;  %v5030_v2 = vadd.f32 %v5026_v41, %v5009_v14  ;;  %v4969_v17 = vadd.f32 %v4965_v20, %v4944_v25  ;;  %v5068_v34 = vmul.f32 %v12318_v57, %v5058_v54  ;;  %v5100_v11 = vld [vmem:[#allocation5 + $0x62] ss:$2 sm:$0xf]  ;;  %v5081_v40 = vld [vmem:[#allocation5 + $0x81] ss:$2 sm:$0xf] }
 0x5e1   : > { %v5136_v0 = vmax.f32 %v5132_v58, 0.0  ;;  %v5048_v31 = vmul.f32 %v12315_v10, %v5039_v61  ;;  %v5060_v14 = vld [vmem:[#allocation5 + $0x80] ss:$2 sm:$0xf]  ;;  %v5110_v48 = vmul.f32 %v12326_v37, %v5100_v11  ;;  %v5090_v20 = vmul.f32 %v12323_v30, %v5081_v40  ;;  %v12473_v38 = vld [vmem:[%s14012_s30 + $0x74] ss:$8 sps:$4 sm:$0xff]  }
 0x5e2   : > { %v5092_v1 = vadd.f32 %v5088_v6, %v5071_v50  ;;  %v4990_v21 = vadd.f32 %v4986_v12, %v4969_v17  ;;  %v5051_v46 = vadd.f32 %v5047_v33, %v5030_v2  ;;  %v5069_v8 = vmul.f32 %v12318_v57, %v5060_v14  ;;  %v12453_v6 = vld [vmem:[%s14012_s30 + $0x54] ss:$8 sps:$4 sm:$0xff]   ;;  %v12456_v2 = vld [vmem:[%s14012_s30 + $0x50] ss:$8 sps:$4 sm:$0xff]   ;;  %v12462_v17 = vld [vmem:[%s14012_s30 + $0x64] ss:$8 sps:$4 sm:$0xff]  }
 0x5e3   : > { %v5140_v56 = vmin.f32 %v5136_v0, 6.0  ;;  %v5102_v0 = vld [vmem:[#allocation5 + $0x82] ss:$2 sm:$0xf]  ;;  %14016 = vst [vmem:[#allocation73_spill] sm:$0xff] %v12453_v6  ;;  %14017 = vst [vmem:[#allocation74_spill] sm:$0xff] %v12456_v2 }
 0x5e4   : > { %v5113_v19 = vadd.f32 %v5109_v18, %v5092_v1  ;;  %v5010_v28 = vadd.f32 %v5006_v7, %v4990_v21  ;;  %v5072_v55 = vadd.f32 %v5068_v34, %v5051_v46  ;;  %14018 = vst [vmem:[#allocation75_spill] sm:$0xff] %v12462_v17  ;;  %v12465_v12 = vld [vmem:[%s14012_s30 + $0x60] ss:$8 sps:$4 sm:$0xff]   ;;  %14020 = vst [vmem:[#allocation77_spill] sm:$0xff] %v12473_v38  ;;  %v12483_v1 = vld [vmem:[%s14012_s30 + $0x84] ss:$8 sps:$4 sm:$0xff]  }
 0x5e5   : > { %v5144_v52 = vpack.c.bf16 %v5140_v56, %v5140_v56  ;;  %14019 = vst [vmem:[#allocation76_spill] sm:$0xff] %v12465_v12  ;;  %v12476_v56 = vld [vmem:[%s14012_s30 + $0x70] ss:$8 sps:$4 sm:$0xff]   ;;  %14022 = vst [vmem:[#allocation79_spill] sm:$0xff] %v12483_v1  ;;  %v12486_v18 = vld [vmem:[%s14012_s30 + $0x80] ss:$8 sps:$4 sm:$0xff]  }
 0x5e6   : > { %v5123_v60 = vmul.f32 %v12337_v49, %v5113_v19  ;;  %v5031_v22 = vadd.f32 %v5027_v32, %v5010_v28  ;;  %v5093_v58 = vadd.f32 %v5089_v42, %v5072_v55  ;;  %14021 = vst [vmem:[#allocation78_spill] sm:$0xff] %v12476_v56  ;;  %14023 = vst [vmem:[#allocation80_spill] sm:$0xff] %v12486_v18  ;;  %v12489_v33 = vld [vmem:[%s14012_s30 + $0x94] ss:$8 sps:$4 sm:$0xff]   ;;  %v12495_v54 = vld [vmem:[%s14012_s30 + $0x90] ss:$8 sps:$4 sm:$0xff]   ;;  %v5270_v32 = vlaneseq }
 0x5e7   : > { %5261 = vmatmul.mubr.bf16.vlgmr.msra.gmra.mrb[40].mxu0 %v5144_v52  ;;  %14024 = vst [vmem:[#allocation81_spill] sm:$0xff] %v12489_v33  ;;  %14025 = vst [vmem:[#allocation82_spill] sm:$0xff] %v12495_v54  ;;  %v12500_v21 = vld [vmem:[%s14012_s30 + $0xa4] ss:$8 sps:$4 sm:$0xff]   ;;  %v12505_v52 = vld [vmem:[%s14012_s30 + $0xa0] ss:$8 sps:$4 sm:$0xff]  }
 0x5e8   : > { %5367 = vmatpush1.bf16.msra.mxu0 %v12219_v59  ;;  %5398 = vmatprep.mubr.bf16.mxu0 %v10249_v3  ;;  %v5133_v23 = vadd.f32 %v12341_v9, %v5123_v60  ;;  %v5052_v51 = vadd.f32 %v5048_v31, %v5031_v22  ;;  %v5114_v29 = vadd.f32 %v5110_v48, %v5093_v58  ;;  %v12510_v19 = vld [vmem:[%s14012_s30 + $0xb4] ss:$8 sps:$4 sm:$0xff]   ;;  %v12515_v46 = vld [vmem:[%s14012_s30 + $0xb0] ss:$8 sps:$4 sm:$0xff]   ;;  %v12520_v7 = vld [vmem:[%s14012_s30 + $0xc4] ss:$8 sps:$4 sm:$0xff]  }
 0x5e9   : > { %5368 = vmatprep.subr.bf16.mxu0 %v12224_v36  ;;  %14026 = vst [vmem:[#allocation83_spill] sm:$0xff] %v12500_v21  ;;  %14027 = vst [vmem:[#allocation84_spill] sm:$0xff] %v12505_v52  ;;  %v12525_v43 = vld [vmem:[%s14012_s30 + $0xc0] ss:$8 sps:$4 sm:$0xff]   ;;  %v12533_v60 = vld [vmem:[%s14012_s30 + $0xd4] ss:$8 sps:$4 sm:$0xff]  }
 0x5ea   : > { %v5137_v24 = vmax.f32 %v5133_v23, 0.0  ;;  %v5073_v10 = vadd.f32 %v5069_v8, %v5052_v51  ;;  %v5124_v25 = vmul.f32 %v12337_v49, %v5114_v29  ;;  %14028 = vst [vmem:[#allocation85_spill] sm:$0xff] %v12510_v19  ;;  %14029 = vst [vmem:[#allocation86_spill] sm:$0xff] %v12515_v46  ;;  %v12536_v34 = vld [vmem:[%s14012_s30 + $0xd0] ss:$8 sps:$4 sm:$0xff]   ;;  %v5271_v61 = vshrl.u32 %v5270_v32, 7 }
 0x5eb   : > { %14030 = vst [vmem:[#allocation87_spill] sm:$0xff] %v12520_v7  ;;  %14031 = vst [vmem:[#allocation88_spill] sm:$0xff] %v12525_v43  ;;  %v12542_v28 = vld [vmem:[%s14012_s30 + $0xe4] ss:$8 sps:$4 sm:$0xff]   ;;  %v12547_v63 = vld [vmem:[%s14012_s30 + $0xe0] ss:$8 sps:$4 sm:$0xff]  }
 0x5ec   : > { %5369 = vmatpush1.bf16.msra.mxu0 %v12227_v35  ;;  %v5141_v44 = vmin.f32 %v5137_v24, 6.0  ;;  %14032 = vst [vmem:[#allocation89_spill] sm:$0xff] %v12533_v60  ;;  %14033 = vst [vmem:[#allocation90_spill] sm:$0xff] %v12536_v34  ;;  %v12553_v23 = vld [vmem:[%s14012_s30 + $0xf4] ss:$8 sps:$4 sm:$0xff]   ;;  %v12564_v24 = vsub.s32 0, %v5271_v61 }
 0x5ed   : > { %5370 = vmatprep.subr.bf16.mxu0 %v12233_v62  ;;  %14034 = vst [vmem:[#allocation91_spill] sm:$0xff] %v12542_v28  ;;  %14036 = vst [vmem:[#allocation92_spill] sm:$0xff] %v12547_v63  ;;  %v12556_v55 = vld [vmem:[%s14012_s30 + $0xf0] ss:$8 sps:$4 sm:$0xff]   ;;  %v4915_v42 = vld [vmem:[%s14035_s12] sm:$0x3] }
 0x5ee   : > { %v5145_v41 = vpack.c.bf16 %v5141_v44, %v5141_v44  ;;  %14038 = vst [vmem:[#allocation93_spill] sm:$0xff] %v12553_v23  ;;  %14041 = vst [vmem:[#allocation94_spill] sm:$0xff] %v12556_v55  ;;  %v12567_v22 = vsub.s32 1, %v5271_v61  ;;  %v4916_v11 = vld [vmem:[%s14037_s18] sm:$0x3]  ;;  %v12571_v44 = vrot.slane %v4915_v42, %v12564_v24  ;;  %s14045_s12 = sld [smem:[#allocation49_spill]] }
 0x5ef   : > { %14042 = vst [vmem:[#allocation95_spill] sm:$0xff] %v12564_v24  ;;  %v9077_v31 = vld [vmem:[%s14039_s28 + $0x1] ss:$8 sm:$0x3]  ;;  %v12578_v14 = vrot.slane %v4916_v11, %v12564_v24  ;;  %v5627_v61 = vld [vmem:[#allocation6] sm:$0x3c] }
 0x5f0   : > { %5371 = vmatpush1.bf16.msra.mxu0 %v12236_v16  ;;  %5341 = vmatmul.mubr.bf16.vlgmr.msra.gmra.mrb[40].mxu1 %v5145_v41  ;;  %14043 = vst [vmem:[#allocation96_spill] sm:$0xff] %v12567_v22  ;;  %v12574_v58 = vrot.slane %v4915_v42, %v12567_v22  ;;  %v12581_v48 = vrot.slane %v4916_v11, %v12567_v22  ;;  %v5538_v8 = vld [vmem:[%s14040_s3] ss:$8 sm:$0x3]  ;;  %s14064_s18 = sld [smem:[#allocation56_spill]]  ;;  %s14089_s28 = sld [smem:[#allocation51_spill]] }
 0x5f1   : > { %5372 = vmatprep.subr.bf16.mxu0 %v12240_v5  ;;  %5425 = vmatpush1.bf16.msra.mxu1 %v12219_v59  ;;  %v5094_v59 = vadd.f32 %v5090_v20, %v5073_v10  ;;  %v12586_v40 = vrot.slane %v9077_v31, %v12564_v24  ;;  %v12590_v20 = vrot.slane %v9077_v31, %v12567_v22  ;;  %v5530_v32 = vld [vmem:[#allocation6] sm:$0xf]  ;;  %v5531_v11 = vld [vmem:[#allocation6 + $0x8] sm:$0xf] }
 0x5f2   : > { %5456 = vmatprep.mubr.bf16.mxu1 %v10249_v3  ;;  %5426 = vmatprep.subr.bf16.mxu1 %v12224_v36  ;;  %v5134_v36 = vadd.f32 %v12341_v9, %v5124_v25  ;;  %v5111_v3 = vmul.f32 %v12326_v37, %v5102_v0  ;;  %v12405_v37 = vld [vmem:[%s14012_s30 + $0x14] ss:$8 sps:$4 sm:$0xff]   ;;  %v9078_v0 = vld [vmem:[%s14040_s3 + $0x2] ss:$8 sm:$0x3] }
 0x5f3   : > { %v5628_v31 = vld [vmem:[#allocation6 + $0x8] sm:$0x3c] }
 0x5f4   : > { %5373 = vmatpush1.bf16.msra.mxu0 %v12246_v45  ;;  %v5115_v57 = vadd.f32 %v5111_v3, %v5094_v59  ;;  %v5566_v59 = vld [vmem:[#allocation6] sm:$0x1e] }
 0x5f5   : > { %5374 = vmatprep.subr.bf16.mxu0 %v12251_v26  ;;  %5427 = vmatpush1.bf16.msra.mxu1 %v12227_v35  ;;  %v5138_v35 = vmax.f32 %v5134_v36, 0.0 }
 0x5f6   : > { %5428 = vmatprep.subr.bf16.mxu1 %v12233_v62  ;;  %v5125_v62 = vmul.f32 %v12337_v49, %v5115_v57  ;;  %v12415_v49 = vld [vmem:[%s14012_s30 + $0x24] ss:$8 sps:$4 sm:$0xff]  }
 0x5f7   : > { %v5567_v57 = vld [vmem:[#allocation6 + $0x8] sm:$0x1e] }
 0x5f8   : > { %5375 = vmatpush1.bf16.msra.mxu0 %v12258_v47  ;;  %v5135_v30 = vadd.f32 %v12341_v9, %v5125_v62 }
 0x5f9   : > { %5376 = vmatprep.subr.bf16.mxu0 %v12263_v13  ;;  %5429 = vmatpush1.bf16.msra.mxu1 %v12236_v16  ;;  %v5142_v16 = vmin.f32 %v5138_v35, 6.0 }
 0x5fa   : > { %5430 = vmatprep.subr.bf16.mxu1 %v12240_v5  ;;  %v12394_v5 = vld [vmem:[%s14012_s30 + $0x4] ss:$8 sps:$4 sm:$0xff]  }
 0x5fc   : > { %5377 = vmatpush1.bf16.msra.mxu0 %v12268_v39 }
 0x5fd   : > { %5378 = vmatprep.subr.bf16.mxu0 %v12273_v15  ;;  %5431 = vmatpush1.bf16.msra.mxu1 %v12246_v45  ;;  %v12401_v45 = vld [vmem:[%s14012_s30] ss:$8 sps:$4 sm:$0xff]  }
 0x5fe   : > { %5432 = vmatprep.subr.bf16.mxu1 %v12251_v26  ;;  %v5146_v26 = vpack.c.bf16 %v5142_v16, %v5142_v16  ;;  %v12596_v16 = vrot.slane %v5538_v8, %v12564_v24 }
 0x600   : > { %5379 = vmatpush1.bf16.msra.mxu0 %v12278_v27 }
 0x601   : > { %5380 = vmatprep.subr.bf16.mxu0 %v12283_v4  ;;  %5433 = vmatpush1.bf16.msra.mxu1 %v12258_v47  ;;  %v5139_v47 = vmax.f32 %v5135_v30, 0.0  ;;  %v5587_v30 = vmul.f32 %v12586_v40, %v5566_v59 }
 0x602   : > { %5434 = vmatprep.subr.bf16.mxu1 %v12263_v13  ;;  %v12411_v13 = vld [vmem:[%s14012_s30 + $0x10] ss:$8 sps:$4 sm:$0xff]  }
 0x603   : > { %v5143_v9 = vmin.f32 %v5139_v47, 6.0  ;;  %v12603_v47 = vrot.slane %v5538_v8, %v12567_v22 }
 0x604   : > { %5381 = vmatpush1.bf16.msra.mxu0 %v12288_v53 }
 0x605   : > { %6228 = vmatprep.subr.bf16.mxu0 %v12394_v5  ;;  %5435 = vmatpush1.bf16.msra.mxu1 %v12268_v39  ;;  %v12421_v39 = vld [vmem:[%s14012_s30 + $0x20] ss:$8 sps:$4 sm:$0xff]   ;;  %v5147_v50 = vpack.c.bf16 %v5143_v9, %v5143_v9  ;;  %v5588_v9 = vmul.f32 %v12590_v20, %v5567_v57 }
 0x606   : > { %5436 = vmatprep.subr.bf16.mxu1 %v12273_v15  ;;  %v12425_v15 = vld [vmem:[%s14012_s30 + $0x34] ss:$8 sps:$4 sm:$0xff]  }
 0x607   : > { %5399 = vmatmul.mubr.bf16.vlgmr.msra.gmra.mrb[44].mxu0 %v5146_v26 }
 0x608   : > { %6229 = vmatpush1.bf16.msra.mxu0 %v12401_v45 }
 0x609   : > { %6230 = vmatprep.subr.bf16.mxu0 %v12405_v37  ;;  %5437 = vmatpush1.bf16.msra.mxu1 %v12278_v27  ;;  %v12431_v27 = vld [vmem:[%s14012_s30 + $0x30] ss:$8 sps:$4 sm:$0xff]  }
 0x60a   : > { %5438 = vmatprep.subr.bf16.mxu1 %v12283_v4  ;;  %14013 = vst [vmem:[#allocation70_spill] sm:$0xff] %v12431_v27  ;;  %v12435_v4 = vld [vmem:[%s14012_s30 + $0x44] ss:$8 sps:$4 sm:$0xff]  }
 0x60b   : > { %14014 = vst [vmem:[#allocation71_spill] sm:$0xff] %v12435_v4 }
 0x60c   : > { %6231 = vmatpush1.bf16.msra.mxu0 %v12411_v13 }
 0x60d   : > { %6232 = vmatprep.subr.bf16.mxu0 %v12415_v49  ;;  %5439 = vmatpush1.bf16.msra.mxu1 %v12288_v53  ;;  %v12441_v53 = vld [vmem:[%s14012_s30 + $0x40] ss:$8 sps:$4 sm:$0xff]  }
 0x60e   : > { %6308 = vmatprep.subr.bf16.mxu1 %v12394_v5  ;;  %14015 = vst [vmem:[#allocation72_spill] sm:$0xff] %v12441_v53 }
 0x610   : > { %6233 = vmatpush1.bf16.msra.mxu0 %v12421_v39  ;;  %5457 = vmatmul.mubr.bf16.vlgmr.msra.gmra.mrb[44].mxu1 %v5147_v50  ;;  %v12607_v50 = vrot.slane %v9078_v0, %v12567_v22 }
 0x611   : > { %6234 = vmatprep.subr.bf16.mxu0 %v12425_v15  ;;  %6309 = vmatpush1.bf16.msra.mxu1 %v12401_v45 }
 0x612   : > { %6310 = vmatprep.subr.bf16.mxu1 %v12405_v37 }
 0x614   : > { %6235 = vmatpush1.bf16.msra.mxu0 %v12431_v27 }
 0x615   : > { %6236 = vmatprep.subr.bf16.mxu0 %v12435_v4  ;;  %6311 = vmatpush1.bf16.msra.mxu1 %v12411_v13 }
 0x616   : > { %6312 = vmatprep.subr.bf16.mxu1 %v12415_v49 }
 0x618   : > { %6237 = vmatpush1.bf16.msra.mxu0 %v12441_v53 }
 0x619   : > { %6313 = vmatpush1.bf16.msra.mxu1 %v12421_v39  ;;  %6238 = vmatprep.subr.bf16.mxu0 %v12453_v6 }
 0x61a   : > { %6314 = vmatprep.subr.bf16.mxu1 %v12425_v15 }
 0x61c   : > { %6239 = vmatpush1.bf16.msra.mxu0 %v12456_v2 }
 0x61d   : > { %6315 = vmatpush1.bf16.msra.mxu1 %v12431_v27  ;;  %6240 = vmatprep.subr.bf16.mxu0 %v12462_v17 }
 0x61e   : > { %6316 = vmatprep.subr.bf16.mxu1 %v12435_v4 }
 0x620   : > { %6241 = vmatpush1.bf16.msra.mxu0 %v12465_v12 }
 0x621   : > { %6317 = vmatpush1.bf16.msra.mxu1 %v12441_v53  ;;  %6242 = vmatprep.subr.bf16.mxu0 %v12473_v38 }
 0x622   : > { %6318 = vmatprep.subr.bf16.mxu1 %v12453_v6 }
 0x624   : > { %6243 = vmatpush1.bf16.msra.mxu0 %v12476_v56 }
 0x625   : > { %6319 = vmatpush1.bf16.msra.mxu1 %v12456_v2  ;;  %6244 = vmatprep.subr.bf16.mxu0 %v12483_v1 }
 0x626   : > { %6320 = vmatprep.subr.bf16.mxu1 %v12462_v17  ;;  %v5515_v17 = vld [vmem:[%s14045_s12] sm:$0x3]  ;;  %s14094_s12 = sld [smem:[#allocation53_spill]] }
 0x628   : > { %6245 = vmatpush1.bf16.msra.mxu0 %v12486_v18 }
 0x629   : > { %6321 = vmatpush1.bf16.msra.mxu1 %v12465_v12  ;;  %6246 = vmatprep.subr.bf16.mxu0 %v12489_v33 }
 0x62a   : > { %6322 = vmatprep.subr.bf16.mxu1 %v12473_v38 }
 0x62c   : > { %6247 = vmatpush1.bf16.msra.mxu0 %v12495_v54 }
 0x62d   : > { %6323 = vmatpush1.bf16.msra.mxu1 %v12476_v56  ;;  %6248 = vmatprep.subr.bf16.mxu0 %v12500_v21 }
 0x62e   : > { %6324 = vmatprep.subr.bf16.mxu1 %v12483_v1 }
 0x630   : > { %6249 = vmatpush1.bf16.msra.mxu0 %v12505_v52 }
 0x631   : > { %6325 = vmatpush1.bf16.msra.mxu1 %v12486_v18  ;;  %6250 = vmatprep.subr.bf16.mxu0 %v12510_v19 }
 0x632   : > { %6326 = vmatprep.subr.bf16.mxu1 %v12489_v33 }
 0x634   : > { %6251 = vmatpush1.bf16.msra.mxu0 %v12515_v46 }
 0x635   : > { %6327 = vmatpush1.bf16.msra.mxu1 %v12495_v54  ;;  %6252 = vmatprep.subr.bf16.mxu0 %v12520_v7 }
 0x636   : > { %6328 = vmatprep.subr.bf16.mxu1 %v12500_v21 }
 0x638   : > { %6253 = vmatpush1.bf16.msra.mxu0 %v12525_v43 }
 0x639   : > { %6329 = vmatpush1.bf16.msra.mxu1 %v12505_v52  ;;  %6254 = vmatprep.subr.bf16.mxu0 %v12533_v60 }
 0x63a   : > { %6330 = vmatprep.subr.bf16.mxu1 %v12510_v19 }
 0x63c   : > { %6255 = vmatpush1.bf16.msra.mxu0 %v12536_v34 }
 0x63d   : > { %6331 = vmatpush1.bf16.msra.mxu1 %v12515_v46  ;;  %6256 = vmatprep.subr.bf16.mxu0 %v12542_v28 }
 0x63e   : > { %6332 = vmatprep.subr.bf16.mxu1 %v12520_v7 }
 0x640   : > { %6257 = vmatpush1.bf16.msra.mxu0 %v12547_v63 }
 0x641   : > { %6333 = vmatpush1.bf16.msra.mxu1 %v12525_v43  ;;  %6258 = vmatprep.subr.bf16.mxu0 %v12553_v23 }
 0x642   : > { %6334 = vmatprep.subr.bf16.mxu1 %v12533_v60 }
 0x644   : > { %6259 = vmatpush1.bf16.msra.mxu0 %v12556_v55 }
 0x645   : > { %6335 = vmatpush1.bf16.msra.mxu1 %v12536_v34  ;;  %6366 = vmatprep.subr.bf16.mxu0 %v12394_v5 }
 0x646   : > { %6336 = vmatprep.subr.bf16.mxu1 %v12542_v28 }
 0x649   : > { %6337 = vmatpush1.bf16.msra.mxu1 %v12547_v63 }
 0x64a   : > { %6338 = vmatprep.subr.bf16.mxu1 %v12553_v23 }
 0x64d   : > { %6339 = vmatpush1.bf16.msra.mxu1 %v12556_v55 }
 0x64e   : > { %6424 = vmatprep.subr.bf16.mxu1 %v12394_v5  ;;  %v12599_v5 = vrot.slane %v9078_v0, %v12564_v24  ;;  %v5604_v0 = vrot.slane %v5588_v9, 1 }
 0x650   : > { %v5648_v8 = vmul.f32 %v12599_v5, %v5627_v61 }
 0x652   : > { %v5664_v55 = vrot.slane %v5648_v8, 2 }
 0x6ba   : > { %v5262_v41 = vpop.f32.mrb[40].mxu0 }
 0x6bb   : > { %v5280_v51 = vmul.f32 %v12571_v44, %v5262_v41  ;;  %v5264_v29 = vpop.f32.mrb[41].mxu0 }
 0x6bc   : > { %v5281_v10 = vmul.f32 %v12574_v58, %v5264_v29  ;;  %v5266_v25 = vpop.f32.mrb[42].mxu0  ;;  %v5550_v29 = vmul.f32 %v12596_v16, %v5530_v32 }
 0x6bd   : > { %v5293_v36 = vadd.f32 %v12578_v14, %v5280_v51  ;;  %v5267_v3 = vpop.f32.mrb[43].mxu0 }
 0x6be   : > { %v5294_v35 = vadd.f32 %v12581_v48, %v5281_v10  ;;  %v5603_v10 = vrot.slane %v5587_v30, 1  ;;  %v5649_v3 = vmul.f32 %v12607_v50, %v5628_v31  ;;  %v9080_v30 = vld [vmem:[%s14040_s3 + $0x4] ss:$8 sm:$0x3] }
 0x6bf   : > { %v5295_v62 = vmax.f32 %v5293_v36, 0.0  ;;  %v5551_v36 = vmul.f32 %v12603_v47, %v5531_v11 }
 0x6c0   : > { %v5296_v26 = vmax.f32 %v5294_v35, 0.0  ;;  %v5665_v31 = vrot.slane %v5649_v3, 2 }
 0x6c1   : > { %v5297_v42 = vmin.f32 %v5295_v62, 6.0  ;;  %v9079_v62 = vld [vmem:[%s14040_s3 + $0x3] ss:$8 sm:$0x3]  ;;  %v5620_v11 = vadd.f32 %v5604_v0, %v5551_v36 }
 0x6c2   : > { %v5298_v41 = vmin.f32 %v5296_v26, 6.0 }
 0x6c3   : > { %v5301_v51 = vrot.slane %v5297_v42, 7  ;;  %v5342_v59 = vpop.f32.mrb[40].mxu1  ;;  %v5681_v3 = vadd.f32 %v5665_v31, %v5620_v11 }
 0x6c4   : > { %v5302_v25 = vrot.slane %v5298_v41, 7  ;;  %v5349_v57 = vmul.f32 %v5342_v59, %v12571_v44  ;;  %v5344_v35 = vpop.f32.mrb[41].mxu1  ;;  %v5619_v41 = vadd.f32 %v5603_v10, %v5550_v29  ;;  %v12621_v59 = vrot.slane %v9079_v62, %v12564_v24 }
 0x6c5   : > { %5306 = vst [vmem:[#allocation6 + $0x10] sm:$0x1e] %v5301_v51  ;;  %v5350_v26 = vmul.f32 %v5344_v35, %v12574_v58  ;;  %v5346_v32 = vpop.f32.mrb[42].mxu1  ;;  %v9081_v51 = vld [vmem:[%s14040_s3 + $0x5] ss:$8 sm:$0x3]  ;;  %v12630_v29 = vrot.slane %v9080_v30, %v12567_v22 }
 0x6c6   : > { %5307 = vst [vmem:[#allocation6 + $0x18] sm:$0x1e] %v5302_v25  ;;  %v5351_v61 = vadd.f32 %v5349_v57, %v12578_v14  ;;  %v5347_v42 = vpop.f32.mrb[43].mxu1  ;;  %v12624_v25 = vrot.slane %v9080_v30, %v12564_v24  ;;  %v12627_v32 = vrot.slane %v9079_v62, %v12567_v22  ;;  %v12633_v8 = vrot.slane %v9081_v51, %v12564_v24 }
 0x6c7   : > { %v5352_v9 = vadd.f32 %v5350_v26, %v12581_v48  ;;  %v5680_v36 = vadd.f32 %v5664_v55, %v5619_v41  ;;  %v12636_v57 = vrot.slane %v9081_v51, %v12567_v22  ;;  %v9082_v26 = vld [vmem:[%s14040_s3 + $0x6] ss:$8 sm:$0x3]  ;;  %v9083_v51 = vld [vmem:[%s14040_s3 + $0x7] ss:$8 sm:$0x3] }
 0x6c8   : > { %v5353_v23 = vmax.f32 %v5351_v61, 0.0 }
 0x6c9   : > { %v5354_v35 = vmax.f32 %v5352_v9, 0.0 }
 0x6ca   : > { %v5355_v10 = vmin.f32 %v5353_v23, 6.0 }
 0x6cb   : > { %v5356_v0 = vmin.f32 %v5354_v35, 6.0 }
 0x6cc   : > { %v5688_v61 = vld [vmem:[#allocation6 + $0x10] sm:$0xf]  ;;  %v5359_v9 = vrot.slane %v5355_v10, 7 }
 0x6cd   : > { %v5725_v42 = vld [vmem:[#allocation6 + $0x10] sm:$0x1e]  ;;  %v5689_v62 = vld [vmem:[#allocation6 + $0x18] sm:$0xf]  ;;  %v5709_v30 = vmul.f32 %v12621_v59, %v5688_v61  ;;  %v5360_v28 = vrot.slane %v5356_v0, 7 }
 0x6ce   : > { %v5726_v63 = vld [vmem:[#allocation6 + $0x18] sm:$0x1e]  ;;  %v5746_v23 = vmul.f32 %v12624_v25, %v5725_v42  ;;  %v5710_v55 = vmul.f32 %v12627_v32, %v5689_v62  ;;  %v5786_v31 = vld [vmem:[#allocation6 + $0x10] sm:$0x3c]  ;;  %5364 = vst [vmem:[#allocation6 + $0x20] sm:$0x1e] %v5359_v9 }
 0x6cf   : > { %v5747_v41 = vmul.f32 %v12630_v29, %v5726_v63  ;;  %v5787_v11 = vld [vmem:[#allocation6 + $0x18] sm:$0x3c]  ;;  %v5717_v35 = vadd.f32 %v5709_v30, %v5680_v36  ;;  %v5807_v10 = vmul.f32 %v12633_v8, %v5786_v31  ;;  %5365 = vst [vmem:[#allocation6 + $0x28] sm:$0x1e] %v5360_v28  ;;  %v12649_v63 = vrot.slane %v9082_v26, %v12564_v24  ;;  %v5568_v36 = vld [vmem:[#allocation6 + $0x10] sm:$0x1e] }
 0x6d0   : > { %v5762_v34 = vrot.slane %v5746_v23, 1  ;;  %v5569_v60 = vld [vmem:[#allocation6 + $0x18] sm:$0x1e]  ;;  %v5718_v61 = vadd.f32 %v5710_v55, %v5681_v3  ;;  %v5808_v42 = vmul.f32 %v12636_v57, %v5787_v11  ;;  %v9084_v0 = vld [vmem:[%s14040_s3 + $0x10] ss:$8 sm:$0x3]  ;;  %v12652_v23 = vrot.slane %v9083_v51, %v12564_v24 }
 0x6d1   : > { %v5763_v43 = vrot.slane %v5747_v41, 1  ;;  %v5590_v62 = vmul.f32 %v12590_v20, %v5569_v60  ;;  %v5533_v9 = vld [vmem:[#allocation6 + $0x18] sm:$0xf]  ;;  %v5589_v3 = vmul.f32 %v12586_v40, %v5568_v36  ;;  %v5629_v55 = vld [vmem:[#allocation6 + $0x10] sm:$0x3c]  ;;  %v12657_v11 = vrot.slane %v9082_v26, %v12567_v22 }
 0x6d2   : > { %v5778_v7 = vadd.f32 %v5762_v34, %v5717_v35  ;;  %v5630_v46 = vld [vmem:[#allocation6 + $0x18] sm:$0x3c]  ;;  %v5514_v41 = vld [vmem:[%s14044_s2] sm:$0x3]  ;;  %v12660_v60 = vrot.slane %v9083_v51, %v12567_v22  ;;  %v12663_v34 = vrot.slane %v9084_v0, %v12564_v24  ;;  %v5823_v31 = vrot.slane %v5807_v10, 2  ;;  %s14090_s2 = sld [smem:[#allocation52_spill]] }
 0x6d3   : > { %v5779_v30 = vadd.f32 %v5763_v43, %v5718_v61  ;;  %v5606_v28 = vrot.slane %v5590_v62, 1  ;;  %v5824_v35 = vrot.slane %v5808_v42, 2  ;;  %v12666_v43 = vrot.slane %v9084_v0, %v12567_v22  ;;  %v5532_v36 = vld [vmem:[#allocation6 + $0x10] sm:$0xf] }
 0x6d4   : > { %v5553_v61 = vmul.f32 %v12603_v47, %v5533_v9  ;;  %v5651_v62 = vmul.f32 %v12607_v50, %v5630_v46  ;;  %v5839_v19 = vadd.f32 %v5823_v31, %v5778_v7  ;;  %v5605_v52 = vrot.slane %v5589_v3, 1 }
 0x6d5   : > { %v5650_v26 = vmul.f32 %v12599_v5, %v5629_v55  ;;  %v5840_v21 = vadd.f32 %v5824_v35, %v5779_v30  ;;  %v12672_v51 = vrot.slane %v5514_v41, %v12564_v24  ;;  %v5847_v54 = vld [vmem:[#allocation6 + $0x20] sm:$0xf]  ;;  %v5552_v3 = vmul.f32 %v12596_v16, %v5532_v36 }
 0x6d6   : > { %v5884_v33 = vld [vmem:[#allocation6 + $0x20] sm:$0x1e]  ;;  %v5622_v42 = vadd.f32 %v5606_v28, %v5553_v61  ;;  %v5848_v18 = vld [vmem:[#allocation6 + $0x28] sm:$0xf]  ;;  %v5868_v9 = vmul.f32 %v12649_v63, %v5847_v54  ;;  %v5667_v35 = vrot.slane %v5651_v62, 2  ;;  %v12682_v61 = vrot.slane %v5514_v41, %v12567_v22 }
 0x6d7   : > { %v5945_v10 = vld [vmem:[#allocation6 + $0x20] sm:$0x3c]  ;;  %v5885_v0 = vld [vmem:[#allocation6 + $0x28] sm:$0x1e]  ;;  %v5905_v46 = vmul.f32 %v12652_v23, %v5884_v33  ;;  %v5869_v30 = vmul.f32 %v12657_v11, %v5848_v18  ;;  %v5666_v12 = vrot.slane %v5650_v26, 2  ;;  %v5621_v6 = vadd.f32 %v5605_v52, %v5552_v3 }
 0x6d8   : > { %v5946_v1 = vld [vmem:[#allocation6 + $0x28] sm:$0x3c]  ;;  %v5966_v7 = vmul.f32 %v12663_v34, %v5945_v10  ;;  %v5906_v55 = vmul.f32 %v12660_v60, %v5885_v0  ;;  %v5876_v56 = vadd.f32 %v5868_v9, %v5839_v19  ;;  %v5683_v36 = vadd.f32 %v5667_v35, %v5622_v42  ;;  %v5727_v27 = vld [vmem:[#allocation6 + $0x20] sm:$0x1e] }
 0x6d9   : > { %v5967_v31 = vmul.f32 %v12666_v43, %v5946_v1  ;;  %v5691_v28 = vld [vmem:[#allocation6 + $0x28] sm:$0xf]  ;;  %v5921_v38 = vrot.slane %v5905_v46, 1  ;;  %v5877_v10 = vadd.f32 %v5869_v30, %v5840_v21  ;;  %v5690_v46 = vld [vmem:[#allocation6 + $0x20] sm:$0xf]  ;;  %v12691_v52 = vrot.slane %v5515_v17, %v12564_v24 }
 0x6da   : > { %v5728_v54 = vld [vmem:[#allocation6 + $0x28] sm:$0x1e]  ;;  %v5400_v33 = vpop.f32.mrb[44].mxu0  ;;  %v5922_v2 = vrot.slane %v5906_v55, 1  ;;  %v5982_v1 = vrot.slane %v5966_v7, 2  ;;  %v5712_v62 = vmul.f32 %v12627_v32, %v5691_v28  ;;  %v12695_v7 = vrot.slane %v5515_v17, %v12567_v22 }
 0x6db   : > { %v5407_v18 = vmul.f32 %v5400_v33, %v12571_v44  ;;  %v5402_v0 = vpop.f32.mrb[45].mxu0  ;;  %v5937_v53 = vadd.f32 %v5921_v38, %v5876_v56  ;;  %v5983_v9 = vrot.slane %v5967_v31, 2  ;;  %v5749_v26 = vmul.f32 %v12630_v29, %v5728_v54  ;;  %v5571_v35 = vld [vmem:[#allocation6 + $0x28] sm:$0x1e]  ;;  %v5788_v17 = vld [vmem:[#allocation6 + $0x20] sm:$0x3c] }
 0x6dc   : > { %v5408_v41 = vmul.f32 %v5402_v0, %v12574_v58  ;;  %v5404_v4 = vpop.f32.mrb[46].mxu0  ;;  %v5938_v19 = vadd.f32 %v5922_v2, %v5877_v10  ;;  %v5711_v55 = vmul.f32 %v12621_v59, %v5690_v46  ;;  %v5748_v31 = vmul.f32 %v12624_v25, %v5727_v27  ;;  %v5789_v0 = vld [vmem:[#allocation6 + $0x28] sm:$0x3c] }
 0x6dd   : > { %v5409_v21 = vadd.f32 %v5407_v18, %v12578_v14  ;;  %v5405_v42 = vpop.f32.mrb[47].mxu0  ;;  %v5998_v3 = vadd.f32 %v5982_v1, %v5937_v53  ;;  %v5682_v4 = vadd.f32 %v5666_v12, %v5621_v6  ;;  %v5720_v33 = vadd.f32 %v5712_v62, %v5683_v36  ;;  %v5535_v12 = vld [vmem:[#allocation6 + $0x28] sm:$0xf] }
 0x6de   : > { %v5410_v38 = vadd.f32 %v5408_v41, %v12581_v48  ;;  %v5999_v56 = vadd.f32 %v5983_v9, %v5938_v19  ;;  %v5765_v53 = vrot.slane %v5749_v26, 1  ;;  %v5592_v41 = vmul.f32 %v12590_v20, %v5571_v35  ;;  %v5570_v19 = vld [vmem:[#allocation6 + $0x20] sm:$0x1e]  ;;  %v5632_v42 = vld [vmem:[#allocation6 + $0x28] sm:$0x3c] }
 0x6df   : > { %v5411_v2 = vmax.f32 %v5409_v21, 0.0  ;;  %v6017_v30 = vmul.f32 %v12672_v51, %v5998_v3  ;;  %v5719_v46 = vadd.f32 %v5711_v55, %v5682_v4  ;;  %v5764_v21 = vrot.slane %v5748_v31, 1 }
 0x6e0   : > { %v5412_v28 = vmax.f32 %v5410_v38, 0.0  ;;  %v6018_v54 = vmul.f32 %v12682_v61, %v5999_v56  ;;  %v5781_v26 = vadd.f32 %v5765_v53, %v5720_v33  ;;  %v5810_v38 = vmul.f32 %v12636_v57, %v5789_v0  ;;  %v5534_v56 = vld [vmem:[#allocation6 + $0x20] sm:$0xf]  ;;  %v5854_v53 = vld [vmem:[#allocation6 + $0x58] sm:$0xf] }
 0x6e1   : > { %v5413_v10 = vmin.f32 %v5411_v2, 6.0  ;;  %v6036_v18 = vadd.f32 %v12691_v52, %v6017_v30  ;;  %v5591_v35 = vmul.f32 %v12586_v40, %v5570_v19  ;;  %v5555_v33 = vmul.f32 %v12603_v47, %v5535_v12 }
 0x6e2   : > { %v5414_v1 = vmin.f32 %v5412_v28, 6.0  ;;  %v6037_v6 = vadd.f32 %v12695_v7, %v6018_v54  ;;  %v5608_v54 = vrot.slane %v5592_v41, 1 }
 0x6e3   : > { %v5417_v9 = vrot.slane %v5413_v10, 7  ;;  %v6044_v27 = vmax.f32 %v6036_v18, 0.0  ;;  %v5458_v36 = vpop.f32.mrb[44].mxu1  ;;  %v5631_v10 = vld [vmem:[#allocation6 + $0x20] sm:$0x3c]  ;;  %v5809_v18 = vmul.f32 %v12633_v8, %v5788_v17  ;;  %v5607_v41 = vrot.slane %v5591_v35, 1 }
 0x6e4   : > { %v5418_v3 = vrot.slane %v5414_v1, 7  ;;  %v6045_v62 = vmax.f32 %v6037_v6, 0.0  ;;  %v5465_v2 = vmul.f32 %v5458_v36, %v12571_v44  ;;  %v5460_v30 = vpop.f32.mrb[45].mxu1  ;;  %v5780_v44 = vadd.f32 %v5764_v21, %v5719_v46 }
 0x6e5   : > { %5422 = vst [vmem:[#allocation6 + $0x30] sm:$0x1e] %v5417_v9  ;;  %v6052_v28 = vmin.f32 %v6044_v27, 6.0  ;;  %v5466_v4 = vmul.f32 %v5460_v30, %v12574_v58  ;;  %v5462_v55 = vpop.f32.mrb[46].mxu1  ;;  %v5653_v6 = vmul.f32 %v12607_v50, %v5632_v42  ;;  %v5891_v27 = vld [vmem:[#allocation6 + $0x58] sm:$0x1e]  ;;  %v5554_v58 = vmul.f32 %v12596_v16, %v5534_v56 }
 0x6e6   : > { %5423 = vst [vmem:[#allocation6 + $0x38] sm:$0x1e] %v5418_v3  ;;  %v6053_v31 = vmin.f32 %v6045_v62, 6.0  ;;  %v5467_v0 = vadd.f32 %v5465_v2, %v12578_v14  ;;  %v5463_v1 = vpop.f32.mrb[47].mxu1  ;;  %v5952_v3 = vld [vmem:[#allocation6 + $0x58] sm:$0x3c]  ;;  %v5652_v36 = vmul.f32 %v12599_v5, %v5631_v10  ;;  %v5624_v12 = vadd.f32 %v5608_v54, %v5555_v33 }
 0x6e7   : > { %v5468_v19 = vadd.f32 %v5466_v4, %v12581_v48  ;;  %v6060_v62 = vpack.c.bf16 %v6052_v28, %v6052_v28  ;;  %v12716_v30 = vmul.f32 %v12657_v11, %v5854_v53  ;;  %v5826_v46 = vrot.slane %v5810_v38, 2 }
 0x6e8   : > { %v6061_v9 = vpack.c.bf16 %v6053_v31, %v6053_v31  ;;  %v5469_v17 = vmax.f32 %v5467_v0, 0.0  ;;  %v5825_v21 = vrot.slane %v5809_v18, 2  ;;  %v5623_v42 = vadd.f32 %v5607_v41, %v5554_v58 }
 0x6e9   : > { %v5470_v14 = vmax.f32 %v5468_v19, 0.0  ;;  %v5669_v48 = vrot.slane %v5653_v6, 2  ;;  %v12719_v35 = vmul.f32 %v12660_v60, %v5891_v27  ;;  %v12722_v56 = vmul.f32 %v12666_v43, %v5952_v3 }
 0x6ea   : > { %6260 = vmatprep.mubr.bf16.mxu0 %v6061_v9  ;;  %v5471_v2 = vmin.f32 %v5469_v17, 6.0  ;;  %v5842_v28 = vadd.f32 %v5826_v46, %v5781_v26  ;;  %v5841_v54 = vadd.f32 %v5825_v21, %v5780_v44  ;;  %v5668_v31 = vrot.slane %v5652_v36, 2 }
 0x6eb   : > { %6261 = vmatmul.mubr.bf16.vlgmr.msra.gmra.mrb[48].mxu0 %v6060_v62  ;;  %v5472_v10 = vmin.f32 %v5470_v14, 6.0  ;;  %v5685_v1 = vadd.f32 %v5669_v48, %v5624_v12 }
 0x6ec   : > { %6367 = vmatpush1.bf16.msra.mxu0 %v12401_v45  ;;  %v5849_v4 = vld [vmem:[#allocation6 + $0x30] sm:$0xf]  ;;  %v5475_v38 = vrot.slane %v5471_v2, 7  ;;  %v5684_v9 = vadd.f32 %v5668_v31, %v5623_v42 }
 0x6ed   : > { %v5886_v55 = vld [vmem:[#allocation6 + $0x30] sm:$0x1e]  ;;  %6368 = vmatprep.subr.bf16.mxu0 %v12405_v37  ;;  %v5850_v18 = vld [vmem:[#allocation6 + $0x38] sm:$0xf]  ;;  %v5870_v53 = vmul.f32 %v12649_v63, %v5849_v4  ;;  %v5476_v6 = vrot.slane %v5472_v10, 7 }
 0x6ee   : > { %v5887_v33 = vld [vmem:[#allocation6 + $0x38] sm:$0x1e]  ;;  %v5907_v0 = vmul.f32 %v12652_v23, %v5886_v55  ;;  %v5871_v41 = vmul.f32 %v12657_v11, %v5850_v18  ;;  %v5947_v44 = vld [vmem:[#allocation6 + $0x30] sm:$0x3c]  ;;  %5480 = vst [vmem:[#allocation6 + $0x40] sm:$0x1e] %v5475_v38 }
 0x6ef   : > { %v5908_v19 = vmul.f32 %v12660_v60, %v5887_v33  ;;  %v5948_v26 = vld [vmem:[#allocation6 + $0x38] sm:$0x3c]  ;;  %v5878_v3 = vadd.f32 %v5870_v53, %v5841_v54  ;;  %v5968_v36 = vmul.f32 %v12663_v34, %v5947_v44  ;;  %5481 = vst [vmem:[#allocation6 + $0x48] sm:$0x1e] %v5476_v6  ;;  %v5692_v53 = vld [vmem:[#allocation6 + $0x30] sm:$0xf] }
 0x6f0   : > { %v5969_v27 = vmul.f32 %v12666_v43, %v5948_v26  ;;  %v5923_v58 = vrot.slane %v5907_v0, 1  ;;  %v5693_v17 = vld [vmem:[#allocation6 + $0x38] sm:$0xf]  ;;  %6369 = vmatpush1.bf16.msra.mxu0 %v12411_v13  ;;  %v5879_v12 = vadd.f32 %v5871_v41, %v5842_v28  ;;  %v5729_v0 = vld [vmem:[#allocation6 + $0x30] sm:$0x1e] }
 0x6f1   : > { %v5730_v62 = vld [vmem:[#allocation6 + $0x38] sm:$0x1e]  ;;  %v5924_v14 = vrot.slane %v5908_v19, 1  ;;  %v5714_v46 = vmul.f32 %v12627_v32, %v5693_v17  ;;  %6370 = vmatprep.subr.bf16.mxu0 %v12415_v49  ;;  %v5984_v54 = vrot.slane %v5968_v36, 2  ;;  %v5790_v44 = vld [vmem:[#allocation6 + $0x30] sm:$0x3c] }
 0x6f2   : > { %v5751_v21 = vmul.f32 %v12630_v29, %v5730_v62  ;;  %v5791_v2 = vld [vmem:[#allocation6 + $0x38] sm:$0x3c]  ;;  %v5985_v48 = vrot.slane %v5969_v27, 2  ;;  %v5939_v10 = vadd.f32 %v5923_v58, %v5878_v3  ;;  %v5713_v58 = vmul.f32 %v12621_v59, %v5692_v53 }
 0x6f3   : > { %v5537_v42 = vld [vmem:[#allocation6 + $0x38] sm:$0xf]  ;;  %v5812_v4 = vmul.f32 %v12636_v57, %v5791_v2  ;;  %v5940_v38 = vadd.f32 %v5924_v14, %v5879_v12  ;;  %v5722_v18 = vadd.f32 %v5714_v46, %v5685_v1  ;;  %v5750_v1 = vmul.f32 %v12624_v25, %v5729_v0 }
 0x6f4   : > { %v5573_v55 = vld [vmem:[#allocation6 + $0x38] sm:$0x1e]  ;;  %v5767_v33 = vrot.slane %v5751_v21, 1  ;;  %v5557_v28 = vmul.f32 %v12603_v47, %v5537_v42  ;;  %v6000_v6 = vadd.f32 %v5984_v54, %v5939_v10  ;;  %6371 = vmatpush1.bf16.msra.mxu0 %v12421_v39  ;;  %v5811_v62 = vmul.f32 %v12633_v8, %v5790_v44 }
 0x6f5   : > { %v5634_v31 = vld [vmem:[#allocation6 + $0x38] sm:$0x3c]  ;;  %v5828_v41 = vrot.slane %v5812_v4, 2  ;;  %v5594_v19 = vmul.f32 %v12590_v20, %v5573_v55  ;;  %v6001_v27 = vadd.f32 %v5985_v48, %v5940_v38  ;;  %6372 = vmatprep.subr.bf16.mxu0 %v12425_v15  ;;  %v5721_v12 = vadd.f32 %v5713_v58, %v5684_v9  ;;  %v5851_v46 = vld [vmem:[#allocation6 + $0x40] sm:$0xf] }
 0x6f6   : > { %v5655_v26 = vmul.f32 %v12607_v50, %v5634_v31  ;;  %v5783_v3 = vadd.f32 %v5767_v33, %v5722_v18  ;;  %v6019_v47 = vmul.f32 %v12672_v51, %v6000_v6  ;;  %v5766_v14 = vrot.slane %v5750_v1, 1  ;;  %v5888_v21 = vld [vmem:[#allocation6 + $0x40] sm:$0x1e]  ;;  %v5852_v42 = vld [vmem:[#allocation6 + $0x48] sm:$0xf]  ;;  %v14046_v31 = vld [vmem:[#allocation70_spill] sm:$0xff] }
 0x6f7   : > { %v5610_v36 = vrot.slane %v5594_v19, 1  ;;  %v6020_v20 = vmul.f32 %v12682_v61, %v6001_v27  ;;  %v5889_v48 = vld [vmem:[#allocation6 + $0x48] sm:$0x1e]  ;;  %v5872_v4 = vmul.f32 %v12649_v63, %v5851_v46  ;;  %v5909_v55 = vmul.f32 %v12652_v23, %v5888_v21 }
 0x6f8   : > { %v5671_v17 = vrot.slane %v5655_v26, 2  ;;  %v5844_v50 = vadd.f32 %v5828_v41, %v5783_v3  ;;  %v6038_v2 = vadd.f32 %v12691_v52, %v6019_v47  ;;  %v5950_v10 = vld [vmem:[#allocation6 + $0x48] sm:$0x3c]  ;;  %6373 = vmatpush1.bf16.msra.mxu0 %v14046_v31  ;;  %v5873_v18 = vmul.f32 %v12657_v11, %v5852_v42  ;;  %v14047_v41 = vld [vmem:[#allocation71_spill] sm:$0xff]  ;;  %v5572_v42 = vld [vmem:[#allocation6 + $0x30] sm:$0x1e] }
 0x6f9   : > { %v5626_v54 = vadd.f32 %v5610_v36, %v5557_v28  ;;  %v6039_v38 = vadd.f32 %v12695_v7, %v6020_v20  ;;  %v5910_v9 = vmul.f32 %v12660_v60, %v5889_v48  ;;  %v5971_v33 = vmul.f32 %v12666_v43, %v5950_v10  ;;  %v5695_v53 = vld [vmem:[#allocation6 + $0x48] sm:$0xf]  ;;  %6374 = vmatprep.subr.bf16.mxu0 %v14047_v41  ;;  %v5949_v36 = vld [vmem:[#allocation6 + $0x40] sm:$0x3c] }
 0x6fa   : > { %v5732_v0 = vld [vmem:[#allocation6 + $0x48] sm:$0x1e]  ;;  %v6046_v28 = vmax.f32 %v6038_v2, 0.0  ;;  %v5716_v26 = vmul.f32 %v12627_v32, %v5695_v53  ;;  %v5881_v3 = vadd.f32 %v5873_v18, %v5844_v50  ;;  %v14048_v20 = vld [vmem:[#allocation72_spill] sm:$0xff]  ;;  %v5782_v2 = vadd.f32 %v5766_v14, %v5721_v12  ;;  %v5633_v32 = vld [vmem:[#allocation6 + $0x30] sm:$0x3c] }
 0x6fb   : > { %v5793_v6 = vld [vmem:[#allocation6 + $0x48] sm:$0x3c]  ;;  %v5687_v19 = vadd.f32 %v5671_v17, %v5626_v54  ;;  %v5753_v44 = vmul.f32 %v12630_v29, %v5732_v0  ;;  %v6047_v27 = vmax.f32 %v6039_v38, 0.0  ;;  %v5926_v58 = vrot.slane %v5910_v9, 1  ;;  %v5731_v53 = vld [vmem:[#allocation6 + $0x40] sm:$0x1e] }
 0x6fc   : > { %v5987_v1 = vrot.slane %v5971_v33, 2  ;;  %v6054_v11 = vmin.f32 %v6046_v28, 6.0  ;;  %v5814_v43 = vmul.f32 %v12636_v57, %v5793_v6  ;;  %6375 = vmatpush1.bf16.msra.mxu0 %v14048_v20  ;;  %v5827_v17 = vrot.slane %v5811_v62, 2  ;;  %v14049_v48 = vld [vmem:[#allocation73_spill] sm:$0xff]  ;;  %v5536_v33 = vld [vmem:[#allocation6 + $0x30] sm:$0xf] }
 0x6fd   : > { %v5724_v47 = vadd.f32 %v5716_v26, %v5687_v19  ;;  %v5769_v60 = vrot.slane %v5753_v44, 1  ;;  %v6055_v46 = vmin.f32 %v6047_v27, 6.0  ;;  %v5942_v21 = vadd.f32 %v5926_v58, %v5881_v3  ;;  %6376 = vmatprep.subr.bf16.mxu0 %v14049_v48  ;;  %v14050_v14 = vld [vmem:[#allocation74_spill] sm:$0xff]  ;;  %v5694_v19 = vld [vmem:[#allocation6 + $0x40] sm:$0xf]  ;;  %v14051_v26 = vld [vmem:[#allocation75_spill] sm:$0xff] }
 0x6fe   : > { %v5830_v50 = vrot.slane %v5814_v43, 2  ;;  %v5928_v10 = vrot.slane %v12719_v35, 1  ;;  %v5925_v54 = vrot.slane %v5909_v55, 1  ;;  %v5843_v9 = vadd.f32 %v5827_v17, %v5782_v2  ;;  %v5853_v17 = vld [vmem:[#allocation6 + $0x50] sm:$0xf] }
 0x6ff   : > { %v5785_v29 = vadd.f32 %v5769_v60, %v5724_v47  ;;  %v6063_v38 = vpack.c.bf16 %v6055_v46, %v6055_v46  ;;  %v6003_v18 = vadd.f32 %v5987_v1, %v5942_v21  ;;  %v5970_v57 = vmul.f32 %v12663_v34, %v5949_v36  ;;  %v5890_v36 = vld [vmem:[#allocation6 + $0x50] sm:$0x1e] }
 0x700   : > { %v6062_v0 = vpack.c.bf16 %v6054_v11, %v6054_v11  ;;  %v5593_v62 = vmul.f32 %v12586_v40, %v5572_v42  ;;  %v5654_v12 = vmul.f32 %v12599_v5, %v5633_v32  ;;  %6377 = vmatpush1.bf16.msra.mxu0 %v14050_v14  ;;  %v5989_v35 = vrot.slane %v12722_v56, 2  ;;  %v5792_v11 = vld [vmem:[#allocation6 + $0x40] sm:$0x3c]  ;;  %v5951_v32 = vld [vmem:[#allocation6 + $0x50] sm:$0x3c] }
 0x701   : > { %v5846_v6 = vadd.f32 %v5830_v50, %v5785_v29  ;;  %6340 = vmatprep.mubr.bf16.mxu1 %v6063_v38  ;;  %v6022_v28 = vmul.f32 %v12682_v61, %v6003_v18  ;;  %v5880_v55 = vadd.f32 %v5872_v4, %v5843_v9  ;;  %6378 = vmatprep.subr.bf16.mxu0 %v14051_v26  ;;  %v5986_v1 = vrot.slane %v5970_v57, 2  ;;  %v14055_v18 = vld [vmem:[#allocation79_spill] sm:$0xff] }
 0x702   : > { %6341 = vmatmul.mubr.bf16.vlgmr.msra.gmra.mrb[48].mxu1 %v6062_v0  ;;  %v5556_v27 = vmul.f32 %v12596_v16, %v5536_v33  ;;  %v5609_v3 = vrot.slane %v5593_v62, 1  ;;  %v5752_v40 = vmul.f32 %v12624_v25, %v5731_v53  ;;  %v5670_v47 = vrot.slane %v5654_v12, 2  ;;  %v14053_v25 = vld [vmem:[#allocation77_spill] sm:$0xff]  ;;  %v14056_v53 = vld [vmem:[#allocation80_spill] sm:$0xff]  ;;  %v14058_v12 = vld [vmem:[#allocation82_spill] sm:$0xff] }
 0x703   : > { %v5883_v44 = vadd.f32 %v12716_v30, %v5846_v6  ;;  %6425 = vmatpush1.bf16.msra.mxu1 %v12401_v45  ;;  %v6041_v5 = vadd.f32 %v12695_v7, %v6022_v28  ;;  %v5941_v58 = vadd.f32 %v5925_v54, %v5880_v55  ;;  %v5715_v60 = vmul.f32 %v12621_v59, %v5694_v19  ;;  %v14052_v30 = vld [vmem:[#allocation76_spill] sm:$0xff]  ;;  %v14057_v0 = vld [vmem:[#allocation81_spill] sm:$0xff]  ;;  %v14063_v19 = vld [vmem:[#allocation87_spill] sm:$0xff] }
 0x704   : > { %6426 = vmatprep.subr.bf16.mxu1 %v12405_v37  ;;  %v5625_v4 = vadd.f32 %v5609_v3, %v5556_v27  ;;  %6379 = vmatpush1.bf16.msra.mxu0 %v14052_v30  ;;  %v5768_v21 = vrot.slane %v5752_v40, 1  ;;  %v5813_v2 = vmul.f32 %v12633_v8, %v5792_v11  ;;  %v5911_v50 = vmul.f32 %v12652_v23, %v5890_v36  ;;  %v14061_v55 = vld [vmem:[#allocation85_spill] sm:$0xff]  ;;  %v14071_v40 = vld [vmem:[#allocation94_spill] sm:$0xff] }
 0x705   : > { %v5944_v56 = vadd.f32 %v5928_v10, %v5883_v44  ;;  %v6049_v16 = vmax.f32 %v6041_v5, 0.0  ;;  %v6002_v43 = vadd.f32 %v5986_v1, %v5941_v58  ;;  %6380 = vmatprep.subr.bf16.mxu0 %v14053_v25  ;;  %v14054_v10 = vld [vmem:[#allocation78_spill] sm:$0xff]  ;;  %v5874_v8 = vmul.f32 %v12649_v63, %v5853_v17  ;;  %v14070_v44 = vld [vmem:[#allocation93_spill] sm:$0xff] }
 0x706   : > { %v5686_v46 = vadd.f32 %v5670_v47, %v5625_v4  ;;  %v5829_v57 = vrot.slane %v5813_v2, 2  ;;  %v5927_v33 = vrot.slane %v5911_v50, 1  ;;  %v12821_v3 = vld [vmem:[%s14064_s18 + $0x4] ss:$8 sps:$4 sm:$0xff]   ;;  %v12843_v4 = vld [vmem:[%s14064_s18 + $0x14] ss:$8 sps:$4 sm:$0xff]  }
 0x707   : > { %v6005_v45 = vadd.f32 %v5989_v35, %v5944_v56  ;;  %6427 = vmatpush1.bf16.msra.mxu1 %v12411_v13  ;;  %v6057_v37 = vmin.f32 %v6049_v16, 6.0  ;;  %v6021_v42 = vmul.f32 %v12672_v51, %v6002_v43  ;;  %v14060_v35 = vld [vmem:[#allocation84_spill] sm:$0xff]  ;;  %v12847_v47 = vld [vmem:[%s14064_s18 + $0x10] ss:$8 sps:$4 sm:$0xff]   ;;  %v12862_v16 = vld [vmem:[%s14064_s18 + $0x34] ss:$8 sps:$4 sm:$0xff]  }
 0x708   : > { %6428 = vmatprep.subr.bf16.mxu1 %v12415_v49  ;;  %v5723_v29 = vadd.f32 %v5715_v60, %v5686_v46  ;;  %6381 = vmatpush1.bf16.msra.mxu0 %v14054_v10  ;;  %v5972_v49 = vmul.f32 %v12663_v34, %v5951_v32  ;;  %v12840_v56 = vld [vmem:[%s14064_s18] ss:$8 sps:$4 sm:$0xff]   ;;  %14072 = vst [vmem:[#allocation70_spill] sm:$0xff] %v12847_v47  ;;  %v12852_v60 = vld [vmem:[%s14064_s18 + $0x24] ss:$8 sps:$4 sm:$0xff]  }
 0x709   : > { %v6024_v59 = vmul.f32 %v12682_v61, %v6005_v45  ;;  %v6065_v54 = vpack.c.bf16 %v6057_v37, %v6057_v37  ;;  %v6040_v38 = vadd.f32 %v12691_v52, %v6021_v42  ;;  %6382 = vmatprep.subr.bf16.mxu0 %v14055_v18  ;;  %14073 = vst [vmem:[#allocation71_spill] sm:$0xff] %v12852_v60  ;;  %v12867_v43 = vld [vmem:[%s14064_s18 + $0x30] ss:$8 sps:$4 sm:$0xff]   ;;  %v12872_v36 = vld [vmem:[%s14064_s18 + $0x44] ss:$8 sps:$4 sm:$0xff]  }
 0x70a   : > { %v5784_v9 = vadd.f32 %v5768_v21, %v5723_v29  ;;  %v5988_v62 = vrot.slane %v5972_v49, 2  ;;  %v12882_v45 = vld [vmem:[%s14064_s18 + $0x54] ss:$8 sps:$4 sm:$0xff]   ;;  %v12887_v46 = vld [vmem:[%s14064_s18 + $0x50] ss:$8 sps:$4 sm:$0xff]  }
 0x70b   : > { %v6043_v13 = vadd.f32 %v12695_v7, %v6024_v59  ;;  %6398 = vmatprep.mubr.bf16.mxu0 %v6065_v54  ;;  %6429 = vmatpush1.bf16.msra.mxu1 %v12421_v39  ;;  %v14059_v39 = vld [vmem:[#allocation83_spill] sm:$0xff]  ;;  %14074 = vst [vmem:[#allocation72_spill] sm:$0xff] %v12887_v46  ;;  %v12892_v21 = vld [vmem:[%s14064_s18 + $0x64] ss:$8 sps:$4 sm:$0xff]   ;;  %v12897_v2 = vld [vmem:[%s14064_s18 + $0x60] ss:$8 sps:$4 sm:$0xff]  }
 0x70c   : > { %6430 = vmatprep.subr.bf16.mxu1 %v12425_v15  ;;  %v5845_v61 = vadd.f32 %v5829_v57, %v5784_v9  ;;  %6383 = vmatpush1.bf16.msra.mxu0 %v14056_v53  ;;  %14075 = vst [vmem:[#allocation73_spill] sm:$0xff] %v12892_v21  ;;  %14076 = vst [vmem:[#allocation74_spill] sm:$0xff] %v12897_v2  ;;  %v12902_v17 = vld [vmem:[%s14064_s18 + $0x74] ss:$8 sps:$4 sm:$0xff]   ;;  %v12907_v37 = vld [vmem:[%s14064_s18 + $0x70] ss:$8 sps:$4 sm:$0xff]  }
 0x70d   : > { %v6051_v23 = vmax.f32 %v6043_v13, 0.0  ;;  %6384 = vmatprep.subr.bf16.mxu0 %v14057_v0  ;;  %v12912_v42 = vld [vmem:[%s14064_s18 + $0x84] ss:$8 sps:$4 sm:$0xff]   ;;  %v12917_v32 = vld [vmem:[%s14064_s18 + $0x80] ss:$8 sps:$4 sm:$0xff]  }
 0x70e   : > { %v5882_v6 = vadd.f32 %v5874_v8, %v5845_v61  ;;  %14077 = vst [vmem:[#allocation75_spill] sm:$0xff] %v12917_v32  ;;  %v12922_v59 = vld [vmem:[%s14064_s18 + $0x94] ss:$8 sps:$4 sm:$0xff]   ;;  %v12927_v29 = vld [vmem:[%s14064_s18 + $0x90] ss:$8 sps:$4 sm:$0xff]  }
 0x70f   : > { %v6059_v63 = vmin.f32 %v6051_v23, 6.0  ;;  %6431 = vmatpush1.bf16.msra.mxu1 %v14046_v31  ;;  %14078 = vst [vmem:[#allocation76_spill] sm:$0xff] %v12922_v59  ;;  %14079 = vst [vmem:[#allocation77_spill] sm:$0xff] %v12927_v29  ;;  %v12932_v50 = vld [vmem:[%s14064_s18 + $0xa4] ss:$8 sps:$4 sm:$0xff]  }
 0x710   : > { %6432 = vmatprep.subr.bf16.mxu1 %v14047_v41  ;;  %v5943_v34 = vadd.f32 %v5927_v33, %v5882_v6  ;;  %6385 = vmatpush1.bf16.msra.mxu0 %v14058_v12  ;;  %v14062_v41 = vld [vmem:[#allocation86_spill] sm:$0xff]  ;;  %14080 = vst [vmem:[#allocation78_spill] sm:$0xff] %v12932_v50  ;;  %v12952_v8 = vld [vmem:[%s14064_s18 + $0xc4] ss:$8 sps:$4 sm:$0xff]   ;;  %v12977_v49 = vld [vmem:[%s14064_s18 + $0xe0] ss:$8 sps:$4 sm:$0xff]  }
 0x711   : > { %v6067_v7 = vpack.c.bf16 %v6059_v63, %v6059_v63  ;;  %6386 = vmatprep.subr.bf16.mxu0 %v14059_v39  ;;  %v12942_v54 = vld [vmem:[%s14064_s18 + $0xb4] ss:$8 sps:$4 sm:$0xff]   ;;  %14084 = vst [vmem:[#allocation82_spill] sm:$0xff] %v12952_v8  ;;  %v12967_v9 = vld [vmem:[%s14064_s18 + $0xd0] ss:$8 sps:$4 sm:$0xff]   ;;  %14091 = vst [vmem:[#allocation87_spill] sm:$0xff] %v12977_v49 }
 0x712   : > { %v6004_v15 = vadd.f32 %v5988_v62, %v5943_v34  ;;  %14082 = vst [vmem:[#allocation80_spill] sm:$0xff] %v12942_v54  ;;  %v12962_v13 = vld [vmem:[%s14064_s18 + $0xd4] ss:$8 sps:$4 sm:$0xff]   ;;  %14087 = vst [vmem:[#allocation85_spill] sm:$0xff] %v12967_v9  ;;  %v12972_v57 = vld [vmem:[%s14064_s18 + $0xe4] ss:$8 sps:$4 sm:$0xff]  }
 0x713   : > { %6456 = vmatprep.mubr.bf16.mxu1 %v6067_v7  ;;  %6433 = vmatpush1.bf16.msra.mxu1 %v14048_v20  ;;  %v14066_v20 = vld [vmem:[#allocation89_spill] sm:$0xff]  ;;  %14086 = vst [vmem:[#allocation84_spill] sm:$0xff] %v12962_v13  ;;  %14088 = vst [vmem:[#allocation86_spill] sm:$0xff] %v12972_v57  ;;  %v12982_v23 = vld [vmem:[%s14064_s18 + $0xf4] ss:$8 sps:$4 sm:$0xff]  }
 0x714   : > { %6434 = vmatprep.subr.bf16.mxu1 %v14049_v48  ;;  %v6023_v28 = vmul.f32 %v12672_v51, %v6004_v15  ;;  %6387 = vmatpush1.bf16.msra.mxu0 %v14060_v35  ;;  %v14065_v51 = vld [vmem:[#allocation88_spill] sm:$0xff]  ;;  %v14068_v48 = vld [vmem:[#allocation91_spill] sm:$0xff] }
 0x715   : > { %6388 = vmatprep.subr.bf16.mxu0 %v14061_v55  ;;  %14092 = vst [vmem:[#allocation88_spill] sm:$0xff] %v12982_v23  ;;  %v12987_v61 = vld [vmem:[%s14064_s18 + $0xf0] ss:$8 sps:$4 sm:$0xff]   ;;  %v5516_v33 = vld [vmem:[%s14089_s28] sm:$0x3]  ;;  %s14095_s28 = sld [smem:[#allocation54_spill]] }
 0x716   : > { %v6042_v31 = vadd.f32 %v12691_v52, %v6023_v28  ;;  %v14067_v52 = vld [vmem:[#allocation90_spill] sm:$0xff]  ;;  %14093 = vst [vmem:[#allocation89_spill] sm:$0xff] %v12987_v61  ;;  %v13002_v63 = vrot.slane %v5516_v33, %v12567_v22 }
 0x717   : > { %6435 = vmatpush1.bf16.msra.mxu1 %v14050_v14  ;;  %v6048_v14 = vmax.f32 %v6040_v38, 0.0  ;;  %v12947_v38 = vld [vmem:[%s14064_s18 + $0xb0] ss:$8 sps:$4 sm:$0xff]  }
 0x718   : > { %6436 = vmatprep.subr.bf16.mxu1 %v14051_v26  ;;  %6389 = vmatpush1.bf16.msra.mxu0 %v14062_v41  ;;  %v14069_v26 = vld [vmem:[#allocation92_spill] sm:$0xff]  ;;  %v6050_v58 = vmax.f32 %v6042_v31, 0.0  ;;  %14083 = vst [vmem:[#allocation81_spill] sm:$0xff] %v12947_v38 }
 0x719   : > { %6390 = vmatprep.subr.bf16.mxu0 %v14063_v19  ;;  %v6056_v27 = vmin.f32 %v6048_v14, 6.0 }
 0x71a   : > { %v6058_v1 = vmin.f32 %v6050_v58, 6.0 }
 0x71b   : > { %6437 = vmatpush1.bf16.msra.mxu1 %v14052_v30  ;;  %v6064_v5 = vpack.c.bf16 %v6056_v27, %v6056_v27  ;;  %v12857_v30 = vld [vmem:[%s14064_s18 + $0x20] ss:$8 sps:$4 sm:$0xff]  }
 0x71c   : > { %6438 = vmatprep.subr.bf16.mxu1 %v14053_v25  ;;  %6391 = vmatpush1.bf16.msra.mxu0 %v14065_v51  ;;  %v6066_v11 = vpack.c.bf16 %v6058_v1, %v6058_v1  ;;  %v12877_v25 = vld [vmem:[%s14064_s18 + $0x40] ss:$8 sps:$4 sm:$0xff]  }
 0x71d   : > { %6392 = vmatprep.subr.bf16.mxu0 %v14066_v20  ;;  %v6531_v1 = vld [vmem:[#allocation7 + $0x8] sm:$0xf] }
 0x71f   : > { %6439 = vmatpush1.bf16.msra.mxu1 %v14054_v10  ;;  %v12937_v10 = vld [vmem:[%s14064_s18 + $0xa0] ss:$8 sps:$4 sm:$0xff]  }
 0x720   : > { %6440 = vmatprep.subr.bf16.mxu1 %v14055_v18  ;;  %6393 = vmatpush1.bf16.msra.mxu0 %v14067_v52  ;;  %14081 = vst [vmem:[#allocation79_spill] sm:$0xff] %v12937_v10  ;;  %v12957_v18 = vld [vmem:[%s14064_s18 + $0xc0] ss:$8 sps:$4 sm:$0xff]  }
 0x721   : > { %6394 = vmatprep.subr.bf16.mxu0 %v14068_v48  ;;  %14085 = vst [vmem:[#allocation83_spill] sm:$0xff] %v12957_v18 }
 0x723   : > { %6441 = vmatpush1.bf16.msra.mxu1 %v14056_v53  ;;  %v5517_v53 = vld [vmem:[%s14090_s2] sm:$0x3]  ;;  %s14096_s2 = sld [smem:[#allocation55_spill]] }
 0x724   : > { %6442 = vmatprep.subr.bf16.mxu1 %v14057_v0  ;;  %6395 = vmatpush1.bf16.msra.mxu0 %v14069_v26  ;;  %v12999_v0 = vrot.slane %v5516_v33, %v12564_v24  ;;  %v13005_v6 = vrot.slane %v5517_v53, %v12564_v24  ;;  %v13008_v7 = vrot.slane %v5517_v53, %v12567_v22 }
 0x725   : > { %6396 = vmatprep.subr.bf16.mxu0 %v14070_v44 }
 0x727   : > { %6443 = vmatpush1.bf16.msra.mxu1 %v14058_v12 }
 0x728   : > { %6444 = vmatprep.subr.bf16.mxu1 %v14059_v39  ;;  %6397 = vmatpush1.bf16.msra.mxu0 %v14071_v40 }
 0x729   : > { %7228 = vmatprep.subr.bf16.mxu0 %v12821_v3 }
 0x72b   : > { %6445 = vmatpush1.bf16.msra.mxu1 %v14060_v35  ;;  %6399 = vmatmul.mubr.bf16.vlgmr.msra.gmra.mrb[52].mxu0 %v6064_v5 }
 0x72c   : > { %6446 = vmatprep.subr.bf16.mxu1 %v14061_v55  ;;  %7229 = vmatpush1.bf16.msra.mxu0 %v12840_v56 }
 0x72d   : > { %7230 = vmatprep.subr.bf16.mxu0 %v12843_v4 }
 0x72f   : > { %6447 = vmatpush1.bf16.msra.mxu1 %v14062_v41 }
 0x730   : > { %6448 = vmatprep.subr.bf16.mxu1 %v14063_v19  ;;  %7231 = vmatpush1.bf16.msra.mxu0 %v12847_v47 }
 0x731   : > { %7232 = vmatprep.subr.bf16.mxu0 %v12852_v60 }
 0x733   : > { %6449 = vmatpush1.bf16.msra.mxu1 %v14065_v51 }
 0x734   : > { %6450 = vmatprep.subr.bf16.mxu1 %v14066_v20  ;;  %7233 = vmatpush1.bf16.msra.mxu0 %v12857_v30 }
 0x735   : > { %7234 = vmatprep.subr.bf16.mxu0 %v12862_v16 }
 0x737   : > { %6451 = vmatpush1.bf16.msra.mxu1 %v14067_v52  ;;  %v9117_v52 = vld [vmem:[%s14094_s12 + $0x1] ss:$8 sm:$0x3] }
 0x738   : > { %6452 = vmatprep.subr.bf16.mxu1 %v14068_v48  ;;  %7235 = vmatpush1.bf16.msra.mxu0 %v12867_v43  ;;  %v13016_v14 = vrot.slane %v9117_v52, %v12567_v22  ;;  %v13020_v27 = vrot.slane %v9117_v52, %v12564_v24 }
 0x739   : > { %7236 = vmatprep.subr.bf16.mxu0 %v12872_v36 }
 0x73b   : > { %6453 = vmatpush1.bf16.msra.mxu1 %v14069_v26  ;;  %v6538_v26 = vld [vmem:[%s14094_s12] ss:$8 sm:$0x3] }
 0x73c   : > { %6454 = vmatprep.subr.bf16.mxu1 %v14070_v44  ;;  %7237 = vmatpush1.bf16.msra.mxu0 %v12877_v25  ;;  %v6567_v44 = vld [vmem:[#allocation7 + $0x8] sm:$0x1e]  ;;  %v13024_v5 = vrot.slane %v6538_v26, %v12567_v22 }
 0x73d   : > { %7238 = vmatprep.subr.bf16.mxu0 %v12882_v45  ;;  %v6588_v58 = vmul.f32 %v13016_v14, %v6567_v44 }
 0x73f   : > { %6455 = vmatpush1.bf16.msra.mxu1 %v14071_v40  ;;  %v6566_v40 = vld [vmem:[#allocation7] sm:$0x1e] }
 0x740   : > { %7308 = vmatprep.subr.bf16.mxu1 %v12821_v3  ;;  %7239 = vmatpush1.bf16.msra.mxu0 %v12887_v46  ;;  %v6587_v53 = vmul.f32 %v13020_v27, %v6566_v40 }
 0x741   : > { %7240 = vmatprep.subr.bf16.mxu0 %v12892_v21 }
 0x742   : > { %6457 = vmatmul.mubr.bf16.vlgmr.msra.gmra.mrb[52].mxu1 %v6066_v11  ;;  %v13028_v11 = vrot.slane %v6538_v26, %v12564_v24 }
 0x743   : > { %7309 = vmatpush1.bf16.msra.mxu1 %v12840_v56 }
 0x744   : > { %7310 = vmatprep.subr.bf16.mxu1 %v12843_v4  ;;  %7241 = vmatpush1.bf16.msra.mxu0 %v12897_v2 }
 0x745   : > { %7242 = vmatprep.subr.bf16.mxu0 %v12902_v17 }
 0x747   : > { %7311 = vmatpush1.bf16.msra.mxu1 %v12847_v47 }
 0x748   : > { %7312 = vmatprep.subr.bf16.mxu1 %v12852_v60  ;;  %7243 = vmatpush1.bf16.msra.mxu0 %v12907_v37 }
 0x749   : > { %7244 = vmatprep.subr.bf16.mxu0 %v12912_v42 }
 0x74b   : > { %7313 = vmatpush1.bf16.msra.mxu1 %v12857_v30 }
 0x74c   : > { %7314 = vmatprep.subr.bf16.mxu1 %v12862_v16  ;;  %7245 = vmatpush1.bf16.msra.mxu0 %v12917_v32 }
 0x74d   : > { %7246 = vmatprep.subr.bf16.mxu0 %v12922_v59 }
 0x74f   : > { %7315 = vmatpush1.bf16.msra.mxu1 %v12867_v43 }
 0x750   : > { %7316 = vmatprep.subr.bf16.mxu1 %v12872_v36  ;;  %7247 = vmatpush1.bf16.msra.mxu0 %v12927_v29 }
 0x751   : > { %7248 = vmatprep.subr.bf16.mxu0 %v12932_v50 }
 0x753   : > { %7317 = vmatpush1.bf16.msra.mxu1 %v12877_v25 }
 0x754   : > { %7318 = vmatprep.subr.bf16.mxu1 %v12882_v45  ;;  %7249 = vmatpush1.bf16.msra.mxu0 %v12937_v10 }
 0x755   : > { %7250 = vmatprep.subr.bf16.mxu0 %v12942_v54 }
 0x757   : > { %7319 = vmatpush1.bf16.msra.mxu1 %v12887_v46 }
 0x758   : > { %7320 = vmatprep.subr.bf16.mxu1 %v12892_v21  ;;  %7251 = vmatpush1.bf16.msra.mxu0 %v12947_v38 }
 0x759   : > { %7252 = vmatprep.subr.bf16.mxu0 %v12952_v8 }
 0x75b   : > { %7321 = vmatpush1.bf16.msra.mxu1 %v12897_v2 }
 0x75c   : > { %7322 = vmatprep.subr.bf16.mxu1 %v12902_v17  ;;  %7253 = vmatpush1.bf16.msra.mxu0 %v12957_v18 }
 0x75d   : > { %7254 = vmatprep.subr.bf16.mxu0 %v12962_v13 }
 0x75f   : > { %7323 = vmatpush1.bf16.msra.mxu1 %v12907_v37 }
 0x760   : > { %7324 = vmatprep.subr.bf16.mxu1 %v12912_v42  ;;  %7255 = vmatpush1.bf16.msra.mxu0 %v12967_v9 }
 0x761   : > { %7256 = vmatprep.subr.bf16.mxu0 %v12972_v57 }
 0x763   : > { %7325 = vmatpush1.bf16.msra.mxu1 %v12917_v32 }
 0x764   : > { %7326 = vmatprep.subr.bf16.mxu1 %v12922_v59  ;;  %7257 = vmatpush1.bf16.msra.mxu0 %v12977_v49 }
 0x765   : > { %7258 = vmatprep.subr.bf16.mxu0 %v12982_v23 }
 0x767   : > { %7327 = vmatpush1.bf16.msra.mxu1 %v12927_v29  ;;  %v6515_v29 = vld [vmem:[%s14096_s2] sm:$0x3]  ;;  %s14138_s2 = sld [smem:[#allocation57_spill]] }
 0x768   : > { %7328 = vmatprep.subr.bf16.mxu1 %v12932_v50  ;;  %7259 = vmatpush1.bf16.msra.mxu0 %v12987_v61 }
 0x769   : > { %7366 = vmatprep.subr.bf16.mxu0 %v12821_v3 }
 0x76b   : > { %7329 = vmatpush1.bf16.msra.mxu1 %v12937_v10 }
 0x76c   : > { %7330 = vmatprep.subr.bf16.mxu1 %v12942_v54 }
 0x76f   : > { %7331 = vmatpush1.bf16.msra.mxu1 %v12947_v38 }
 0x770   : > { %7332 = vmatprep.subr.bf16.mxu1 %v12952_v8 }
 0x773   : > { %7333 = vmatpush1.bf16.msra.mxu1 %v12957_v18 }
 0x774   : > { %7334 = vmatprep.subr.bf16.mxu1 %v12962_v13  ;;  %v9124_v13 = vld [vmem:[%s14094_s12 + $0x10] ss:$8 sm:$0x3] }
 0x777   : > { %7335 = vmatpush1.bf16.msra.mxu1 %v12967_v9 }
 0x778   : > { %7336 = vmatprep.subr.bf16.mxu1 %v12972_v57 }
 0x77b   : > { %7337 = vmatpush1.bf16.msra.mxu1 %v12977_v49  ;;  %v9121_v49 = vld [vmem:[%s14094_s12 + $0x5] ss:$8 sm:$0x3] }
 0x77c   : > { %7338 = vmatprep.subr.bf16.mxu1 %v12982_v23  ;;  %v13065_v9 = vrot.slane %v9121_v49, %v12564_v24 }
 0x77f   : > { %7339 = vmatpush1.bf16.msra.mxu1 %v12987_v61 }
 0x780   : > { %7424 = vmatprep.subr.bf16.mxu1 %v12821_v3  ;;  %v9118_v3 = vld [vmem:[%s14094_s12 + $0x2] ss:$8 sm:$0x3] }
 0x781   : > { %v13031_v33 = vrot.slane %v9118_v3, %v12564_v24 }
 0x7be   : > { %v6262_v62 = vpop.f32.mrb[48].mxu0 }
 0x7bf   : > { %v6280_v34 = vmul.f32 %v12999_v0, %v6262_v62  ;;  %v6264_v12 = vpop.f32.mrb[49].mxu0  ;;  %v13035_v62 = vrot.slane %v9118_v3, %v12567_v22 }
 0x7c0   : > { %v6281_v39 = vmul.f32 %v13002_v63, %v6264_v12  ;;  %v6266_v15 = vpop.f32.mrb[50].mxu0  ;;  %v6627_v12 = vld [vmem:[#allocation7] sm:$0x3c] }
 0x7c1   : > { %v6293_v28 = vadd.f32 %v13005_v6, %v6280_v34  ;;  %v6267_v35 = vpop.f32.mrb[51].mxu0  ;;  %v6530_v34 = vld [vmem:[#allocation7] sm:$0xf]  ;;  %v6551_v15 = vmul.f32 %v13024_v5, %v6531_v1 }
 0x7c2   : > { %v6294_v55 = vadd.f32 %v13008_v7, %v6281_v39  ;;  %v6628_v39 = vld [vmem:[#allocation7 + $0x8] sm:$0x3c] }
 0x7c3   : > { %v6295_v31 = vmax.f32 %v6293_v28, 0.0  ;;  %v6604_v28 = vrot.slane %v6588_v58, 1  ;;  %v9119_v35 = vld [vmem:[%s14094_s12 + $0x3] ss:$8 sm:$0x3] }
 0x7c4   : > { %v6296_v41 = vmax.f32 %v6294_v55, 0.0  ;;  %v6550_v55 = vmul.f32 %v13028_v11, %v6530_v34  ;;  %v13046_v40 = vrot.slane %v9119_v35, %v12564_v24  ;;  %v13054_v61 = vrot.slane %v9119_v35, %v12567_v22 }
 0x7c5   : > { %v6297_v19 = vmin.f32 %v6295_v31, 6.0  ;;  %v6603_v31 = vrot.slane %v6587_v53, 1  ;;  %v6620_v3 = vadd.f32 %v6604_v28, %v6551_v15 }
 0x7c6   : > { %v6298_v51 = vmin.f32 %v6296_v41, 6.0  ;;  %v6648_v41 = vmul.f32 %v13031_v33, %v6627_v12 }
 0x7c7   : > { %v6301_v20 = vrot.slane %v6297_v19, 7  ;;  %v6619_v34 = vadd.f32 %v6603_v31, %v6550_v55 }
 0x7c8   : > { %v6302_v48 = vrot.slane %v6298_v51, 7  ;;  %v6649_v51 = vmul.f32 %v13035_v62, %v6628_v39  ;;  %v6664_v12 = vrot.slane %v6648_v41, 2 }
 0x7c9   : > { %6306 = vst [vmem:[#allocation7 + $0x10] sm:$0x1e] %v6301_v20  ;;  %v9120_v20 = vld [vmem:[%s14094_s12 + $0x4] ss:$8 sm:$0x3] }
 0x7ca   : > { %6307 = vst [vmem:[#allocation7 + $0x18] sm:$0x1e] %v6302_v48  ;;  %v13050_v53 = vrot.slane %v9120_v20, %v12564_v24  ;;  %v13057_v15 = vrot.slane %v9120_v20, %v12567_v22  ;;  %v6680_v55 = vadd.f32 %v6664_v12, %v6619_v34  ;;  %v9122_v12 = vld [vmem:[%s14094_s12 + $0x6] ss:$8 sm:$0x3] }
 0x7cb   : > { %v13076_v18 = vrot.slane %v9122_v12, %v12564_v24 }
 0x7d0   : > { %v6688_v28 = vld [vmem:[#allocation7 + $0x10] sm:$0xf] }
 0x7d1   : > { %v6689_v23 = vld [vmem:[#allocation7 + $0x18] sm:$0xf]  ;;  %v6709_v31 = vmul.f32 %v13046_v40, %v6688_v28  ;;  %v6786_v28 = vld [vmem:[#allocation7 + $0x10] sm:$0x3c] }
 0x7d2   : > { %v6710_v20 = vmul.f32 %v13054_v61, %v6689_v23  ;;  %v6787_v34 = vld [vmem:[#allocation7 + $0x18] sm:$0x3c] }
 0x7d5   : > { %v6342_v19 = vpop.f32.mrb[48].mxu1 }
 0x7d6   : > { %v6349_v52 = vmul.f32 %v6342_v19, %v12999_v0  ;;  %v6344_v48 = vpop.f32.mrb[49].mxu1  ;;  %v6665_v19 = vrot.slane %v6649_v51, 2 }
 0x7d7   : > { %v6350_v26 = vmul.f32 %v6344_v48, %v13002_v63  ;;  %v6346_v44 = vpop.f32.mrb[50].mxu1  ;;  %v6725_v48 = vld [vmem:[#allocation7 + $0x10] sm:$0x1e] }
 0x7d8   : > { %v6351_v58 = vadd.f32 %v6349_v52, %v13005_v6  ;;  %v6347_v1 = vpop.f32.mrb[51].mxu1  ;;  %v6726_v52 = vld [vmem:[#allocation7 + $0x18] sm:$0x1e]  ;;  %v6746_v41 = vmul.f32 %v13050_v53, %v6725_v48  ;;  %v6681_v51 = vadd.f32 %v6665_v19, %v6620_v3  ;;  %v9123_v48 = vld [vmem:[%s14094_s12 + $0x7] ss:$8 sm:$0x3] }
 0x7d9   : > { %v6352_v39 = vadd.f32 %v6350_v26, %v13008_v7  ;;  %v6747_v26 = vmul.f32 %v13057_v15, %v6726_v52  ;;  %v6807_v52 = vmul.f32 %v13065_v9, %v6786_v28 }
 0x7da   : > { %v6353_v44 = vmax.f32 %v6351_v58, 0.0  ;;  %v6762_v3 = vrot.slane %v6746_v41, 1  ;;  %v6718_v23 = vadd.f32 %v6710_v20, %v6681_v51  ;;  %v13088_v41 = vrot.slane %v9123_v48, %v12567_v22 }
 0x7db   : > { %v6354_v1 = vmax.f32 %v6352_v39, 0.0  ;;  %v13068_v39 = vrot.slane %v9121_v49, %v12567_v22  ;;  %v6763_v19 = vrot.slane %v6747_v26, 1  ;;  %v13079_v49 = vrot.slane %v9123_v48, %v12564_v24 }
 0x7dc   : > { %v6355_v57 = vmin.f32 %v6353_v44, 6.0  ;;  %v13091_v51 = vrot.slane %v9124_v13, %v12567_v22  ;;  %v6823_v26 = vrot.slane %v6807_v52, 2 }
 0x7dd   : > { %v6356_v35 = vmin.f32 %v6354_v1, 6.0  ;;  %v6717_v1 = vadd.f32 %v6709_v31, %v6680_v55  ;;  %v6779_v55 = vadd.f32 %v6763_v19, %v6718_v23  ;;  %v13085_v31 = vrot.slane %v9122_v12, %v12567_v22  ;;  %v6514_v19 = vld [vmem:[%s14095_s28] sm:$0x3]  ;;  %s14118_s28 = sld [smem:[#allocation62_spill]] }
 0x7de   : > { %v6359_v58 = vrot.slane %v6355_v57, 7  ;;  %v6808_v57 = vmul.f32 %v13068_v39, %v6787_v34 }
 0x7df   : > { %v6360_v44 = vrot.slane %v6356_v35, 7  ;;  %v13082_v35 = vrot.slane %v9124_v13, %v12564_v24 }
 0x7e0   : > { %6364 = vst [vmem:[#allocation7 + $0x20] sm:$0x1e] %v6359_v58  ;;  %v6778_v58 = vadd.f32 %v6762_v3, %v6717_v1  ;;  %v6824_v20 = vrot.slane %v6808_v57, 2 }
 0x7e1   : > { %6365 = vst [vmem:[#allocation7 + $0x28] sm:$0x1e] %v6360_v44 }
 0x7e2   : > { %v6839_v3 = vadd.f32 %v6823_v26, %v6778_v58  ;;  %v6840_v54 = vadd.f32 %v6824_v20, %v6779_v55  ;;  %v13102_v58 = vrot.slane %v6514_v19, %v12564_v24  ;;  %v13105_v55 = vrot.slane %v6514_v19, %v12567_v22  ;;  %v6568_v19 = vld [vmem:[#allocation7 + $0x10] sm:$0x1e] }
 0x7e3   : > { %s14119_s3 = smov %s14118_s28 }
 0x7e7   : > { %v6847_v44 = vld [vmem:[#allocation7 + $0x20] sm:$0xf] }
 0x7e8   : > { %v6884_v34 = vld [vmem:[#allocation7 + $0x20] sm:$0x1e]  ;;  %v6848_v8 = vld [vmem:[#allocation7 + $0x28] sm:$0xf]  ;;  %v6868_v23 = vmul.f32 %v13076_v18, %v6847_v44 }
 0x7e9   : > { %v6945_v28 = vld [vmem:[#allocation7 + $0x20] sm:$0x3c]  ;;  %v6885_v38 = vld [vmem:[#allocation7 + $0x28] sm:$0x1e]  ;;  %v6905_v12 = vmul.f32 %v13079_v49, %v6884_v34  ;;  %v6869_v13 = vmul.f32 %v13085_v31, %v6848_v8  ;;  %v13108_v8 = vrot.slane %v6515_v29, %v12564_v24 }
 0x7ea   : > { %v6946_v1 = vld [vmem:[#allocation7 + $0x28] sm:$0x3c]  ;;  %v6966_v48 = vmul.f32 %v13082_v35, %v6945_v28  ;;  %v6906_v57 = vmul.f32 %v13088_v41, %v6885_v38  ;;  %v6876_v10 = vadd.f32 %v6868_v23, %v6839_v3 }
 0x7eb   : > { %v6967_v52 = vmul.f32 %v13091_v51, %v6946_v1  ;;  %v6921_v50 = vrot.slane %v6905_v12, 1  ;;  %v6877_v59 = vadd.f32 %v6869_v13, %v6840_v54  ;;  %v13111_v1 = vrot.slane %v6515_v29, %v12567_v22 }
 0x7ec   : > { %v6922_v32 = vrot.slane %v6906_v57, 1  ;;  %v6982_v44 = vrot.slane %v6966_v48, 2  ;;  %v6569_v57 = vld [vmem:[#allocation7 + $0x18] sm:$0x1e]  ;;  %v6589_v29 = vmul.f32 %v13020_v27, %v6568_v19 }
 0x7ed   : > { %v6937_v26 = vadd.f32 %v6921_v50, %v6876_v10  ;;  %v6983_v28 = vrot.slane %v6967_v52, 2  ;;  %v6590_v52 = vmul.f32 %v13016_v14, %v6569_v57 }
 0x7ee   : > { %v6938_v34 = vadd.f32 %v6922_v32, %v6877_v59 }
 0x7ef   : > { %v6998_v38 = vadd.f32 %v6982_v44, %v6937_v26  ;;  %v6532_v44 = vld [vmem:[#allocation7 + $0x10] sm:$0xf] }
 0x7f0   : > { %v6999_v20 = vadd.f32 %v6983_v28, %v6938_v34  ;;  %v6629_v34 = vld [vmem:[#allocation7 + $0x10] sm:$0x3c] }
 0x7f1   : > { %v7017_v54 = vmul.f32 %v13102_v58, %v6998_v38 }
 0x7f2   : > { %v7018_v3 = vmul.f32 %v13105_v55, %v6999_v20  ;;  %v6533_v20 = vld [vmem:[#allocation7 + $0x18] sm:$0xf] }
 0x7f3   : > { %v7036_v50 = vadd.f32 %v13108_v8, %v7017_v54  ;;  %v6630_v54 = vld [vmem:[#allocation7 + $0x18] sm:$0x3c] }
 0x7f4   : > { %v7037_v32 = vadd.f32 %v13111_v1, %v7018_v3  ;;  %v6605_v3 = vrot.slane %v6589_v29, 1  ;;  %v6651_v57 = vmul.f32 %v13035_v62, %v6630_v54  ;;  %v6690_v29 = vld [vmem:[#allocation7 + $0x20] sm:$0xf] }
 0x7f5   : > { %v7044_v59 = vmax.f32 %v7036_v50, 0.0 }
 0x7f6   : > { %v7045_v10 = vmax.f32 %v7037_v32, 0.0  ;;  %v6667_v54 = vrot.slane %v6651_v57, 2 }
 0x7f7   : > { %v7052_v23 = vmin.f32 %v7044_v59, 6.0  ;;  %v6606_v59 = vrot.slane %v6590_v52, 1  ;;  %v6728_v52 = vld [vmem:[#allocation7 + $0x28] sm:$0x1e] }
 0x7f8   : > { %v7053_v12 = vmin.f32 %v7045_v10, 6.0 }
 0x7f9   : > { %v7060_v13 = vpack.c.bf16 %v7052_v23, %v7052_v23 }
 0x7fa   : > { %v7061_v48 = vpack.c.bf16 %v7053_v12, %v7053_v12  ;;  %v6552_v12 = vmul.f32 %v13028_v11, %v6532_v44 }
 0x7fc   : > { %7260 = vmatprep.mubr.bf16.mxu0 %v7061_v48  ;;  %v6650_v48 = vmul.f32 %v13031_v33, %v6629_v34  ;;  %v6621_v22 = vadd.f32 %v6605_v3, %v6552_v12  ;;  %v6711_v34 = vmul.f32 %v13046_v40, %v6690_v29 }
 0x7fd   : > { %7261 = vmatmul.mubr.bf16.vlgmr.msra.gmra.mrb[56].mxu0 %v7060_v13  ;;  %v6553_v13 = vmul.f32 %v13024_v5, %v6533_v20 }
 0x7fe   : > { %7367 = vmatpush1.bf16.msra.mxu0 %v12840_v56  ;;  %v6400_v26 = vpop.f32.mrb[52].mxu0  ;;  %v6666_v44 = vrot.slane %v6650_v48, 2 }
 0x7ff   : > { %7368 = vmatprep.subr.bf16.mxu0 %v12843_v4  ;;  %v6407_v28 = vmul.f32 %v6400_v26, %v12999_v0  ;;  %v6402_v38 = vpop.f32.mrb[53].mxu0  ;;  %v6727_v26 = vld [vmem:[#allocation7 + $0x20] sm:$0x1e] }
 0x800   : > { %v6408_v50 = vmul.f32 %v6402_v38, %v13002_v63  ;;  %v6404_v32 = vpop.f32.mrb[54].mxu0  ;;  %v6748_v20 = vmul.f32 %v13050_v53, %v6727_v26  ;;  %v6682_v3 = vadd.f32 %v6666_v44, %v6621_v22  ;;  %v6571_v22 = vld [vmem:[#allocation7 + $0x28] sm:$0x1e] }
 0x801   : > { %v6409_v10 = vadd.f32 %v6407_v28, %v13005_v6  ;;  %v6405_v23 = vpop.f32.mrb[55].mxu0  ;;  %v6691_v32 = vld [vmem:[#allocation7 + $0x28] sm:$0xf] }
 0x802   : > { %7369 = vmatpush1.bf16.msra.mxu0 %v12847_v47  ;;  %v6410_v19 = vadd.f32 %v6408_v50, %v13008_v7  ;;  %v6622_v23 = vadd.f32 %v6606_v59, %v6553_v13  ;;  %v6788_v13 = vld [vmem:[#allocation7 + $0x20] sm:$0x3c]  ;;  %v6719_v48 = vadd.f32 %v6711_v34, %v6682_v3  ;;  %v6764_v29 = vrot.slane %v6748_v20, 1  ;;  %v6632_v44 = vld [vmem:[#allocation7 + $0x28] sm:$0x3c] }
 0x803   : > { %7370 = vmatprep.subr.bf16.mxu0 %v12852_v60  ;;  %v6411_v38 = vmax.f32 %v6409_v10, 0.0  ;;  %v6712_v60 = vmul.f32 %v13054_v61, %v6691_v32  ;;  %v6749_v10 = vmul.f32 %v13057_v15, %v6728_v52  ;;  %v6809_v32 = vmul.f32 %v13065_v9, %v6788_v13  ;;  %v6570_v52 = vld [vmem:[#allocation7 + $0x20] sm:$0x1e] }
 0x804   : > { %v6412_v28 = vmax.f32 %v6410_v19, 0.0  ;;  %v6683_v59 = vadd.f32 %v6667_v54, %v6622_v23  ;;  %v6789_v19 = vld [vmem:[#allocation7 + $0x28] sm:$0x3c]  ;;  %v6591_v54 = vmul.f32 %v13020_v27, %v6570_v52  ;;  %v6631_v52 = vld [vmem:[#allocation7 + $0x20] sm:$0x3c] }
 0x805   : > { %v6413_v24 = vmin.f32 %v6411_v38, 6.0  ;;  %v6765_v57 = vrot.slane %v6749_v10, 1  ;;  %v6810_v38 = vmul.f32 %v13068_v39, %v6789_v19  ;;  %v6825_v23 = vrot.slane %v6809_v32, 2 }
 0x806   : > { %7371 = vmatpush1.bf16.msra.mxu0 %v12857_v30  ;;  %v6414_v50 = vmin.f32 %v6412_v28, 6.0  ;;  %v6720_v26 = vadd.f32 %v6712_v60, %v6683_v59 }
 0x807   : > { %7372 = vmatprep.subr.bf16.mxu0 %v12862_v16  ;;  %v6417_v47 = vrot.slane %v6413_v24, 7  ;;  %v6780_v24 = vadd.f32 %v6764_v29, %v6719_v48 }
 0x808   : > { %v6418_v12 = vrot.slane %v6414_v50, 7  ;;  %v6781_v28 = vadd.f32 %v6765_v57, %v6720_v26  ;;  %v6592_v50 = vmul.f32 %v13016_v14, %v6571_v22 }
 0x809   : > { %6422 = vst [vmem:[#allocation7 + $0x30] sm:$0x1e] %v6417_v47  ;;  %v6826_v47 = vrot.slane %v6810_v38, 2  ;;  %v6841_v59 = vadd.f32 %v6825_v23, %v6780_v24 }
 0x80a   : > { %7373 = vmatpush1.bf16.msra.mxu0 %v12867_v43  ;;  %6423 = vst [vmem:[#allocation7 + $0x38] sm:$0x1e] %v6418_v12 }
 0x80b   : > { %7374 = vmatprep.subr.bf16.mxu0 %v12872_v36  ;;  %v6842_v29 = vadd.f32 %v6826_v47, %v6781_v28 }
 0x80e   : > { %7375 = vmatpush1.bf16.msra.mxu0 %v12877_v25 }
 0x80f   : > { %7376 = vmatprep.subr.bf16.mxu0 %v12882_v45 }
 0x810   : > { %v6849_v34 = vld [vmem:[#allocation7 + $0x30] sm:$0xf] }
 0x811   : > { %v6886_v60 = vld [vmem:[#allocation7 + $0x30] sm:$0x1e]  ;;  %v6850_v10 = vld [vmem:[#allocation7 + $0x38] sm:$0xf]  ;;  %v6870_v19 = vmul.f32 %v13076_v18, %v6849_v34  ;;  %v6608_v34 = vrot.slane %v6592_v50, 1 }
 0x812   : > { %7377 = vmatpush1.bf16.msra.mxu0 %v12887_v46  ;;  %v6947_v20 = vld [vmem:[#allocation7 + $0x30] sm:$0x3c]  ;;  %v6887_v3 = vld [vmem:[#allocation7 + $0x38] sm:$0x1e]  ;;  %v6907_v13 = vmul.f32 %v13079_v49, %v6886_v60  ;;  %v6871_v26 = vmul.f32 %v13085_v31, %v6850_v10  ;;  %v6653_v60 = vmul.f32 %v13035_v62, %v6632_v44  ;;  %v6534_v46 = vld [vmem:[#allocation7 + $0x20] sm:$0xf] }
 0x813   : > { %7378 = vmatprep.subr.bf16.mxu0 %v12892_v21  ;;  %v6948_v12 = vld [vmem:[#allocation7 + $0x38] sm:$0x3c]  ;;  %v6968_v48 = vmul.f32 %v13082_v35, %v6947_v20  ;;  %v6908_v57 = vmul.f32 %v13088_v41, %v6887_v3  ;;  %v6878_v32 = vadd.f32 %v6870_v19, %v6841_v59  ;;  %v6535_v3 = vld [vmem:[#allocation7 + $0x28] sm:$0xf] }
 0x814   : > { %v6969_v38 = vmul.f32 %v13091_v51, %v6948_v12  ;;  %v6923_v22 = vrot.slane %v6907_v13, 1  ;;  %v6879_v24 = vadd.f32 %v6871_v26, %v6842_v29  ;;  %v6607_v12 = vrot.slane %v6591_v54, 1 }
 0x815   : > { %v6458_v21 = vpop.f32.mrb[52].mxu1  ;;  %v6924_v23 = vrot.slane %v6908_v57, 1  ;;  %v6984_v10 = vrot.slane %v6968_v48, 2  ;;  %v6652_v29 = vmul.f32 %v13031_v33, %v6631_v52  ;;  %v6555_v54 = vmul.f32 %v13024_v5, %v6535_v3  ;;  %v6692_v57 = vld [vmem:[#allocation7 + $0x30] sm:$0xf] }
 0x816   : > { %7379 = vmatpush1.bf16.msra.mxu0 %v12897_v2  ;;  %v6465_v28 = vmul.f32 %v6458_v21, %v12999_v0  ;;  %v6460_v47 = vpop.f32.mrb[53].mxu1  ;;  %v6939_v20 = vadd.f32 %v6923_v22, %v6878_v32  ;;  %v6985_v2 = vrot.slane %v6969_v38, 2  ;;  %v6554_v21 = vmul.f32 %v13028_v11, %v6534_v46  ;;  %v6730_v52 = vld [vmem:[#allocation7 + $0x38] sm:$0x1e] }
 0x817   : > { %7380 = vmatprep.subr.bf16.mxu0 %v12902_v17  ;;  %v6466_v59 = vmul.f32 %v6460_v47, %v13002_v63  ;;  %v6462_v19 = vpop.f32.mrb[54].mxu1  ;;  %v6940_v13 = vadd.f32 %v6924_v23, %v6879_v24  ;;  %v6729_v63 = vld [vmem:[#allocation7 + $0x30] sm:$0x1e]  ;;  %v6669_v22 = vrot.slane %v6653_v60, 2  ;;  %v6573_v47 = vld [vmem:[#allocation7 + $0x38] sm:$0x1e] }
 0x818   : > { %v6467_v50 = vadd.f32 %v6465_v28, %v13005_v6  ;;  %v6463_v44 = vpop.f32.mrb[55].mxu1  ;;  %v7000_v26 = vadd.f32 %v6984_v10, %v6939_v20  ;;  %v6693_v6 = vld [vmem:[#allocation7 + $0x38] sm:$0xf]  ;;  %v6623_v24 = vadd.f32 %v6607_v12, %v6554_v21  ;;  %v6668_v28 = vrot.slane %v6652_v29, 2 }
 0x819   : > { %v6468_v0 = vadd.f32 %v6466_v59, %v13008_v7  ;;  %v7001_v48 = vadd.f32 %v6985_v2, %v6940_v13  ;;  %v6624_v7 = vadd.f32 %v6608_v34, %v6555_v54  ;;  %v6713_v10 = vmul.f32 %v13046_v40, %v6692_v57  ;;  %v14097_v19 = vld [vmem:[#allocation75_spill] sm:$0xff]  ;;  %v14098_v34 = vld [vmem:[#allocation76_spill] sm:$0xff]  ;;  %v6790_v57 = vld [vmem:[#allocation7 + $0x30] sm:$0x3c] }
 0x81a   : > { %7381 = vmatpush1.bf16.msra.mxu0 %v12907_v37  ;;  %v6469_v32 = vmax.f32 %v6467_v50, 0.0  ;;  %v7019_v38 = vmul.f32 %v13102_v58, %v7000_v26  ;;  %v6750_v3 = vmul.f32 %v13050_v53, %v6729_v63  ;;  %v6714_v12 = vmul.f32 %v13054_v61, %v6693_v6  ;;  %v6791_v44 = vld [vmem:[#allocation7 + $0x38] sm:$0x3c]  ;;  %v14099_v6 = vld [vmem:[#allocation77_spill] sm:$0xff] }
 0x81b   : > { %7382 = vmatprep.subr.bf16.mxu0 %v12912_v42  ;;  %v6470_v23 = vmax.f32 %v6468_v0, 0.0  ;;  %v7020_v46 = vmul.f32 %v13105_v55, %v7001_v48  ;;  %v6751_v13 = vmul.f32 %v13057_v15, %v6730_v52  ;;  %v6684_v26 = vadd.f32 %v6668_v28, %v6623_v24  ;;  %v6634_v63 = vld [vmem:[#allocation7 + $0x38] sm:$0x3c] }
 0x81c   : > { %v6471_v2 = vmin.f32 %v6469_v32, 6.0  ;;  %v7038_v20 = vadd.f32 %v13108_v8, %v7019_v38  ;;  %v6594_v21 = vmul.f32 %v13016_v14, %v6573_v47  ;;  %v6685_v54 = vadd.f32 %v6669_v22, %v6624_v7 }
 0x81d   : > { %v6472_v59 = vmin.f32 %v6470_v23, 6.0  ;;  %v7039_v60 = vadd.f32 %v13111_v1, %v7020_v46  ;;  %v6721_v38 = vadd.f32 %v6713_v10, %v6684_v26  ;;  %v6766_v23 = vrot.slane %v6750_v3, 1 }
 0x81e   : > { %7383 = vmatpush1.bf16.msra.mxu0 %v14097_v19  ;;  %v6475_v50 = vrot.slane %v6471_v2, 7  ;;  %v7046_v29 = vmax.f32 %v7038_v20, 0.0  ;;  %v6722_v46 = vadd.f32 %v6714_v12, %v6685_v54  ;;  %v6767_v2 = vrot.slane %v6751_v13, 1  ;;  %v6537_v20 = vld [vmem:[#allocation7 + $0x38] sm:$0xf]  ;;  %v14102_v12 = vld [vmem:[#allocation80_spill] sm:$0xff] }
 0x81f   : > { %7384 = vmatprep.subr.bf16.mxu0 %v14098_v34  ;;  %v6476_v0 = vrot.slane %v6472_v59, 7  ;;  %v7047_v48 = vmax.f32 %v7039_v60, 0.0  ;;  %v14100_v34 = vld [vmem:[#allocation78_spill] sm:$0xff]  ;;  %v6812_v14 = vmul.f32 %v13068_v39, %v6791_v44  ;;  %v6811_v24 = vmul.f32 %v13065_v9, %v6790_v57  ;;  %v14101_v59 = vld [vmem:[#allocation79_spill] sm:$0xff] }
 0x820   : > { %6480 = vst [vmem:[#allocation7 + $0x40] sm:$0x1e] %v6475_v50  ;;  %v7054_v32 = vmin.f32 %v7046_v29, 6.0  ;;  %v6610_v22 = vrot.slane %v6594_v21, 1  ;;  %v6655_v7 = vmul.f32 %v13035_v62, %v6634_v63  ;;  %v6782_v10 = vadd.f32 %v6766_v23, %v6721_v38  ;;  %v14103_v38 = vld [vmem:[#allocation81_spill] sm:$0xff] }
 0x821   : > { %6481 = vst [vmem:[#allocation7 + $0x48] sm:$0x1e] %v6476_v0  ;;  %v7055_v52 = vmin.f32 %v7047_v48, 6.0  ;;  %v6557_v3 = vmul.f32 %v13024_v5, %v6537_v20  ;;  %v6783_v60 = vadd.f32 %v6767_v2, %v6722_v46  ;;  %v6828_v13 = vrot.slane %v6812_v14, 2  ;;  %v14104_v14 = vld [vmem:[#allocation82_spill] sm:$0xff] }
 0x822   : > { %7385 = vmatpush1.bf16.msra.mxu0 %v14099_v6  ;;  %v7062_v47 = vpack.c.bf16 %v7054_v32, %v7054_v32  ;;  %v6827_v50 = vrot.slane %v6811_v24, 2  ;;  %v6671_v44 = vrot.slane %v6655_v7, 2 }
 0x823   : > { %7386 = vmatprep.subr.bf16.mxu0 %v14100_v34  ;;  %v7063_v28 = vpack.c.bf16 %v7055_v52, %v7055_v52  ;;  %v6626_v29 = vadd.f32 %v6610_v22, %v6557_v3  ;;  %v6844_v23 = vadd.f32 %v6828_v13, %v6783_v60 }
 0x824   : > { %v6843_v54 = vadd.f32 %v6827_v50, %v6782_v10  ;;  %v14105_v10 = vld [vmem:[#allocation70_spill] sm:$0xff]  ;;  %v6854_v50 = vld [vmem:[#allocation7 + $0x58] sm:$0xf] }
 0x825   : > { %7340 = vmatprep.mubr.bf16.mxu1 %v7063_v28  ;;  %v6687_v7 = vadd.f32 %v6671_v44, %v6626_v29  ;;  %v14107_v29 = vld [vmem:[#allocation83_spill] sm:$0xff] }
 0x826   : > { %7387 = vmatpush1.bf16.msra.mxu0 %v14101_v59  ;;  %7341 = vmatmul.mubr.bf16.vlgmr.msra.gmra.mrb[56].mxu1 %v7062_v47  ;;  %v6891_v47 = vld [vmem:[#allocation7 + $0x58] sm:$0x1e] }
 0x827   : > { %7388 = vmatprep.subr.bf16.mxu0 %v14102_v12  ;;  %7425 = vmatpush1.bf16.msra.mxu1 %v12840_v56  ;;  %v6851_v26 = vld [vmem:[#allocation7 + $0x40] sm:$0xf] }
 0x828   : > { %v6888_v62 = vld [vmem:[#allocation7 + $0x40] sm:$0x1e]  ;;  %7426 = vmatprep.subr.bf16.mxu1 %v12843_v4  ;;  %v6852_v0 = vld [vmem:[#allocation7 + $0x48] sm:$0xf]  ;;  %v6872_v57 = vmul.f32 %v13076_v18, %v6851_v26  ;;  %v6572_v26 = vld [vmem:[#allocation7 + $0x30] sm:$0x1e] }
 0x829   : > { %v6949_v21 = vld [vmem:[#allocation7 + $0x40] sm:$0x3c]  ;;  %v6889_v5 = vld [vmem:[#allocation7 + $0x48] sm:$0x1e]  ;;  %v6909_v63 = vmul.f32 %v13079_v49, %v6888_v62  ;;  %v6873_v56 = vmul.f32 %v13085_v31, %v6852_v0  ;;  %v14106_v62 = vld [vmem:[#allocation71_spill] sm:$0xff] }
 0x82a   : > { %v6950_v48 = vld [vmem:[#allocation7 + $0x48] sm:$0x3c]  ;;  %v6970_v32 = vmul.f32 %v13082_v35, %v6949_v21  ;;  %7389 = vmatpush1.bf16.msra.mxu0 %v14103_v38  ;;  %v6910_v52 = vmul.f32 %v13088_v41, %v6889_v5  ;;  %v6880_v24 = vadd.f32 %v6872_v57, %v6843_v54  ;;  %v6952_v54 = vld [vmem:[#allocation7 + $0x58] sm:$0x3c] }
 0x82b   : > { %v6971_v46 = vmul.f32 %v13091_v51, %v6950_v48  ;;  %v6695_v4 = vld [vmem:[#allocation7 + $0x48] sm:$0xf]  ;;  %7390 = vmatprep.subr.bf16.mxu0 %v14104_v14  ;;  %v6925_v22 = vrot.slane %v6909_v63, 1  ;;  %7427 = vmatpush1.bf16.msra.mxu1 %v14105_v10  ;;  %v6881_v3 = vadd.f32 %v6873_v56, %v6844_v23  ;;  %v6912_v63 = vmul.f32 %v13088_v41, %v6891_v47  ;;  %v14108_v23 = vld [vmem:[#allocation84_spill] sm:$0xff] }
 0x82c   : > { %v6732_v2 = vld [vmem:[#allocation7 + $0x48] sm:$0x1e]  ;;  %v6716_v28 = vmul.f32 %v13054_v61, %v6695_v4  ;;  %v6926_v60 = vrot.slane %v6910_v52, 1  ;;  %7428 = vmatprep.subr.bf16.mxu1 %v14106_v62  ;;  %v6986_v0 = vrot.slane %v6970_v32, 2  ;;  %v6875_v56 = vmul.f32 %v13085_v31, %v6854_v50  ;;  %v6536_v31 = vld [vmem:[#allocation7 + $0x30] sm:$0xf] }
 0x82d   : > { %v6793_v20 = vld [vmem:[#allocation7 + $0x48] sm:$0x3c]  ;;  %v6753_v13 = vmul.f32 %v13057_v15, %v6732_v2  ;;  %v6941_v21 = vadd.f32 %v6925_v22, %v6880_v24  ;;  %v6987_v44 = vrot.slane %v6971_v46, 2  ;;  %v6593_v52 = vmul.f32 %v13020_v27, %v6572_v26  ;;  %v14110_v27 = vld [vmem:[#allocation86_spill] sm:$0xff]  ;;  %v6694_v62 = vld [vmem:[#allocation7 + $0x40] sm:$0xf] }
 0x82e   : > { %v6724_v5 = vadd.f32 %v6716_v28, %v6687_v7  ;;  %v6814_v48 = vmul.f32 %v13068_v39, %v6793_v20  ;;  %7391 = vmatpush1.bf16.msra.mxu0 %v14107_v29  ;;  %v6942_v61 = vadd.f32 %v6926_v60, %v6881_v3  ;;  %v6973_v2 = vmul.f32 %v13091_v51, %v6952_v54  ;;  %v14109_v20 = vld [vmem:[#allocation85_spill] sm:$0xff]  ;;  %v6633_v7 = vld [vmem:[#allocation7 + $0x30] sm:$0x3c] }
 0x82f   : > { %v6769_v57 = vrot.slane %v6753_v13, 1  ;;  %7392 = vmatprep.subr.bf16.mxu0 %v14108_v23  ;;  %v7002_v15 = vadd.f32 %v6986_v0, %v6941_v21  ;;  %7429 = vmatpush1.bf16.msra.mxu1 %v12857_v30  ;;  %v6928_v22 = vrot.slane %v6912_v63, 1  ;;  %v6609_v28 = vrot.slane %v6593_v52, 1  ;;  %v14111_v13 = vld [vmem:[#allocation87_spill] sm:$0xff]  ;;  %v6731_v21 = vld [vmem:[#allocation7 + $0x40] sm:$0x1e] }
 0x830   : > { %v7003_v32 = vadd.f32 %v6987_v44, %v6942_v61  ;;  %v6830_v39 = vrot.slane %v6814_v48, 2  ;;  %7430 = vmatprep.subr.bf16.mxu1 %v12862_v16  ;;  %v6989_v47 = vrot.slane %v6973_v2, 2  ;;  %v6556_v3 = vmul.f32 %v13028_v11, %v6536_v31  ;;  %v14112_v0 = vld [vmem:[#allocation88_spill] sm:$0xff]  ;;  %v14113_v61 = vld [vmem:[#allocation89_spill] sm:$0xff] }
 0x831   : > { %v6785_v4 = vadd.f32 %v6769_v57, %v6724_v5  ;;  %v7021_v46 = vmul.f32 %v13102_v58, %v7002_v15  ;;  %v6654_v60 = vmul.f32 %v13031_v33, %v6633_v7  ;;  %v6715_v11 = vmul.f32 %v13046_v40, %v6694_v62  ;;  %v6792_v52 = vld [vmem:[#allocation7 + $0x40] sm:$0x3c]  ;;  %v6951_v7 = vld [vmem:[#allocation7 + $0x50] sm:$0x3c] }
 0x832   : > { %7393 = vmatpush1.bf16.msra.mxu0 %v14109_v20  ;;  %v7022_v41 = vmul.f32 %v13105_v55, %v7003_v32  ;;  %v6625_v5 = vadd.f32 %v6609_v28, %v6556_v3  ;;  %v6752_v33 = vmul.f32 %v13050_v53, %v6731_v21  ;;  %v14115_v32 = vld [vmem:[#allocation73_spill] sm:$0xff]  ;;  %v6813_v53 = vmul.f32 %v13065_v9, %v6792_v52  ;;  %v13341_v62 = vld [vmem:[%s14119_s3 + $0x94] ss:$8 sps:$4 sm:$0xff]   ;;  %v13346_v21 = vld [vmem:[%s14119_s3 + $0x90] ss:$8 sps:$4 sm:$0xff]  }
 0x833   : > { %v6846_v24 = vadd.f32 %v6830_v39, %v6785_v4  ;;  %7394 = vmatprep.subr.bf16.mxu0 %v14110_v27  ;;  %v7040_v30 = vadd.f32 %v13108_v8, %v7021_v46  ;;  %7431 = vmatpush1.bf16.msra.mxu1 %v12867_v43  ;;  %v14116_v39 = vld [vmem:[#allocation74_spill] sm:$0xff]  ;;  %v13312_v3 = vld [vmem:[%s14119_s3 + $0x60] ss:$8 sps:$4 sm:$0xff]   ;;  %14127 = vst [vmem:[#allocation78_spill] sm:$0xff] %v13341_v62  ;;  %14128 = vst [vmem:[#allocation79_spill] sm:$0xff] %v13346_v21 }
 0x834   : > { %v7041_v51 = vadd.f32 %v13111_v1, %v7022_v41  ;;  %7432 = vmatprep.subr.bf16.mxu1 %v12872_v36  ;;  %v6670_v36 = vrot.slane %v6654_v60, 2  ;;  %v6768_v40 = vrot.slane %v6752_v33, 1  ;;  %v6853_v41 = vld [vmem:[#allocation7 + $0x50] sm:$0xf]  ;;  %14122 = vst [vmem:[#allocation92_spill] sm:$0xff] %v13312_v3 }
 0x835   : > { %v6883_v16 = vadd.f32 %v6875_v56, %v6846_v24  ;;  %v7048_v10 = vmax.f32 %v7040_v30, 0.0  ;;  %v14114_v56 = vld [vmem:[#allocation72_spill] sm:$0xff]  ;;  %v6890_v24 = vld [vmem:[#allocation7 + $0x50] sm:$0x1e]  ;;  %v6874_v31 = vmul.f32 %v13076_v18, %v6853_v41 }
 0x836   : > { %7395 = vmatpush1.bf16.msra.mxu0 %v14111_v13  ;;  %v7049_v50 = vmax.f32 %v7041_v51, 0.0  ;;  %v6686_v15 = vadd.f32 %v6670_v36, %v6625_v5  ;;  %v6911_v9 = vmul.f32 %v13079_v49, %v6890_v24  ;;  %v14117_v30 = vld [vmem:[#allocation76_spill] sm:$0xff]  ;;  %v6972_v51 = vmul.f32 %v13082_v35, %v6951_v7  ;;  %v13324_v60 = vld [vmem:[%s14119_s3 + $0x74] ss:$8 sps:$4 sm:$0xff]   ;;  %v13386_v33 = vld [vmem:[%s14119_s3 + $0xd0] ss:$8 sps:$4 sm:$0xff]  }
 0x837   : > { %v6944_v26 = vadd.f32 %v6928_v22, %v6883_v16  ;;  %7396 = vmatprep.subr.bf16.mxu0 %v14112_v0  ;;  %v7056_v43 = vmin.f32 %v7048_v10, 6.0  ;;  %7433 = vmatpush1.bf16.msra.mxu1 %v12877_v25  ;;  %v6829_v22 = vrot.slane %v6813_v53, 2  ;;  %v13296_v16 = vld [vmem:[%s14119_s3 + $0x54] ss:$8 sps:$4 sm:$0xff]   ;;  %v13306_v10 = vld [vmem:[%s14119_s3 + $0x64] ss:$8 sps:$4 sm:$0xff]  }
 0x838   : > { %v7057_v48 = vmin.f32 %v7049_v50, 6.0  ;;  %7434 = vmatprep.subr.bf16.mxu1 %v12882_v45  ;;  %v6723_v45 = vadd.f32 %v6715_v11, %v6686_v15  ;;  %v6927_v28 = vrot.slane %v6911_v9, 1  ;;  %14121 = vst [vmem:[#allocation91_spill] sm:$0xff] %v13306_v10  ;;  %14123 = vst [vmem:[#allocation93_spill] sm:$0xff] %v13324_v60  ;;  %v13330_v50 = vld [vmem:[%s14119_s3 + $0x84] ss:$8 sps:$4 sm:$0xff]  }
 0x839   : > { %v7005_v54 = vadd.f32 %v6989_v47, %v6944_v26  ;;  %v7064_v63 = vpack.c.bf16 %v7056_v43, %v7056_v43  ;;  %v13302_v47 = vld [vmem:[%s14119_s3 + $0x50] ss:$8 sps:$4 sm:$0xff]   ;;  %14125 = vst [vmem:[#allocation75_spill] sm:$0xff] %v13330_v50  ;;  %v13336_v26 = vld [vmem:[%s14119_s3 + $0x80] ss:$8 sps:$4 sm:$0xff]   ;;  %14136 = vst [vmem:[#allocation85_spill] sm:$0xff] %v13386_v33 }
 0x83a   : > { %7397 = vmatpush1.bf16.msra.mxu0 %v14113_v61  ;;  %v7065_v44 = vpack.c.bf16 %v7057_v48, %v7057_v48  ;;  %14120 = vst [vmem:[#allocation90_spill] sm:$0xff] %v13302_v47  ;;  %14126 = vst [vmem:[#allocation77_spill] sm:$0xff] %v13336_v26  ;;  %v13356_v43 = vld [vmem:[%s14119_s3 + $0xa0] ss:$8 sps:$4 sm:$0xff]   ;;  %v13361_v5 = vld [vmem:[%s14119_s3 + $0xb4] ss:$8 sps:$4 sm:$0xff]  }
 0x83b   : > { %v7024_v57 = vmul.f32 %v13105_v55, %v7005_v54  ;;  %7435 = vmatpush1.bf16.msra.mxu1 %v14114_v56  ;;  %v6784_v55 = vadd.f32 %v6768_v40, %v6723_v45  ;;  %14130 = vst [vmem:[#allocation81_spill] sm:$0xff] %v13356_v43  ;;  %14131 = vst [vmem:[#allocation82_spill] sm:$0xff] %v13361_v5  ;;  %v13366_v48 = vld [vmem:[%s14119_s3 + $0xb0] ss:$8 sps:$4 sm:$0xff]   ;;  %v13371_v54 = vld [vmem:[%s14119_s3 + $0xc4] ss:$8 sps:$4 sm:$0xff]  }
 0x83c   : > { %7398 = vmatprep.mubr.bf16.mxu0 %v7065_v44  ;;  %7436 = vmatprep.subr.bf16.mxu1 %v14115_v32  ;;  %14132 = vst [vmem:[#allocation70_spill] sm:$0xff] %v13366_v48  ;;  %14133 = vst [vmem:[#allocation71_spill] sm:$0xff] %v13371_v54  ;;  %v13376_v36 = vld [vmem:[%s14119_s3 + $0xc0] ss:$8 sps:$4 sm:$0xff]   ;;  %v13382_v11 = vld [vmem:[%s14119_s3 + $0xd4] ss:$8 sps:$4 sm:$0xff]  }
 0x83d   : > { %v7043_v25 = vadd.f32 %v13111_v1, %v7024_v57  ;;  %7399 = vmatmul.mubr.bf16.vlgmr.msra.gmra.mrb[60].mxu0 %v7064_v63  ;;  %v6845_v1 = vadd.f32 %v6829_v22, %v6784_v55  ;;  %14134 = vst [vmem:[#allocation83_spill] sm:$0xff] %v13376_v36  ;;  %14135 = vst [vmem:[#allocation84_spill] sm:$0xff] %v13382_v11  ;;  %v13396_v44 = vld [vmem:[%s14119_s3 + $0xe0] ss:$8 sps:$4 sm:$0xff]   ;;  %v13401_v57 = vld [vmem:[%s14119_s3 + $0xf4] ss:$8 sps:$4 sm:$0xff]  }
 0x83e   : > { %14140 = vst [vmem:[#allocation87_spill] sm:$0xff] %v13396_v44  ;;  %14141 = vst [vmem:[#allocation88_spill] sm:$0xff] %v13401_v57  ;;  %v13406_v63 = vld [vmem:[%s14119_s3 + $0xf0] ss:$8 sps:$4 sm:$0xff]   ;;  %v6516_v15 = vld [vmem:[%s14138_s2] sm:$0x3] }
 0x83f   : > { %v7051_v4 = vmax.f32 %v7043_v25, 0.0  ;;  %7437 = vmatpush1.bf16.msra.mxu1 %v14116_v39  ;;  %14142 = vst [vmem:[#allocation89_spill] sm:$0xff] %v13406_v63  ;;  %v14143_v25 = vld [vmem:[#allocation95_spill] sm:$0xff]  ;;  %v14144_v32 = vld [vmem:[#allocation96_spill] sm:$0xff]  ;;  %s14147_s2 = sld [smem:[#allocation60_spill]] }
 0x840   : > { %7438 = vmatprep.subr.bf16.mxu1 %v12902_v17  ;;  %v6882_v17 = vadd.f32 %v6874_v31, %v6845_v1  ;;  %v13418_v52 = vrot.slane %v6516_v15, %v14143_v25  ;;  %v13421_v45 = vrot.slane %v6516_v15, %v14144_v32 }
 0x841   : > { %v7059_v2 = vmin.f32 %v7051_v4, 6.0 }
 0x843   : > { %v7067_v46 = vpack.c.bf16 %v7059_v2, %v7059_v2  ;;  %7439 = vmatpush1.bf16.msra.mxu1 %v12907_v37  ;;  %v6943_v37 = vadd.f32 %v6927_v28, %v6882_v17 }
 0x844   : > { %7440 = vmatprep.subr.bf16.mxu1 %v12912_v42  ;;  %v6988_v42 = vrot.slane %v6972_v51, 2 }
 0x845   : > { %7456 = vmatprep.mubr.bf16.mxu1 %v7067_v46 }
 0x846   : > { %v7004_v18 = vadd.f32 %v6988_v42, %v6943_v37  ;;  %v7555_v42 = vld [vmem:[#allocation8 + $0x8] sm:$0x1e] }
 0x847   : > { %7441 = vmatpush1.bf16.msra.mxu1 %v14097_v19  ;;  %v13250_v19 = vld [vmem:[%s14118_s28 + $0x4] ss:$8 sps:$4 sm:$0xff]   ;;  %s14139_s28 = sld [smem:[#allocation58_spill]] }
 0x848   : > { %7442 = vmatprep.subr.bf16.mxu1 %v14117_v30  ;;  %v7023_v49 = vmul.f32 %v13102_v58, %v7004_v18  ;;  %8216 = vmatprep.subr.bf16.mxu0 %v13250_v19  ;;  %v13262_v58 = vld [vmem:[%s14119_s3 + $0x10] ss:$8 sps:$4 sm:$0xff]  }
 0x84a   : > { %v7042_v35 = vadd.f32 %v13108_v8, %v7023_v49  ;;  %v13267_v8 = vld [vmem:[%s14119_s3 + $0x24] ss:$8 sps:$4 sm:$0xff]  }
 0x84b   : > { %7443 = vmatpush1.bf16.msra.mxu1 %v14099_v6  ;;  %v13256_v6 = vld [vmem:[%s14119_s3 + $0x14] ss:$8 sps:$4 sm:$0xff]  }
 0x84c   : > { %7444 = vmatprep.subr.bf16.mxu1 %v14100_v34  ;;  %v13253_v34 = vld [vmem:[%s14119_s3] ss:$8 sps:$4 sm:$0xff]  }
 0x84d   : > { %8217 = vmatpush1.bf16.msra.mxu0 %v13253_v34  ;;  %v6517_v56 = vld [vmem:[%s14139_s28] sm:$0x3]  ;;  %s14148_s28 = sld [smem:[#allocation61_spill]] }
 0x84e   : > { %8218 = vmatprep.subr.bf16.mxu0 %v13256_v6  ;;  %v13424_v40 = vrot.slane %v6517_v56, %v14143_v25  ;;  %v13427_v53 = vrot.slane %v6517_v56, %v14144_v32 }
 0x84f   : > { %7445 = vmatpush1.bf16.msra.mxu1 %v14101_v59  ;;  %v7050_v59 = vmax.f32 %v7042_v35, 0.0  ;;  %v7554_v35 = vld [vmem:[#allocation8] sm:$0x1e] }
 0x850   : > { %7446 = vmatprep.subr.bf16.mxu1 %v14102_v12 }
 0x851   : > { %v7058_v12 = vmin.f32 %v7050_v59, 6.0  ;;  %8219 = vmatpush1.bf16.msra.mxu0 %v13262_v58 }
 0x852   : > { %8220 = vmatprep.subr.bf16.mxu0 %v13267_v8 }
 0x853   : > { %7447 = vmatpush1.bf16.msra.mxu1 %v14103_v38  ;;  %v13272_v38 = vld [vmem:[%s14119_s3 + $0x20] ss:$8 sps:$4 sm:$0xff]  }
 0x854   : > { %7448 = vmatprep.subr.bf16.mxu1 %v14104_v14  ;;  %v13277_v14 = vld [vmem:[%s14119_s3 + $0x34] ss:$8 sps:$4 sm:$0xff]  }
 0x855   : > { %8221 = vmatpush1.bf16.msra.mxu0 %v13272_v38 }
 0x856   : > { %8222 = vmatprep.subr.bf16.mxu0 %v13277_v14 }
 0x857   : > { %7449 = vmatpush1.bf16.msra.mxu1 %v14107_v29  ;;  %v7066_v29 = vpack.c.bf16 %v7058_v12, %v7058_v12  ;;  %v7519_v12 = vld [vmem:[#allocation8 + $0x8] sm:$0xf] }
 0x858   : > { %7450 = vmatprep.subr.bf16.mxu1 %v14108_v23  ;;  %v13282_v23 = vld [vmem:[%s14119_s3 + $0x30] ss:$8 sps:$4 sm:$0xff]  }
 0x859   : > { %8223 = vmatpush1.bf16.msra.mxu0 %v13282_v23 }
 0x85b   : > { %7451 = vmatpush1.bf16.msra.mxu1 %v14109_v20  ;;  %v13286_v20 = vld [vmem:[%s14119_s3 + $0x44] ss:$8 sps:$4 sm:$0xff]  }
 0x85c   : > { %7452 = vmatprep.subr.bf16.mxu1 %v14110_v27  ;;  %v13292_v27 = vld [vmem:[%s14119_s3 + $0x40] ss:$8 sps:$4 sm:$0xff]   ;;  %8224 = vmatprep.subr.bf16.mxu0 %v13286_v20 }
 0x85d   : > { %8225 = vmatpush1.bf16.msra.mxu0 %v13292_v27 }
 0x85e   : > { %8226 = vmatprep.subr.bf16.mxu0 %v13296_v16 }
 0x85f   : > { %7453 = vmatpush1.bf16.msra.mxu1 %v14111_v13  ;;  %v13327_v13 = vld [vmem:[%s14119_s3 + $0x70] ss:$8 sps:$4 sm:$0xff]  }
 0x860   : > { %7454 = vmatprep.subr.bf16.mxu1 %v14112_v0  ;;  %14124 = vst [vmem:[#allocation94_spill] sm:$0xff] %v13327_v13  ;;  %v13351_v0 = vld [vmem:[%s14119_s3 + $0xa4] ss:$8 sps:$4 sm:$0xff]  }
 0x861   : > { %8227 = vmatpush1.bf16.msra.mxu0 %v13302_v47  ;;  %14129 = vst [vmem:[#allocation80_spill] sm:$0xff] %v13351_v0 }
 0x862   : > { %8228 = vmatprep.subr.bf16.mxu0 %v13306_v10 }
 0x863   : > { %7455 = vmatpush1.bf16.msra.mxu1 %v14113_v61  ;;  %v13391_v61 = vld [vmem:[%s14119_s3 + $0xe4] ss:$8 sps:$4 sm:$0xff]   ;;  %s14145_s3 = sld [smem:[#allocation59_spill]] }
 0x864   : > { %8302 = vmatprep.subr.bf16.mxu1 %v13250_v19  ;;  %14137 = vst [vmem:[#allocation86_spill] sm:$0xff] %v13391_v61 }
 0x865   : > { %8229 = vmatpush1.bf16.msra.mxu0 %v13312_v3 }
 0x866   : > { %7457 = vmatmul.mubr.bf16.vlgmr.msra.gmra.mrb[60].mxu1 %v7066_v29  ;;  %8230 = vmatprep.subr.bf16.mxu0 %v13324_v60 }
 0x867   : > { %8303 = vmatpush1.bf16.msra.mxu1 %v13253_v34 }
 0x868   : > { %8304 = vmatprep.subr.bf16.mxu1 %v13256_v6 }
 0x869   : > { %8231 = vmatpush1.bf16.msra.mxu0 %v13327_v13  ;;  %v9157_v28 = vld [vmem:[%s14145_s3 + $0x1] ss:$8 sm:$0x3]  ;;  %v7526_v37 = vld [vmem:[%s14145_s3] ss:$8 sm:$0x3] }
 0x86a   : > { %8232 = vmatprep.subr.bf16.mxu0 %v13330_v50  ;;  %v13435_v51 = vrot.slane %v9157_v28, %v14144_v32  ;;  %v13439_v18 = vrot.slane %v9157_v28, %v14143_v25  ;;  %v9158_v49 = vld [vmem:[%s14145_s3 + $0x2] ss:$8 sm:$0x3]  ;;  %v13447_v29 = vrot.slane %v7526_v37, %v14143_v25 }
 0x86b   : > { %8305 = vmatpush1.bf16.msra.mxu1 %v13262_v58  ;;  %v13450_v15 = vrot.slane %v9158_v49, %v14143_v25 }
 0x86c   : > { %8306 = vmatprep.subr.bf16.mxu1 %v13267_v8  ;;  %14146 = vst [vmem:[#allocation72_spill] sm:$0xff] %v13439_v18  ;;  %v7576_v59 = vmul.f32 %v13435_v51, %v7555_v42  ;;  %v7575_v56 = vmul.f32 %v13439_v18, %v7554_v35 }
 0x86d   : > { %8233 = vmatpush1.bf16.msra.mxu0 %v13336_v26 }
 0x86e   : > { %8234 = vmatprep.subr.bf16.mxu0 %v13341_v62 }
 0x86f   : > { %8307 = vmatpush1.bf16.msra.mxu1 %v13272_v38 }
 0x870   : > { %8308 = vmatprep.subr.bf16.mxu1 %v13277_v14 }
 0x871   : > { %8235 = vmatpush1.bf16.msra.mxu0 %v13346_v21 }
 0x872   : > { %8236 = vmatprep.subr.bf16.mxu0 %v13351_v0 }
 0x873   : > { %8309 = vmatpush1.bf16.msra.mxu1 %v13282_v23 }
 0x874   : > { %8310 = vmatprep.subr.bf16.mxu1 %v13286_v20 }
 0x875   : > { %8237 = vmatpush1.bf16.msra.mxu0 %v13356_v43 }
 0x876   : > { %8238 = vmatprep.subr.bf16.mxu0 %v13361_v5 }
 0x877   : > { %8311 = vmatpush1.bf16.msra.mxu1 %v13292_v27 }
 0x878   : > { %8312 = vmatprep.subr.bf16.mxu1 %v13296_v16 }
 0x879   : > { %8239 = vmatpush1.bf16.msra.mxu0 %v13366_v48 }
 0x87a   : > { %8240 = vmatprep.subr.bf16.mxu0 %v13371_v54 }
 0x87b   : > { %8313 = vmatpush1.bf16.msra.mxu1 %v13302_v47 }
 0x87c   : > { %8314 = vmatprep.subr.bf16.mxu1 %v13306_v10 }
 0x87d   : > { %8241 = vmatpush1.bf16.msra.mxu0 %v13376_v36 }
 0x87e   : > { %8242 = vmatprep.subr.bf16.mxu0 %v13382_v11 }
 0x87f   : > { %8315 = vmatpush1.bf16.msra.mxu1 %v13312_v3 }
 0x880   : > { %8316 = vmatprep.subr.bf16.mxu1 %v13324_v60 }
 0x881   : > { %8243 = vmatpush1.bf16.msra.mxu0 %v13386_v33 }
 0x882   : > { %8244 = vmatprep.subr.bf16.mxu0 %v13391_v61 }
 0x883   : > { %8317 = vmatpush1.bf16.msra.mxu1 %v13327_v13 }
 0x884   : > { %8318 = vmatprep.subr.bf16.mxu1 %v13330_v50 }
 0x885   : > { %8245 = vmatpush1.bf16.msra.mxu0 %v13396_v44 }
 0x886   : > { %8246 = vmatprep.subr.bf16.mxu0 %v13401_v57 }
 0x887   : > { %8319 = vmatpush1.bf16.msra.mxu1 %v13336_v26 }
 0x888   : > { %8320 = vmatprep.subr.bf16.mxu1 %v13341_v62 }
 0x889   : > { %8247 = vmatpush1.bf16.msra.mxu0 %v13406_v63 }
 0x88a   : > { %8367 = vmatprep.subr.bf16.mxu0 %v13250_v19 }
 0x88b   : > { %8321 = vmatpush1.bf16.msra.mxu1 %v13346_v21 }
 0x88c   : > { %8322 = vmatprep.subr.bf16.mxu1 %v13351_v0 }
 0x88f   : > { %8323 = vmatpush1.bf16.msra.mxu1 %v13356_v43 }
 0x890   : > { %8324 = vmatprep.subr.bf16.mxu1 %v13361_v5 }
 0x893   : > { %8325 = vmatpush1.bf16.msra.mxu1 %v13366_v48 }
 0x894   : > { %8326 = vmatprep.subr.bf16.mxu1 %v13371_v54 }
 0x897   : > { %8327 = vmatpush1.bf16.msra.mxu1 %v13376_v36 }
 0x898   : > { %8328 = vmatprep.subr.bf16.mxu1 %v13382_v11 }
 0x89b   : > { %8329 = vmatpush1.bf16.msra.mxu1 %v13386_v33 }
 0x89c   : > { %8330 = vmatprep.subr.bf16.mxu1 %v13391_v61 }
 0x89f   : > { %8331 = vmatpush1.bf16.msra.mxu1 %v13396_v44  ;;  %v9161_v44 = vld [vmem:[%s14145_s3 + $0x5] ss:$8 sm:$0x3] }
 0x8a0   : > { %8332 = vmatprep.subr.bf16.mxu1 %v13401_v57  ;;  %v13484_v33 = vrot.slane %v9161_v44, %v14143_v25 }
 0x8a3   : > { %8333 = vmatpush1.bf16.msra.mxu1 %v13406_v63 }
 0x8a4   : > { %8432 = vmatprep.subr.bf16.mxu1 %v13250_v19  ;;  %v13443_v19 = vrot.slane %v7526_v37, %v14144_v32 }
 0x8d0   : > { %v7262_v4 = vpop.f32.mrb[56].mxu0 }
 0x8d1   : > { %v7280_v39 = vmul.f32 %v13418_v52, %v7262_v4  ;;  %v7264_v2 = vpop.f32.mrb[57].mxu0  ;;  %v13454_v4 = vrot.slane %v9158_v49, %v14144_v32 }
 0x8d2   : > { %v7281_v55 = vmul.f32 %v13421_v45, %v7264_v2  ;;  %v7266_v46 = vpop.f32.mrb[58].mxu0  ;;  %v7615_v2 = vld [vmem:[#allocation8] sm:$0x3c] }
 0x8d3   : > { %v7293_v41 = vadd.f32 %v13424_v40, %v7280_v39  ;;  %v7267_v24 = vpop.f32.mrb[59].mxu0  ;;  %v7518_v39 = vld [vmem:[#allocation8] sm:$0xf]  ;;  %v7539_v46 = vmul.f32 %v13443_v19, %v7519_v12 }
 0x8d4   : > { %v7294_v22 = vadd.f32 %v13427_v53, %v7281_v55  ;;  %v7616_v55 = vld [vmem:[#allocation8 + $0x8] sm:$0x3c] }
 0x8d5   : > { %v7295_v1 = vmax.f32 %v7293_v41, 0.0  ;;  %v7592_v41 = vrot.slane %v7576_v59, 1  ;;  %v9159_v24 = vld [vmem:[%s14145_s3 + $0x3] ss:$8 sm:$0x3] }
 0x8d6   : > { %v7296_v31 = vmax.f32 %v7294_v22, 0.0  ;;  %v7538_v22 = vmul.f32 %v13447_v29, %v7518_v39  ;;  %v13465_v35 = vrot.slane %v9159_v24, %v14143_v25  ;;  %v13473_v63 = vrot.slane %v9159_v24, %v14144_v32 }
 0x8d7   : > { %v7297_v9 = vmin.f32 %v7295_v1, 6.0  ;;  %v7591_v1 = vrot.slane %v7575_v56, 1  ;;  %v7608_v49 = vadd.f32 %v7592_v41, %v7539_v46 }
 0x8d8   : > { %v7298_v7 = vmin.f32 %v7296_v31, 6.0  ;;  %v7636_v31 = vmul.f32 %v13450_v15, %v7615_v2 }
 0x8d9   : > { %v7301_v30 = vrot.slane %v7297_v9, 7  ;;  %v7607_v39 = vadd.f32 %v7591_v1, %v7538_v22 }
 0x8da   : > { %v7302_v17 = vrot.slane %v7298_v7, 7  ;;  %v7637_v7 = vmul.f32 %v13454_v4, %v7616_v55  ;;  %v7652_v2 = vrot.slane %v7636_v31, 2 }
 0x8db   : > { %7306 = vst [vmem:[#allocation8 + $0x10] sm:$0x1e] %v7301_v30  ;;  %v9160_v30 = vld [vmem:[%s14145_s3 + $0x4] ss:$8 sm:$0x3] }
 0x8dc   : > { %7307 = vst [vmem:[#allocation8 + $0x18] sm:$0x1e] %v7302_v17  ;;  %v13469_v56 = vrot.slane %v9160_v30, %v14143_v25  ;;  %v13476_v46 = vrot.slane %v9160_v30, %v14144_v32  ;;  %v7668_v22 = vadd.f32 %v7652_v2, %v7607_v39  ;;  %v9162_v2 = vld [vmem:[%s14145_s3 + $0x6] ss:$8 sm:$0x3] }
 0x8e2   : > { %v7676_v41 = vld [vmem:[#allocation8 + $0x10] sm:$0xf] }
 0x8e3   : > { %v7677_v57 = vld [vmem:[#allocation8 + $0x18] sm:$0xf]  ;;  %v7697_v1 = vmul.f32 %v13465_v35, %v7676_v41  ;;  %v7774_v41 = vld [vmem:[#allocation8 + $0x10] sm:$0x3c] }
 0x8e4   : > { %v7698_v30 = vmul.f32 %v13473_v63, %v7677_v57  ;;  %v7775_v39 = vld [vmem:[#allocation8 + $0x18] sm:$0x3c]  ;;  %v7795_v11 = vmul.f32 %v13484_v33, %v7774_v41 }
 0x8e5   : > { %v7618_v54 = vld [vmem:[#allocation8 + $0x18] sm:$0x3c] }
 0x8e6   : > { %v7811_v36 = vrot.slane %v7795_v11, 2  ;;  %v7521_v10 = vld [vmem:[#allocation8 + $0x18] sm:$0xf] }
 0x8f9   : > { %v7342_v9 = vpop.f32.mrb[56].mxu1 }
 0x8fa   : > { %v7349_v17 = vmul.f32 %v7342_v9, %v13418_v52  ;;  %v7344_v28 = vpop.f32.mrb[57].mxu1  ;;  %v7653_v9 = vrot.slane %v7637_v7, 2 }
 0x8fb   : > { %v7350_v37 = vmul.f32 %v7344_v28, %v13421_v45  ;;  %v7346_v42 = vpop.f32.mrb[58].mxu1  ;;  %v7713_v28 = vld [vmem:[#allocation8 + $0x10] sm:$0x1e] }
 0x8fc   : > { %v7351_v59 = vadd.f32 %v7349_v17, %v13424_v40  ;;  %v7347_v12 = vpop.f32.mrb[59].mxu1  ;;  %v7714_v17 = vld [vmem:[#allocation8 + $0x18] sm:$0x1e]  ;;  %v7734_v31 = vmul.f32 %v13469_v56, %v7713_v28  ;;  %v7669_v7 = vadd.f32 %v7653_v9, %v7608_v49  ;;  %v9163_v28 = vld [vmem:[%s14145_s3 + $0x7] ss:$8 sm:$0x3] }
 0x8fd   : > { %v7352_v55 = vadd.f32 %v7350_v37, %v13427_v53  ;;  %v7735_v37 = vmul.f32 %v13476_v46, %v7714_v17  ;;  %v9164_v17 = vld [vmem:[%s14145_s3 + $0x10] ss:$8 sm:$0x3] }
 0x8fe   : > { %v7353_v42 = vmax.f32 %v7351_v59, 0.0  ;;  %v7750_v49 = vrot.slane %v7734_v31, 1  ;;  %v7706_v57 = vadd.f32 %v7698_v30, %v7669_v7  ;;  %v7556_v31 = vld [vmem:[#allocation8 + $0x10] sm:$0x1e]  ;;  %v13504_v7 = vrot.slane %v9162_v2, %v14144_v32 }
 0x8ff   : > { %v7354_v12 = vmax.f32 %v7352_v55, 0.0  ;;  %v13487_v55 = vrot.slane %v9161_v44, %v14144_v32  ;;  %v7751_v9 = vrot.slane %v7735_v37, 1  ;;  %v13495_v44 = vrot.slane %v9162_v2, %v14143_v25 }
 0x900   : > { %v7355_v61 = vmin.f32 %v7353_v42, 6.0  ;;  %v13507_v30 = vrot.slane %v9163_v28, %v14144_v32  ;;  %v13510_v37 = vrot.slane %v9164_v17, %v14144_v32 }
 0x901   : > { %v7356_v24 = vmin.f32 %v7354_v12, 6.0  ;;  %v7705_v12 = vadd.f32 %v7697_v1, %v7668_v22  ;;  %v7557_v1 = vld [vmem:[#allocation8 + $0x18] sm:$0x1e] }
 0x902   : > { %v7359_v59 = vrot.slane %v7355_v61, 7  ;;  %v7796_v61 = vmul.f32 %v13487_v55, %v7775_v39  ;;  %v7514_v39 = vld [vmem:[%s14147_s2] sm:$0x3]  ;;  %s14171_s2 = sld [smem:[#allocation63_spill]] }
 0x903   : > { %v7360_v42 = vrot.slane %v7356_v24, 7  ;;  %v13498_v24 = vrot.slane %v9163_v28, %v14143_v25  ;;  %v7766_v22 = vadd.f32 %v7750_v49, %v7705_v12  ;;  %v7578_v49 = vmul.f32 %v13435_v51, %v7557_v1  ;;  %v7515_v1 = vld [vmem:[%s14148_s28] sm:$0x3]  ;;  %s1513_s28 = sand.u32 1, %s10183_s1  }
 0x904   : > { %7364 = vst [vmem:[#allocation8 + $0x20] sm:$0x1e] %v7359_v59  ;;  %v13501_v59 = vrot.slane %v9164_v17, %v14143_v25  ;;  %v7812_v41 = vrot.slane %v7796_v61, 2  ;;  %v13526_v50 = vrot.slane %v7514_v39, %v14144_v32  ;;  %s1514_s3 = scalar_lea.vmem [#allocation21], %s1513_s28  ;;  %s8672_s8 = scalar_lea.sflag [#allocation11], %s1513_s28 }
 0x905   : > { %7365 = vst [vmem:[#allocation8 + $0x28] sm:$0x1e] %v7360_v42  ;;  %v7767_v42 = vadd.f32 %v7751_v9, %v7706_v57  ;;  %v7577_v57 = vmul.f32 %v13439_v18, %v7556_v31  ;;  %v7827_v28 = vadd.f32 %v7811_v36, %v7766_v22  ;;  %v13523_v31 = vrot.slane %v7514_v39, %v14143_v25  ;;  %v7617_v22 = vld [vmem:[#allocation8 + $0x10] sm:$0x3c]  ;;  %s8684_s4 = sshll.u32 %s1514_s3, 4  ;;  %s13734_s4 = int_to_ptr.vmem [resolvable:$true] %s8684_s4 }
 0x906   : > { %s10113_s9 = scalar_lea.vmem %s13734_s4, 16 }
 0x907   : > { %v7828_v11 = vadd.f32 %v7812_v41, %v7767_v42  ;;  %v7594_v42 = vrot.slane %v7578_v49, 1  ;;  %v7639_v41 = vmul.f32 %v13454_v4, %v7618_v54  ;;  %v7593_v18 = vrot.slane %v7577_v57, 1  ;;  %p10114_p10 = scmp.ne.s32.totalorder %s13734_s4, %s10113_s9 }
 0x908   : > { %v13534_v54 = vrot.slane %v7515_v1, %v14143_v25  ;;  %v13539_v57 = vrot.slane %v7515_v1, %v14144_v32 }
 0x909   : > { %p10115_p8 = pnand %p10114_p10, %p14173_p7 }
 0x90b   : > { %v7835_v48 = vld [vmem:[#allocation8 + $0x20] sm:$0xf]  ;;  %p10116_p11 = pneg %p10115_p8 }
 0x90c   : > { %v7872_v5 = vld [vmem:[#allocation8 + $0x20] sm:$0x1e]  ;;  %v7836_v2 = vld [vmem:[#allocation8 + $0x28] sm:$0xf]  ;;  %v7856_v0 = vmul.f32 %v13495_v44, %v7835_v48 }
 0x90d   : > { %v7933_v12 = vld [vmem:[#allocation8 + $0x20] sm:$0x3c]  ;;  %v7873_v9 = vld [vmem:[#allocation8 + $0x28] sm:$0x1e]  ;;  %v7893_v17 = vmul.f32 %v13498_v24, %v7872_v5  ;;  %v7857_v21 = vmul.f32 %v13504_v7, %v7836_v2  ;;  %v7520_v2 = vld [vmem:[#allocation8 + $0x10] sm:$0xf] }
 0x90e   : > { %v7934_v43 = vld [vmem:[#allocation8 + $0x28] sm:$0x3c]  ;;  %v7954_v61 = vmul.f32 %v13501_v59, %v7933_v12  ;;  %v7894_v62 = vmul.f32 %v13507_v30, %v7873_v9  ;;  %v7864_v36 = vadd.f32 %v7856_v0, %v7827_v28 }
 0x90f   : > { %v7955_v26 = vmul.f32 %v13510_v37, %v7934_v43  ;;  %v7909_v48 = vrot.slane %v7893_v17, 1  ;;  %v7865_v13 = vadd.f32 %v7857_v21, %v7828_v11  ;;  %v7638_v17 = vmul.f32 %v13450_v15, %v7617_v22 }
 0x910   : > { %v7400_v5 = vpop.f32.mrb[60].mxu0  ;;  %v7910_v12 = vrot.slane %v7894_v62, 1  ;;  %v7970_v3 = vrot.slane %v7954_v61, 2  ;;  %v7540_v11 = vmul.f32 %v13447_v29, %v7520_v2 }
 0x911   : > { %v7407_v9 = vmul.f32 %v7400_v5, %v13418_v52  ;;  %v7402_v43 = vpop.f32.mrb[61].mxu0  ;;  %v7925_v60 = vadd.f32 %v7909_v48, %v7864_v36  ;;  %v7971_v28 = vrot.slane %v7955_v26, 2  ;;  %v7715_v26 = vld [vmem:[#allocation8 + $0x20] sm:$0x1e]  ;;  %v7655_v5 = vrot.slane %v7639_v41, 2 }
 0x912   : > { %v7408_v39 = vmul.f32 %v7402_v43, %v13421_v45  ;;  %v7404_v47 = vpop.f32.mrb[62].mxu0  ;;  %v7926_v0 = vadd.f32 %v7910_v12, %v7865_v13  ;;  %v7678_v13 = vld [vmem:[#allocation8 + $0x20] sm:$0xf]  ;;  %v7679_v12 = vld [vmem:[#allocation8 + $0x28] sm:$0xf]  ;;  %v7609_v43 = vadd.f32 %v7593_v18, %v7540_v11 }
 0x913   : > { %v7409_v62 = vadd.f32 %v7407_v9, %v13424_v40  ;;  %v7405_v21 = vpop.f32.mrb[63].mxu0  ;;  %v7986_v49 = vadd.f32 %v7970_v3, %v7925_v60  ;;  %v7541_v47 = vmul.f32 %v13443_v19, %v7521_v10  ;;  %v7716_v9 = vld [vmem:[#allocation8 + $0x28] sm:$0x1e]  ;;  %v7736_v10 = vmul.f32 %v13469_v56, %v7715_v26 }
 0x914   : > { %v7410_v61 = vadd.f32 %v7408_v39, %v13427_v53  ;;  %v7987_v36 = vadd.f32 %v7971_v28, %v7926_v0  ;;  %v7654_v39 = vrot.slane %v7638_v17, 2  ;;  %v7699_v28 = vmul.f32 %v13465_v35, %v7678_v13 }
 0x915   : > { %v7411_v48 = vmax.f32 %v7409_v62, 0.0  ;;  %v8005_v22 = vmul.f32 %v13523_v31, %v7986_v49  ;;  %v7610_v2 = vadd.f32 %v7594_v42, %v7541_v47  ;;  %v7700_v41 = vmul.f32 %v13473_v63, %v7679_v12  ;;  %v7777_v47 = vld [vmem:[#allocation8 + $0x28] sm:$0x3c] }
 0x916   : > { %v7412_v3 = vmax.f32 %v7410_v61, 0.0  ;;  %v8006_v60 = vmul.f32 %v13526_v50, %v7987_v36  ;;  %v7737_v49 = vmul.f32 %v13476_v46, %v7716_v9  ;;  %v7670_v61 = vadd.f32 %v7654_v39, %v7609_v43 }
 0x917   : > { %v7413_v0 = vmin.f32 %v7411_v48, 6.0  ;;  %v8024_v1 = vadd.f32 %v13534_v54, %v8005_v22  ;;  %v7671_v17 = vadd.f32 %v7655_v5, %v7610_v2  ;;  %v7776_v48 = vld [vmem:[#allocation8 + $0x20] sm:$0x3c]  ;;  %v7752_v32 = vrot.slane %v7736_v10, 1 }
 0x918   : > { %v7414_v21 = vmin.f32 %v7412_v3, 6.0  ;;  %v8025_v62 = vadd.f32 %v13539_v57, %v8006_v60  ;;  %v7707_v13 = vadd.f32 %v7699_v28, %v7670_v61  ;;  %v7753_v60 = vrot.slane %v7737_v49, 1 }
 0x919   : > { %v7417_v18 = vrot.slane %v7413_v0, 7  ;;  %v8032_v11 = vmax.f32 %v8024_v1, 0.0  ;;  %v7708_v3 = vadd.f32 %v7700_v41, %v7671_v17  ;;  %v7798_v12 = vmul.f32 %v13487_v55, %v7777_v47 }
 0x91a   : > { %v7418_v36 = vrot.slane %v7414_v21, 7  ;;  %v8033_v42 = vmax.f32 %v8025_v62, 0.0  ;;  %v7797_v9 = vmul.f32 %v13484_v33, %v7776_v48  ;;  %v7768_v43 = vadd.f32 %v7752_v32, %v7707_v13 }
 0x91b   : > { %7422 = vst [vmem:[#allocation8 + $0x30] sm:$0x1e] %v7417_v18  ;;  %v8040_v22 = vmin.f32 %v8032_v11, 6.0  ;;  %v7769_v39 = vadd.f32 %v7753_v60, %v7708_v3  ;;  %v7814_v5 = vrot.slane %v7798_v12, 2 }
 0x91c   : > { %7423 = vst [vmem:[#allocation8 + $0x38] sm:$0x1e] %v7418_v36  ;;  %v8041_v26 = vmin.f32 %v8033_v42, 6.0  ;;  %v7813_v2 = vrot.slane %v7797_v9, 2 }
 0x91d   : > { %v8048_v1 = vpack.c.bf16 %v8040_v22, %v8040_v22  ;;  %v7830_v36 = vadd.f32 %v7814_v5, %v7769_v39 }
 0x91e   : > { %v8049_v0 = vpack.c.bf16 %v8041_v26, %v8041_v26  ;;  %v7829_v18 = vadd.f32 %v7813_v2, %v7768_v43 }
 0x920   : > { %8248 = vmatprep.mubr.bf16.mxu0 %v8049_v0 }
 0x921   : > { %8249 = vmatmul.mubr.bf16.vlgmr.msra.gmra.mrb[64].mxu0 %v8048_v1 }
 0x922   : > { %8368 = vmatpush1.bf16.msra.mxu0 %v13253_v34  ;;  %v7837_v28 = vld [vmem:[#allocation8 + $0x30] sm:$0xf] }
 0x923   : > { %v7874_v10 = vld [vmem:[#allocation8 + $0x30] sm:$0x1e]  ;;  %8369 = vmatprep.subr.bf16.mxu0 %v13256_v6  ;;  %v7838_v62 = vld [vmem:[#allocation8 + $0x38] sm:$0xf]  ;;  %v7858_v11 = vmul.f32 %v13495_v44, %v7837_v28 }
 0x924   : > { %v7935_v21 = vld [vmem:[#allocation8 + $0x30] sm:$0x3c]  ;;  %v7875_v41 = vld [vmem:[#allocation8 + $0x38] sm:$0x1e]  ;;  %v7895_v32 = vmul.f32 %v13498_v24, %v7874_v10  ;;  %v7859_v42 = vmul.f32 %v13504_v7, %v7838_v62 }
 0x925   : > { %v7936_v49 = vld [vmem:[#allocation8 + $0x38] sm:$0x3c]  ;;  %v7956_v61 = vmul.f32 %v13501_v59, %v7935_v21  ;;  %v7896_v17 = vmul.f32 %v13507_v30, %v7875_v41  ;;  %v7866_v48 = vadd.f32 %v7858_v11, %v7829_v18  ;;  %v7559_v41 = vld [vmem:[#allocation8 + $0x28] sm:$0x1e] }
 0x926   : > { %v7957_v47 = vmul.f32 %v13510_v37, %v7936_v49  ;;  %v7911_v22 = vrot.slane %v7895_v32, 1  ;;  %8370 = vmatpush1.bf16.msra.mxu0 %v13262_v58  ;;  %v7867_v13 = vadd.f32 %v7859_v42, %v7830_v36  ;;  %v7558_v49 = vld [vmem:[#allocation8 + $0x20] sm:$0x1e]  ;;  %v7580_v32 = vmul.f32 %v13435_v51, %v7559_v41  ;;  %v7680_v41 = vld [vmem:[#allocation8 + $0x30] sm:$0xf] }
 0x927   : > { %v7912_v26 = vrot.slane %v7896_v17, 1  ;;  %8371 = vmatprep.subr.bf16.mxu0 %v13267_v8  ;;  %v7972_v60 = vrot.slane %v7956_v61, 2  ;;  %v14149_v61 = vld [vmem:[#allocation90_spill] sm:$0xff]  ;;  %v14150_v36 = vld [vmem:[#allocation72_spill] sm:$0xff]  ;;  %v14151_v17 = vld [vmem:[#allocation91_spill] sm:$0xff] }
 0x928   : > { %v7927_v3 = vadd.f32 %v7911_v22, %v7866_v48  ;;  %v7973_v9 = vrot.slane %v7957_v47, 2  ;;  %v7579_v42 = vmul.f32 %v14150_v36, %v7558_v49  ;;  %v7523_v47 = vld [vmem:[#allocation8 + $0x28] sm:$0xf]  ;;  %v7619_v22 = vld [vmem:[#allocation8 + $0x20] sm:$0x3c] }
 0x929   : > { %v7928_v12 = vadd.f32 %v7912_v26, %v7867_v13  ;;  %v7620_v48 = vld [vmem:[#allocation8 + $0x28] sm:$0x3c]  ;;  %v7596_v13 = vrot.slane %v7580_v32, 1  ;;  %v7522_v26 = vld [vmem:[#allocation8 + $0x20] sm:$0xf] }
 0x92a   : > { %v7988_v0 = vadd.f32 %v7972_v60, %v7927_v3  ;;  %8372 = vmatpush1.bf16.msra.mxu0 %v13272_v38  ;;  %v14152_v60 = vld [vmem:[#allocation92_spill] sm:$0xff]  ;;  %v7717_v49 = vld [vmem:[#allocation8 + $0x30] sm:$0x1e]  ;;  %v7561_v32 = vld [vmem:[#allocation8 + $0x38] sm:$0x1e] }
 0x92b   : > { %v7989_v1 = vadd.f32 %v7973_v9, %v7928_v12  ;;  %8373 = vmatprep.subr.bf16.mxu0 %v13277_v14  ;;  %v7595_v12 = vrot.slane %v7579_v42, 1 }
 0x92c   : > { %v8007_v43 = vmul.f32 %v13523_v31, %v7988_v0 }
 0x92d   : > { %v8008_v39 = vmul.f32 %v13526_v50, %v7989_v1  ;;  %v14153_v1 = vld [vmem:[#allocation93_spill] sm:$0xff] }
 0x92e   : > { %v8026_v5 = vadd.f32 %v13534_v54, %v8007_v43  ;;  %8374 = vmatpush1.bf16.msra.mxu0 %v13282_v23  ;;  %v7543_v43 = vmul.f32 %v13443_v19, %v7523_v47 }
 0x92f   : > { %v8027_v2 = vadd.f32 %v13539_v57, %v8008_v39  ;;  %8375 = vmatprep.subr.bf16.mxu0 %v13286_v20  ;;  %v7640_v39 = vmul.f32 %v13450_v15, %v7619_v22 }
 0x930   : > { %v8034_v28 = vmax.f32 %v8026_v5, 0.0 }
 0x931   : > { %v8035_v10 = vmax.f32 %v8027_v2, 0.0  ;;  %v7681_v2 = vld [vmem:[#allocation8 + $0x38] sm:$0xf]  ;;  %v7656_v22 = vrot.slane %v7640_v39, 2 }
 0x932   : > { %v8042_v21 = vmin.f32 %v8034_v28, 6.0  ;;  %8376 = vmatpush1.bf16.msra.mxu0 %v13292_v27  ;;  %v7718_v28 = vld [vmem:[#allocation8 + $0x38] sm:$0x1e] }
 0x933   : > { %v8043_v62 = vmin.f32 %v8035_v10, 6.0  ;;  %8377 = vmatprep.subr.bf16.mxu0 %v13296_v16  ;;  %v7542_v10 = vmul.f32 %v13447_v29, %v7522_v26 }
 0x934   : > { %v8050_v11 = vpack.c.bf16 %v8042_v21, %v8042_v21 }
 0x935   : > { %v8051_v18 = vpack.c.bf16 %v8043_v62, %v8043_v62  ;;  %v7612_v62 = vadd.f32 %v7596_v13, %v7543_v43  ;;  %v7701_v13 = vmul.f32 %v13465_v35, %v7680_v41  ;;  %v14156_v43 = vld [vmem:[#allocation77_spill] sm:$0xff]  ;;  %v7621_v41 = vld [vmem:[#allocation8 + $0x30] sm:$0x3c] }
 0x936   : > { %8378 = vmatpush1.bf16.msra.mxu0 %v14149_v61 }
 0x937   : > { %8334 = vmatprep.mubr.bf16.mxu1 %v8051_v18  ;;  %8379 = vmatprep.subr.bf16.mxu0 %v14151_v17 }
 0x938   : > { %8335 = vmatmul.mubr.bf16.vlgmr.msra.gmra.mrb[64].mxu1 %v8050_v11  ;;  %v14154_v11 = vld [vmem:[#allocation94_spill] sm:$0xff] }
 0x939   : > { %8433 = vmatpush1.bf16.msra.mxu1 %v13253_v34  ;;  %v7458_v3 = vpop.f32.mrb[60].mxu1  ;;  %v7641_v34 = vmul.f32 %v13454_v4, %v7620_v48  ;;  %v7702_v48 = vmul.f32 %v13473_v63, %v7681_v2  ;;  %v14157_v2 = vld [vmem:[#allocation78_spill] sm:$0xff] }
 0x93a   : > { %8434 = vmatprep.subr.bf16.mxu1 %v13256_v6  ;;  %8380 = vmatpush1.bf16.msra.mxu0 %v14152_v60  ;;  %v7465_v9 = vmul.f32 %v7458_v3, %v13418_v52  ;;  %v7460_v0 = vpop.f32.mrb[61].mxu1 }
 0x93b   : > { %8381 = vmatprep.subr.bf16.mxu0 %v14153_v1  ;;  %v7466_v5 = vmul.f32 %v7460_v0, %v13421_v45  ;;  %v7462_v6 = vpop.f32.mrb[62].mxu1  ;;  %v7611_v45 = vadd.f32 %v7595_v12, %v7542_v10  ;;  %v7657_v47 = vrot.slane %v7641_v34, 2  ;;  %v7779_v34 = vld [vmem:[#allocation8 + $0x38] sm:$0x3c] }
 0x93c   : > { %v7467_v52 = vadd.f32 %v7465_v9, %v13424_v40  ;;  %v7463_v21 = vpop.f32.mrb[63].mxu1  ;;  %v7560_v40 = vld [vmem:[#allocation8 + $0x30] sm:$0x1e]  ;;  %v7582_v9 = vmul.f32 %v13435_v51, %v7561_v32  ;;  %v7525_v10 = vld [vmem:[#allocation8 + $0x38] sm:$0xf] }
 0x93d   : > { %8435 = vmatpush1.bf16.msra.mxu1 %v13262_v58  ;;  %v7468_v18 = vadd.f32 %v7466_v5, %v13427_v53  ;;  %v14155_v58 = vld [vmem:[#allocation75_spill] sm:$0xff]  ;;  %v7738_v53 = vmul.f32 %v13469_v56, %v7717_v49  ;;  %v7673_v12 = vadd.f32 %v7657_v47, %v7612_v62  ;;  %v7672_v39 = vadd.f32 %v7656_v22, %v7611_v45  ;;  %v7778_v5 = vld [vmem:[#allocation8 + $0x30] sm:$0x3c]  ;;  %v14159_v47 = vld [vmem:[#allocation80_spill] sm:$0xff] }
 0x93e   : > { %8436 = vmatprep.subr.bf16.mxu1 %v13267_v8  ;;  %8382 = vmatpush1.bf16.msra.mxu0 %v14154_v11  ;;  %v7469_v42 = vmax.f32 %v7467_v52, 0.0  ;;  %v7739_v8 = vmul.f32 %v13476_v46, %v7718_v28  ;;  %v7622_v52 = vld [vmem:[#allocation8 + $0x38] sm:$0x3c]  ;;  %v7598_v49 = vrot.slane %v7582_v9, 1  ;;  %v7800_v45 = vmul.f32 %v13487_v55, %v7779_v34 }
 0x93f   : > { %8383 = vmatprep.subr.bf16.mxu0 %v14155_v58  ;;  %v7470_v26 = vmax.f32 %v7468_v18, 0.0  ;;  %v7710_v28 = vadd.f32 %v7702_v48, %v7673_v12  ;;  %v7709_v62 = vadd.f32 %v7701_v13, %v7672_v39  ;;  %v7754_v51 = vrot.slane %v7738_v53, 1  ;;  %v7524_v18 = vld [vmem:[#allocation8 + $0x30] sm:$0xf]  ;;  %v7879_v13 = vld [vmem:[#allocation8 + $0x58] sm:$0x1e] }
 0x940   : > { %v7471_v3 = vmin.f32 %v7469_v42, 6.0  ;;  %v7799_v32 = vmul.f32 %v13484_v33, %v7778_v5  ;;  %v7643_v48 = vmul.f32 %v13454_v4, %v7622_v52  ;;  %v7642_v22 = vmul.f32 %v13450_v15, %v7621_v41  ;;  %v14160_v53 = vld [vmem:[#allocation81_spill] sm:$0xff] }
 0x941   : > { %8437 = vmatpush1.bf16.msra.mxu1 %v13272_v38  ;;  %v7472_v0 = vmin.f32 %v7470_v26, 6.0  ;;  %v7581_v38 = vmul.f32 %v14150_v36, %v7560_v40  ;;  %v14158_v36 = vld [vmem:[#allocation79_spill] sm:$0xff]  ;;  %v7770_v40 = vadd.f32 %v7754_v51, %v7709_v62  ;;  %v7544_v26 = vmul.f32 %v13447_v29, %v7524_v18 }
 0x942   : > { %8438 = vmatprep.subr.bf16.mxu1 %v13277_v14  ;;  %8384 = vmatpush1.bf16.msra.mxu0 %v14156_v43  ;;  %v7475_v6 = vrot.slane %v7471_v3, 7  ;;  %v7755_v14 = vrot.slane %v7739_v8, 1  ;;  %v7816_v3 = vrot.slane %v7800_v45, 2  ;;  %v7815_v12 = vrot.slane %v7799_v32, 2  ;;  %v7842_v18 = vld [vmem:[#allocation8 + $0x58] sm:$0xf] }
 0x943   : > { %8385 = vmatprep.subr.bf16.mxu0 %v14157_v2  ;;  %v7476_v21 = vrot.slane %v7472_v0, 7  ;;  %v7597_v42 = vrot.slane %v7581_v38, 1  ;;  %v7659_v4 = vrot.slane %v7643_v48, 2  ;;  %v7658_v0 = vrot.slane %v7642_v22, 2  ;;  %v14163_v32 = vld [vmem:[#allocation71_spill] sm:$0xff] }
 0x944   : > { %7480 = vst [vmem:[#allocation8 + $0x40] sm:$0x1e] %v7475_v6  ;;  %v7831_v15 = vadd.f32 %v7815_v12, %v7770_v40 }
 0x945   : > { %8439 = vmatpush1.bf16.msra.mxu1 %v13282_v23  ;;  %7481 = vst [vmem:[#allocation8 + $0x48] sm:$0x1e] %v7476_v21  ;;  %v7545_v23 = vmul.f32 %v13443_v19, %v7525_v10  ;;  %v7613_v9 = vadd.f32 %v7597_v42, %v7544_v26  ;;  %v14161_v19 = vld [vmem:[#allocation82_spill] sm:$0xff] }
 0x946   : > { %8440 = vmatprep.subr.bf16.mxu1 %v13286_v20  ;;  %8386 = vmatpush1.bf16.msra.mxu0 %v14158_v36  ;;  %v7771_v20 = vadd.f32 %v7755_v14, %v7710_v28  ;;  %v14162_v21 = vld [vmem:[#allocation70_spill] sm:$0xff] }
 0x947   : > { %8387 = vmatprep.subr.bf16.mxu0 %v14159_v47  ;;  %v7614_v8 = vadd.f32 %v7598_v49, %v7545_v23  ;;  %v7674_v45 = vadd.f32 %v7658_v0, %v7613_v9 }
 0x949   : > { %8441 = vmatpush1.bf16.msra.mxu1 %v13292_v27  ;;  %v7832_v27 = vadd.f32 %v7816_v3, %v7771_v20  ;;  %v7940_v3 = vld [vmem:[#allocation8 + $0x58] sm:$0x3c] }
 0x94a   : > { %8442 = vmatprep.subr.bf16.mxu1 %v13296_v16  ;;  %8388 = vmatpush1.bf16.msra.mxu0 %v14160_v53  ;;  %v13618_v16 = vmul.f32 %v13507_v30, %v7879_v13 }
 0x94b   : > { %8389 = vmatprep.subr.bf16.mxu0 %v14161_v19  ;;  %v7839_v34 = vld [vmem:[#allocation8 + $0x40] sm:$0xf] }
 0x94c   : > { %v7876_v39 = vld [vmem:[#allocation8 + $0x40] sm:$0x1e]  ;;  %v7840_v5 = vld [vmem:[#allocation8 + $0x48] sm:$0xf]  ;;  %v7860_v28 = vmul.f32 %v13495_v44, %v7839_v34 }
 0x94d   : > { %8443 = vmatpush1.bf16.msra.mxu1 %v14149_v61  ;;  %v7937_v29 = vld [vmem:[#allocation8 + $0x40] sm:$0x3c]  ;;  %v7877_v38 = vld [vmem:[#allocation8 + $0x48] sm:$0x1e]  ;;  %v7897_v10 = vmul.f32 %v13498_v24, %v7876_v39  ;;  %v7675_v61 = vadd.f32 %v7659_v4, %v7614_v8  ;;  %v7861_v14 = vmul.f32 %v13504_v7, %v7840_v5 }
 0x94e   : > { %8444 = vmatprep.subr.bf16.mxu1 %v14151_v17  ;;  %v7938_v6 = vld [vmem:[#allocation8 + $0x48] sm:$0x3c]  ;;  %v7958_v52 = vmul.f32 %v13501_v59, %v7937_v29  ;;  %8390 = vmatpush1.bf16.msra.mxu0 %v14162_v21  ;;  %v7898_v62 = vmul.f32 %v13507_v30, %v7877_v38  ;;  %v7868_v42 = vadd.f32 %v7860_v28, %v7831_v15  ;;  %v7682_v20 = vld [vmem:[#allocation8 + $0x40] sm:$0xf]  ;;  %v7841_v29 = vld [vmem:[#allocation8 + $0x50] sm:$0xf] }
 0x94f   : > { %v7959_v51 = vmul.f32 %v13510_v37, %v7938_v6  ;;  %v7683_v41 = vld [vmem:[#allocation8 + $0x48] sm:$0xf]  ;;  %8391 = vmatprep.subr.bf16.mxu0 %v14163_v32  ;;  %v7913_v23 = vrot.slane %v7897_v10, 1  ;;  %v7719_v40 = vld [vmem:[#allocation8 + $0x40] sm:$0x1e]  ;;  %v7869_v26 = vadd.f32 %v7861_v14, %v7832_v27  ;;  %v7703_v15 = vmul.f32 %v13465_v35, %v7682_v20 }
 0x950   : > { %v7720_v17 = vld [vmem:[#allocation8 + $0x48] sm:$0x1e]  ;;  %v7974_v48 = vrot.slane %v7958_v52, 2  ;;  %v7704_v22 = vmul.f32 %v13473_v63, %v7683_v41  ;;  %v7914_v30 = vrot.slane %v7898_v62, 1  ;;  %v7780_v12 = vld [vmem:[#allocation8 + $0x40] sm:$0x3c]  ;;  %v7961_v6 = vmul.f32 %v13510_v37, %v7940_v3 }
 0x951   : > { %v7781_v49 = vld [vmem:[#allocation8 + $0x48] sm:$0x3c]  ;;  %8445 = vmatpush1.bf16.msra.mxu1 %v14152_v60  ;;  %v7975_v8 = vrot.slane %v7959_v51, 2  ;;  %v7741_v13 = vmul.f32 %v13476_v46, %v7720_v17  ;;  %v7929_v9 = vadd.f32 %v7913_v23, %v7868_v42  ;;  %v14164_v63 = vld [vmem:[#allocation83_spill] sm:$0xff]  ;;  %v7740_v60 = vmul.f32 %v13469_v56, %v7719_v40  ;;  %v7878_v46 = vld [vmem:[#allocation8 + $0x50] sm:$0x1e] }
 0x952   : > { %8446 = vmatprep.subr.bf16.mxu1 %v14153_v1  ;;  %v7712_v4 = vadd.f32 %v7704_v22, %v7675_v61  ;;  %v7802_v0 = vmul.f32 %v13487_v55, %v7781_v49  ;;  %8392 = vmatpush1.bf16.msra.mxu0 %v14164_v63  ;;  %v7930_v34 = vadd.f32 %v7914_v30, %v7869_v26  ;;  %v14165_v5 = vld [vmem:[#allocation84_spill] sm:$0xff]  ;;  %v7916_v56 = vrot.slane %v13618_v16, 1  ;;  %v7939_v41 = vld [vmem:[#allocation8 + $0x50] sm:$0x3c]  ;;  %v14168_v23 = vld [vmem:[#allocation87_spill] sm:$0xff] }
 0x953   : > { %v7757_v39 = vrot.slane %v7741_v13, 1  ;;  %v7801_v27 = vmul.f32 %v13484_v33, %v7780_v12  ;;  %8393 = vmatprep.subr.bf16.mxu0 %v14165_v5  ;;  %v7990_v38 = vadd.f32 %v7974_v48, %v7929_v9  ;;  %v7863_v1 = vmul.f32 %v13504_v7, %v7842_v18  ;;  %v14166_v7 = vld [vmem:[#allocation85_spill] sm:$0xff]  ;;  %v14167_v17 = vld [vmem:[#allocation86_spill] sm:$0xff]  ;;  %v14169_v40 = vld [vmem:[#allocation88_spill] sm:$0xff] }
 0x954   : > { %v7711_v55 = vadd.f32 %v7703_v15, %v7674_v45  ;;  %v7991_v35 = vadd.f32 %v7975_v8, %v7930_v34  ;;  %v7818_v10 = vrot.slane %v7802_v0, 2  ;;  %v7756_v52 = vrot.slane %v7740_v60, 1  ;;  %v14170_v13 = vld [vmem:[#allocation89_spill] sm:$0xff]  ;;  %v9892_v34 = vld [vmem:[%s10489_s24 + $0x10] sm:$0xff]   ;;  %v9894_v60 = vld [vmem:[%s10489_s24 + $0x18] sm:$0xff]  }
 0x955   : > { %8447 = vmatpush1.bf16.msra.mxu1 %v14154_v11  ;;  %v7773_v28 = vadd.f32 %v7757_v39, %v7712_v4  ;;  %v8009_v33 = vmul.f32 %v13523_v31, %v7990_v38  ;;  %v7862_v61 = vmul.f32 %v13495_v44, %v7841_v29  ;;  %v7899_v14 = vmul.f32 %v13498_v24, %v7878_v46  ;;  %v9890_v15 = vld [vmem:[%s10489_s24 + $0x8] sm:$0xff]   ;;  %v9893_v39 = vld [vmem:[%s10489_s24 + $0x58] sm:$0xff]   ;;  %v9896_v29 = vld [vmem:[%s10489_s24 + $0x20] sm:$0xff]  }
 0x956   : > { %8448 = vmatprep.subr.bf16.mxu1 %v14155_v58  ;;  %8394 = vmatpush1.bf16.msra.mxu0 %v14166_v7  ;;  %v8010_v37 = vmul.f32 %v13526_v50, %v7991_v35  ;;  %v7772_v11 = vadd.f32 %v7756_v52, %v7711_v55  ;;  %v7817_v51 = vrot.slane %v7801_v27, 2  ;;  %v7977_v44 = vrot.slane %v7961_v6, 2  ;;  %v9895_v27 = vld [vmem:[%s10489_s24 + $0x60] sm:$0xff]   ;;  %v9897_v46 = vld [vmem:[%s10489_s24 + $0x68] sm:$0xff]   ;;  %v9899_v38 = vld [vmem:[%s10489_s24 + $0x70] sm:$0xff]  }
 0x957   : > { %v7834_v62 = vadd.f32 %v7818_v10, %v7773_v28  ;;  %8395 = vmatprep.subr.bf16.mxu0 %v14167_v17  ;;  %v8028_v58 = vadd.f32 %v13534_v54, %v8009_v33  ;;  %v7915_v45 = vrot.slane %v7899_v14, 1  ;;  %v7960_v42 = vmul.f32 %v13501_v59, %v7939_v41  ;;  %v9901_v6 = vld [vmem:[%s10489_s24 + $0x78] sm:$0xff]   ;;  %v7516_v55 = vld [vmem:[%s14171_s2] sm:$0x3]  ;;  %s9213_s2 = sshll.u32 %s10522_s0, 4  ;;  %s10250_s0 = smov [#allocation21]  }
 0x958   : > { %v8029_v16 = vadd.f32 %v13539_v57, %v8010_v37  ;;  %v7833_v18 = vadd.f32 %v7817_v51, %v7772_v11  ;;  %v9902_v35 = vld [vmem:[%s10489_s24 + $0x38] sm:$0xff]   ;;  %v13693_v28 = vrot.slane %v7516_v55, %v14143_v25  ;;  %v7517_v10 = vld [vmem:[%s10484_s14] sm:$0x3]  ;;  %s13732_s5 = scalar_lea.hbm %s10499_s6, %s9213_s2  ;;  %s10117_s10 = sshll.u32 %s10250_s0, 4  ;;  %s10118_s10 = int_to_ptr.vmem [resolvable:$false] %s10117_s10 }
 0x959   : > { %8449 = vmatpush1.bf16.msra.mxu1 %v14156_v43  ;;  %v7871_v49 = vadd.f32 %v7863_v1, %v7834_v62  ;;  %v8036_v24 = vmax.f32 %v8028_v58, 0.0  ;;  %v9900_v1 = vld [vmem:[%s10489_s24 + $0x30] sm:$0xff]   ;;  %v14172_v33 = vld [vmem:[#allocation96_spill] sm:$0xff]  ;;  %v13701_v37 = vrot.slane %v7517_v10, %v14143_v25  ;;  %s10119_s11 = scalar_lea.vmem %s10118_s10, 32  ;;  %p10120_p13 = scmp.lt.s32.totalorder %s13734_s4, %s10118_s10 }
 0x95a   : > { %8450 = vmatprep.subr.bf16.mxu1 %v14157_v2  ;;  %8396 = vmatpush1.bf16.msra.mxu0 %v14168_v23  ;;  %v8037_v48 = vmax.f32 %v8029_v16, 0.0  ;;  %v7870_v20 = vadd.f32 %v7862_v61, %v7833_v18  ;;  %v7976_v2 = vrot.slane %v7960_v42, 2  ;;  %v13705_v51 = vrot.slane %v7517_v10, %v14172_v33  ;;  %p10121_p1 = scmp.lt.s32.totalorder %s10119_s11, %s10113_s9 }
 0x95b   : > { %v7932_v22 = vadd.f32 %v7916_v56, %v7871_v49  ;;  %8397 = vmatprep.subr.bf16.mxu0 %v14169_v40  ;;  %v8044_v26 = vmin.f32 %v8036_v24, 6.0  ;;  %v13697_v56 = vrot.slane %v7516_v55, %v14172_v33 }
 0x95c   : > { %v8045_v43 = vmin.f32 %v8037_v48, 6.0  ;;  %v7931_v8 = vadd.f32 %v7915_v45, %v7870_v20  ;;  %p10122_p2 = por %p10121_p1, %p10120_p13 }
 0x95d   : > { %8451 = vmatpush1.bf16.msra.mxu1 %v14158_v36  ;;  %v7993_v30 = vadd.f32 %v7977_v44, %v7932_v22  ;;  %v8052_v12 = vpack.c.bf16 %v8044_v26, %v8044_v26 }
 0x95e   : > { %8452 = vmatprep.subr.bf16.mxu1 %v14159_v47  ;;  %8398 = vmatpush1.bf16.msra.mxu0 %v14170_v13  ;;  %v8053_v3 = vpack.c.bf16 %v8045_v43, %v8045_v43  ;;  %v7992_v36 = vadd.f32 %v7976_v2, %v7931_v8  ;;  %p10123_p0 = pnand %p10122_p2, %p10116_p11 }
 0x95f   : > { %v8012_v59 = vmul.f32 %v13526_v50, %v7993_v30 }
 0x960   : > { %8399 = vmatprep.mubr.bf16.mxu0 %v8053_v3  ;;  %v8011_v47 = vmul.f32 %v13523_v31, %v7992_v36 }
 0x961   : > { %8453 = vmatpush1.bf16.msra.mxu1 %v14160_v53  ;;  %v8031_v9 = vadd.f32 %v13539_v57, %v8012_v59  ;;  %8400 = vmatmul.mubr.bf16.vlgmr.msra.gmra.mrb[68].mxu0 %v8052_v12 }
 0x962   : > { %8454 = vmatprep.subr.bf16.mxu1 %v14161_v19  ;;  %v8030_v57 = vadd.f32 %v13534_v54, %v8011_v47  ;;  %v9887_v54 = vld [vmem:[%s10489_s24 + $0x40] sm:$0xff]  }
 0x963   : > { %v8039_v4 = vmax.f32 %v8031_v9, 0.0  ;;  %9313 = vmatprep.subr.bf16.mxu0 %v9887_v54 }
 0x964   : > { %v8038_v53 = vmax.f32 %v8030_v57, 0.0 }
 0x965   : > { %v8047_v0 = vmin.f32 %v8039_v4, 6.0  ;;  %8455 = vmatpush1.bf16.msra.mxu1 %v14162_v21  ;;  %v9888_v21 = vld [vmem:[%s10489_s24] sm:$0xff]  }
 0x966   : > { %8456 = vmatprep.subr.bf16.mxu1 %v14163_v32  ;;  %v8046_v31 = vmin.f32 %v8038_v53, 6.0  ;;  %9314 = vmatpush3.bf16.msra.mxu0 %v9888_v21  ;;  %v9889_v32 = vld [vmem:[%s10489_s24 + $0x48] sm:$0xff]  }
 0x967   : > { %v8055_v50 = vpack.c.bf16 %v8047_v0, %v8047_v0  ;;  %9315 = vmatprep.subr.bf16.mxu0 %v9889_v32 }
 0x968   : > { %v8054_v19 = vpack.c.bf16 %v8046_v31, %v8046_v31 }
 0x969   : > { %8464 = vmatprep.mubr.bf16.mxu1 %v8055_v50  ;;  %8457 = vmatpush1.bf16.msra.mxu1 %v14164_v63  ;;  %v9891_v63 = vld [vmem:[%s10489_s24 + $0x50] sm:$0xff]  }
 0x96a   : > { %8458 = vmatprep.subr.bf16.mxu1 %v14165_v5  ;;  %9316 = vmatpush3.bf16.msra.mxu0 %v9890_v15  ;;  %v9898_v5 = vld [vmem:[%s10489_s24 + $0x28] sm:$0xff]  }
 0x96b   : > { %9317 = vmatprep.subr.bf16.mxu0 %v9891_v63 }
 0x96d   : > { %8459 = vmatpush1.bf16.msra.mxu1 %v14166_v7 }
 0x96e   : > { %8460 = vmatprep.subr.bf16.mxu1 %v14167_v17  ;;  %9318 = vmatpush3.bf16.msra.mxu0 %v9892_v34 }
 0x96f   : > { %9319 = vmatprep.subr.bf16.mxu0 %v9893_v39 }
 0x971   : > { %8461 = vmatpush1.bf16.msra.mxu1 %v14168_v23 }
 0x972   : > { %8462 = vmatprep.subr.bf16.mxu1 %v14169_v40  ;;  %9320 = vmatpush3.bf16.msra.mxu0 %v9894_v60 }
 0x973   : > { %9321 = vmatprep.subr.bf16.mxu0 %v9895_v27 }
 0x975   : > { %8463 = vmatpush1.bf16.msra.mxu1 %v14170_v13 }
 0x976   : > { %9322 = vmatpush3.bf16.msra.mxu0 %v9896_v29 }
 0x977   : > { %9323 = vmatprep.subr.bf16.mxu0 %v9897_v46 }
 0x978   : > { %8465 = vmatmul.mubr.bf16.vlgmr.msra.gmra.mrb[68].mxu1 %v8054_v19 }
 0x97a   : > { %9324 = vmatpush3.bf16.msra.mxu0 %v9898_v5 }
 0x97b   : > { %9325 = vmatprep.subr.bf16.mxu0 %v9899_v38 }
 0x97e   : > { %9326 = vmatpush3.bf16.msra.mxu0 %v9900_v1 }
 0x97f   : > { %9327 = vmatprep.subr.bf16.mxu0 %v9901_v6 }
 0x982   : > { %9328 = vmatpush3.bf16.msra.mxu0 %v9902_v35 }
 0x9f4   : > { %v8250_v52 = vpop.f32.mrb[64].mxu0 }
 0x9f5   : > { %v8252_v61 = vpop.f32.mrb[65].mxu0  ;;  %v8268_v7 = vmul.f32 %v13693_v28, %v8250_v52 }
 0x9f6   : > { %v8254_v14 = vpop.f32.mrb[66].mxu0  ;;  %v8269_v11 = vmul.f32 %v13697_v56, %v8252_v61 }
 0x9f7   : > { %v8255_v62 = vpop.f32.mrb[67].mxu0  ;;  %v8281_v41 = vadd.f32 %v13701_v37, %v8268_v7 }
 0x9f8   : > { %v8282_v17 = vadd.f32 %v13705_v51, %v8269_v11 }
 0x9f9   : > { %v8283_v58 = vmax.f32 %v8281_v41, 0.0 }
 0x9fa   : > { %v8284_v16 = vmax.f32 %v8282_v17, 0.0 }
 0x9fb   : > { %v8285_v49 = vmin.f32 %v8283_v58, 6.0 }
 0x9fc   : > { %v8286_v44 = vmin.f32 %v8284_v16, 6.0 }
 0x9fd   : > { %v8288_v18 = vsel %vm8287_vm0, %v8285_v49, 0.0 }
 0x9fe   : > { %v8295_v25 = vsel %vm8287_vm0, %v8286_v44, 0.0  ;;  %v8289_v24 = vrot.slane %v8288_v18, 4 }
 0x9ff   : > { %v8296_v42 = vrot.slane %v8295_v25, 4 }
 0xa00   : > { %v8290_v43 = vadd.f32 %v8289_v24, %v8288_v18 }
 0xa01   : > { %v8297_v8 = vadd.f32 %v8296_v42, %v8295_v25 }
 0xa02   : > { %v8291_v59 = vrot.slane %v8290_v43, 2 }
 0xa03   : > { %v8298_v9 = vrot.slane %v8297_v8, 2 }
 0xa04   : > { %v8292_v50 = vadd.f32 %v8291_v59, %v8290_v43 }
 0xa05   : > { %v8299_v53 = vadd.f32 %v8298_v9, %v8297_v8 }
 0xa06   : > { %v8293_v21 = vrot.slane %v8292_v50, 1 }
 0xa07   : > { %v8300_v15 = vrot.slane %v8299_v53, 1 }
 0xa08   : > { %v8294_v60 = vadd.f32 %v8293_v21, %v8292_v50 }
 0xa09   : > { %v8301_v29 = vadd.f32 %v8300_v15, %v8299_v53 }
 0xa0b   : > { %v8336_v45 = vpop.f32.mrb[64].mxu1 }
 0xa0c   : > { %v8343_v23 = vmul.f32 %v8336_v45, %v13693_v28  ;;  %v8338_v48 = vpop.f32.mrb[65].mxu1 }
 0xa0d   : > { %v8344_v22 = vmul.f32 %v8338_v48, %v13697_v56  ;;  %v8340_v20 = vpop.f32.mrb[66].mxu1 }
 0xa0e   : > { %v8345_v40 = vadd.f32 %v8343_v23, %v13701_v37  ;;  %v8341_v26 = vpop.f32.mrb[67].mxu1 }
 0xa0f   : > { %v8346_v30 = vadd.f32 %v8344_v22, %v13705_v51 }
 0xa10   : > { %v8347_v2 = vmax.f32 %v8345_v40, 0.0 }
 0xa11   : > { %v8348_v13 = vmax.f32 %v8346_v30, 0.0 }
 0xa12   : > { %v8349_v3 = vmin.f32 %v8347_v2, 6.0 }
 0xa13   : > { %v8350_v12 = vmin.f32 %v8348_v13, 6.0 }
 0xa14   : > { %v8351_v36 = vsel %vm8287_vm0, %v8349_v3, 0.0 }
 0xa15   : > { %v8352_v4 = vrot.slane %v8351_v36, 4  ;;  %v8358_v0 = vsel %vm8287_vm0, %v8350_v12, 0.0 }
 0xa16   : > { %v8359_v47 = vrot.slane %v8358_v0, 4 }
 0xa17   : > { %v8353_v57 = vadd.f32 %v8352_v4, %v8351_v36 }
 0xa18   : > { %v8360_v31 = vadd.f32 %v8359_v47, %v8358_v0 }
 0xa19   : > { %v8354_v19 = vrot.slane %v8353_v57, 2 }
 0xa1a   : > { %v8361_v54 = vrot.slane %v8360_v31, 2 }
 0xa1b   : > { %v8355_v32 = vadd.f32 %v8354_v19, %v8353_v57 }
 0xa1c   : > { %v8362_v63 = vadd.f32 %v8361_v54, %v8360_v31 }
 0xa1d   : > { %v8356_v34 = vrot.slane %v8355_v32, 1 }
 0xa1e   : > { %v8363_v39 = vrot.slane %v8362_v63, 1 }
 0xa1f   : > { %v8357_v27 = vadd.f32 %v8356_v34, %v8355_v32 }
 0xa20   : > { %v8364_v46 = vadd.f32 %v8363_v39, %v8362_v63 }
 0xa21   : > { %v8365_v5 = vadd.f32 %v8357_v27, %v8294_v60 }
 0xa22   : > { %v8366_v38 = vadd.f32 %v8364_v46, %v8301_v29  ;;  %v8533_v46 = vld [vmem:[#allocation20] sm:$0x1] }
 0xa34   : > { %v8401_v1 = vpop.f32.mrb[68].mxu0 }
 0xa35   : > { %v8408_v6 = vmul.f32 %v8401_v1, %v13693_v28  ;;  %v8403_v55 = vpop.f32.mrb[69].mxu0 }
 0xa36   : > { %v8409_v35 = vmul.f32 %v8403_v55, %v13697_v56  ;;  %v8405_v10 = vpop.f32.mrb[70].mxu0 }
 0xa37   : > { %v8410_v52 = vadd.f32 %v8408_v6, %v13701_v37  ;;  %v8406_v33 = vpop.f32.mrb[71].mxu0 }
 0xa38   : > { %v8411_v61 = vadd.f32 %v8409_v35, %v13705_v51 }
 0xa39   : > { %v8412_v14 = vmax.f32 %v8410_v52, 0.0 }
 0xa3a   : > { %v8413_v7 = vmax.f32 %v8411_v61, 0.0 }
 0xa3b   : > { %v8414_v62 = vmin.f32 %v8412_v14, 6.0 }
 0xa3c   : > { %v8415_v11 = vmin.f32 %v8413_v7, 6.0 }
 0xa3d   : > { %v8416_v41 = vsel %vm8287_vm0, %v8414_v62, 0.0 }
 0xa3e   : > { %v8417_v17 = vrot.slane %v8416_v41, 4  ;;  %v8423_v58 = vsel %vm8287_vm0, %v8415_v11, 0.0 }
 0xa3f   : > { %v8424_v16 = vrot.slane %v8423_v58, 4 }
 0xa40   : > { %v8418_v49 = vadd.f32 %v8417_v17, %v8416_v41 }
 0xa41   : > { %v8425_v44 = vadd.f32 %v8424_v16, %v8423_v58 }
 0xa42   : > { %v8419_v18 = vrot.slane %v8418_v49, 2 }
 0xa43   : > { %v8426_v25 = vrot.slane %v8425_v44, 2 }
 0xa44   : > { %v8420_v24 = vadd.f32 %v8419_v18, %v8418_v49 }
 0xa45   : > { %v8427_v45 = vadd.f32 %v8426_v25, %v8425_v44 }
 0xa46   : > { %v8421_v42 = vrot.slane %v8420_v24, 1 }
 0xa47   : > { %v8428_v23 = vrot.slane %v8427_v45, 1 }
 0xa48   : > { %v8422_v48 = vadd.f32 %v8421_v42, %v8420_v24 }
 0xa49   : > { %v8429_v22 = vadd.f32 %v8428_v23, %v8427_v45 }
 0xa4a   : > { %v8430_v40 = vadd.f32 %v8422_v48, %v8365_v5 }
 0xa4b   : > { %v8466_v20 = vpop.f32.mrb[68].mxu1  ;;  %v8431_v30 = vadd.f32 %v8429_v22, %v8366_v38 }
 0xa4c   : > { %v8473_v26 = vmul.f32 %v8466_v20, %v13693_v28  ;;  %v8468_v43 = vpop.f32.mrb[69].mxu1 }
 0xa4d   : > { %v8474_v8 = vmul.f32 %v8468_v43, %v13697_v56  ;;  %v8470_v2 = vpop.f32.mrb[70].mxu1 }
 0xa4e   : > { %v8475_v13 = vadd.f32 %v8473_v26, %v13701_v37  ;;  %v8471_v3 = vpop.f32.mrb[71].mxu1 }
 0xa4f   : > { %v8476_v59 = vadd.f32 %v8474_v8, %v13705_v51 }
 0xa50   : > { %v8477_v12 = vmax.f32 %v8475_v13, 0.0 }
 0xa51   : > { %v8478_v9 = vmax.f32 %v8476_v59, 0.0 }
 0xa52   : > { %v8479_v36 = vmin.f32 %v8477_v12, 6.0 }
 0xa53   : > { %v8480_v4 = vmin.f32 %v8478_v9, 6.0 }
 0xa54   : > { %v8481_v0 = vsel %vm8287_vm0, %v8479_v36, 0.0 }
 0xa55   : > { %v8482_v47 = vrot.slane %v8481_v0, 4  ;;  %v8488_v50 = vsel %vm8287_vm0, %v8480_v4, 0.0 }
 0xa56   : > { %v8489_v28 = vrot.slane %v8488_v50, 4 }
 0xa57   : > { %v8483_v57 = vadd.f32 %v8482_v47, %v8481_v0 }
 0xa58   : > { %v8490_v53 = vadd.f32 %v8489_v28, %v8488_v50 }
 0xa59   : > { %v8484_v31 = vrot.slane %v8483_v57, 2 }
 0xa5a   : > { %v8491_v56 = vrot.slane %v8490_v53, 2 }
 0xa5b   : > { %v8485_v19 = vadd.f32 %v8484_v31, %v8483_v57 }
 0xa5c   : > { %v8492_v37 = vadd.f32 %v8491_v56, %v8490_v53 }
 0xa5d   : > { %v8486_v54 = vrot.slane %v8485_v19, 1 }
 0xa5e   : > { %v8493_v51 = vrot.slane %v8492_v37, 1 }
 0xa5f   : > { %v8487_v21 = vadd.f32 %v8486_v54, %v8485_v19 }
 0xa60   : > { %v8494_v32 = vadd.f32 %v8493_v51, %v8492_v37 }
 0xa61   : > { %v8495_v15 = vadd.f32 %v8487_v21, %v8430_v40 }
 0xa62   : > { %v8496_v63 = vadd.f32 %v8494_v32, %v8431_v30 }
 0xa63   : > { %v8497_v34 = vmul.f32 0.0625, %v8495_v15 }
 0xa64   : > { %v8498_v39 = vmul.f32 0.0625, %v8496_v63 }
 0xa65   : > { %v8499_v27 = vpack.c.bf16 %v8497_v34, %v8497_v34 }
 0xa66   : > { %v8500_v60 = vpack.c.bf16 %v8498_v39, %v8498_v39 }
 0xa68   : > { %8662 = vmatprep.mubr.bf16.mxu0 %v8500_v60 }
 0xa69   : > { %8663 = vmatmul.mubr.bf16.vlgmr.msra.gmra.mrb[72].mxu0 %v8499_v27 }
 0xb3c   : > { %v9329_v29 = vpop.f32.mrb[72].mxu0 }
 0xb3d   : > { %v9330_v5 = vpop.f32.mrb[73].mxu0 }
 0xb3e   : > { %v9331_v38 = vadd.f32 %v9330_v5, %v9329_v29  ;;  %v9332_v1 = vpop.f32.mrb[74].mxu0 }
 0xb3f   : > { %v9333_v6 = vpop.f32.mrb[75].mxu0 }
 0xb40   : > { %v8665_v55 = vadd.f32 %v9331_v38, %v8533_v46 }
 0xb42   : > { %8670 = vst [vmem:[%s1514_s3] sm:$0x1] %v8665_v55 }
 0xb43   : > { %10126 = shalt.err (!%p10123_p0)
}
 0xb44   : > { %s10127_s3 = scalar_lea.hbm %s13732_s5, 16  ;;  %s10131_s28 = scalar_lea.hbm %s10499_s6, 32 }
 0xb45   : > { %p10128_p3 = scmp.ne.s32.totalorder %s13732_s5, %s10127_s3  ;;  %p10132_p5 = scmp.lt.u32.totalorder %s13732_s5, %s10499_s6 }
 0xb46   : > { %p10133_p6 = scmp.lt.u32.totalorder %s10131_s28, %s10127_s3  ;;  %p10135_p10 = scmp.lt.u32.totalorder %s10127_s3, %s13732_s5 }
 0xb47   : > { %p10129_p4 = pnand %p10128_p3, %p14173_p7 }
 0xb48   : > { %p10134_p9 = por %p10133_p6, %p10132_p5 }
 0xb49   : > { %p10130_p12 = pneg %p10129_p4 }
 0xb4a   : > { %p10136_p8 = por %p10135_p10, %p10134_p9 }
 0xb4c   : > { %p10137_p11 = pnand %p10136_p8, %p10130_p12 }
 0xb4e   : > { %10140 = shalt.err (!%p10137_p11)
}
 0xb4f   : > { %9539 = dma.vmem_to_hbm [thread:$0]  (%p14173_p7), %s13734_s4, 16, %s13732_s5, %s8672_s8  }
 0xb50 PF: > { %s14174_s9 = sld [smem:[#allocation65_spill]]  ;;  %s14175_s11 = sld [smem:[#allocation69_spill]] }
 0xb51   : > { %p9581_p13 = scmp.ge.s32.totalorder %s10191_s7, 2 }
 0xb56   : > { %s8696_s10 = sand.u32 1, %s14174_s9   ;;  %p14176_p1 = scmp.ne.s32.totalorder %s14175_s11, 0 }
 0xb57   : > { %s8697_s2 = scalar_lea.sflag [#allocation11], %s8696_s10 }
 0xb58   : > { %p9564_p2 = pnand %p9581_p13, %p14176_p1 }
 0xb5a   : > { %10174 = dma.done.wait (!%p9564_p2), %s8697_s2, 16  }
 0xb5b   : > { %10176 = vsyncadd (!%p9564_p2), %s8697_s2, 4294967280  ;;  %s14177_s7 = sld [smem:[#allocation67_spill]]  ;;  %s14178_s0 = sld [smem:[#allocation66_spill]] }
 0xb5c   : > { %s14179_s2 = sld [smem:[#allocation68_spill]]  ;;  %s14180_s28 = smov %s10183_s1 }
 0xb61   : > { %p111_p0 = scmp.ge.s32.totalorder %s14177_s7, 4   ;;  %s14181_s1 = smov %s14178_s0 }
 0xb63   :  { %113 = sbr.rel (!%p111_p0) target bundleno = 102 (0x66), region = 474 }
 0xb6a   :  { %8701 = vsyncpa [#allocation10], 1 }
 0xb6b   :  { %8703 = vsyncpa [#allocation10 + $0x1], 1 }
 0xb6c   :  { %8704 = vsyncpa [#allocation13], 1 }
 0xb6d   :  { %8705 = vsyncpa [#allocation16], 1 }
 0xb6e   :  { %8706 = vsyncpa [#allocation19], 1 }
 0xb6f   :  { %8707 = vsyncpa [#allocation11], 1 }
 0xb70   :  { %8709 = vsyncpa [#allocation11 + $0x1], 1 }

</bundles_post_ra>
